<compile_context>
chip_gen: v6e
topology: v6e:2x2x1
jax: 0.10.0
libtpu: 0.0.40
codegen_flags: <defaults>
</compile_context>

<pallas_src>
import math
import jax
import jax.numpy as jnp
from jax import lax
from jax.experimental import pallas as pl
from jax.experimental.pallas import tpu as pltpu

HIDDEN = 128
NUM_LAYERS = 2


# ------------------------- Pallas kernel -------------------------

def fused_rnn_kernel(x_ref, wih0_ref, whh0_ref, b0_ref,
                     wih1_ref, whh1_ref, b1_ref,
                     wout_ref, bout_ref,
                     out_ref, gx_scr, hseq_scr):
    """Whole forward pass: 2-layer LSTM over T steps + fused output Linear.

    x_ref:   (B*T, I)   rows are batch-major (row = b*T + t)
    wih*/whh*: (I or H, 4H) pre-transposed, PyTorch gate order [i, f, g, o]
    b*:      (1, 4H)    combined b_ih + b_hh
    wout/bout: (H, OP) / (1, OP) with OP padded up to a multiple of 128
    out_ref: (B, T, OP)
    gx_scr:  (B, T, 4H) hoisted layer-0 input projection
    hseq_scr:(B, T, H)  layer-1 hidden sequence
    """
    B, T, G = gx_scr.shape
    H = G // 4

    # ---- hoisted layer-0 input projection: one matmul for all timesteps ----
    gx = (jnp.dot(x_ref[...], wih0_ref[...], preferred_element_type=jnp.float32)
          + b0_ref[...])                              # (B*T, 4H)
    gx_scr[...] = gx.reshape(B, T, G)

    # Hoist layer-1 bias broadcast out of the unrolled loop.
    b1 = jnp.broadcast_to(b1_ref[...], (B, G))

    def cell(gates, c):
        i_g = jax.nn.sigmoid(gates[:, 0:H])
        f_g = jax.nn.sigmoid(gates[:, H:2 * H])
        g_g = jnp.tanh(gates[:, 2 * H:3 * H])
        o_g = jax.nn.sigmoid(gates[:, 3 * H:4 * H])
        c_new = f_g * c + i_g * g_g
        return o_g * jnp.tanh(c_new), c_new

    zero = jnp.zeros((B, H), jnp.float32)
    h0, c0, h1, c1 = zero, zero, zero, zero

    # Static unroll over time: the recurrence is inherently serial; only the
    # (B,H)x(H,4H) recurrent matmuls remain on the per-step critical path.
    for t in range(T):
        g0 = gx_scr[:, t, :] + jnp.dot(h0, whh0_ref[...],
                                       preferred_element_type=jnp.float32)
        h0, c0 = cell(g0, c0)

        g1 = (jnp.dot(h0, wih1_ref[...], preferred_element_type=jnp.float32)
              + jnp.dot(h1, whh1_ref[...], preferred_element_type=jnp.float32)
              + b1)
        h1, c1 = cell(g1, c1)
        hseq_scr[:, t, :] = h1

    # ---- fused output Linear: one batched matmul, lane-dense 128-wide out ----
    hs = hseq_scr[...].reshape(B * T, H)
    y = (jnp.dot(hs, wout_ref[...], preferred_element_type=jnp.float32)
         + bout_ref[...])                             # (B*T, OP)
    out_ref[...] = y.reshape(B, T, -1)


# ------------------------- wrapper -------------------------

def rnn_forward(x, params):
    """x: (B, T, INPUT_SIZE) batch_first (matches the PyTorch module).
    Returns (out (B, O), out_trace (B, T, O))."""
    B, T, I = x.shape
    H = HIDDEN
    p0, p1, po = params["layer0"], params["layer1"], params["out"]
    O = po["w_t"].shape[1]          # true output size
    OP = po["w_t_pad"].shape[1]     # lane-padded output size (multiple of 128)

    # Free row-major collapse (no transpose): row = b*T + t.
    x2 = x.astype(jnp.float32).reshape(B * T, I)

    out_pad = pl.pallas_call(
        fused_rnn_kernel,
        out_shape=jax.ShapeDtypeStruct((B, T, OP), jnp.float32),
        in_specs=[
            pl.BlockSpec((B * T, I), lambda: (0, 0)),
            pl.BlockSpec((I, 4 * H), lambda: (0, 0)),
            pl.BlockSpec((H, 4 * H), lambda: (0, 0)),
            pl.BlockSpec((1, 4 * H), lambda: (0, 0)),
            pl.BlockSpec((H, 4 * H), lambda: (0, 0)),
            pl.BlockSpec((H, 4 * H), lambda: (0, 0)),
            pl.BlockSpec((1, 4 * H), lambda: (0, 0)),
            pl.BlockSpec((H, OP), lambda: (0, 0)),
            pl.BlockSpec((1, OP), lambda: (0, 0)),
        ],
        out_specs=pl.BlockSpec((B, T, OP), lambda: (0, 0, 0)),
        scratch_shapes=[
            pltpu.VMEM((B, T, 4 * H), jnp.float32),   # hoisted input projection
            pltpu.VMEM((B, T, H), jnp.float32),       # layer-1 hidden sequence
        ],
    )(x2, p0["w_ih_t"], p0["w_hh_t"], p0["b"],
      p1["w_ih_t"], p1["w_hh_t"], p1["b"],
      po["w_t_pad"], po["b_pad"])

    out_trace = out_pad[:, :, :O]          # drop lane padding
    out = out_trace[:, -1, :]              # Linear(r_out[:, -1, :]) == last step
    return out, out_trace


# ------------------------- parameter init (deterministic) -------------------------

def init_params(key, input_size, output_size):
    k = 1.0 / math.sqrt(HIDDEN)
    params = {}
    for l in range(NUM_LAYERS):
        in_sz = input_size if l == 0 else HIDDEN
        key, k1, k2, k3, k4 = jax.random.split(key, 5)
        w_ih = jax.random.uniform(k1, (4 * HIDDEN, in_sz), jnp.float32, -k, k)
        w_hh = jax.random.uniform(k2, (4 * HIDDEN, HIDDEN), jnp.float32, -k, k)
        b_ih = jax.random.uniform(k3, (4 * HIDDEN,), jnp.float32, -k, k)
        b_hh = jax.random.uniform(k4, (4 * HIDDEN,), jnp.float32, -k, k)
        params[f"layer{l}"] = {
            "w_ih_t": w_ih.T,                        # (in_sz, 4H)
            "w_hh_t": w_hh.T,                        # (H, 4H)
            "b": (b_ih + b_hh)[None, :],             # (1, 4H)
        }
    key, k1, k2 = jax.random.split(key, 3)
    w_out = jax.random.uniform(k1, (output_size, HIDDEN), jnp.float32, -k, k)
    b_out = jax.random.uniform(k2, (output_size,), jnp.float32, -k, k)
    w_t = w_out.T                                    # (H, O)
    b_row = b_out[None, :]                           # (1, O)
    op = ((output_size + 127) // 128) * 128          # lane-pad to multiple of 128
    pad = op - output_size
    params["out"] = {
        "w_t": w_t,
        "b": b_row,
        "w_t_pad": jnp.pad(w_t, ((0, 0), (0, pad))),
        "b_pad": jnp.pad(b_row, ((0, 0), (0, pad))),
    }
    return params


# ------------------------- pure-JAX reference (for verification) -------------------------

def rnn_reference(x, params):
    h_seq = jnp.transpose(x, (1, 0, 2)).astype(jnp.float32)  # (T, B, I)
    B = x.shape[0]
    for l in range(NUM_LAYERS):
        p = params[f"layer{l}"]

        def step(carry, x_t):
            h, c = carry
            g = x_t @ p["w_ih_t"] + h @ p["w_hh_t"] + p["b"]
            i = jax.nn.sigmoid(g[:, 0:HIDDEN])
            f = jax.nn.sigmoid(g[:, HIDDEN:2 * HIDDEN])
            gg = jnp.tanh(g[:, 2 * HIDDEN:3 * HIDDEN])
            o = jax.nn.sigmoid(g[:, 3 * HIDDEN:4 * HIDDEN])
            c = f * c + i * gg
            h = o * jnp.tanh(c)
            return (h, c), h

        init = (jnp.zeros((B, HIDDEN), jnp.float32), jnp.zeros((B, HIDDEN), jnp.float32))
        _, h_seq = lax.scan(step, init, h_seq)
    r_out = jnp.transpose(h_seq, (1, 0, 2))
    out_trace = r_out @ params["out"]["w_t"] + params["out"]["b"]
    return out_trace[:, -1, :], out_trace


# ------------------------- main -------------------------

if __name__ == "__main__":
    INPUT_SIZE, OUTPUT_SIZE = 16, 10
    B, T = 2, 8

    key = jax.random.PRNGKey(0)
    kp, kx = jax.random.split(key)
    params = init_params(kp, INPUT_SIZE, OUTPUT_SIZE)
    x = jax.random.normal(kx, (B, T, INPUT_SIZE), jnp.float32)

    out, out_trace = jax.jit(rnn_forward)(x, params)
    jax.block_until_ready((out, out_trace))

    ref_out, ref_trace = rnn_reference(x, params)
    assert out.shape == (B, OUTPUT_SIZE)
    assert out_trace.shape == (B, T, OUTPUT_SIZE)
    assert jnp.allclose(out, ref_out, atol=1e-4, rtol=1e-4)
    assert jnp.allclose(out_trace, ref_trace, atol=1e-4, rtol=1e-4)

    print("KERNEL_OK")
</pallas_src>

<mosaic_0001>
module attributes {stable_mosaic.version = 11 : i64} {
  func.func @fused_rnn_kernel(%arg0: memref<16x16xf32, #tpu.memory_space<vmem>>, %arg1: memref<16x512xf32, #tpu.memory_space<vmem>>, %arg2: memref<128x512xf32, #tpu.memory_space<vmem>>, %arg3: memref<1x512xf32, #tpu.memory_space<vmem>>, %arg4: memref<128x512xf32, #tpu.memory_space<vmem>>, %arg5: memref<128x512xf32, #tpu.memory_space<vmem>>, %arg6: memref<1x512xf32, #tpu.memory_space<vmem>>, %arg7: memref<128x128xf32, #tpu.memory_space<vmem>>, %arg8: memref<1x128xf32, #tpu.memory_space<vmem>>, %arg9: memref<2x8x128xf32, #tpu.memory_space<vmem>>, %arg10: memref<2x8x512xf32, #tpu.memory_space<vmem>>, %arg11: memref<2x8x128xf32, #tpu.memory_space<vmem>>) attributes {dimension_semantics = [], scalar_prefetch = 0 : i64, scratch_operands = 2 : i64, tpu.core_type = #tpu.core_type<tc>} {
    %c0 = arith.constant 0 : index
    %c0_0 = arith.constant 0 : index
    %0 = vector.load %arg0[%c0, %c0_0] : memref<16x16xf32, #tpu.memory_space<vmem>>, vector<16x16xf32>
    %c0_1 = arith.constant 0 : index
    %c0_2 = arith.constant 0 : index
    %1 = vector.load %arg1[%c0_1, %c0_2] : memref<16x512xf32, #tpu.memory_space<vmem>>, vector<16x512xf32>
    %cst = arith.constant dense<0.000000e+00> : vector<16x512xf32>
    %2 = tpu.matmul %0, %1, %cst {dimension_numbers = #tpu.dot_dimension_numbers<[1], [0], [0], [1], [0, 0, 1, 1], [], []>} : vector<16x16xf32>, vector<16x512xf32>, vector<16x512xf32> -> vector<16x512xf32>
    %c0_3 = arith.constant 0 : index
    %c0_4 = arith.constant 0 : index
    %3 = vector.load %arg3[%c0_3, %c0_4] : memref<1x512xf32, #tpu.memory_space<vmem>>, vector<1x512xf32>
    %4 = vector.broadcast %3 : vector<1x512xf32> to vector<16x512xf32>
    %5 = arith.addf %2, %4 : vector<16x512xf32>
    %6 = vector.shape_cast %5 : vector<16x512xf32> to vector<2x8x512xf32>
    %c0_5 = arith.constant 0 : index
    %c0_6 = arith.constant 0 : index
    %c0_7 = arith.constant 0 : index
    %7 = vector.load %arg10[%c0_5, %c0_6, %c0_7] : memref<2x8x512xf32, #tpu.memory_space<vmem>>, vector<2x8x512xf32>
    tpu.vector_store %arg10[%c0_5, %c0_6, %c0_7], %6 {strides = array<i32>} : memref<2x8x512xf32, #tpu.memory_space<vmem>>, vector<2x8x512xf32>,
    %c0_8 = arith.constant 0 : index
    %c0_9 = arith.constant 0 : index
    %8 = vector.load %arg6[%c0_8, %c0_9] : memref<1x512xf32, #tpu.memory_space<vmem>>, vector<1x512xf32>
    %9 = vector.shape_cast %8 : vector<1x512xf32> to vector<1x512xf32>
    %10 = vector.broadcast %9 : vector<1x512xf32> to vector<2x512xf32>
    %cst_10 = arith.constant 0.000000e+00 : f32
    %11 = vector.broadcast %cst_10 : f32 to vector<2x128xf32>
    %c0_11 = arith.constant 0 : index
    %c0_12 = arith.constant 0 : index
    %c0_13 = arith.constant 0 : index
    %12 = vector.load %arg10[%c0_11, %c0_12, %c0_13] : memref<2x8x512xf32, #tpu.memory_space<vmem>>, vector<2x1x512xf32>
    %13 = vector.shape_cast %12 : vector<2x1x512xf32> to vector<2x512xf32>
    %c0_14 = arith.constant 0 : index
    %c0_15 = arith.constant 0 : index
    %14 = vector.load %arg2[%c0_14, %c0_15] : memref<128x512xf32, #tpu.memory_space<vmem>>, vector<128x512xf32>
    %cst_16 = arith.constant dense<0.000000e+00> : vector<2x512xf32>
    %15 = tpu.matmul %11, %14, %cst_16 {dimension_numbers = #tpu.dot_dimension_numbers<[1], [0], [0], [1], [0, 0, 1, 1], [], []>} : vector<2x128xf32>, vector<128x512xf32>, vector<2x512xf32> -> vector<2x512xf32>
    %16 = arith.addf %13, %15 : vector<2x512xf32>
    %17 = vector.extract_strided_slice %16 {offsets = [0, 0], sizes = [2, 128], strides = [1, 1]} : vector<2x512xf32> to vector<2x128xf32>
    %18 = arith.negf %17 : vector<2x128xf32>
    %19 = math.exp %18 : vector<2x128xf32>
    %cst_17 = arith.constant 1.000000e+00 : f32
    %20 = vector.broadcast %cst_17 : f32 to vector<2x128xf32>
    %21 = arith.addf %20, %19 : vector<2x128xf32>
    %22 = arith.divf %20, %21 : vector<2x128xf32>
    %23 = vector.extract_strided_slice %16 {offsets = [0, 128], sizes = [2, 128], strides = [1, 1]} : vector<2x512xf32> to vector<2x128xf32>
    %24 = arith.negf %23 : vector<2x128xf32>
    %25 = math.exp %24 : vector<2x128xf32>
    %cst_18 = arith.constant 1.000000e+00 : f32
    %26 = vector.broadcast %cst_18 : f32 to vector<2x128xf32>
    %27 = arith.addf %26, %25 : vector<2x128xf32>
    %28 = arith.divf %26, %27 : vector<2x128xf32>
    %29 = vector.extract_strided_slice %16 {offsets = [0, 256], sizes = [2, 128], strides = [1, 1]} : vector<2x512xf32> to vector<2x128xf32>
    %30 = math.tanh %29 : vector<2x128xf32>
    %31 = vector.extract_strided_slice %16 {offsets = [0, 384], sizes = [2, 128], strides = [1, 1]} : vector<2x512xf32> to vector<2x128xf32>
    %32 = arith.negf %31 : vector<2x128xf32>
    %33 = math.exp %32 : vector<2x128xf32>
    %cst_19 = arith.constant 1.000000e+00 : f32
    %34 = vector.broadcast %cst_19 : f32 to vector<2x128xf32>
    %35 = arith.addf %34, %33 : vector<2x128xf32>
    %36 = arith.divf %34, %35 : vector<2x128xf32>
    %37 = arith.mulf %28, %11 : vector<2x128xf32>
    %38 = arith.mulf %22, %30 : vector<2x128xf32>
    %39 = arith.addf %37, %38 : vector<2x128xf32>
    %40 = math.tanh %39 : vector<2x128xf32>
    %41 = arith.mulf %36, %40 : vector<2x128xf32>
    %c0_20 = arith.constant 0 : index
    %c0_21 = arith.constant 0 : index
    %42 = vector.load %arg4[%c0_20, %c0_21] : memref<128x512xf32, #tpu.memory_space<vmem>>, vector<128x512xf32>
    %cst_22 = arith.constant dense<0.000000e+00> : vector<2x512xf32>
    %43 = tpu.matmul %41, %42, %cst_22 {dimension_numbers = #tpu.dot_dimension_numbers<[1], [0], [0], [1], [0, 0, 1, 1], [], []>} : vector<2x128xf32>, vector<128x512xf32>, vector<2x512xf32> -> vector<2x512xf32>
    %c0_23 = arith.constant 0 : index
    %c0_24 = arith.constant 0 : index
    %44 = vector.load %arg5[%c0_23, %c0_24] : memref<128x512xf32, #tpu.memory_space<vmem>>, vector<128x512xf32>
    %cst_25 = arith.constant dense<0.000000e+00> : vector<2x512xf32>
    %45 = tpu.matmul %11, %44, %cst_25 {dimension_numbers = #tpu.dot_dimension_numbers<[1], [0], [0], [1], [0, 0, 1, 1], [], []>} : vector<2x128xf32>, vector<128x512xf32>, vector<2x512xf32> -> vector<2x512xf32>
    %46 = arith.addf %43, %45 : vector<2x512xf32>
    %47 = arith.addf %46, %10 : vector<2x512xf32>
    %48 = vector.extract_strided_slice %47 {offsets = [0, 0], sizes = [2, 128], strides = [1, 1]} : vector<2x512xf32> to vector<2x128xf32>
    %49 = arith.negf %48 : vector<2x128xf32>
    %50 = math.exp %49 : vector<2x128xf32>
    %cst_26 = arith.constant 1.000000e+00 : f32
    %51 = vector.broadcast %cst_26 : f32 to vector<2x128xf32>
    %52 = arith.addf %51, %50 : vector<2x128xf32>
    %53 = arith.divf %51, %52 : vector<2x128xf32>
    %54 = vector.extract_strided_slice %47 {offsets = [0, 128], sizes = [2, 128], strides = [1, 1]} : vector<2x512xf32> to vector<2x128xf32>
    %55 = arith.negf %54 : vector<2x128xf32>
    %56 = math.exp %55 : vector<2x128xf32>
    %cst_27 = arith.constant 1.000000e+00 : f32
    %57 = vector.broadcast %cst_27 : f32 to vector<2x128xf32>
    %58 = arith.addf %57, %56 : vector<2x128xf32>
    %59 = arith.divf %57, %58 : vector<2x128xf32>
    %60 = vector.extract_strided_slice %47 {offsets = [0, 256], sizes = [2, 128], strides = [1, 1]} : vector<2x512xf32> to vector<2x128xf32>
    %61 = math.tanh %60 : vector<2x128xf32>
    %62 = vector.extract_strided_slice %47 {offsets = [0, 384], sizes = [2, 128], strides = [1, 1]} : vector<2x512xf32> to vector<2x128xf32>
    %63 = arith.negf %62 : vector<2x128xf32>
    %64 = math.exp %63 : vector<2x128xf32>
    %cst_28 = arith.constant 1.000000e+00 : f32
    %65 = vector.broadcast %cst_28 : f32 to vector<2x128xf32>
    %66 = arith.addf %65, %64 : vector<2x128xf32>
    %67 = arith.divf %65, %66 : vector<2x128xf32>
    %68 = arith.mulf %59, %11 : vector<2x128xf32>
    %69 = arith.mulf %53, %61 : vector<2x128xf32>
    %70 = arith.addf %68, %69 : vector<2x128xf32>
    %71 = math.tanh %70 : vector<2x128xf32>
    %72 = arith.mulf %67, %71 : vector<2x128xf32>
    %c0_29 = arith.constant 0 : index
    %c0_30 = arith.constant 0 : index
    %c0_31 = arith.constant 0 : index
    %73 = vector.load %arg11[%c0_29, %c0_30, %c0_31] : memref<2x8x128xf32, #tpu.memory_space<vmem>>, vector<2x1x128xf32>
    %74 = vector.shape_cast %73 : vector<2x1x128xf32> to vector<2x128xf32>
    %75 = vector.shape_cast %72 : vector<2x128xf32> to vector<2x1x128xf32>
    tpu.vector_store %arg11[%c0_29, %c0_30, %c0_31], %75 {strides = array<i32>} : memref<2x8x128xf32, #tpu.memory_space<vmem>>, vector<2x1x128xf32>,
    %c0_32 = arith.constant 0 : index
    %c1 = arith.constant 1 : index
    %c0_33 = arith.constant 0 : index
    %76 = vector.load %arg10[%c0_32, %c1, %c0_33] : memref<2x8x512xf32, #tpu.memory_space<vmem>>, vector<2x1x512xf32>
    %77 = vector.shape_cast %76 : vector<2x1x512xf32> to vector<2x512xf32>
    %c0_34 = arith.constant 0 : index
    %c0_35 = arith.constant 0 : index
    %78 = vector.load %arg2[%c0_34, %c0_35] : memref<128x512xf32, #tpu.memory_space<vmem>>, vector<128x512xf32>
    %cst_36 = arith.constant dense<0.000000e+00> : vector<2x512xf32>
    %79 = tpu.matmul %41, %78, %cst_36 {dimension_numbers = #tpu.dot_dimension_numbers<[1], [0], [0], [1], [0, 0, 1, 1], [], []>} : vector<2x128xf32>, vector<128x512xf32>, vector<2x512xf32> -> vector<2x512xf32>
    %80 = arith.addf %77, %79 : vector<2x512xf32>
    %81 = vector.extract_strided_slice %80 {offsets = [0, 0], sizes = [2, 128], strides = [1, 1]} : vector<2x512xf32> to vector<2x128xf32>
    %82 = arith.negf %81 : vector<2x128xf32>
    %83 = math.exp %82 : vector<2x128xf32>
    %cst_37 = arith.constant 1.000000e+00 : f32
    %84 = vector.broadcast %cst_37 : f32 to vector<2x128xf32>
    %85 = arith.addf %84, %83 : vector<2x128xf32>
    %86 = arith.divf %84, %85 : vector<2x128xf32>
    %87 = vector.extract_strided_slice %80 {offsets = [0, 128], sizes = [2, 128], strides = [1, 1]} : vector<2x512xf32> to vector<2x128xf32>
    %88 = arith.negf %87 : vector<2x128xf32>
    %89 = math.exp %88 : vector<2x128xf32>
    %cst_38 = arith.constant 1.000000e+00 : f32
    %90 = vector.broadcast %cst_38 : f32 to vector<2x128xf32>
    %91 = arith.addf %90, %89 : vector<2x128xf32>
    %92 = arith.divf %90, %91 : vector<2x128xf32>
    %93 = vector.extract_strided_slice %80 {offsets = [0, 256], sizes = [2, 128], strides = [1, 1]} : vector<2x512xf32> to vector<2x128xf32>
    %94 = math.tanh %93 : vector<2x128xf32>
    %95 = vector.extract_strided_slice %80 {offsets = [0, 384], sizes = [2, 128], strides = [1, 1]} : vector<2x512xf32> to vector<2x128xf32>
    %96 = arith.negf %95 : vector<2x128xf32>
    %97 = math.exp %96 : vector<2x128xf32>
    %cst_39 = arith.constant 1.000000e+00 : f32
    %98 = vector.broadcast %cst_39 : f32 to vector<2x128xf32>
    %99 = arith.addf %98, %97 : vector<2x128xf32>
    %100 = arith.divf %98, %99 : vector<2x128xf32>
    %101 = arith.mulf %92, %39 : vector<2x128xf32>
    %102 = arith.mulf %86, %94 : vector<2x128xf32>
    %103 = arith.addf %101, %102 : vector<2x128xf32>
    %104 = math.tanh %103 : vector<2x128xf32>
    %105 = arith.mulf %100, %104 : vector<2x128xf32>
    %c0_40 = arith.constant 0 : index
    %c0_41 = arith.constant 0 : index
    %106 = vector.load %arg4[%c0_40, %c0_41] : memref<128x512xf32, #tpu.memory_space<vmem>>, vector<128x512xf32>
    %cst_42 = arith.constant dense<0.000000e+00> : vector<2x512xf32>
    %107 = tpu.matmul %105, %106, %cst_42 {dimension_numbers = #tpu.dot_dimension_numbers<[1], [0], [0], [1], [0, 0, 1, 1], [], []>} : vector<2x128xf32>, vector<128x512xf32>, vector<2x512xf32> -> vector<2x512xf32>
    %c0_43 = arith.constant 0 : index
    %c0_44 = arith.constant 0 : index
    %108 = vector.load %arg5[%c0_43, %c0_44] : memref<128x512xf32, #tpu.memory_space<vmem>>, vector<128x512xf32>
    %cst_45 = arith.constant dense<0.000000e+00> : vector<2x512xf32>
    %109 = tpu.matmul %72, %108, %cst_45 {dimension_numbers = #tpu.dot_dimension_numbers<[1], [0], [0], [1], [0, 0, 1, 1], [], []>} : vector<2x128xf32>, vector<128x512xf32>, vector<2x512xf32> -> vector<2x512xf32>
    %110 = arith.addf %107, %109 : vector<2x512xf32>
    %111 = arith.addf %110, %10 : vector<2x512xf32>
    %112 = vector.extract_strided_slice %111 {offsets = [0, 0], sizes = [2, 128], strides = [1, 1]} : vector<2x512xf32> to vector<2x128xf32>
    %113 = arith.negf %112 : vector<2x128xf32>
    %114 = math.exp %113 : vector<2x128xf32>
    %cst_46 = arith.constant 1.000000e+00 : f32
    %115 = vector.broadcast %cst_46 : f32 to vector<2x128xf32>
    %116 = arith.addf %115, %114 : vector<2x128xf32>
    %117 = arith.divf %115, %116 : vector<2x128xf32>
    %118 = vector.extract_strided_slice %111 {offsets = [0, 128], sizes = [2, 128], strides = [1, 1]} : vector<2x512xf32> to vector<2x128xf32>
    %119 = arith.negf %118 : vector<2x128xf32>
    %120 = math.exp %119 : vector<2x128xf32>
    %cst_47 = arith.constant 1.000000e+00 : f32
    %121 = vector.broadcast %cst_47 : f32 to vector<2x128xf32>
    %122 = arith.addf %121, %120 : vector<2x128xf32>
    %123 = arith.divf %121, %122 : vector<2x128xf32>
    %124 = vector.extract_strided_slice %111 {offsets = [0, 256], sizes = [2, 128], strides = [1, 1]} : vector<2x512xf32> to vector<2x128xf32>
    %125 = math.tanh %124 : vector<2x128xf32>
    %126 = vector.extract_strided_slice %111 {offsets = [0, 384], sizes = [2, 128], strides = [1, 1]} : vector<2x512xf32> to vector<2x128xf32>
    %127 = arith.negf %126 : vector<2x128xf32>
    %128 = math.exp %127 : vector<2x128xf32>
    %cst_48 = arith.constant 1.000000e+00 : f32
    %129 = vector.broadcast %cst_48 : f32 to vector<2x128xf32>
    %130 = arith.addf %129, %128 : vector<2x128xf32>
    %131 = arith.divf %129, %130 : vector<2x128xf32>
    %132 = arith.mulf %123, %70 : vector<2x128xf32>
    %133 = arith.mulf %117, %125 : vector<2x128xf32>
    %134 = arith.addf %132, %133 : vector<2x128xf32>
    %135 = math.tanh %134 : vector<2x128xf32>
    %136 = arith.mulf %131, %135 : vector<2x128xf32>
    %c0_49 = arith.constant 0 : index
    %c1_50 = arith.constant 1 : index
    %c0_51 = arith.constant 0 : index
    %137 = vector.load %arg11[%c0_49, %c1_50, %c0_51] : memref<2x8x128xf32, #tpu.memory_space<vmem>>, vector<2x1x128xf32>
    %138 = vector.shape_cast %137 : vector<2x1x128xf32> to vector<2x128xf32>
    %139 = vector.shape_cast %136 : vector<2x128xf32> to vector<2x1x128xf32>
    tpu.vector_store %arg11[%c0_49, %c1_50, %c0_51], %139 {strides = array<i32>} : memref<2x8x128xf32, #tpu.memory_space<vmem>>, vector<2x1x128xf32>,
    %c0_52 = arith.constant 0 : index
    %c2 = arith.constant 2 : index
    %c0_53 = arith.constant 0 : index
    %140 = vector.load %arg10[%c0_52, %c2, %c0_53] : memref<2x8x512xf32, #tpu.memory_space<vmem>>, vector<2x1x512xf32>
    %141 = vector.shape_cast %140 : vector<2x1x512xf32> to vector<2x512xf32>
    %c0_54 = arith.constant 0 : index
    %c0_55 = arith.constant 0 : index
    %142 = vector.load %arg2[%c0_54, %c0_55] : memref<128x512xf32, #tpu.memory_space<vmem>>, vector<128x512xf32>
    %cst_56 = arith.constant dense<0.000000e+00> : vector<2x512xf32>
    %143 = tpu.matmul %105, %142, %cst_56 {dimension_numbers = #tpu.dot_dimension_numbers<[1], [0], [0], [1], [0, 0, 1, 1], [], []>} : vector<2x128xf32>, vector<128x512xf32>, vector<2x512xf32> -> vector<2x512xf32>
    %144 = arith.addf %141, %143 : vector<2x512xf32>
    %145 = vector.extract_strided_slice %144 {offsets = [0, 0], sizes = [2, 128], strides = [1, 1]} : vector<2x512xf32> to vector<2x128xf32>
    %146 = arith.negf %145 : vector<2x128xf32>
    %147 = math.exp %146 : vector<2x128xf32>
    %cst_57 = arith.constant 1.000000e+00 : f32
    %148 = vector.broadcast %cst_57 : f32 to vector<2x128xf32>
    %149 = arith.addf %148, %147 : vector<2x128xf32>
    %150 = arith.divf %148, %149 : vector<2x128xf32>
    %151 = vector.extract_strided_slice %144 {offsets = [0, 128], sizes = [2, 128], strides = [1, 1]} : vector<2x512xf32> to vector<2x128xf32>
    %152 = arith.negf %151 : vector<2x128xf32>
    %153 = math.exp %152 : vector<2x128xf32>
    %cst_58 = arith.constant 1.000000e+00 : f32
    %154 = vector.broadcast %cst_58 : f32 to vector<2x128xf32>
    %155 = arith.addf %154, %153 : vector<2x128xf32>
    %156 = arith.divf %154, %155 : vector<2x128xf32>
    %157 = vector.extract_strided_slice %144 {offsets = [0, 256], sizes = [2, 128], strides = [1, 1]} : vector<2x512xf32> to vector<2x128xf32>
    %158 = math.tanh %157 : vector<2x128xf32>
    %159 = vector.extract_strided_slice %144 {offsets = [0, 384], sizes = [2, 128], strides = [1, 1]} : vector<2x512xf32> to vector<2x128xf32>
    %160 = arith.negf %159 : vector<2x128xf32>
    %161 = math.exp %160 : vector<2x128xf32>
    %cst_59 = arith.constant 1.000000e+00 : f32
    %162 = vector.broadcast %cst_59 : f32 to vector<2x128xf32>
    %163 = arith.addf %162, %161 : vector<2x128xf32>
    %164 = arith.divf %162, %163 : vector<2x128xf32>
    %165 = arith.mulf %156, %103 : vector<2x128xf32>
    %166 = arith.mulf %150, %158 : vector<2x128xf32>
    %167 = arith.addf %165, %166 : vector<2x128xf32>
    %168 = math.tanh %167 : vector<2x128xf32>
    %169 = arith.mulf %164, %168 : vector<2x128xf32>
    %c0_60 = arith.constant 0 : index
    %c0_61 = arith.constant 0 : index
    %170 = vector.load %arg4[%c0_60, %c0_61] : memref<128x512xf32, #tpu.memory_space<vmem>>, vector<128x512xf32>
    %cst_62 = arith.constant dense<0.000000e+00> : vector<2x512xf32>
    %171 = tpu.matmul %169, %170, %cst_62 {dimension_numbers = #tpu.dot_dimension_numbers<[1], [0], [0], [1], [0, 0, 1, 1], [], []>} : vector<2x128xf32>, vector<128x512xf32>, vector<2x512xf32> -> vector<2x512xf32>
    %c0_63 = arith.constant 0 : index
    %c0_64 = arith.constant 0 : index
    %172 = vector.load %arg5[%c0_63, %c0_64] : memref<128x512xf32, #tpu.memory_space<vmem>>, vector<128x512xf32>
    %cst_65 = arith.constant dense<0.000000e+00> : vector<2x512xf32>
    %173 = tpu.matmul %136, %172, %cst_65 {dimension_numbers = #tpu.dot_dimension_numbers<[1], [0], [0], [1], [0, 0, 1, 1], [], []>} : vector<2x128xf32>, vector<128x512xf32>, vector<2x512xf32> -> vector<2x512xf32>
    %174 = arith.addf %171, %173 : vector<2x512xf32>
    %175 = arith.addf %174, %10 : vector<2x512xf32>
    %176 = vector.extract_strided_slice %175 {offsets = [0, 0], sizes = [2, 128], strides = [1, 1]} : vector<2x512xf32> to vector<2x128xf32>
    %177 = arith.negf %176 : vector<2x128xf32>
    %178 = math.exp %177 : vector<2x128xf32>
    %cst_66 = arith.constant 1.000000e+00 : f32
    %179 = vector.broadcast %cst_66 : f32 to vector<2x128xf32>
    %180 = arith.addf %179, %178 : vector<2x128xf32>
    %181 = arith.divf %179, %180 : vector<2x128xf32>
    %182 = vector.extract_strided_slice %175 {offsets = [0, 128], sizes = [2, 128], strides = [1, 1]} : vector<2x512xf32> to vector<2x128xf32>
    %183 = arith.negf %182 : vector<2x128xf32>
    %184 = math.exp %183 : vector<2x128xf32>
    %cst_67 = arith.constant 1.000000e+00 : f32
    %185 = vector.broadcast %cst_67 : f32 to vector<2x128xf32>
    %186 = arith.addf %185, %184 : vector<2x128xf32>
    %187 = arith.divf %185, %186 : vector<2x128xf32>
    %188 = vector.extract_strided_slice %175 {offsets = [0, 256], sizes = [2, 128], strides = [1, 1]} : vector<2x512xf32> to vector<2x128xf32>
    %189 = math.tanh %188 : vector<2x128xf32>
    %190 = vector.extract_strided_slice %175 {offsets = [0, 384], sizes = [2, 128], strides = [1, 1]} : vector<2x512xf32> to vector<2x128xf32>
    %191 = arith.negf %190 : vector<2x128xf32>
    %192 = math.exp %191 : vector<2x128xf32>
    %cst_68 = arith.constant 1.000000e+00 : f32
    %193 = vector.broadcast %cst_68 : f32 to vector<2x128xf32>
    %194 = arith.addf %193, %192 : vector<2x128xf32>
    %195 = arith.divf %193, %194 : vector<2x128xf32>
    %196 = arith.mulf %187, %134 : vector<2x128xf32>
    %197 = arith.mulf %181, %189 : vector<2x128xf32>
    %198 = arith.addf %196, %197 : vector<2x128xf32>
    %199 = math.tanh %198 : vector<2x128xf32>
    %200 = arith.mulf %195, %199 : vector<2x128xf32>
    %c0_69 = arith.constant 0 : index
    %c2_70 = arith.constant 2 : index
    %c0_71 = arith.constant 0 : index
    %201 = vector.load %arg11[%c0_69, %c2_70, %c0_71] : memref<2x8x128xf32, #tpu.memory_space<vmem>>, vector<2x1x128xf32>
    %202 = vector.shape_cast %201 : vector<2x1x128xf32> to vector<2x128xf32>
    %203 = vector.shape_cast %200 : vector<2x128xf32> to vector<2x1x128xf32>
    tpu.vector_store %arg11[%c0_69, %c2_70, %c0_71], %203 {strides = array<i32>} : memref<2x8x128xf32, #tpu.memory_space<vmem>>, vector<2x1x128xf32>,
    %c0_72 = arith.constant 0 : index
    %c3 = arith.constant 3 : index
    %c0_73 = arith.constant 0 : index
    %204 = vector.load %arg10[%c0_72, %c3, %c0_73] : memref<2x8x512xf32, #tpu.memory_space<vmem>>, vector<2x1x512xf32>
    %205 = vector.shape_cast %204 : vector<2x1x512xf32> to vector<2x512xf32>
    %c0_74 = arith.constant 0 : index
    %c0_75 = arith.constant 0 : index
    %206 = vector.load %arg2[%c0_74, %c0_75] : memref<128x512xf32, #tpu.memory_space<vmem>>, vector<128x512xf32>
    %cst_76 = arith.constant dense<0.000000e+00> : vector<2x512xf32>
    %207 = tpu.matmul %169, %206, %cst_76 {dimension_numbers = #tpu.dot_dimension_numbers<[1], [0], [0], [1], [0, 0, 1, 1], [], []>} : vector<2x128xf32>, vector<128x512xf32>, vector<2x512xf32> -> vector<2x512xf32>
    %208 = arith.addf %205, %207 : vector<2x512xf32>
    %209 = vector.extract_strided_slice %208 {offsets = [0, 0], sizes = [2, 128], strides = [1, 1]} : vector<2x512xf32> to vector<2x128xf32>
    %210 = arith.negf %209 : vector<2x128xf32>
    %211 = math.exp %210 : vector<2x128xf32>
    %cst_77 = arith.constant 1.000000e+00 : f32
    %212 = vector.broadcast %cst_77 : f32 to vector<2x128xf32>
    %213 = arith.addf %212, %211 : vector<2x128xf32>
    %214 = arith.divf %212, %213 : vector<2x128xf32>
    %215 = vector.extract_strided_slice %208 {offsets = [0, 128], sizes = [2, 128], strides = [1, 1]} : vector<2x512xf32> to vector<2x128xf32>
    %216 = arith.negf %215 : vector<2x128xf32>
    %217 = math.exp %216 : vector<2x128xf32>
    %cst_78 = arith.constant 1.000000e+00 : f32
    %218 = vector.broadcast %cst_78 : f32 to vector<2x128xf32>
    %219 = arith.addf %218, %217 : vector<2x128xf32>
    %220 = arith.divf %218, %219 : vector<2x128xf32>
    %221 = vector.extract_strided_slice %208 {offsets = [0, 256], sizes = [2, 128], strides = [1, 1]} : vector<2x512xf32> to vector<2x128xf32>
    %222 = math.tanh %221 : vector<2x128xf32>
    %223 = vector.extract_strided_slice %208 {offsets = [0, 384], sizes = [2, 128], strides = [1, 1]} : vector<2x512xf32> to vector<2x128xf32>
    %224 = arith.negf %223 : vector<2x128xf32>
    %225 = math.exp %224 : vector<2x128xf32>
    %cst_79 = arith.constant 1.000000e+00 : f32
    %226 = vector.broadcast %cst_79 : f32 to vector<2x128xf32>
    %227 = arith.addf %226, %225 : vector<2x128xf32>
    %228 = arith.divf %226, %227 : vector<2x128xf32>
    %229 = arith.mulf %220, %167 : vector<2x128xf32>
    %230 = arith.mulf %214, %222 : vector<2x128xf32>
    %231 = arith.addf %229, %230 : vector<2x128xf32>
    %232 = math.tanh %231 : vector<2x128xf32>
    %233 = arith.mulf %228, %232 : vector<2x128xf32>
    %c0_80 = arith.constant 0 : index
    %c0_81 = arith.constant 0 : index
    %234 = vector.load %arg4[%c0_80, %c0_81] : memref<128x512xf32, #tpu.memory_space<vmem>>, vector<128x512xf32>
    %cst_82 = arith.constant dense<0.000000e+00> : vector<2x512xf32>
    %235 = tpu.matmul %233, %234, %cst_82 {dimension_numbers = #tpu.dot_dimension_numbers<[1], [0], [0], [1], [0, 0, 1, 1], [], []>} : vector<2x128xf32>, vector<128x512xf32>, vector<2x512xf32> -> vector<2x512xf32>
    %c0_83 = arith.constant 0 : index
    %c0_84 = arith.constant 0 : index
    %236 = vector.load %arg5[%c0_83, %c0_84] : memref<128x512xf32, #tpu.memory_space<vmem>>, vector<128x512xf32>
    %cst_85 = arith.constant dense<0.000000e+00> : vector<2x512xf32>
    %237 = tpu.matmul %200, %236, %cst_85 {dimension_numbers = #tpu.dot_dimension_numbers<[1], [0], [0], [1], [0, 0, 1, 1], [], []>} : vector<2x128xf32>, vector<128x512xf32>, vector<2x512xf32> -> vector<2x512xf32>
    %238 = arith.addf %235, %237 : vector<2x512xf32>
    %239 = arith.addf %238, %10 : vector<2x512xf32>
    %240 = vector.extract_strided_slice %239 {offsets = [0, 0], sizes = [2, 128], strides = [1, 1]} : vector<2x512xf32> to vector<2x128xf32>
    %241 = arith.negf %240 : vector<2x128xf32>
    %242 = math.exp %241 : vector<2x128xf32>
    %cst_86 = arith.constant 1.000000e+00 : f32
    %243 = vector.broadcast %cst_86 : f32 to vector<2x128xf32>
    %244 = arith.addf %243, %242 : vector<2x128xf32>
    %245 = arith.divf %243, %244 : vector<2x128xf32>
    %246 = vector.extract_strided_slice %239 {offsets = [0, 128], sizes = [2, 128], strides = [1, 1]} : vector<2x512xf32> to vector<2x128xf32>
    %247 = arith.negf %246 : vector<2x128xf32>
    %248 = math.exp %247 : vector<2x128xf32>
    %cst_87 = arith.constant 1.000000e+00 : f32
    %249 = vector.broadcast %cst_87 : f32 to vector<2x128xf32>
    %250 = arith.addf %249, %248 : vector<2x128xf32>
    %251 = arith.divf %249, %250 : vector<2x128xf32>
    %252 = vector.extract_strided_slice %239 {offsets = [0, 256], sizes = [2, 128], strides = [1, 1]} : vector<2x512xf32> to vector<2x128xf32>
    %253 = math.tanh %252 : vector<2x128xf32>
    %254 = vector.extract_strided_slice %239 {offsets = [0, 384], sizes = [2, 128], strides = [1, 1]} : vector<2x512xf32> to vector<2x128xf32>
    %255 = arith.negf %254 : vector<2x128xf32>
    %256 = math.exp %255 : vector<2x128xf32>
    %cst_88 = arith.constant 1.000000e+00 : f32
    %257 = vector.broadcast %cst_88 : f32 to vector<2x128xf32>
    %258 = arith.addf %257, %256 : vector<2x128xf32>
    %259 = arith.divf %257, %258 : vector<2x128xf32>
    %260 = arith.mulf %251, %198 : vector<2x128xf32>
    %261 = arith.mulf %245, %253 : vector<2x128xf32>
    %262 = arith.addf %260, %261 : vector<2x128xf32>
    %263 = math.tanh %262 : vector<2x128xf32>
    %264 = arith.mulf %259, %263 : vector<2x128xf32>
    %c0_89 = arith.constant 0 : index
    %c3_90 = arith.constant 3 : index
    %c0_91 = arith.constant 0 : index
    %265 = vector.load %arg11[%c0_89, %c3_90, %c0_91] : memref<2x8x128xf32, #tpu.memory_space<vmem>>, vector<2x1x128xf32>
    %266 = vector.shape_cast %265 : vector<2x1x128xf32> to vector<2x128xf32>
    %267 = vector.shape_cast %264 : vector<2x128xf32> to vector<2x1x128xf32>
    tpu.vector_store %arg11[%c0_89, %c3_90, %c0_91], %267 {strides = array<i32>} : memref<2x8x128xf32, #tpu.memory_space<vmem>>, vector<2x1x128xf32>,
    %c0_92 = arith.constant 0 : index
    %c4 = arith.constant 4 : index
    %c0_93 = arith.constant 0 : index
    %268 = vector.load %arg10[%c0_92, %c4, %c0_93] : memref<2x8x512xf32, #tpu.memory_space<vmem>>, vector<2x1x512xf32>
    %269 = vector.shape_cast %268 : vector<2x1x512xf32> to vector<2x512xf32>
    %c0_94 = arith.constant 0 : index
    %c0_95 = arith.constant 0 : index
    %270 = vector.load %arg2[%c0_94, %c0_95] : memref<128x512xf32, #tpu.memory_space<vmem>>, vector<128x512xf32>
    %cst_96 = arith.constant dense<0.000000e+00> : vector<2x512xf32>
    %271 = tpu.matmul %233, %270, %cst_96 {dimension_numbers = #tpu.dot_dimension_numbers<[1], [0], [0], [1], [0, 0, 1, 1], [], []>} : vector<2x128xf32>, vector<128x512xf32>, vector<2x512xf32> -> vector<2x512xf32>
    %272 = arith.addf %269, %271 : vector<2x512xf32>
    %273 = vector.extract_strided_slice %272 {offsets = [0, 0], sizes = [2, 128], strides = [1, 1]} : vector<2x512xf32> to vector<2x128xf32>
    %274 = arith.negf %273 : vector<2x128xf32>
    %275 = math.exp %274 : vector<2x128xf32>
    %cst_97 = arith.constant 1.000000e+00 : f32
    %276 = vector.broadcast %cst_97 : f32 to vector<2x128xf32>
    %277 = arith.addf %276, %275 : vector<2x128xf32>
    %278 = arith.divf %276, %277 : vector<2x128xf32>
    %279 = vector.extract_strided_slice %272 {offsets = [0, 128], sizes = [2, 128], strides = [1, 1]} : vector<2x512xf32> to vector<2x128xf32>
    %280 = arith.negf %279 : vector<2x128xf32>
    %281 = math.exp %280 : vector<2x128xf32>
    %cst_98 = arith.constant 1.000000e+00 : f32
    %282 = vector.broadcast %cst_98 : f32 to vector<2x128xf32>
    %283 = arith.addf %282, %281 : vector<2x128xf32>
    %284 = arith.divf %282, %283 : vector<2x128xf32>
    %285 = vector.extract_strided_slice %272 {offsets = [0, 256], sizes = [2, 128], strides = [1, 1]} : vector<2x512xf32> to vector<2x128xf32>
    %286 = math.tanh %285 : vector<2x128xf32>
    %287 = vector.extract_strided_slice %272 {offsets = [0, 384], sizes = [2, 128], strides = [1, 1]} : vector<2x512xf32> to vector<2x128xf32>
    %288 = arith.negf %287 : vector<2x128xf32>
    %289 = math.exp %288 : vector<2x128xf32>
    %cst_99 = arith.constant 1.000000e+00 : f32
    %290 = vector.broadcast %cst_99 : f32 to vector<2x128xf32>
    %291 = arith.addf %290, %289 : vector<2x128xf32>
    %292 = arith.divf %290, %291 : vector<2x128xf32>
    %293 = arith.mulf %284, %231 : vector<2x128xf32>
    %294 = arith.mulf %278, %286 : vector<2x128xf32>
    %295 = arith.addf %293, %294 : vector<2x128xf32>
    %296 = math.tanh %295 : vector<2x128xf32>
    %297 = arith.mulf %292, %296 : vector<2x128xf32>
    %c0_100 = arith.constant 0 : index
    %c0_101 = arith.constant 0 : index
    %298 = vector.load %arg4[%c0_100, %c0_101] : memref<128x512xf32, #tpu.memory_space<vmem>>, vector<128x512xf32>
    %cst_102 = arith.constant dense<0.000000e+00> : vector<2x512xf32>
    %299 = tpu.matmul %297, %298, %cst_102 {dimension_numbers = #tpu.dot_dimension_numbers<[1], [0], [0], [1], [0, 0, 1, 1], [], []>} : vector<2x128xf32>, vector<128x512xf32>, vector<2x512xf32> -> vector<2x512xf32>
    %c0_103 = arith.constant 0 : index
    %c0_104 = arith.constant 0 : index
    %300 = vector.load %arg5[%c0_103, %c0_104] : memref<128x512xf32, #tpu.memory_space<vmem>>, vector<128x512xf32>
    %cst_105 = arith.constant dense<0.000000e+00> : vector<2x512xf32>
    %301 = tpu.matmul %264, %300, %cst_105 {dimension_numbers = #tpu.dot_dimension_numbers<[1], [0], [0], [1], [0, 0, 1, 1], [], []>} : vector<2x128xf32>, vector<128x512xf32>, vector<2x512xf32> -> vector<2x512xf32>
    %302 = arith.addf %299, %301 : vector<2x512xf32>
    %303 = arith.addf %302, %10 : vector<2x512xf32>
    %304 = vector.extract_strided_slice %303 {offsets = [0, 0], sizes = [2, 128], strides = [1, 1]} : vector<2x512xf32> to vector<2x128xf32>
    %305 = arith.negf %304 : vector<2x128xf32>
    %306 = math.exp %305 : vector<2x128xf32>
    %cst_106 = arith.constant 1.000000e+00 : f32
    %307 = vector.broadcast %cst_106 : f32 to vector<2x128xf32>
    %308 = arith.addf %307, %306 : vector<2x128xf32>
    %309 = arith.divf %307, %308 : vector<2x128xf32>
    %310 = vector.extract_strided_slice %303 {offsets = [0, 128], sizes = [2, 128], strides = [1, 1]} : vector<2x512xf32> to vector<2x128xf32>
    %311 = arith.negf %310 : vector<2x128xf32>
    %312 = math.exp %311 : vector<2x128xf32>
    %cst_107 = arith.constant 1.000000e+00 : f32
    %313 = vector.broadcast %cst_107 : f32 to vector<2x128xf32>
    %314 = arith.addf %313, %312 : vector<2x128xf32>
    %315 = arith.divf %313, %314 : vector<2x128xf32>
    %316 = vector.extract_strided_slice %303 {offsets = [0, 256], sizes = [2, 128], strides = [1, 1]} : vector<2x512xf32> to vector<2x128xf32>
    %317 = math.tanh %316 : vector<2x128xf32>
    %318 = vector.extract_strided_slice %303 {offsets = [0, 384], sizes = [2, 128], strides = [1, 1]} : vector<2x512xf32> to vector<2x128xf32>
    %319 = arith.negf %318 : vector<2x128xf32>
    %320 = math.exp %319 : vector<2x128xf32>
    %cst_108 = arith.constant 1.000000e+00 : f32
    %321 = vector.broadcast %cst_108 : f32 to vector<2x128xf32>
    %322 = arith.addf %321, %320 : vector<2x128xf32>
    %323 = arith.divf %321, %322 : vector<2x128xf32>
    %324 = arith.mulf %315, %262 : vector<2x128xf32>
    %325 = arith.mulf %309, %317 : vector<2x128xf32>
    %326 = arith.addf %324, %325 : vector<2x128xf32>
    %327 = math.tanh %326 : vector<2x128xf32>
    %328 = arith.mulf %323, %327 : vector<2x128xf32>
    %c0_109 = arith.constant 0 : index
    %c4_110 = arith.constant 4 : index
    %c0_111 = arith.constant 0 : index
    %329 = vector.load %arg11[%c0_109, %c4_110, %c0_111] : memref<2x8x128xf32, #tpu.memory_space<vmem>>, vector<2x1x128xf32>
    %330 = vector.shape_cast %329 : vector<2x1x128xf32> to vector<2x128xf32>
    %331 = vector.shape_cast %328 : vector<2x128xf32> to vector<2x1x128xf32>
    tpu.vector_store %arg11[%c0_109, %c4_110, %c0_111], %331 {strides = array<i32>} : memref<2x8x128xf32, #tpu.memory_space<vmem>>, vector<2x1x128xf32>,
    %c0_112 = arith.constant 0 : index
    %c5 = arith.constant 5 : index
    %c0_113 = arith.constant 0 : index
    %332 = vector.load %arg10[%c0_112, %c5, %c0_113] : memref<2x8x512xf32, #tpu.memory_space<vmem>>, vector<2x1x512xf32>
    %333 = vector.shape_cast %332 : vector<2x1x512xf32> to vector<2x512xf32>
    %c0_114 = arith.constant 0 : index
    %c0_115 = arith.constant 0 : index
    %334 = vector.load %arg2[%c0_114, %c0_115] : memref<128x512xf32, #tpu.memory_space<vmem>>, vector<128x512xf32>
    %cst_116 = arith.constant dense<0.000000e+00> : vector<2x512xf32>
    %335 = tpu.matmul %297, %334, %cst_116 {dimension_numbers = #tpu.dot_dimension_numbers<[1], [0], [0], [1], [0, 0, 1, 1], [], []>} : vector<2x128xf32>, vector<128x512xf32>, vector<2x512xf32> -> vector<2x512xf32>
    %336 = arith.addf %333, %335 : vector<2x512xf32>
    %337 = vector.extract_strided_slice %336 {offsets = [0, 0], sizes = [2, 128], strides = [1, 1]} : vector<2x512xf32> to vector<2x128xf32>
    %338 = arith.negf %337 : vector<2x128xf32>
    %339 = math.exp %338 : vector<2x128xf32>
    %cst_117 = arith.constant 1.000000e+00 : f32
    %340 = vector.broadcast %cst_117 : f32 to vector<2x128xf32>
    %341 = arith.addf %340, %339 : vector<2x128xf32>
    %342 = arith.divf %340, %341 : vector<2x128xf32>
    %343 = vector.extract_strided_slice %336 {offsets = [0, 128], sizes = [2, 128], strides = [1, 1]} : vector<2x512xf32> to vector<2x128xf32>
    %344 = arith.negf %343 : vector<2x128xf32>
    %345 = math.exp %344 : vector<2x128xf32>
    %cst_118 = arith.constant 1.000000e+00 : f32
    %346 = vector.broadcast %cst_118 : f32 to vector<2x128xf32>
    %347 = arith.addf %346, %345 : vector<2x128xf32>
    %348 = arith.divf %346, %347 : vector<2x128xf32>
    %349 = vector.extract_strided_slice %336 {offsets = [0, 256], sizes = [2, 128], strides = [1, 1]} : vector<2x512xf32> to vector<2x128xf32>
    %350 = math.tanh %349 : vector<2x128xf32>
    %351 = vector.extract_strided_slice %336 {offsets = [0, 384], sizes = [2, 128], strides = [1, 1]} : vector<2x512xf32> to vector<2x128xf32>
    %352 = arith.negf %351 : vector<2x128xf32>
    %353 = math.exp %352 : vector<2x128xf32>
    %cst_119 = arith.constant 1.000000e+00 : f32
    %354 = vector.broadcast %cst_119 : f32 to vector<2x128xf32>
    %355 = arith.addf %354, %353 : vector<2x128xf32>
    %356 = arith.divf %354, %355 : vector<2x128xf32>
    %357 = arith.mulf %348, %295 : vector<2x128xf32>
    %358 = arith.mulf %342, %350 : vector<2x128xf32>
    %359 = arith.addf %357, %358 : vector<2x128xf32>
    %360 = math.tanh %359 : vector<2x128xf32>
    %361 = arith.mulf %356, %360 : vector<2x128xf32>
    %c0_120 = arith.constant 0 : index
    %c0_121 = arith.constant 0 : index
    %362 = vector.load %arg4[%c0_120, %c0_121] : memref<128x512xf32, #tpu.memory_space<vmem>>, vector<128x512xf32>
    %cst_122 = arith.constant dense<0.000000e+00> : vector<2x512xf32>
    %363 = tpu.matmul %361, %362, %cst_122 {dimension_numbers = #tpu.dot_dimension_numbers<[1], [0], [0], [1], [0, 0, 1, 1], [], []>} : vector<2x128xf32>, vector<128x512xf32>, vector<2x512xf32> -> vector<2x512xf32>
    %c0_123 = arith.constant 0 : index
    %c0_124 = arith.constant 0 : index
    %364 = vector.load %arg5[%c0_123, %c0_124] : memref<128x512xf32, #tpu.memory_space<vmem>>, vector<128x512xf32>
    %cst_125 = arith.constant dense<0.000000e+00> : vector<2x512xf32>
    %365 = tpu.matmul %328, %364, %cst_125 {dimension_numbers = #tpu.dot_dimension_numbers<[1], [0], [0], [1], [0, 0, 1, 1], [], []>} : vector<2x128xf32>, vector<128x512xf32>, vector<2x512xf32> -> vector<2x512xf32>
    %366 = arith.addf %363, %365 : vector<2x512xf32>
    %367 = arith.addf %366, %10 : vector<2x512xf32>
    %368 = vector.extract_strided_slice %367 {offsets = [0, 0], sizes = [2, 128], strides = [1, 1]} : vector<2x512xf32> to vector<2x128xf32>
    %369 = arith.negf %368 : vector<2x128xf32>
    %370 = math.exp %369 : vector<2x128xf32>
    %cst_126 = arith.constant 1.000000e+00 : f32
    %371 = vector.broadcast %cst_126 : f32 to vector<2x128xf32>
    %372 = arith.addf %371, %370 : vector<2x128xf32>
    %373 = arith.divf %371, %372 : vector<2x128xf32>
    %374 = vector.extract_strided_slice %367 {offsets = [0, 128], sizes = [2, 128], strides = [1, 1]} : vector<2x512xf32> to vector<2x128xf32>
    %375 = arith.negf %374 : vector<2x128xf32>
    %376 = math.exp %375 : vector<2x128xf32>
    %cst_127 = arith.constant 1.000000e+00 : f32
    %377 = vector.broadcast %cst_127 : f32 to vector<2x128xf32>
    %378 = arith.addf %377, %376 : vector<2x128xf32>
    %379 = arith.divf %377, %378 : vector<2x128xf32>
    %380 = vector.extract_strided_slice %367 {offsets = [0, 256], sizes = [2, 128], strides = [1, 1]} : vector<2x512xf32> to vector<2x128xf32>
    %381 = math.tanh %380 : vector<2x128xf32>
    %382 = vector.extract_strided_slice %367 {offsets = [0, 384], sizes = [2, 128], strides = [1, 1]} : vector<2x512xf32> to vector<2x128xf32>
    %383 = arith.negf %382 : vector<2x128xf32>
    %384 = math.exp %383 : vector<2x128xf32>
    %cst_128 = arith.constant 1.000000e+00 : f32
    %385 = vector.broadcast %cst_128 : f32 to vector<2x128xf32>
    %386 = arith.addf %385, %384 : vector<2x128xf32>
    %387 = arith.divf %385, %386 : vector<2x128xf32>
    %388 = arith.mulf %379, %326 : vector<2x128xf32>
    %389 = arith.mulf %373, %381 : vector<2x128xf32>
    %390 = arith.addf %388, %389 : vector<2x128xf32>
    %391 = math.tanh %390 : vector<2x128xf32>
    %392 = arith.mulf %387, %391 : vector<2x128xf32>
    %c0_129 = arith.constant 0 : index
    %c5_130 = arith.constant 5 : index
    %c0_131 = arith.constant 0 : index
    %393 = vector.load %arg11[%c0_129, %c5_130, %c0_131] : memref<2x8x128xf32, #tpu.memory_space<vmem>>, vector<2x1x128xf32>
    %394 = vector.shape_cast %393 : vector<2x1x128xf32> to vector<2x128xf32>
    %395 = vector.shape_cast %392 : vector<2x128xf32> to vector<2x1x128xf32>
    tpu.vector_store %arg11[%c0_129, %c5_130, %c0_131], %395 {strides = array<i32>} : memref<2x8x128xf32, #tpu.memory_space<vmem>>, vector<2x1x128xf32>,
    %c0_132 = arith.constant 0 : index
    %c6 = arith.constant 6 : index
    %c0_133 = arith.constant 0 : index
    %396 = vector.load %arg10[%c0_132, %c6, %c0_133] : memref<2x8x512xf32, #tpu.memory_space<vmem>>, vector<2x1x512xf32>
    %397 = vector.shape_cast %396 : vector<2x1x512xf32> to vector<2x512xf32>
    %c0_134 = arith.constant 0 : index
    %c0_135 = arith.constant 0 : index
    %398 = vector.load %arg2[%c0_134, %c0_135] : memref<128x512xf32, #tpu.memory_space<vmem>>, vector<128x512xf32>
    %cst_136 = arith.constant dense<0.000000e+00> : vector<2x512xf32>
    %399 = tpu.matmul %361, %398, %cst_136 {dimension_numbers = #tpu.dot_dimension_numbers<[1], [0], [0], [1], [0, 0, 1, 1], [], []>} : vector<2x128xf32>, vector<128x512xf32>, vector<2x512xf32> -> vector<2x512xf32>
    %400 = arith.addf %397, %399 : vector<2x512xf32>
    %401 = vector.extract_strided_slice %400 {offsets = [0, 0], sizes = [2, 128], strides = [1, 1]} : vector<2x512xf32> to vector<2x128xf32>
    %402 = arith.negf %401 : vector<2x128xf32>
    %403 = math.exp %402 : vector<2x128xf32>
    %cst_137 = arith.constant 1.000000e+00 : f32
    %404 = vector.broadcast %cst_137 : f32 to vector<2x128xf32>
    %405 = arith.addf %404, %403 : vector<2x128xf32>
    %406 = arith.divf %404, %405 : vector<2x128xf32>
    %407 = vector.extract_strided_slice %400 {offsets = [0, 128], sizes = [2, 128], strides = [1, 1]} : vector<2x512xf32> to vector<2x128xf32>
    %408 = arith.negf %407 : vector<2x128xf32>
    %409 = math.exp %408 : vector<2x128xf32>
    %cst_138 = arith.constant 1.000000e+00 : f32
    %410 = vector.broadcast %cst_138 : f32 to vector<2x128xf32>
    %411 = arith.addf %410, %409 : vector<2x128xf32>
    %412 = arith.divf %410, %411 : vector<2x128xf32>
    %413 = vector.extract_strided_slice %400 {offsets = [0, 256], sizes = [2, 128], strides = [1, 1]} : vector<2x512xf32> to vector<2x128xf32>
    %414 = math.tanh %413 : vector<2x128xf32>
    %415 = vector.extract_strided_slice %400 {offsets = [0, 384], sizes = [2, 128], strides = [1, 1]} : vector<2x512xf32> to vector<2x128xf32>
    %416 = arith.negf %415 : vector<2x128xf32>
    %417 = math.exp %416 : vector<2x128xf32>
    %cst_139 = arith.constant 1.000000e+00 : f32
    %418 = vector.broadcast %cst_139 : f32 to vector<2x128xf32>
    %419 = arith.addf %418, %417 : vector<2x128xf32>
    %420 = arith.divf %418, %419 : vector<2x128xf32>
    %421 = arith.mulf %412, %359 : vector<2x128xf32>
    %422 = arith.mulf %406, %414 : vector<2x128xf32>
    %423 = arith.addf %421, %422 : vector<2x128xf32>
    %424 = math.tanh %423 : vector<2x128xf32>
    %425 = arith.mulf %420, %424 : vector<2x128xf32>
    %c0_140 = arith.constant 0 : index
    %c0_141 = arith.constant 0 : index
    %426 = vector.load %arg4[%c0_140, %c0_141] : memref<128x512xf32, #tpu.memory_space<vmem>>, vector<128x512xf32>
    %cst_142 = arith.constant dense<0.000000e+00> : vector<2x512xf32>
    %427 = tpu.matmul %425, %426, %cst_142 {dimension_numbers = #tpu.dot_dimension_numbers<[1], [0], [0], [1], [0, 0, 1, 1], [], []>} : vector<2x128xf32>, vector<128x512xf32>, vector<2x512xf32> -> vector<2x512xf32>
    %c0_143 = arith.constant 0 : index
    %c0_144 = arith.constant 0 : index
    %428 = vector.load %arg5[%c0_143, %c0_144] : memref<128x512xf32, #tpu.memory_space<vmem>>, vector<128x512xf32>
    %cst_145 = arith.constant dense<0.000000e+00> : vector<2x512xf32>
    %429 = tpu.matmul %392, %428, %cst_145 {dimension_numbers = #tpu.dot_dimension_numbers<[1], [0], [0], [1], [0, 0, 1, 1], [], []>} : vector<2x128xf32>, vector<128x512xf32>, vector<2x512xf32> -> vector<2x512xf32>
    %430 = arith.addf %427, %429 : vector<2x512xf32>
    %431 = arith.addf %430, %10 : vector<2x512xf32>
    %432 = vector.extract_strided_slice %431 {offsets = [0, 0], sizes = [2, 128], strides = [1, 1]} : vector<2x512xf32> to vector<2x128xf32>
    %433 = arith.negf %432 : vector<2x128xf32>
    %434 = math.exp %433 : vector<2x128xf32>
    %cst_146 = arith.constant 1.000000e+00 : f32
    %435 = vector.broadcast %cst_146 : f32 to vector<2x128xf32>
    %436 = arith.addf %435, %434 : vector<2x128xf32>
    %437 = arith.divf %435, %436 : vector<2x128xf32>
    %438 = vector.extract_strided_slice %431 {offsets = [0, 128], sizes = [2, 128], strides = [1, 1]} : vector<2x512xf32> to vector<2x128xf32>
    %439 = arith.negf %438 : vector<2x128xf32>
    %440 = math.exp %439 : vector<2x128xf32>
    %cst_147 = arith.constant 1.000000e+00 : f32
    %441 = vector.broadcast %cst_147 : f32 to vector<2x128xf32>
    %442 = arith.addf %441, %440 : vector<2x128xf32>
    %443 = arith.divf %441, %442 : vector<2x128xf32>
    %444 = vector.extract_strided_slice %431 {offsets = [0, 256], sizes = [2, 128], strides = [1, 1]} : vector<2x512xf32> to vector<2x128xf32>
    %445 = math.tanh %444 : vector<2x128xf32>
    %446 = vector.extract_strided_slice %431 {offsets = [0, 384], sizes = [2, 128], strides = [1, 1]} : vector<2x512xf32> to vector<2x128xf32>
    %447 = arith.negf %446 : vector<2x128xf32>
    %448 = math.exp %447 : vector<2x128xf32>
    %cst_148 = arith.constant 1.000000e+00 : f32
    %449 = vector.broadcast %cst_148 : f32 to vector<2x128xf32>
    %450 = arith.addf %449, %448 : vector<2x128xf32>
    %451 = arith.divf %449, %450 : vector<2x128xf32>
    %452 = arith.mulf %443, %390 : vector<2x128xf32>
    %453 = arith.mulf %437, %445 : vector<2x128xf32>
    %454 = arith.addf %452, %453 : vector<2x128xf32>
    %455 = math.tanh %454 : vector<2x128xf32>
    %456 = arith.mulf %451, %455 : vector<2x128xf32>
    %c0_149 = arith.constant 0 : index
    %c6_150 = arith.constant 6 : index
    %c0_151 = arith.constant 0 : index
    %457 = vector.load %arg11[%c0_149, %c6_150, %c0_151] : memref<2x8x128xf32, #tpu.memory_space<vmem>>, vector<2x1x128xf32>
    %458 = vector.shape_cast %457 : vector<2x1x128xf32> to vector<2x128xf32>
    %459 = vector.shape_cast %456 : vector<2x128xf32> to vector<2x1x128xf32>
    tpu.vector_store %arg11[%c0_149, %c6_150, %c0_151], %459 {strides = array<i32>} : memref<2x8x128xf32, #tpu.memory_space<vmem>>, vector<2x1x128xf32>,
    %c0_152 = arith.constant 0 : index
    %c7 = arith.constant 7 : index
    %c0_153 = arith.constant 0 : index
    %460 = vector.load %arg10[%c0_152, %c7, %c0_153] : memref<2x8x512xf32, #tpu.memory_space<vmem>>, vector<2x1x512xf32>
    %461 = vector.shape_cast %460 : vector<2x1x512xf32> to vector<2x512xf32>
    %c0_154 = arith.constant 0 : index
    %c0_155 = arith.constant 0 : index
    %462 = vector.load %arg2[%c0_154, %c0_155] : memref<128x512xf32, #tpu.memory_space<vmem>>, vector<128x512xf32>
    %cst_156 = arith.constant dense<0.000000e+00> : vector<2x512xf32>
    %463 = tpu.matmul %425, %462, %cst_156 {dimension_numbers = #tpu.dot_dimension_numbers<[1], [0], [0], [1], [0, 0, 1, 1], [], []>} : vector<2x128xf32>, vector<128x512xf32>, vector<2x512xf32> -> vector<2x512xf32>
    %464 = arith.addf %461, %463 : vector<2x512xf32>
    %465 = vector.extract_strided_slice %464 {offsets = [0, 0], sizes = [2, 128], strides = [1, 1]} : vector<2x512xf32> to vector<2x128xf32>
    %466 = arith.negf %465 : vector<2x128xf32>
    %467 = math.exp %466 : vector<2x128xf32>
    %cst_157 = arith.constant 1.000000e+00 : f32
    %468 = vector.broadcast %cst_157 : f32 to vector<2x128xf32>
    %469 = arith.addf %468, %467 : vector<2x128xf32>
    %470 = arith.divf %468, %469 : vector<2x128xf32>
    %471 = vector.extract_strided_slice %464 {offsets = [0, 128], sizes = [2, 128], strides = [1, 1]} : vector<2x512xf32> to vector<2x128xf32>
    %472 = arith.negf %471 : vector<2x128xf32>
    %473 = math.exp %472 : vector<2x128xf32>
    %cst_158 = arith.constant 1.000000e+00 : f32
    %474 = vector.broadcast %cst_158 : f32 to vector<2x128xf32>
    %475 = arith.addf %474, %473 : vector<2x128xf32>
    %476 = arith.divf %474, %475 : vector<2x128xf32>
    %477 = vector.extract_strided_slice %464 {offsets = [0, 256], sizes = [2, 128], strides = [1, 1]} : vector<2x512xf32> to vector<2x128xf32>
    %478 = math.tanh %477 : vector<2x128xf32>
    %479 = vector.extract_strided_slice %464 {offsets = [0, 384], sizes = [2, 128], strides = [1, 1]} : vector<2x512xf32> to vector<2x128xf32>
    %480 = arith.negf %479 : vector<2x128xf32>
    %481 = math.exp %480 : vector<2x128xf32>
    %cst_159 = arith.constant 1.000000e+00 : f32
    %482 = vector.broadcast %cst_159 : f32 to vector<2x128xf32>
    %483 = arith.addf %482, %481 : vector<2x128xf32>
    %484 = arith.divf %482, %483 : vector<2x128xf32>
    %485 = arith.mulf %476, %423 : vector<2x128xf32>
    %486 = arith.mulf %470, %478 : vector<2x128xf32>
    %487 = arith.addf %485, %486 : vector<2x128xf32>
    %488 = math.tanh %487 : vector<2x128xf32>
    %489 = arith.mulf %484, %488 : vector<2x128xf32>
    %c0_160 = arith.constant 0 : index
    %c0_161 = arith.constant 0 : index
    %490 = vector.load %arg4[%c0_160, %c0_161] : memref<128x512xf32, #tpu.memory_space<vmem>>, vector<128x512xf32>
    %cst_162 = arith.constant dense<0.000000e+00> : vector<2x512xf32>
    %491 = tpu.matmul %489, %490, %cst_162 {dimension_numbers = #tpu.dot_dimension_numbers<[1], [0], [0], [1], [0, 0, 1, 1], [], []>} : vector<2x128xf32>, vector<128x512xf32>, vector<2x512xf32> -> vector<2x512xf32>
    %c0_163 = arith.constant 0 : index
    %c0_164 = arith.constant 0 : index
    %492 = vector.load %arg5[%c0_163, %c0_164] : memref<128x512xf32, #tpu.memory_space<vmem>>, vector<128x512xf32>
    %cst_165 = arith.constant dense<0.000000e+00> : vector<2x512xf32>
    %493 = tpu.matmul %456, %492, %cst_165 {dimension_numbers = #tpu.dot_dimension_numbers<[1], [0], [0], [1], [0, 0, 1, 1], [], []>} : vector<2x128xf32>, vector<128x512xf32>, vector<2x512xf32> -> vector<2x512xf32>
    %494 = arith.addf %491, %493 : vector<2x512xf32>
    %495 = arith.addf %494, %10 : vector<2x512xf32>
    %496 = vector.extract_strided_slice %495 {offsets = [0, 0], sizes = [2, 128], strides = [1, 1]} : vector<2x512xf32> to vector<2x128xf32>
    %497 = arith.negf %496 : vector<2x128xf32>
    %498 = math.exp %497 : vector<2x128xf32>
    %cst_166 = arith.constant 1.000000e+00 : f32
    %499 = vector.broadcast %cst_166 : f32 to vector<2x128xf32>
    %500 = arith.addf %499, %498 : vector<2x128xf32>
    %501 = arith.divf %499, %500 : vector<2x128xf32>
    %502 = vector.extract_strided_slice %495 {offsets = [0, 128], sizes = [2, 128], strides = [1, 1]} : vector<2x512xf32> to vector<2x128xf32>
    %503 = arith.negf %502 : vector<2x128xf32>
    %504 = math.exp %503 : vector<2x128xf32>
    %cst_167 = arith.constant 1.000000e+00 : f32
    %505 = vector.broadcast %cst_167 : f32 to vector<2x128xf32>
    %506 = arith.addf %505, %504 : vector<2x128xf32>
    %507 = arith.divf %505, %506 : vector<2x128xf32>
    %508 = vector.extract_strided_slice %495 {offsets = [0, 256], sizes = [2, 128], strides = [1, 1]} : vector<2x512xf32> to vector<2x128xf32>
    %509 = math.tanh %508 : vector<2x128xf32>
    %510 = vector.extract_strided_slice %495 {offsets = [0, 384], sizes = [2, 128], strides = [1, 1]} : vector<2x512xf32> to vector<2x128xf32>
    %511 = arith.negf %510 : vector<2x128xf32>
    %512 = math.exp %511 : vector<2x128xf32>
    %cst_168 = arith.constant 1.000000e+00 : f32
    %513 = vector.broadcast %cst_168 : f32 to vector<2x128xf32>
    %514 = arith.addf %513, %512 : vector<2x128xf32>
    %515 = arith.divf %513, %514 : vector<2x128xf32>
    %516 = arith.mulf %507, %454 : vector<2x128xf32>
    %517 = arith.mulf %501, %509 : vector<2x128xf32>
    %518 = arith.addf %516, %517 : vector<2x128xf32>
    %519 = math.tanh %518 : vector<2x128xf32>
    %520 = arith.mulf %515, %519 : vector<2x128xf32>
    %c0_169 = arith.constant 0 : index
    %c7_170 = arith.constant 7 : index
    %c0_171 = arith.constant 0 : index
    %521 = vector.load %arg11[%c0_169, %c7_170, %c0_171] : memref<2x8x128xf32, #tpu.memory_space<vmem>>, vector<2x1x128xf32>
    %522 = vector.shape_cast %521 : vector<2x1x128xf32> to vector<2x128xf32>
    %523 = vector.shape_cast %520 : vector<2x128xf32> to vector<2x1x128xf32>
    tpu.vector_store %arg11[%c0_169, %c7_170, %c0_171], %523 {strides = array<i32>} : memref<2x8x128xf32, #tpu.memory_space<vmem>>, vector<2x1x128xf32>,
    %c0_172 = arith.constant 0 : index
    %c0_173 = arith.constant 0 : index
    %c0_174 = arith.constant 0 : index
    %524 = vector.load %arg11[%c0_172, %c0_173, %c0_174] : memref<2x8x128xf32, #tpu.memory_space<vmem>>, vector<2x8x128xf32>
    %525 = vector.shape_cast %524 : vector<2x8x128xf32> to vector<16x128xf32>
    %c0_175 = arith.constant 0 : index
    %c0_176 = arith.constant 0 : index
    %526 = vector.load %arg7[%c0_175, %c0_176] : memref<128x128xf32, #tpu.memory_space<vmem>>, vector<128x128xf32>
    %cst_177 = arith.constant dense<0.000000e+00> : vector<16x128xf32>
    %527 = tpu.matmul %525, %526, %cst_177 {dimension_numbers = #tpu.dot_dimension_numbers<[1], [0], [0], [1], [0, 0, 1, 1], [], []>} : vector<16x128xf32>, vector<128x128xf32>, vector<16x128xf32> -> vector<16x128xf32>
    %c0_178 = arith.constant 0 : index
    %c0_179 = arith.constant 0 : index
    %528 = vector.load %arg8[%c0_178, %c0_179] : memref<1x128xf32, #tpu.memory_space<vmem>>, vector<1x128xf32>
    %529 = vector.broadcast %528 : vector<1x128xf32> to vector<16x128xf32>
    %530 = arith.addf %527, %529 : vector<16x128xf32>
    %531 = vector.shape_cast %530 : vector<16x128xf32> to vector<2x8x128xf32>
    %c0_180 = arith.constant 0 : index
    %c0_181 = arith.constant 0 : index
    %c0_182 = arith.constant 0 : index
    %532 = vector.load %arg9[%c0_180, %c0_181, %c0_182] : memref<2x8x128xf32, #tpu.memory_space<vmem>>, vector<2x8x128xf32>
    tpu.vector_store %arg9[%c0_180, %c0_181, %c0_182], %531 {strides = array<i32>} : memref<2x8x128xf32, #tpu.memory_space<vmem>>, vector<2x8x128xf32>,
    return
  }
}

</mosaic_0001>

<bundles_post_ra>
// kernel: rnn_forward.1
= control target key start
LH: loop header
LB: loop body
LE: loop exit
PB: predicated region body
PF: predicated region fallthrough
CT: control target
= control target key end

     0   :  { %14 = vsyncpa [#allocation5], 0  ;;  %s10891_s0 = inlined_call_operand.hbm [shape: f32[16,16], index: 0, kind: input, shape index: {}]   ;;  %s10892_s1 = inlined_call_operand.hbm [shape: f32[16,512], index: 1, kind: input, shape index: {}]   ;;  %s10893_s2 = inlined_call_operand.hbm [shape: f32[128,512], index: 2, kind: input, shape index: {}]   ;;  %s10894_s3 = inlined_call_operand.hbm [shape: f32[1,512], index: 3, kind: input, shape index: {}]   ;;  %s10895_s4 = inlined_call_operand.hbm [shape: f32[128,512], index: 4, kind: input, shape index: {}]   ;;  %s10896_s5 = inlined_call_operand.hbm [shape: f32[128,512], index: 5, kind: input, shape index: {}]   ;;  %s10897_s6 = inlined_call_operand.vmem [shape: f32[1,512], index: 6, kind: input, shape index: {}]   ;;  %s10898_s7 = inlined_call_operand.hbm [shape: f32[128,128], index: 7, kind: input, shape index: {}]   ;;  %s10899_s8 = inlined_call_operand.vmem [shape: f32[1,128], index: 8, kind: input, shape index: {}]   ;;  %s10900_s9 = inlined_call_operand.vmem [shape: f32[2,8,128], index: 9, kind: output, shape index: {}]  }
   0x1   :  { %15 = vsyncpa [#allocation7], 0 }
   0x2   :  { %16 = vsyncpa [#allocation10], 0 }
   0x3   :  { %17 = vsyncpa [#allocation13], 0  ;;  %s7566_s30 = smov [#allocation6]  }
   0x4   :  { %s35_s10 = sshll.u32 %s7566_s30, 4  ;;  %s36_s10 = int_to_ptr.vmem [resolvable:$true] %s35_s10 }
   0x5   :  { %s7426_s11 = scalar_lea.vmem %s36_s10, 1024  ;;  %p7431_p1 = scmp.lt.s32.totalorder %s36_s10, %s36_s10 }
   0x6   :  { %p7427_p0 = scmp.ne.s32.totalorder %s36_s10, %s7426_s11  ;;  %p7432_p2 = scmp.lt.s32.totalorder %s7426_s11, %s7426_s11 }
   0x8   :  { %p7433_p3 = por %p7432_p2, %p7431_p1 }
   0xa   :  { %p7434_p4 = pnand %p7433_p3, %p7427_p0 }
   0xc   :  { %7437 = shalt.err (!%p7434_p4)
}
   0xd   :  { %s7567_s12 = smov 512   ;;  %s7568_s13 = smov 32  }
   0xe   :  { %41 = dma.hbm_to_vmem [thread:$0]  %s10892_s1, 1024, %s36_s10, [#allocation7], %s7567_s12, %s7567_s12, %s7568_s13  }
   0xf   :  { %s7569_s16 = smov [#allocation9]   ;;  %s7570_s18 = smov [#allocation12]  }
  0x10   :  { %s60_s17 = sshll.u32 %s7569_s16, 4  ;;  %s81_s19 = sshll.u32 %s7570_s18, 4  ;;  %s61_s17 = int_to_ptr.vmem [resolvable:$true] %s60_s17  ;;  %s82_s19 = int_to_ptr.vmem [resolvable:$true] %s81_s19 }
  0x11   :  { %s7446_s20 = scalar_lea.vmem %s61_s17, 64  ;;  %p7451_p6 = scmp.lt.s32.totalorder %s61_s17, %s61_s17 }
  0x12   :  { %p7447_p5 = scmp.ne.s32.totalorder %s61_s17, %s7446_s20  ;;  %p7452_p7 = scmp.lt.s32.totalorder %s7446_s20, %s7446_s20 }
  0x14   :  { %p7453_p8 = por %p7452_p7, %p7451_p6 }
  0x16   :  { %p7454_p9 = pnand %p7453_p8, %p7447_p5 }
  0x18   :  { %7457 = shalt.err (!%p7454_p9)
}
  0x19   :  { %63 = dma.hbm_to_vmem [thread:$0]  %s10894_s3, 64, %s61_s17, [#allocation10]  }
  0x1a   :  { %s7466_s23 = scalar_lea.vmem %s82_s19, 8192  ;;  %p7471_p11 = scmp.lt.s32.totalorder %s82_s19, %s82_s19 }
  0x1b   :  { %p7467_p10 = scmp.ne.s32.totalorder %s82_s19, %s7466_s23  ;;  %p7472_p12 = scmp.lt.s32.totalorder %s7466_s23, %s7466_s23 }
  0x1d   :  { %p7473_p13 = por %p7472_p12, %p7471_p11 }
  0x1f   :  { %p7474_p0 = pnand %p7473_p13, %p7467_p10 }
  0x21   :  { %7477 = shalt.err (!%p7474_p0)
}
  0x22   :  { %87 = dma.hbm_to_vmem [thread:$0]  %s10896_s5, 8192, %s82_s19, [#allocation13], %s7567_s12, %s7567_s12, %s7568_s13  }
  0x23   :  { %s7571_s25 = smov [#allocation4]  }
  0x24   :  { %s23_s26 = sshll.u32 %s7571_s25, 4  ;;  %s24_s26 = int_to_ptr.vmem [resolvable:$true] %s23_s26 }
  0x25   :  { %s7486_s27 = scalar_lea.vmem %s24_s26, 256  ;;  %p7491_p2 = scmp.lt.s32.totalorder %s24_s26, %s24_s26 }
  0x26   :  { %p7487_p1 = scmp.ne.s32.totalorder %s24_s26, %s7486_s27  ;;  %p7492_p3 = scmp.lt.s32.totalorder %s7486_s27, %s7486_s27 }
  0x28   :  { %p7493_p4 = por %p7492_p3, %p7491_p2 }
  0x2a   :  { %p7494_p5 = pnand %p7493_p4, %p7487_p1 }
  0x2c   :  { %7497 = shalt.err (!%p7494_p5)
}
  0x2d   :  { %s7572_s3 = smov 128   ;;  %s7573_s28 = smov 8  }
  0x2e   :  { %29 = dma.hbm_to_vmem [thread:$0]  %s10891_s0, 256, %s24_s26, [#allocation5], %s7572_s3, %s7572_s3, %s7573_s28  }
  0x2f   :  { %s7574_s5 = smov [#allocation8]   ;;  %s7575_s11 = smov [#allocation11]  }
  0x30   :  { %s47_s10 = sshll.u32 %s7574_s5, 4  ;;  %s69_s14 = sshll.u32 %s7575_s11, 4  ;;  %s48_s10 = int_to_ptr.vmem [resolvable:$true] %s47_s10  ;;  %s70_s14 = int_to_ptr.vmem [resolvable:$true] %s69_s14 }
  0x31   :  { %s7506_s15 = scalar_lea.vmem %s48_s10, 8192  ;;  %p7511_p7 = scmp.lt.s32.totalorder %s48_s10, %s48_s10 }
  0x32   :  { %p7507_p6 = scmp.ne.s32.totalorder %s48_s10, %s7506_s15  ;;  %p7512_p8 = scmp.lt.s32.totalorder %s7506_s15, %s7506_s15 }
  0x34   :  { %p7513_p9 = por %p7512_p8, %p7511_p7 }
  0x36   :  { %p7514_p10 = pnand %p7513_p9, %p7507_p6 }
  0x38   :  { %7517 = shalt.err (!%p7514_p10)
}
  0x39   :  { %53 = dma.hbm_to_vmem [thread:$0]  %s10893_s2, 8192, %s48_s10, [#allocation7], %s7567_s12, %s7567_s12, %s7568_s13  }
  0x3a   :  { %s7526_s0 = scalar_lea.vmem %s70_s14, 8192  ;;  %p7531_p12 = scmp.lt.s32.totalorder %s70_s14, %s70_s14 }
  0x3b   :  { %p7527_p11 = scmp.ne.s32.totalorder %s70_s14, %s7526_s0  ;;  %p7532_p13 = scmp.lt.s32.totalorder %s7526_s0, %s7526_s0 }
  0x3d   :  { %p7533_p0 = por %p7532_p13, %p7531_p12 }
  0x3f   :  { %p7534_p1 = pnand %p7533_p0, %p7527_p11 }
  0x41   :  { %7537 = shalt.err (!%p7534_p1)
}
  0x42   :  { %75 = dma.hbm_to_vmem [thread:$0]  %s10895_s4, 8192, %s70_s14, [#allocation10], %s7567_s12, %s7567_s12, %s7568_s13  }
  0x43   :  { %s7576_s20 = smov [#allocation14]  }
  0x44   :  { %s95_s21 = sshll.u32 %s7576_s20, 4  ;;  %s96_s21 = int_to_ptr.vmem [resolvable:$true] %s95_s21 }
  0x45   :  { %s7546_s22 = scalar_lea.vmem %s96_s21, 2048  ;;  %p7551_p3 = scmp.lt.s32.totalorder %s96_s21, %s96_s21 }
  0x46   :  { %p7547_p2 = scmp.ne.s32.totalorder %s96_s21, %s7546_s22  ;;  %p7552_p4 = scmp.lt.s32.totalorder %s7546_s22, %s7546_s22 }
  0x48   :  { %p7553_p5 = por %p7552_p4, %p7551_p3 }
  0x4a   :  { %p7554_p6 = pnand %p7553_p5, %p7547_p2 }
  0x4c   :  { %7557 = shalt.err (!%p7554_p6)
}
  0x4d   :  { %101 = dma.hbm_to_vmem [thread:$0]  %s10898_s7, 2048, %s96_s21, [#allocation13], %s7572_s3, %s7572_s3, %s7573_s28  }
  0x4e   :  { %7558 = dma.done.wait [#allocation5], 256  }
  0x4f   :  { %7559 = vsyncadd [#allocation5], 4294967040 }
  0x50   :  { %7560 = dma.done.wait [#allocation7], 9216  }
  0x51   :  { %7561 = vsyncadd [#allocation7], 4294958080 }
  0x52   :  { %7562 = dma.done.wait [#allocation10], 8256  }
  0x53   :  { %7563 = vsyncadd [#allocation10], 4294959040 }
  0x54   :  { %7564 = dma.done.wait [#allocation13], 10240  }
  0x55   :  { %7565 = vsyncadd [#allocation13], 4294957056  ;;  %v10902_v0 = vmov 0.0   ;;  %v132_v1 = vld [vmem:[#allocation6 + $0x28] sm:$0xff]  ;;  %v131_v2 = vld [vmem:[#allocation6 + $0x20] sm:$0xff]  ;;  %vm157_vm0 = vcmask 130048  }
  0x56   :  { %228 = vmatprep.mubr.f32.mxu1 %v10902_v0  ;;  %479 = vmatprep.mubr.f32.mxu0 %v10902_v0  ;;  %v128_v3 = vld [vmem:[#allocation6 + $0x8] sm:$0xff]  ;;  %v127_v4 = vld [vmem:[#allocation6] sm:$0xff]  ;;  %v125_v5 = vld [vmem:[#allocation4] sm:$0xff] }
  0x57   :  { %192 = vmatprep.subr.mxu1 %v132_v1  ;;  %v134_v6 = vld [vmem:[#allocation6 + $0x38] sm:$0xff]  ;;  %v133_v7 = vld [vmem:[#allocation6 + $0x30] sm:$0xff]  ;;  %v7670_v8 = vld [vmem:[#allocation8 + $0x1e8] sm:$0xff] }
  0x58   :  { %193 = vmatpush1.msra.mxu1 %v131_v2  ;;  %v130_v9 = vld [vmem:[#allocation6 + $0x18] sm:$0xff]  ;;  %415 = vmatprep.subr.mxu0 %v7670_v8  ;;  %v411_v10 = vld [vmem:[#allocation8 + $0x1e0] sm:$0xff]  ;;  %v129_v11 = vld [vmem:[#allocation6 + $0x10] sm:$0xff] }
  0x59   :  { %194 = vmatprep.subr.mxu1 %v128_v3  ;;  %v408_v12 = vld [vmem:[#allocation8 + $0x1c8] sm:$0xff]  ;;  %v126_v13 = vld [vmem:[#allocation4 + $0x8] sm:$0xff]  ;;  %416 = vmatpush1.msra.mxu0 %v411_v10  ;;  %v407_v15 = vld [vmem:[#allocation8 + $0x1c0] sm:$0xff] }
  0x5a   :  { %195 = vmatpush1.msra.mxu1 %v127_v4  ;;  %v7675_v14 = vld [vmem:[#allocation8 + $0x1f8] sm:$0xff]  ;;  %417 = vmatprep.subr.mxu0 %v408_v12  ;;  %v404_v16 = vld [vmem:[#allocation8 + $0x1a8] sm:$0xff]  ;;  %v403_v17 = vld [vmem:[#allocation8 + $0x1a0] sm:$0xff] }
  0x5b   :  { %6833 = vmatmul.mubr.msk.f32.vlgmr.msra.gmra.mxu1 %vm157_vm0, %v125_v5  ;;  %269 = vmatprep.subr.mxu1 %v134_v6  ;;  %v400_v18 = vld [vmem:[#allocation8 + $0x188] sm:$0xff]  ;;  %v7680_v19 = vld [vmem:[#allocation8 + $0x1f0] sm:$0xff]  ;;  %v7682_v20 = vld [vmem:[#allocation8 + $0x1d8] sm:$0xff] }
  0x5c   :  { %270 = vmatpush1.msra.mxu1 %v133_v7  ;;  %234 = vmatprep.mubr.f32.mxu1 %v10902_v0  ;;  %v7684_v21 = vld [vmem:[#allocation8 + $0x180] sm:$0xff]  ;;  %v7687_v22 = vld [vmem:[#allocation8 + $0x1d0] sm:$0xff]  ;;  %v7689_v23 = vld [vmem:[#allocation8 + $0x168] sm:$0xff] }
  0x5d   :  { %271 = vmatprep.subr.mxu1 %v130_v9  ;;  %418 = vmatpush1.msra.mxu0 %v407_v15  ;;  %v7693_v24 = vld [vmem:[#allocation8 + $0x1b8] sm:$0xff]  ;;  %v7696_v25 = vld [vmem:[#allocation8 + $0x1b0] sm:$0xff]  ;;  %v7699_v26 = vld [vmem:[#allocation8 + $0x160] sm:$0xff] }
  0x5e   :  { %272 = vmatpush1.msra.mxu1 %v129_v11  ;;  %419 = vmatprep.subr.mxu0 %v404_v16  ;;  %v7702_v27 = vld [vmem:[#allocation8 + $0x198] sm:$0xff]  ;;  %v7705_v28 = vld [vmem:[#allocation8 + $0x148] sm:$0xff]  ;;  %v7709_v29 = vld [vmem:[#allocation8 + $0x190] sm:$0xff] }
  0x5f   :  { %6834 = vmatmul.mubr.msk.f32.gmra.mxu1 %vm157_vm0, %v126_v13  ;;  %486 = vmatprep.subr.mxu1 %v7675_v14  ;;  %v7711_v30 = vld [vmem:[#allocation8 + $0x140] sm:$0xff]  ;;  %v7715_v31 = vld [vmem:[#allocation8 + $0x178] sm:$0xff]  ;;  %v7717_v32 = vld [vmem:[#allocation8 + $0x128] sm:$0xff] }
  0x60   :  { %305 = vmatprep.mubr.f32.mxu1 %v10902_v0  ;;  %420 = vmatpush1.msra.mxu0 %v403_v17  ;;  %v7721_v33 = vld [vmem:[#allocation8 + $0x170] sm:$0xff]  ;;  %v7723_v34 = vld [vmem:[#allocation8 + $0x120] sm:$0xff]  ;;  %v7727_v35 = vld [vmem:[#allocation8 + $0x158] sm:$0xff] }
  0x61   :  { %421 = vmatprep.subr.mxu0 %v400_v18  ;;  %v7729_v36 = vld [vmem:[#allocation8 + $0x108] sm:$0xff]  ;;  %v7733_v37 = vld [vmem:[#allocation8 + $0x150] sm:$0xff]  ;;  %v7735_v38 = vld [vmem:[#allocation8 + $0x100] sm:$0xff] }
  0x62   :  { %422 = vmatpush1.msra.mxu0 %v7684_v21  ;;  %v7739_v39 = vld [vmem:[#allocation8 + $0x138] sm:$0xff]  ;;  %v7741_v40 = vld [vmem:[#allocation8 + $0xe8] sm:$0xff]  ;;  %v7745_v41 = vld [vmem:[#allocation8 + $0x130] sm:$0xff] }
  0x63   :  { %6835 = vmatmul.mubr.msk.f32.vlgmr.msra.gmra.mxu1 %vm157_vm0, %v125_v5  ;;  %423 = vmatprep.subr.mxu0 %v7689_v23  ;;  %v7747_v42 = vld [vmem:[#allocation8 + $0xe0] sm:$0xff]  ;;  %v7751_v43 = vld [vmem:[#allocation8 + $0x118] sm:$0xff]  ;;  %v7753_v44 = vld [vmem:[#allocation8 + $0xc8] sm:$0xff] }
  0x64   :  { %487 = vmatpush1.msra.mxu1 %v7680_v19  ;;  %311 = vmatprep.mubr.f32.mxu1 %v10902_v0  ;;  %v7757_v45 = vld [vmem:[#allocation8 + $0x110] sm:$0xff]  ;;  %v7759_v46 = vld [vmem:[#allocation8 + $0xc0] sm:$0xff]  ;;  %v7763_v47 = vld [vmem:[#allocation8 + $0xf8] sm:$0xff] }
  0x65   :  { %488 = vmatprep.subr.mxu1 %v7682_v20  ;;  %424 = vmatpush1.msra.mxu0 %v7699_v26  ;;  %v7765_v48 = vld [vmem:[#allocation8 + $0xa8] sm:$0xff]  ;;  %v7769_v49 = vld [vmem:[#allocation8 + $0xf0] sm:$0xff]  ;;  %v7771_v50 = vld [vmem:[#allocation8 + $0xa0] sm:$0xff] }
  0x66   :  { %489 = vmatpush1.msra.mxu1 %v7687_v22  ;;  %425 = vmatprep.subr.mxu0 %v7705_v28  ;;  %v7775_v51 = vld [vmem:[#allocation8 + $0xd8] sm:$0xff]  ;;  %v7777_v52 = vld [vmem:[#allocation8 + $0x88] sm:$0xff]  ;;  %v7781_v53 = vld [vmem:[#allocation8 + $0xd0] sm:$0xff] }
  0x67   :  { %490 = vmatprep.subr.mxu1 %v7693_v24  ;;  %6836 = vmatmul.mubr.msk.f32.gmra.mxu1 %vm157_vm0, %v126_v13  ;;  %v7783_v54 = vld [vmem:[#allocation8 + $0x80] sm:$0xff]  ;;  %v7787_v55 = vld [vmem:[#allocation8 + $0xb8] sm:$0xff]  ;;  %v7789_v56 = vld [vmem:[#allocation8 + $0x68] sm:$0xff] }
  0x68   :  { %491 = vmatpush1.msra.mxu1 %v7696_v25  ;;  %426 = vmatpush1.msra.mxu0 %v7711_v30  ;;  %v7793_v57 = vld [vmem:[#allocation8 + $0xb0] sm:$0xff]  ;;  %v7795_v58 = vld [vmem:[#allocation8 + $0x60] sm:$0xff]  ;;  %v7799_v59 = vld [vmem:[#allocation8 + $0x98] sm:$0xff] }
  0x69   :  { %492 = vmatprep.subr.mxu1 %v7702_v27  ;;  %427 = vmatprep.subr.mxu0 %v7717_v32  ;;  %v7801_v60 = vld [vmem:[#allocation8 + $0x48] sm:$0xff]  ;;  %v7805_v61 = vld [vmem:[#allocation8 + $0x90] sm:$0xff]  ;;  %v7807_v62 = vld [vmem:[#allocation8 + $0x40] sm:$0xff] }
  0x6a   :  { %493 = vmatpush1.msra.mxu1 %v7709_v29  ;;  %428 = vmatpush1.msra.mxu0 %v7723_v34  ;;  %11465 = vst [vmem:[#allocation19_spill] sm:$0xff] %v7801_v60  ;;  %11466 = vst [vmem:[#allocation20_spill] sm:$0xff] %v7807_v62  ;;  %v7811_v63 = vld [vmem:[#allocation8 + $0x78] sm:$0xff]  ;;  %v7813_v1 = vld [vmem:[#allocation8 + $0x28] sm:$0xff] }
  0x6b   :  { %494 = vmatprep.subr.mxu1 %v7715_v31  ;;  %429 = vmatprep.subr.mxu0 %v7729_v36  ;;  %11467 = vst [vmem:[#allocation21_spill] sm:$0xff] %v7813_v1  ;;  %v7817_v2 = vld [vmem:[#allocation8 + $0x70] sm:$0xff]  ;;  %v7819_v3 = vld [vmem:[#allocation8 + $0x20] sm:$0xff]  ;;  %v7823_v4 = vld [vmem:[#allocation8 + $0x58] sm:$0xff] }
  0x6c   :  { %495 = vmatpush1.msra.mxu1 %v7721_v33  ;;  %430 = vmatpush1.msra.mxu0 %v7735_v38  ;;  %11468 = vst [vmem:[#allocation22_spill] sm:$0xff] %v7817_v2  ;;  %11469 = vst [vmem:[#allocation23_spill] sm:$0xff] %v7819_v3  ;;  %v7825_v5 = vld [vmem:[#allocation8 + $0x8] sm:$0xff]  ;;  %v7829_v6 = vld [vmem:[#allocation8 + $0x50] sm:$0xff] }
  0x6d   :  { %496 = vmatprep.subr.mxu1 %v7727_v35  ;;  %431 = vmatprep.subr.mxu0 %v7741_v40  ;;  %11470 = vst [vmem:[#allocation24_spill] sm:$0xff] %v7823_v4  ;;  %11471 = vst [vmem:[#allocation25_spill] sm:$0xff] %v7825_v5  ;;  %v7831_v7 = vld [vmem:[#allocation8] sm:$0xff]  ;;  %v7835_v9 = vld [vmem:[#allocation8 + $0x38] sm:$0xff] }
  0x6e   :  { %497 = vmatpush1.msra.mxu1 %v7733_v37  ;;  %432 = vmatpush1.msra.mxu0 %v7747_v42  ;;  %11472 = vst [vmem:[#allocation26_spill] sm:$0xff] %v7829_v6  ;;  %11473 = vst [vmem:[#allocation27_spill] sm:$0xff] %v7831_v7  ;;  %v7839_v10 = vld [vmem:[#allocation8 + $0x30] sm:$0xff]  ;;  %v7843_v11 = vld [vmem:[#allocation8 + $0x18] sm:$0xff] }
  0x6f   :  { %498 = vmatprep.subr.mxu1 %v7739_v39  ;;  %433 = vmatprep.subr.mxu0 %v7753_v44  ;;  %11474 = vst [vmem:[#allocation28_spill] sm:$0xff] %v7835_v9  ;;  %11475 = vst [vmem:[#allocation29_spill] sm:$0xff] %v7839_v10  ;;  %v7847_v12 = vld [vmem:[#allocation8 + $0x10] sm:$0xff]  ;;  %v7858_v15 = vld [vmem:[#allocation12 + $0x1f8] sm:$0xff] }
  0x70   :  { %499 = vmatpush1.msra.mxu1 %v7745_v41  ;;  %434 = vmatpush1.msra.mxu0 %v7759_v46  ;;  %11476 = vst [vmem:[#allocation30_spill] sm:$0xff] %v7843_v11  ;;  %11477 = vst [vmem:[#allocation31_spill] sm:$0xff] %v7847_v12  ;;  %v7856_v13 = vld [vmem:[#allocation12 + $0x1e8] sm:$0xff]  ;;  %v7862_v16 = vld [vmem:[#allocation12 + $0x1e0] sm:$0xff] }
  0x71   :  { %500 = vmatprep.subr.mxu1 %v7751_v43  ;;  %435 = vmatprep.subr.mxu0 %v7765_v48  ;;  %11478 = vst [vmem:[#allocation32_spill] sm:$0xff] %v7856_v13  ;;  %11479 = vst [vmem:[#allocation33_spill] sm:$0xff] %v7858_v15  ;;  %v7864_v17 = vld [vmem:[#allocation12 + $0x1f0] sm:$0xff]  ;;  %v7868_v18 = vld [vmem:[#allocation12 + $0x1c8] sm:$0xff] }
  0x72   :  { %501 = vmatpush1.msra.mxu1 %v7757_v45  ;;  %436 = vmatpush1.msra.mxu0 %v7771_v50  ;;  %11480 = vst [vmem:[#allocation34_spill] sm:$0xff] %v7862_v16  ;;  %11481 = vst [vmem:[#allocation35_spill] sm:$0xff] %v7864_v17 }
  0x73   :  { %502 = vmatprep.subr.mxu1 %v7763_v47  ;;  %437 = vmatprep.subr.mxu0 %v7777_v52  ;;  %11482 = vst [vmem:[#allocation36_spill] sm:$0xff] %v7868_v18 }
  0x74   :  { %503 = vmatpush1.msra.mxu1 %v7769_v49  ;;  %438 = vmatpush1.msra.mxu0 %v7783_v54 }
  0x75   :  { %504 = vmatprep.subr.mxu1 %v7775_v51  ;;  %439 = vmatprep.subr.mxu0 %v7789_v56 }
  0x76   :  { %505 = vmatpush1.msra.mxu1 %v7781_v53  ;;  %440 = vmatpush1.msra.mxu0 %v7795_v58 }
  0x77   :  { %506 = vmatprep.subr.mxu1 %v7787_v55  ;;  %441 = vmatprep.subr.mxu0 %v7801_v60 }
  0x78   :  { %507 = vmatpush1.msra.mxu1 %v7793_v57  ;;  %442 = vmatpush1.msra.mxu0 %v7807_v62 }
  0x79   :  { %508 = vmatprep.subr.mxu1 %v7799_v59  ;;  %443 = vmatprep.subr.mxu0 %v7813_v1 }
  0x7a   :  { %509 = vmatpush1.msra.mxu1 %v7805_v61  ;;  %444 = vmatpush1.msra.mxu0 %v7819_v3  ;;  %v8130_v3 = vld [vmem:[#allocation11 + $0x108] sm:$0xff] }
  0x7b   :  { %510 = vmatprep.subr.mxu1 %v7811_v63  ;;  %445 = vmatprep.subr.mxu0 %v7825_v5  ;;  %v8106_v5 = vld [vmem:[#allocation11 + $0x148] sm:$0xff]  ;;  %11571 = vst [vmem:[#allocation124_spill] sm:$0xff] %v8130_v3 }
  0x7c   :  { %511 = vmatpush1.msra.mxu1 %v7817_v2  ;;  %446 = vmatpush1.msra.mxu0 %v7831_v7  ;;  %v8068_v7 = vld [vmem:[#allocation11 + $0x1c0] sm:$0xff]  ;;  %11563 = vst [vmem:[#allocation116_spill] sm:$0xff] %v8106_v5 }
  0x7d   :  { %512 = vmatprep.subr.mxu1 %v7823_v4  ;;  %480 = vmatmul.mubr.f32.vlgmr.msra.gmra.mxu0 %v10902_v0  ;;  %11549 = vst [vmem:[#allocation102_spill] sm:$0xff] %v8068_v7 }
  0x7e   :  { %513 = vmatpush1.msra.mxu1 %v7829_v6  ;;  %550 = vmatprep.mubr.f32.mxu1 %v10902_v0 }
  0x7f   :  { %514 = vmatprep.subr.mxu1 %v7835_v9  ;;  %851 = vmatprep.mubr.f32.mxu0 %v10902_v0 }
  0x80   :  { %515 = vmatpush1.msra.mxu1 %v7839_v10  ;;  %787 = vmatprep.subr.mxu0 %v7856_v13  ;;  %v7876_v13 = vld [vmem:[#allocation12 + $0x1d0] sm:$0xff] }
  0x81   :  { %516 = vmatprep.subr.mxu1 %v7843_v11  ;;  %788 = vmatpush1.msra.mxu0 %v7862_v16  ;;  %11485 = vst [vmem:[#allocation39_spill] sm:$0xff] %v7876_v13  ;;  %v7882_v16 = vld [vmem:[#allocation12 + $0x1b8] sm:$0xff]  ;;  %v8114_v10 = vld [vmem:[#allocation11 + $0x150] sm:$0xff] }
  0x82   :  { %517 = vmatpush1.msra.mxu1 %v7847_v12  ;;  %v7870_v12 = vld [vmem:[#allocation12 + $0x1d8] sm:$0xff]  ;;  %789 = vmatprep.subr.mxu0 %v7868_v18  ;;  %11487 = vst [vmem:[#allocation41_spill] sm:$0xff] %v7882_v16  ;;  %v7888_v18 = vld [vmem:[#allocation12 + $0x1b0] sm:$0xff]  ;;  %11566 = vst [vmem:[#allocation119_spill] sm:$0xff] %v8114_v10 }
  0x83   :  { %551 = vmatmul.mubr.f32.vlgmr.msra.gmra.mxu1 %v10902_v0  ;;  %858 = vmatprep.subr.mxu1 %v7858_v15  ;;  %11483 = vst [vmem:[#allocation37_spill] sm:$0xff] %v7870_v12  ;;  %v7880_v15 = vld [vmem:[#allocation12 + $0x1a8] sm:$0xff]  ;;  %11489 = vst [vmem:[#allocation43_spill] sm:$0xff] %v7888_v18  ;;  %v8098_v11 = vld [vmem:[#allocation11 + $0x178] sm:$0xff] }
  0x84   :  { %922 = vmatprep.mubr.f32.mxu1 %v10902_v0  ;;  %859 = vmatpush1.msra.mxu1 %v7864_v17  ;;  %v7874_v0 = vld [vmem:[#allocation12 + $0x1c0] sm:$0xff]  ;;  %11486 = vst [vmem:[#allocation40_spill] sm:$0xff] %v7880_v15  ;;  %11560 = vst [vmem:[#allocation113_spill] sm:$0xff] %v8098_v11 }
  0x85   :  { %860 = vmatprep.subr.mxu1 %v7870_v12  ;;  %11484 = vst [vmem:[#allocation38_spill] sm:$0xff] %v7874_v0  ;;  %790 = vmatpush1.msra.mxu0 %v7874_v0  ;;  %v7886_v17 = vld [vmem:[#allocation12 + $0x1a0] sm:$0xff]  ;;  %v7892_v12 = vld [vmem:[#allocation12 + $0x188] sm:$0xff]  ;;  %v7894_v0 = vld [vmem:[#allocation12 + $0x198] sm:$0xff] }
  0x86   :  { %861 = vmatpush1.msra.mxu1 %v7876_v13  ;;  %791 = vmatprep.subr.mxu0 %v7880_v15  ;;  %11488 = vst [vmem:[#allocation42_spill] sm:$0xff] %v7886_v17  ;;  %11490 = vst [vmem:[#allocation44_spill] sm:$0xff] %v7892_v12  ;;  %v7898_v13 = vld [vmem:[#allocation12 + $0x180] sm:$0xff]  ;;  %v7900_v15 = vld [vmem:[#allocation12 + $0x190] sm:$0xff] }
  0x87   :  { %862 = vmatprep.subr.mxu1 %v7882_v16  ;;  %792 = vmatpush1.msra.mxu0 %v7886_v17  ;;  %11491 = vst [vmem:[#allocation45_spill] sm:$0xff] %v7894_v0  ;;  %11492 = vst [vmem:[#allocation46_spill] sm:$0xff] %v7898_v13  ;;  %v7904_v16 = vld [vmem:[#allocation12 + $0x168] sm:$0xff]  ;;  %v7906_v17 = vld [vmem:[#allocation12 + $0x178] sm:$0xff] }
  0x88   :  { %863 = vmatpush1.msra.mxu1 %v7888_v18  ;;  %793 = vmatprep.subr.mxu0 %v7892_v12  ;;  %11493 = vst [vmem:[#allocation47_spill] sm:$0xff] %v7900_v15  ;;  %11494 = vst [vmem:[#allocation48_spill] sm:$0xff] %v7904_v16  ;;  %v7910_v18 = vld [vmem:[#allocation12 + $0x160] sm:$0xff]  ;;  %v7912_v12 = vld [vmem:[#allocation12 + $0x170] sm:$0xff] }
  0x89   :  { %864 = vmatprep.subr.mxu1 %v7894_v0  ;;  %794 = vmatpush1.msra.mxu0 %v7898_v13  ;;  %11495 = vst [vmem:[#allocation49_spill] sm:$0xff] %v7906_v17  ;;  %11496 = vst [vmem:[#allocation50_spill] sm:$0xff] %v7910_v18  ;;  %v7916_v0 = vld [vmem:[#allocation12 + $0x148] sm:$0xff]  ;;  %v7918_v13 = vld [vmem:[#allocation12 + $0x158] sm:$0xff] }
  0x8a   :  { %865 = vmatpush1.msra.mxu1 %v7900_v15  ;;  %795 = vmatprep.subr.mxu0 %v7904_v16  ;;  %11497 = vst [vmem:[#allocation51_spill] sm:$0xff] %v7912_v12  ;;  %11498 = vst [vmem:[#allocation52_spill] sm:$0xff] %v7916_v0  ;;  %v7922_v15 = vld [vmem:[#allocation12 + $0x140] sm:$0xff]  ;;  %v7924_v16 = vld [vmem:[#allocation12 + $0x150] sm:$0xff] }
  0x8b   :  { %866 = vmatprep.subr.mxu1 %v7906_v17  ;;  %796 = vmatpush1.msra.mxu0 %v7910_v18  ;;  %11499 = vst [vmem:[#allocation53_spill] sm:$0xff] %v7918_v13  ;;  %11500 = vst [vmem:[#allocation54_spill] sm:$0xff] %v7922_v15  ;;  %v7928_v17 = vld [vmem:[#allocation12 + $0x128] sm:$0xff]  ;;  %v7930_v18 = vld [vmem:[#allocation12 + $0x138] sm:$0xff] }
  0x8c   :  { %867 = vmatpush1.msra.mxu1 %v7912_v12  ;;  %797 = vmatprep.subr.mxu0 %v7916_v0  ;;  %11501 = vst [vmem:[#allocation55_spill] sm:$0xff] %v7924_v16  ;;  %11502 = vst [vmem:[#allocation56_spill] sm:$0xff] %v7928_v17  ;;  %v7934_v12 = vld [vmem:[#allocation12 + $0x120] sm:$0xff]  ;;  %v7936_v0 = vld [vmem:[#allocation12 + $0x130] sm:$0xff] }
  0x8d   :  { %868 = vmatprep.subr.mxu1 %v7918_v13  ;;  %798 = vmatpush1.msra.mxu0 %v7922_v15  ;;  %11503 = vst [vmem:[#allocation57_spill] sm:$0xff] %v7930_v18  ;;  %11504 = vst [vmem:[#allocation58_spill] sm:$0xff] %v7934_v12  ;;  %v7940_v13 = vld [vmem:[#allocation12 + $0x108] sm:$0xff]  ;;  %v7942_v15 = vld [vmem:[#allocation12 + $0x118] sm:$0xff] }
  0x8e   :  { %869 = vmatpush1.msra.mxu1 %v7924_v16  ;;  %799 = vmatprep.subr.mxu0 %v7928_v17  ;;  %11505 = vst [vmem:[#allocation59_spill] sm:$0xff] %v7936_v0  ;;  %11506 = vst [vmem:[#allocation60_spill] sm:$0xff] %v7940_v13  ;;  %v7946_v16 = vld [vmem:[#allocation12 + $0x100] sm:$0xff]  ;;  %v7948_v17 = vld [vmem:[#allocation12 + $0x110] sm:$0xff] }
  0x8f   :  { %870 = vmatprep.subr.mxu1 %v7930_v18  ;;  %800 = vmatpush1.msra.mxu0 %v7934_v12  ;;  %11507 = vst [vmem:[#allocation61_spill] sm:$0xff] %v7942_v15  ;;  %11508 = vst [vmem:[#allocation62_spill] sm:$0xff] %v7946_v16  ;;  %v7952_v18 = vld [vmem:[#allocation12 + $0xe8] sm:$0xff]  ;;  %v7954_v12 = vld [vmem:[#allocation12 + $0xf8] sm:$0xff] }
  0x90   :  { %871 = vmatpush1.msra.mxu1 %v7936_v0  ;;  %801 = vmatprep.subr.mxu0 %v7940_v13  ;;  %11509 = vst [vmem:[#allocation63_spill] sm:$0xff] %v7948_v17  ;;  %11510 = vst [vmem:[#allocation64_spill] sm:$0xff] %v7952_v18  ;;  %v7958_v0 = vld [vmem:[#allocation12 + $0xe0] sm:$0xff]  ;;  %v7960_v13 = vld [vmem:[#allocation12 + $0xf0] sm:$0xff] }
  0x91   :  { %872 = vmatprep.subr.mxu1 %v7942_v15  ;;  %802 = vmatpush1.msra.mxu0 %v7946_v16  ;;  %11511 = vst [vmem:[#allocation65_spill] sm:$0xff] %v7954_v12  ;;  %11512 = vst [vmem:[#allocation66_spill] sm:$0xff] %v7958_v0  ;;  %v7964_v15 = vld [vmem:[#allocation12 + $0xc8] sm:$0xff]  ;;  %v7966_v16 = vld [vmem:[#allocation12 + $0xd8] sm:$0xff] }
  0x92   :  { %873 = vmatpush1.msra.mxu1 %v7948_v17  ;;  %803 = vmatprep.subr.mxu0 %v7952_v18  ;;  %11513 = vst [vmem:[#allocation67_spill] sm:$0xff] %v7960_v13  ;;  %11514 = vst [vmem:[#allocation68_spill] sm:$0xff] %v7964_v15  ;;  %v7970_v17 = vld [vmem:[#allocation12 + $0xc0] sm:$0xff]  ;;  %v7972_v18 = vld [vmem:[#allocation12 + $0xd0] sm:$0xff] }
  0x93   :  { %874 = vmatprep.subr.mxu1 %v7954_v12  ;;  %804 = vmatpush1.msra.mxu0 %v7958_v0  ;;  %11515 = vst [vmem:[#allocation69_spill] sm:$0xff] %v7966_v16  ;;  %11516 = vst [vmem:[#allocation70_spill] sm:$0xff] %v7970_v17  ;;  %v7976_v12 = vld [vmem:[#allocation12 + $0xa8] sm:$0xff]  ;;  %v7978_v0 = vld [vmem:[#allocation12 + $0xb8] sm:$0xff] }
  0x94   :  { %875 = vmatpush1.msra.mxu1 %v7960_v13  ;;  %805 = vmatprep.subr.mxu0 %v7964_v15  ;;  %11517 = vst [vmem:[#allocation71_spill] sm:$0xff] %v7972_v18  ;;  %11518 = vst [vmem:[#allocation72_spill] sm:$0xff] %v7976_v12  ;;  %v7982_v13 = vld [vmem:[#allocation12 + $0xa0] sm:$0xff]  ;;  %v7984_v15 = vld [vmem:[#allocation12 + $0xb0] sm:$0xff] }
  0x95   :  { %876 = vmatprep.subr.mxu1 %v7966_v16  ;;  %806 = vmatpush1.msra.mxu0 %v7970_v17  ;;  %11519 = vst [vmem:[#allocation73_spill] sm:$0xff] %v7978_v0  ;;  %11520 = vst [vmem:[#allocation74_spill] sm:$0xff] %v7982_v13  ;;  %v7988_v16 = vld [vmem:[#allocation12 + $0x88] sm:$0xff]  ;;  %v7990_v17 = vld [vmem:[#allocation12 + $0x98] sm:$0xff] }
  0x96   :  { %877 = vmatpush1.msra.mxu1 %v7972_v18  ;;  %807 = vmatprep.subr.mxu0 %v7976_v12  ;;  %11521 = vst [vmem:[#allocation75_spill] sm:$0xff] %v7984_v15  ;;  %11522 = vst [vmem:[#allocation76_spill] sm:$0xff] %v7988_v16  ;;  %v7994_v18 = vld [vmem:[#allocation12 + $0x80] sm:$0xff]  ;;  %v7996_v12 = vld [vmem:[#allocation12 + $0x90] sm:$0xff] }
  0x97   :  { %878 = vmatprep.subr.mxu1 %v7978_v0  ;;  %808 = vmatpush1.msra.mxu0 %v7982_v13  ;;  %11523 = vst [vmem:[#allocation77_spill] sm:$0xff] %v7990_v17  ;;  %11524 = vst [vmem:[#allocation78_spill] sm:$0xff] %v7994_v18  ;;  %v8000_v0 = vld [vmem:[#allocation12 + $0x68] sm:$0xff]  ;;  %v8002_v13 = vld [vmem:[#allocation12 + $0x78] sm:$0xff] }
  0x98   :  { %879 = vmatpush1.msra.mxu1 %v7984_v15  ;;  %809 = vmatprep.subr.mxu0 %v7988_v16  ;;  %11525 = vst [vmem:[#allocation79_spill] sm:$0xff] %v7996_v12  ;;  %11526 = vst [vmem:[#allocation80_spill] sm:$0xff] %v8000_v0  ;;  %v8006_v15 = vld [vmem:[#allocation12 + $0x60] sm:$0xff]  ;;  %v8008_v16 = vld [vmem:[#allocation12 + $0x70] sm:$0xff] }
  0x99   :  { %880 = vmatprep.subr.mxu1 %v7990_v17  ;;  %810 = vmatpush1.msra.mxu0 %v7994_v18  ;;  %11527 = vst [vmem:[#allocation81_spill] sm:$0xff] %v8002_v13  ;;  %11528 = vst [vmem:[#allocation82_spill] sm:$0xff] %v8006_v15  ;;  %v8012_v17 = vld [vmem:[#allocation12 + $0x48] sm:$0xff]  ;;  %v8014_v18 = vld [vmem:[#allocation12 + $0x58] sm:$0xff] }
  0x9a   :  { %881 = vmatpush1.msra.mxu1 %v7996_v12  ;;  %811 = vmatprep.subr.mxu0 %v8000_v0  ;;  %11529 = vst [vmem:[#allocation83_spill] sm:$0xff] %v8008_v16  ;;  %11530 = vst [vmem:[#allocation84_spill] sm:$0xff] %v8012_v17  ;;  %v8018_v12 = vld [vmem:[#allocation12 + $0x40] sm:$0xff]  ;;  %v8020_v0 = vld [vmem:[#allocation12 + $0x50] sm:$0xff] }
  0x9b   :  { %882 = vmatprep.subr.mxu1 %v8002_v13  ;;  %812 = vmatpush1.msra.mxu0 %v8006_v15  ;;  %11531 = vst [vmem:[#allocation85_spill] sm:$0xff] %v8014_v18  ;;  %11532 = vst [vmem:[#allocation86_spill] sm:$0xff] %v8018_v12  ;;  %v8024_v13 = vld [vmem:[#allocation12 + $0x28] sm:$0xff]  ;;  %v8026_v15 = vld [vmem:[#allocation12 + $0x38] sm:$0xff] }
  0x9c   :  { %883 = vmatpush1.msra.mxu1 %v8008_v16  ;;  %813 = vmatprep.subr.mxu0 %v8012_v17  ;;  %11533 = vst [vmem:[#allocation87_spill] sm:$0xff] %v8020_v0  ;;  %11534 = vst [vmem:[#allocation88_spill] sm:$0xff] %v8024_v13  ;;  %v8030_v16 = vld [vmem:[#allocation12 + $0x20] sm:$0xff]  ;;  %v8032_v17 = vld [vmem:[#allocation12 + $0x30] sm:$0xff] }
  0x9d   :  { %884 = vmatprep.subr.mxu1 %v8014_v18  ;;  %814 = vmatpush1.msra.mxu0 %v8018_v12  ;;  %11535 = vst [vmem:[#allocation89_spill] sm:$0xff] %v8026_v15  ;;  %11536 = vst [vmem:[#allocation90_spill] sm:$0xff] %v8030_v16  ;;  %v8036_v18 = vld [vmem:[#allocation12 + $0x8] sm:$0xff]  ;;  %v8038_v12 = vld [vmem:[#allocation12 + $0x18] sm:$0xff] }
  0x9e   :  { %885 = vmatpush1.msra.mxu1 %v8020_v0  ;;  %815 = vmatprep.subr.mxu0 %v8024_v13  ;;  %11537 = vst [vmem:[#allocation91_spill] sm:$0xff] %v8032_v17  ;;  %11538 = vst [vmem:[#allocation92_spill] sm:$0xff] %v8036_v18  ;;  %v8042_v0 = vld [vmem:[#allocation12] sm:$0xff]  ;;  %v8044_v13 = vld [vmem:[#allocation12 + $0x10] sm:$0xff] }
  0x9f   :  { %886 = vmatprep.subr.mxu1 %v8026_v15  ;;  %816 = vmatpush1.msra.mxu0 %v8030_v16  ;;  %11539 = vst [vmem:[#allocation93_spill] sm:$0xff] %v8038_v12  ;;  %11540 = vst [vmem:[#allocation94_spill] sm:$0xff] %v8042_v0  ;;  %v11542_v15 = vmov 0.0   ;;  %v8052_v16 = vld [vmem:[#allocation11 + $0x1f8] sm:$0xff] }
  0xa0   :  { %887 = vmatpush1.msra.mxu1 %v8032_v17  ;;  %817 = vmatprep.subr.mxu0 %v8036_v18  ;;  %11541 = vst [vmem:[#allocation95_spill] sm:$0xff] %v8044_v13  ;;  %v8050_v17 = vld [vmem:[#allocation11 + $0x1e8] sm:$0xff]  ;;  %11544 = vst [vmem:[#allocation97_spill] sm:$0xff] %v8052_v16  ;;  %v8058_v18 = vld [vmem:[#allocation11 + $0x1f0] sm:$0xff] }
  0xa1   :  { %888 = vmatprep.subr.mxu1 %v8038_v12  ;;  %818 = vmatpush1.msra.mxu0 %v8042_v0  ;;  %11543 = vst [vmem:[#allocation96_spill] sm:$0xff] %v8050_v17  ;;  %v8056_v12 = vld [vmem:[#allocation11 + $0x1e0] sm:$0xff]  ;;  %11546 = vst [vmem:[#allocation99_spill] sm:$0xff] %v8058_v18  ;;  %v8064_v0 = vld [vmem:[#allocation11 + $0x1d8] sm:$0xff] }
  0xa2   :  { %889 = vmatpush1.msra.mxu1 %v8044_v13  ;;  %852 = vmatmul.mubr.f32.vlgmr.msra.gmra.mxu0 %v11542_v15  ;;  %11545 = vst [vmem:[#allocation98_spill] sm:$0xff] %v8056_v12  ;;  %v8062_v13 = vld [vmem:[#allocation11 + $0x1c8] sm:$0xff]  ;;  %11548 = vst [vmem:[#allocation101_spill] sm:$0xff] %v8064_v0 }
  0xa3   :  { %923 = vmatmul.mubr.f32.vlgmr.msra.gmra.mxu1 %v11542_v15  ;;  %947 = vmatprep.subr.mxu0 %v8050_v17  ;;  %11547 = vst [vmem:[#allocation100_spill] sm:$0xff] %v8062_v13  ;;  %v8070_v17 = vld [vmem:[#allocation11 + $0x1d0] sm:$0xff] }
  0xa4   :  { %1018 = vmatprep.subr.mxu1 %v8052_v16  ;;  %948 = vmatpush1.msra.mxu0 %v8056_v12  ;;  %11550 = vst [vmem:[#allocation103_spill] sm:$0xff] %v8070_v17  ;;  %v8074_v16 = vld [vmem:[#allocation11 + $0x1a8] sm:$0xff]  ;;  %v8076_v12 = vld [vmem:[#allocation11 + $0x1b8] sm:$0xff] }
  0xa5   :  { %1019 = vmatpush1.msra.mxu1 %v8058_v18  ;;  %949 = vmatprep.subr.mxu0 %v8062_v13  ;;  %11551 = vst [vmem:[#allocation104_spill] sm:$0xff] %v8074_v16  ;;  %11552 = vst [vmem:[#allocation105_spill] sm:$0xff] %v8076_v12  ;;  %v8080_v18 = vld [vmem:[#allocation11 + $0x1a0] sm:$0xff]  ;;  %v8082_v13 = vld [vmem:[#allocation11 + $0x1b0] sm:$0xff] }
  0xa6   :  { %1020 = vmatprep.subr.mxu1 %v8064_v0  ;;  %950 = vmatpush1.msra.mxu0 %v8068_v7  ;;  %11553 = vst [vmem:[#allocation106_spill] sm:$0xff] %v8080_v18  ;;  %11554 = vst [vmem:[#allocation107_spill] sm:$0xff] %v8082_v13  ;;  %v8086_v0 = vld [vmem:[#allocation11 + $0x188] sm:$0xff]  ;;  %v8088_v7 = vld [vmem:[#allocation11 + $0x198] sm:$0xff] }
  0xa7   :  { %1021 = vmatpush1.msra.mxu1 %v8070_v17  ;;  %951 = vmatprep.subr.mxu0 %v8074_v16  ;;  %11555 = vst [vmem:[#allocation108_spill] sm:$0xff] %v8086_v0  ;;  %11556 = vst [vmem:[#allocation109_spill] sm:$0xff] %v8088_v7  ;;  %v8090_v17 = vld [vmem:[#allocation11 + $0x180] sm:$0xff]  ;;  %v8094_v16 = vld [vmem:[#allocation11 + $0x190] sm:$0xff] }
  0xa8   :  { %1022 = vmatprep.subr.mxu1 %v8076_v12  ;;  %952 = vmatpush1.msra.mxu0 %v8080_v18  ;;  %11557 = vst [vmem:[#allocation110_spill] sm:$0xff] %v8090_v17  ;;  %11558 = vst [vmem:[#allocation111_spill] sm:$0xff] %v8094_v16  ;;  %v8096_v12 = vld [vmem:[#allocation11 + $0x168] sm:$0xff]  ;;  %v8104_v18 = vld [vmem:[#allocation11 + $0x170] sm:$0xff] }
  0xa9   :  { %1023 = vmatpush1.msra.mxu1 %v8082_v13  ;;  %953 = vmatprep.subr.mxu0 %v8086_v0  ;;  %11559 = vst [vmem:[#allocation112_spill] sm:$0xff] %v8096_v12  ;;  %v8102_v13 = vld [vmem:[#allocation11 + $0x160] sm:$0xff]  ;;  %11562 = vst [vmem:[#allocation115_spill] sm:$0xff] %v8104_v18 }
  0xaa   :  { %1024 = vmatprep.subr.mxu1 %v8088_v7  ;;  %954 = vmatpush1.msra.mxu0 %v8090_v17  ;;  %11561 = vst [vmem:[#allocation114_spill] sm:$0xff] %v8102_v13  ;;  %v8110_v7 = vld [vmem:[#allocation11 + $0x158] sm:$0xff]  ;;  %v8112_v0 = vld [vmem:[#allocation11 + $0x140] sm:$0xff] }
  0xab   :  { %1025 = vmatpush1.msra.mxu1 %v8094_v16  ;;  %955 = vmatprep.subr.mxu0 %v8096_v12  ;;  %11564 = vst [vmem:[#allocation117_spill] sm:$0xff] %v8110_v7  ;;  %11565 = vst [vmem:[#allocation118_spill] sm:$0xff] %v8112_v0  ;;  %v8118_v16 = vld [vmem:[#allocation11 + $0x128] sm:$0xff]  ;;  %v8120_v17 = vld [vmem:[#allocation11 + $0x138] sm:$0xff] }
  0xac   :  { %1026 = vmatprep.subr.mxu1 %v8098_v11  ;;  %956 = vmatpush1.msra.mxu0 %v8102_v13  ;;  %11567 = vst [vmem:[#allocation120_spill] sm:$0xff] %v8118_v16  ;;  %11568 = vst [vmem:[#allocation121_spill] sm:$0xff] %v8120_v17  ;;  %v8124_v12 = vld [vmem:[#allocation11 + $0x120] sm:$0xff]  ;;  %v8126_v11 = vld [vmem:[#allocation11 + $0x130] sm:$0xff] }
  0xad   :  { %1027 = vmatpush1.msra.mxu1 %v8104_v18  ;;  %957 = vmatprep.subr.mxu0 %v8106_v5  ;;  %11569 = vst [vmem:[#allocation122_spill] sm:$0xff] %v8124_v12  ;;  %11570 = vst [vmem:[#allocation123_spill] sm:$0xff] %v8126_v11  ;;  %v8132_v13 = vld [vmem:[#allocation11 + $0x118] sm:$0xff]  ;;  %v8136_v18 = vld [vmem:[#allocation11 + $0x100] sm:$0xff] }
  0xae   :  { %1028 = vmatprep.subr.mxu1 %v8110_v7  ;;  %958 = vmatpush1.msra.mxu0 %v8112_v0  ;;  %11572 = vst [vmem:[#allocation125_spill] sm:$0xff] %v8132_v13  ;;  %11573 = vst [vmem:[#allocation126_spill] sm:$0xff] %v8136_v18  ;;  %v8138_v5 = vld [vmem:[#allocation11 + $0x110] sm:$0xff]  ;;  %v8142_v7 = vld [vmem:[#allocation11 + $0xe8] sm:$0xff] }
  0xaf   :  { %1029 = vmatpush1.msra.mxu1 %v8114_v10  ;;  %959 = vmatprep.subr.mxu0 %v8118_v16  ;;  %11574 = vst [vmem:[#allocation127_spill] sm:$0xff] %v8138_v5  ;;  %11575 = vst [vmem:[#allocation128_spill] sm:$0xff] %v8142_v7  ;;  %v8144_v0 = vld [vmem:[#allocation11 + $0xf8] sm:$0xff]  ;;  %v8148_v10 = vld [vmem:[#allocation11 + $0xe0] sm:$0xff] }
  0xb0   :  { %1030 = vmatprep.subr.mxu1 %v8120_v17  ;;  %960 = vmatpush1.msra.mxu0 %v8124_v12  ;;  %11576 = vst [vmem:[#allocation129_spill] sm:$0xff] %v8144_v0  ;;  %11577 = vst [vmem:[#allocation130_spill] sm:$0xff] %v8148_v10  ;;  %v8150_v16 = vld [vmem:[#allocation11 + $0xf0] sm:$0xff]  ;;  %v8154_v17 = vld [vmem:[#allocation11 + $0xc8] sm:$0xff] }
  0xb1   :  { %1031 = vmatpush1.msra.mxu1 %v8126_v11  ;;  %961 = vmatprep.subr.mxu0 %v8130_v3  ;;  %11578 = vst [vmem:[#allocation131_spill] sm:$0xff] %v8150_v16  ;;  %11579 = vst [vmem:[#allocation132_spill] sm:$0xff] %v8154_v17  ;;  %v8156_v12 = vld [vmem:[#allocation11 + $0xd8] sm:$0xff]  ;;  %v8160_v11 = vld [vmem:[#allocation11 + $0xc0] sm:$0xff] }
  0xb2   :  { %1032 = vmatprep.subr.mxu1 %v8132_v13  ;;  %962 = vmatpush1.msra.mxu0 %v8136_v18  ;;  %11580 = vst [vmem:[#allocation133_spill] sm:$0xff] %v8156_v12  ;;  %11581 = vst [vmem:[#allocation134_spill] sm:$0xff] %v8160_v11  ;;  %v8162_v3 = vld [vmem:[#allocation11 + $0xd0] sm:$0xff]  ;;  %v8166_v13 = vld [vmem:[#allocation11 + $0xa8] sm:$0xff] }
  0xb3   :  { %1033 = vmatpush1.msra.mxu1 %v8138_v5  ;;  %963 = vmatprep.subr.mxu0 %v8142_v7  ;;  %11582 = vst [vmem:[#allocation135_spill] sm:$0xff] %v8162_v3  ;;  %11583 = vst [vmem:[#allocation136_spill] sm:$0xff] %v8166_v13  ;;  %v8168_v18 = vld [vmem:[#allocation11 + $0xb8] sm:$0xff]  ;;  %v8172_v5 = vld [vmem:[#allocation11 + $0xa0] sm:$0xff] }
  0xb4   :  { %1034 = vmatprep.subr.mxu1 %v8144_v0  ;;  %964 = vmatpush1.msra.mxu0 %v8148_v10  ;;  %11584 = vst [vmem:[#allocation137_spill] sm:$0xff] %v8168_v18  ;;  %11585 = vst [vmem:[#allocation138_spill] sm:$0xff] %v8172_v5  ;;  %v8174_v7 = vld [vmem:[#allocation11 + $0xb0] sm:$0xff]  ;;  %v8178_v0 = vld [vmem:[#allocation11 + $0x88] sm:$0xff] }
  0xb5   :  { %1035 = vmatpush1.msra.mxu1 %v8150_v16  ;;  %965 = vmatprep.subr.mxu0 %v8154_v17  ;;  %11586 = vst [vmem:[#allocation139_spill] sm:$0xff] %v8174_v7  ;;  %11587 = vst [vmem:[#allocation140_spill] sm:$0xff] %v8178_v0  ;;  %v8180_v10 = vld [vmem:[#allocation11 + $0x98] sm:$0xff]  ;;  %v8184_v16 = vld [vmem:[#allocation11 + $0x80] sm:$0xff] }
  0xb6   :  { %1036 = vmatprep.subr.mxu1 %v8156_v12  ;;  %966 = vmatpush1.msra.mxu0 %v8160_v11  ;;  %11588 = vst [vmem:[#allocation141_spill] sm:$0xff] %v8180_v10  ;;  %11589 = vst [vmem:[#allocation142_spill] sm:$0xff] %v8184_v16  ;;  %v8186_v17 = vld [vmem:[#allocation11 + $0x90] sm:$0xff]  ;;  %v8190_v12 = vld [vmem:[#allocation11 + $0x68] sm:$0xff] }
  0xb7   :  { %1037 = vmatpush1.msra.mxu1 %v8162_v3  ;;  %967 = vmatprep.subr.mxu0 %v8166_v13  ;;  %11590 = vst [vmem:[#allocation143_spill] sm:$0xff] %v8186_v17  ;;  %11591 = vst [vmem:[#allocation144_spill] sm:$0xff] %v8190_v12  ;;  %v8192_v11 = vld [vmem:[#allocation11 + $0x78] sm:$0xff]  ;;  %v8196_v3 = vld [vmem:[#allocation11 + $0x60] sm:$0xff] }
  0xb8   :  { %1038 = vmatprep.subr.mxu1 %v8168_v18  ;;  %968 = vmatpush1.msra.mxu0 %v8172_v5  ;;  %11592 = vst [vmem:[#allocation145_spill] sm:$0xff] %v8192_v11  ;;  %11593 = vst [vmem:[#allocation146_spill] sm:$0xff] %v8196_v3  ;;  %v8198_v13 = vld [vmem:[#allocation11 + $0x70] sm:$0xff]  ;;  %v8202_v18 = vld [vmem:[#allocation11 + $0x48] sm:$0xff] }
  0xb9   :  { %1039 = vmatpush1.msra.mxu1 %v8174_v7  ;;  %969 = vmatprep.subr.mxu0 %v8178_v0  ;;  %11594 = vst [vmem:[#allocation147_spill] sm:$0xff] %v8198_v13  ;;  %11595 = vst [vmem:[#allocation148_spill] sm:$0xff] %v8202_v18  ;;  %v8204_v5 = vld [vmem:[#allocation11 + $0x58] sm:$0xff]  ;;  %v8208_v7 = vld [vmem:[#allocation11 + $0x40] sm:$0xff] }
  0xba   :  { %1040 = vmatprep.subr.mxu1 %v8180_v10  ;;  %970 = vmatpush1.msra.mxu0 %v8184_v16  ;;  %11596 = vst [vmem:[#allocation149_spill] sm:$0xff] %v8204_v5  ;;  %11597 = vst [vmem:[#allocation150_spill] sm:$0xff] %v8208_v7  ;;  %v8210_v0 = vld [vmem:[#allocation11 + $0x50] sm:$0xff]  ;;  %v8214_v10 = vld [vmem:[#allocation11 + $0x28] sm:$0xff] }
  0xbb   :  { %1041 = vmatpush1.msra.mxu1 %v8186_v17  ;;  %971 = vmatprep.subr.mxu0 %v8190_v12  ;;  %11598 = vst [vmem:[#allocation151_spill] sm:$0xff] %v8210_v0  ;;  %11599 = vst [vmem:[#allocation152_spill] sm:$0xff] %v8214_v10  ;;  %v8216_v16 = vld [vmem:[#allocation11 + $0x38] sm:$0xff]  ;;  %v8220_v17 = vld [vmem:[#allocation11 + $0x20] sm:$0xff] }
  0xbc   :  { %1042 = vmatprep.subr.mxu1 %v8192_v11  ;;  %972 = vmatpush1.msra.mxu0 %v8196_v3  ;;  %11600 = vst [vmem:[#allocation153_spill] sm:$0xff] %v8216_v16  ;;  %11601 = vst [vmem:[#allocation154_spill] sm:$0xff] %v8220_v17  ;;  %v8222_v12 = vld [vmem:[#allocation11 + $0x30] sm:$0xff]  ;;  %v8226_v11 = vld [vmem:[#allocation11 + $0x8] sm:$0xff] }
  0xbd   :  { %1043 = vmatpush1.msra.mxu1 %v8198_v13  ;;  %973 = vmatprep.subr.mxu0 %v8202_v18  ;;  %11602 = vst [vmem:[#allocation155_spill] sm:$0xff] %v8222_v12  ;;  %11603 = vst [vmem:[#allocation156_spill] sm:$0xff] %v8226_v11  ;;  %v8228_v3 = vld [vmem:[#allocation11 + $0x18] sm:$0xff]  ;;  %v137_v13 = vlaneseq  ;;  %v8232_v18 = vld [vmem:[#allocation11] sm:$0xff] }
  0xbe   :  { %1044 = vmatprep.subr.mxu1 %v8204_v5  ;;  %974 = vmatpush1.msra.mxu0 %v8208_v7  ;;  %11604 = vst [vmem:[#allocation157_spill] sm:$0xff] %v8228_v3  ;;  %11605 = vst [vmem:[#allocation158_spill] sm:$0xff] %v8232_v18  ;;  %v8234_v5 = vld [vmem:[#allocation11 + $0x10] sm:$0xff] }
  0xbf   :  { %1045 = vmatpush1.msra.mxu1 %v8210_v0  ;;  %975 = vmatprep.subr.mxu0 %v8214_v10  ;;  %11606 = vst [vmem:[#allocation159_spill] sm:$0xff] %v8234_v5  ;;  %v8242_v0 = vshrl.u32 %v137_v13, 7 }
  0xc0   :  { %1046 = vmatprep.subr.mxu1 %v8216_v16  ;;  %976 = vmatpush1.msra.mxu0 %v8220_v17  ;;  %v135_v17 = vld [vmem:[#allocation9] sm:$0xf] }
  0xc1   :  { %1047 = vmatpush1.msra.mxu1 %v8222_v12  ;;  %977 = vmatprep.subr.mxu0 %v8226_v11  ;;  %11607 = vst [vmem:[#allocation160_spill] sm:$0xff] %v8242_v0  ;;  %v11040_v12 = vsub.s32 0, %v8242_v0  ;;  %v11041_v11 = vsub.s32 1, %v8242_v0  ;;  %v11045_v16 = vsub.s32 2, %v8242_v0 }
  0xc2   :  { %1048 = vmatprep.subr.mxu1 %v8228_v3  ;;  %978 = vmatpush1.msra.mxu0 %v8232_v18 }
  0xc3   :  { %1049 = vmatpush1.msra.mxu1 %v8234_v5  ;;  %1011 = vmatprep.mubr.f32.mxu0 %v11542_v15  ;;  %v140_v18 = vrot.slane %v135_v17, %v11040_v12  ;;  %v144_v13 = vrot.slane %v135_v17, %v11041_v11  ;;  %v148_v9 = vrot.slane %v135_v17, %v11045_v16 }
  0xc4   :  { %1082 = vmatprep.mubr.f32.mxu1 %v11542_v15  ;;  %1212 = vmatprep.subr.mxu0 %v7670_v8 }
  0xc5   :  { %1283 = vmatprep.subr.mxu1 %v7675_v14  ;;  %v11047_v14 = vsub.s32 3, %v8242_v0 }
  0xc7   :  { %v152_v11 = vrot.slane %v135_v17, %v11047_v14 }
 0x11b   :  { %v230_v5 = vpop.f32.mrf.mxu1 }
 0x11c   :  { %v231_v3 = vadd.f32 %v230_v5, %v140_v18 }
 0x11d   :  { %v232_v10 = vpop.f32.mrf.mxu1 }
 0x11e   :  { %318 = vst [vmem:[#allocation2] sm:$0xff] %v231_v3  ;;  %v233_v8 = vadd.f32 %v232_v10, %v144_v13 }
 0x11f   :  { %v236_v7 = vpop.f32.mrf.mxu1 }
 0x120   :  { %319 = vst [vmem:[#allocation2 + $0x8] sm:$0xff] %v233_v8  ;;  %v237_v15 = vadd.f32 %v236_v7, %v140_v18  ;;  %v7578_v18 = vmov 1966171168  }
 0x121   :  { %v238_v1 = vpop.f32.mrf.mxu1  ;;  %v564_v16 = vunpack.c.l.s4 %v7578_v18 }
 0x122   :  { %322 = vst [vmem:[#allocation2 + $0x20] sm:$0xff] %v237_v15  ;;  %v239_v12 = vadd.f32 %v238_v1, %v144_v13 }
 0x123   :  { %v307_v5 = vpop.f32.mrf.mxu1  ;;  %v565_v1 = vunpack.c.0.s8 %v564_v16 }
 0x124   :  { %323 = vst [vmem:[#allocation2 + $0x28] sm:$0xff] %v239_v12  ;;  %v308_v6 = vadd.f32 %v307_v5, %v148_v9 }
 0x125   :  { %v309_v62 = vpop.f32.mrf.mxu1  ;;  %v8261_v17 = vsub.s32 %v565_v1, %v8242_v0 }
 0x126   :  { %320 = vst [vmem:[#allocation2 + $0x10] sm:$0xff] %v308_v6  ;;  %v310_v3 = vadd.f32 %v309_v62, %v152_v11 }
 0x127   :  { %v313_v10 = vpop.f32.mrf.mxu1 }
 0x128   :  { %321 = vst [vmem:[#allocation2 + $0x18] sm:$0xff] %v310_v3  ;;  %v314_v4 = vadd.f32 %v313_v10, %v148_v9 }
 0x129   :  { %v315_v8 = vpop.f32.mrf.mxu1 }
 0x12a   :  { %324 = vst [vmem:[#allocation2 + $0x30] sm:$0xff] %v314_v4  ;;  %v316_v7 = vadd.f32 %v315_v8, %v152_v11 }
 0x12c   :  { %325 = vst [vmem:[#allocation2 + $0x38] sm:$0xff] %v316_v7 }
 0x12f   :  { %v348_v8 = vld [vmem:[#allocation2] ss:$8 sm:$0xf] }
 0x133   :  { %v350_v16 = vld [vmem:[#allocation2 + $0x20] ss:$8 sm:$0xf] }
 0x13d   :  { %v481_v15 = vpop.f32.mrf.mxu0 }
 0x13f   :  { %v483_v13 = vpop.f32.mrf.mxu0 }
 0x140   :  { %v561_v12 = vcombine.low %v481_v15, %v483_v13 }
 0x142   :  { %v569_v62 = vrot.slane %v561_v12, %v8261_v17 }
 0x143   :  { %v552_v60 = vpop.f32.mrf.mxu1 }
 0x145   :  { %v554_v5 = vpop.f32.mrf.mxu1 }
 0x146   :  { %v562_v6 = vcombine.low %v552_v60, %v554_v5 }
 0x148   :  { %v576_v9 = vrot.slane %v562_v6, %v8261_v17 }
 0x14a   :  { %v577_v3 = vcombine.low %v569_v62, %v576_v9  ;;  %v578_v4 = vcombine.high %v569_v62, %v576_v9 }
 0x14c   :  { %v585_v11 = vrot.slane %v577_v3, %v8261_v17  ;;  %v592_v10 = vrot.slane %v578_v4, %v8261_v17 }
 0x14e   :  { %v595_v7 = vadd.f32 %v585_v11, %v348_v8  ;;  %v596_v18 = vadd.f32 %v592_v10, %v350_v16 }
 0x150   :  { %v6837_v14 = vmul.f32 -1.442695, %v595_v7  ;;  %v6838_v1 = vmul.f32 -1.442695, %v596_v18  ;;  %v611_v0 = vrot.slane %v595_v7, 1  ;;  %v612_v15 = vrot.slane %v596_v18, 1 }
 0x151   :  { %v633_v12 = vrot.slane %v595_v7, 3  ;;  %v634_v5 = vrot.slane %v596_v18, 3  ;;  %v627_v6 = vrot.slane %v595_v7, 2  ;;  %v628_v62 = vrot.slane %v596_v18, 2 }
 0x152   :  { %6992 = vpow2.f32 %v6837_v14  ;;  %v6839_v60 = vmul.f32 -1.442695, %v611_v0  ;;  %v6840_v13 = vmul.f32 -1.442695, %v612_v15 }
 0x153   :  { %6994 = vpow2.f32 %v6838_v1  ;;  %v6841_v9 = vmul.f32 -1.442695, %v633_v12  ;;  %v6842_v3 = vmul.f32 -1.442695, %v634_v5 }
 0x154   :  { %6996 = vpow2.f32 %v6839_v60 }
 0x155   :  { %6998 = vpow2.f32 %v6840_v13 }
 0x156   :  { %7000 = vtanh.f32 %v627_v6 }
 0x157   :  { %7002 = vtanh.f32 %v628_v62 }
 0x158   :  { %7004 = vpow2.f32 %v6841_v9 }
 0x159   :  { %7006 = vpow2.f32 %v6842_v3 }
 0x15f   :  { %v6993_v4 = vpop.eup %6992 }
 0x160   :  { %v6995_v11 = vpop.eup %6994  ;;  %v603_v10 = vadd.f32 1.0, %v6993_v4 }
 0x161   :  { %v6997_v8 = vpop.eup %6996  ;;  %v604_v16 = vadd.f32 1.0, %v6995_v11 }
 0x162   :  { %v6999_v0 = vpop.eup %6998  ;;  %7008 = vrcp.f32 %v603_v10  ;;  %v621_v14 = vadd.f32 1.0, %v6997_v8 }
 0x163   :  { %7010 = vrcp.f32 %v604_v16  ;;  %v622_v1 = vadd.f32 1.0, %v6999_v0  ;;  %v7001_v7 = vpop.eup %7000 }
 0x164   :  { %7012 = vrcp.f32 %v621_v14  ;;  %v7003_v18 = vpop.eup %7002 }
 0x165   :  { %7014 = vrcp.f32 %v622_v1  ;;  %v7005_v15 = vpop.eup %7004 }
 0x166   :  { %v7007_v60 = vpop.eup %7006  ;;  %v643_v5 = vadd.f32 1.0, %v7005_v15 }
 0x167   :  { %v644_v62 = vadd.f32 1.0, %v7007_v60 }
 0x168   :  { %7016 = vrcp.f32 %v643_v5  ;;  %v7379_v5 = vld [vmem:[#allocation8 + $0x1a8] sm:$0xff] }
 0x169   :  { %7018 = vrcp.f32 %v644_v62  ;;  %v7380_v62 = vld [vmem:[#allocation8 + $0x1a0] sm:$0xff] }
 0x16f   :  { %v7009_v13 = vpop.eup %7008 }
 0x170   :  { %v7011_v12 = vpop.eup %7010  ;;  %v651_v11 = vmul.f32 %v7009_v13, %v7001_v7  ;;  %v7377_v13 = vld [vmem:[#allocation8 + $0x1c8] sm:$0xff] }
 0x171   :  { %v7013_v6 = vpop.eup %7012  ;;  %v652_v2 = vmul.f32 %v7011_v12, %v7003_v18  ;;  %v7378_v12 = vld [vmem:[#allocation8 + $0x1c0] sm:$0xff] }
 0x172   :  { %v7015_v9 = vpop.eup %7014  ;;  %v649_v4 = vmul.f32 0.0, %v7013_v6 }
 0x173   :  { %v650_v3 = vmul.f32 0.0, %v7015_v9  ;;  %v7381_v9 = vld [vmem:[#allocation8 + $0x188] sm:$0xff] }
 0x174   :  { %v8267_v10 = vadd.f32 %v651_v11, %v649_v4  ;;  %v11651_v4 = vld [vmem:[#allocation61_spill] sm:$0xff]  ;;  %v11652_v11 = vld [vmem:[#allocation62_spill] sm:$0xff] }
 0x175   :  { %v8269_v8 = vadd.f32 %v652_v2, %v650_v3  ;;  %v7017_v16 = vpop.eup %7016  ;;  %v7376_v2 = vld [vmem:[#allocation8 + $0x1e0] sm:$0xff] }
 0x176   :  { %7020 = vtanh.f32 %v8267_v10  ;;  %v7019_v0 = vpop.eup %7018  ;;  %v11653_v3 = vld [vmem:[#allocation63_spill] sm:$0xff] }
 0x177   :  { %7022 = vtanh.f32 %v8269_v8 }
 0x183   :  { %v7021_v14 = vpop.eup %7020 }
 0x184   :  { %v7023_v1 = vpop.eup %7022  ;;  %v657_v15 = vmul.f32 %v7021_v14, %v7017_v16  ;;  %v11654_v16 = vld [vmem:[#allocation64_spill] sm:$0xff]  ;;  %v11656_v14 = vld [vmem:[#allocation66_spill] sm:$0xff] }
 0x185   :  { %v658_v60 = vmul.f32 %v7023_v1, %v7019_v0  ;;  %v11655_v0 = vld [vmem:[#allocation65_spill] sm:$0xff]  ;;  %v11657_v1 = vld [vmem:[#allocation67_spill] sm:$0xff] }
 0x187   :  { %v931_v6 = vcombine.low %v657_v15, %v658_v60  ;;  %v11658_v15 = vld [vmem:[#allocation68_spill] sm:$0xff]  ;;  %v11659_v60 = vld [vmem:[#allocation69_spill] sm:$0xff] }
 0x189   :  { %v938_v7 = vrot.slane %v931_v6, %v8261_v17  ;;  %v11660_v6 = vld [vmem:[#allocation70_spill] sm:$0xff] }
 0x18b   :  { %v8275_v18 = vrot.slane %v938_v7, %v8261_v17  ;;  %v11661_v7 = vld [vmem:[#allocation71_spill] sm:$0xff] }
 0x18d   :  { %1012 = vmatmul.mubr.f32.vlgmr.msra.gmra.mxu0 %v8275_v18  ;;  %1083 = vmatmul.mubr.f32.vlgmr.msra.gmra.mxu1 %v8275_v18 }
 0x18e   :  { %1213 = vmatpush1.msra.mxu0 %v7376_v2  ;;  %1284 = vmatpush1.msra.mxu1 %v7680_v19  ;;  %v11608_v19 = vld [vmem:[#allocation22_spill] sm:$0xff]  ;;  %v11663_v2 = vld [vmem:[#allocation73_spill] sm:$0xff] }
 0x18f   :  { %1214 = vmatprep.subr.mxu0 %v7377_v13  ;;  %1285 = vmatprep.subr.mxu1 %v7682_v20  ;;  %v11609_v20 = vld [vmem:[#allocation19_spill] sm:$0xff]  ;;  %v11664_v13 = vld [vmem:[#allocation74_spill] sm:$0xff] }
 0x190   :  { %1215 = vmatpush1.msra.mxu0 %v7378_v12  ;;  %1286 = vmatpush1.msra.mxu1 %v7687_v22  ;;  %v11611_v22 = vld [vmem:[#allocation20_spill] sm:$0xff]  ;;  %v11665_v12 = vld [vmem:[#allocation75_spill] sm:$0xff] }
 0x191   :  { %1216 = vmatprep.subr.mxu0 %v7379_v5  ;;  %1287 = vmatprep.subr.mxu1 %v7693_v24  ;;  %v11613_v24 = vld [vmem:[#allocation21_spill] sm:$0xff]  ;;  %v11666_v5 = vld [vmem:[#allocation76_spill] sm:$0xff] }
 0x192   :  { %1217 = vmatpush1.msra.mxu0 %v7380_v62  ;;  %1288 = vmatpush1.msra.mxu1 %v7696_v25  ;;  %v11614_v25 = vld [vmem:[#allocation28_spill] sm:$0xff]  ;;  %v11667_v62 = vld [vmem:[#allocation77_spill] sm:$0xff] }
 0x193   :  { %1218 = vmatprep.subr.mxu0 %v7381_v9  ;;  %1289 = vmatprep.subr.mxu1 %v7702_v27  ;;  %v11616_v27 = vld [vmem:[#allocation29_spill] sm:$0xff]  ;;  %v11668_v9 = vld [vmem:[#allocation78_spill] sm:$0xff] }
 0x194   :  { %1219 = vmatpush1.msra.mxu0 %v7684_v21  ;;  %1290 = vmatpush1.msra.mxu1 %v7709_v29  ;;  %v11610_v21 = vld [vmem:[#allocation24_spill] sm:$0xff]  ;;  %v11618_v29 = vld [vmem:[#allocation30_spill] sm:$0xff] }
 0x195   :  { %1220 = vmatprep.subr.mxu0 %v7689_v23  ;;  %1291 = vmatprep.subr.mxu1 %v7715_v31  ;;  %v11612_v23 = vld [vmem:[#allocation26_spill] sm:$0xff]  ;;  %v11620_v31 = vmov 0.0  }
 0x196   :  { %1221 = vmatpush1.msra.mxu0 %v7699_v26  ;;  %1292 = vmatpush1.msra.mxu1 %v7721_v33  ;;  %v11615_v26 = vld [vmem:[#allocation23_spill] sm:$0xff]  ;;  %v11622_v33 = vld [vmem:[#allocation32_spill] sm:$0xff] }
 0x197   :  { %1222 = vmatprep.subr.mxu0 %v7705_v28  ;;  %1293 = vmatprep.subr.mxu1 %v7727_v35  ;;  %v11617_v28 = vld [vmem:[#allocation25_spill] sm:$0xff]  ;;  %v11624_v35 = vld [vmem:[#allocation34_spill] sm:$0xff] }
 0x198   :  { %1223 = vmatpush1.msra.mxu0 %v7711_v30  ;;  %1294 = vmatpush1.msra.mxu1 %v7733_v37  ;;  %v11619_v30 = vld [vmem:[#allocation27_spill] sm:$0xff]  ;;  %v11626_v37 = vld [vmem:[#allocation36_spill] sm:$0xff] }
 0x199   :  { %1224 = vmatprep.subr.mxu0 %v7717_v32  ;;  %1295 = vmatprep.subr.mxu1 %v7739_v39  ;;  %v11621_v32 = vld [vmem:[#allocation31_spill] sm:$0xff]  ;;  %v11628_v39 = vld [vmem:[#allocation38_spill] sm:$0xff] }
 0x19a   :  { %1225 = vmatpush1.msra.mxu0 %v7723_v34  ;;  %1296 = vmatpush1.msra.mxu1 %v7745_v41  ;;  %v11623_v34 = vld [vmem:[#allocation33_spill] sm:$0xff]  ;;  %v11630_v41 = vld [vmem:[#allocation40_spill] sm:$0xff] }
 0x19b   :  { %1226 = vmatprep.subr.mxu0 %v7729_v36  ;;  %1297 = vmatprep.subr.mxu1 %v7751_v43  ;;  %v11625_v36 = vld [vmem:[#allocation35_spill] sm:$0xff]  ;;  %v11632_v43 = vld [vmem:[#allocation42_spill] sm:$0xff] }
 0x19c   :  { %1227 = vmatpush1.msra.mxu0 %v7735_v38  ;;  %1298 = vmatpush1.msra.mxu1 %v7757_v45  ;;  %v11627_v38 = vld [vmem:[#allocation37_spill] sm:$0xff]  ;;  %v11634_v45 = vld [vmem:[#allocation44_spill] sm:$0xff] }
 0x19d   :  { %1228 = vmatprep.subr.mxu0 %v7741_v40  ;;  %1299 = vmatprep.subr.mxu1 %v7763_v47  ;;  %v11629_v40 = vld [vmem:[#allocation39_spill] sm:$0xff]  ;;  %v11636_v47 = vld [vmem:[#allocation46_spill] sm:$0xff] }
 0x19e   :  { %1229 = vmatpush1.msra.mxu0 %v7747_v42  ;;  %1300 = vmatpush1.msra.mxu1 %v7769_v49  ;;  %v11631_v42 = vld [vmem:[#allocation41_spill] sm:$0xff]  ;;  %v11638_v49 = vld [vmem:[#allocation48_spill] sm:$0xff] }
 0x19f   :  { %1230 = vmatprep.subr.mxu0 %v7753_v44  ;;  %1301 = vmatprep.subr.mxu1 %v7775_v51  ;;  %v11633_v44 = vld [vmem:[#allocation43_spill] sm:$0xff]  ;;  %v11640_v51 = vld [vmem:[#allocation50_spill] sm:$0xff] }
 0x1a0   :  { %1231 = vmatpush1.msra.mxu0 %v7759_v46  ;;  %1302 = vmatpush1.msra.mxu1 %v7781_v53  ;;  %v11635_v46 = vld [vmem:[#allocation45_spill] sm:$0xff]  ;;  %v11642_v53 = vld [vmem:[#allocation52_spill] sm:$0xff] }
 0x1a1   :  { %1232 = vmatprep.subr.mxu0 %v7765_v48  ;;  %1303 = vmatprep.subr.mxu1 %v7787_v55  ;;  %v11637_v48 = vld [vmem:[#allocation47_spill] sm:$0xff]  ;;  %v11644_v55 = vld [vmem:[#allocation54_spill] sm:$0xff] }
 0x1a2   :  { %1233 = vmatpush1.msra.mxu0 %v7771_v50  ;;  %1304 = vmatpush1.msra.mxu1 %v7793_v57  ;;  %v11639_v50 = vld [vmem:[#allocation49_spill] sm:$0xff]  ;;  %v11646_v57 = vld [vmem:[#allocation56_spill] sm:$0xff] }
 0x1a3   :  { %1234 = vmatprep.subr.mxu0 %v7777_v52  ;;  %1305 = vmatprep.subr.mxu1 %v7799_v59  ;;  %v11641_v52 = vld [vmem:[#allocation51_spill] sm:$0xff]  ;;  %v11648_v59 = vld [vmem:[#allocation58_spill] sm:$0xff] }
 0x1a4   :  { %1235 = vmatpush1.msra.mxu0 %v7783_v54  ;;  %1306 = vmatpush1.msra.mxu1 %v7805_v61  ;;  %v11643_v54 = vld [vmem:[#allocation53_spill] sm:$0xff]  ;;  %v11649_v61 = vld [vmem:[#allocation59_spill] sm:$0xff] }
 0x1a5   :  { %1236 = vmatprep.subr.mxu0 %v7789_v56  ;;  %1307 = vmatprep.subr.mxu1 %v7811_v63  ;;  %v11645_v56 = vld [vmem:[#allocation55_spill] sm:$0xff]  ;;  %v11650_v63 = vld [vmem:[#allocation60_spill] sm:$0xff] }
 0x1a6   :  { %1237 = vmatpush1.msra.mxu0 %v7795_v58  ;;  %1308 = vmatpush1.msra.mxu1 %v11608_v19  ;;  %v11647_v58 = vld [vmem:[#allocation57_spill] sm:$0xff]  ;;  %v11669_v19 = vld [vmem:[#allocation79_spill] sm:$0xff] }
 0x1a7   :  { %1238 = vmatprep.subr.mxu0 %v11609_v20  ;;  %1309 = vmatprep.subr.mxu1 %v11610_v21  ;;  %v11670_v20 = vld [vmem:[#allocation80_spill] sm:$0xff]  ;;  %v11671_v21 = vld [vmem:[#allocation81_spill] sm:$0xff] }
 0x1a8   :  { %1239 = vmatpush1.msra.mxu0 %v11611_v22  ;;  %1310 = vmatpush1.msra.mxu1 %v11612_v23  ;;  %v11672_v22 = vld [vmem:[#allocation82_spill] sm:$0xff]  ;;  %v11673_v23 = vld [vmem:[#allocation83_spill] sm:$0xff] }
 0x1a9   :  { %1240 = vmatprep.subr.mxu0 %v11613_v24  ;;  %1311 = vmatprep.subr.mxu1 %v11614_v25  ;;  %v11674_v24 = vld [vmem:[#allocation84_spill] sm:$0xff]  ;;  %v11675_v25 = vld [vmem:[#allocation85_spill] sm:$0xff] }
 0x1aa   :  { %1241 = vmatpush1.msra.mxu0 %v11615_v26  ;;  %1312 = vmatpush1.msra.mxu1 %v11616_v27  ;;  %v11676_v26 = vld [vmem:[#allocation86_spill] sm:$0xff]  ;;  %v11677_v27 = vld [vmem:[#allocation87_spill] sm:$0xff] }
 0x1ab   :  { %1242 = vmatprep.subr.mxu0 %v11617_v28  ;;  %1313 = vmatprep.subr.mxu1 %v11618_v29  ;;  %v11678_v28 = vld [vmem:[#allocation88_spill] sm:$0xff]  ;;  %v11679_v29 = vld [vmem:[#allocation89_spill] sm:$0xff] }
 0x1ac   :  { %1243 = vmatpush1.msra.mxu0 %v11619_v30  ;;  %1276 = vmatprep.mubr.f32.mxu0 %v11620_v31  ;;  %v11680_v30 = vld [vmem:[#allocation90_spill] sm:$0xff] }
 0x1ad   :  { %1314 = vmatpush1.msra.mxu1 %v11621_v32  ;;  %1347 = vmatprep.mubr.f32.mxu1 %v11620_v31  ;;  %v11681_v32 = vld [vmem:[#allocation91_spill] sm:$0xff] }
 0x1ae   :  { %1277 = vmatmul.mubr.f32.vlgmr.msra.gmra.mxu0 %v8275_v18  ;;  %1348 = vmatmul.mubr.f32.vlgmr.msra.gmra.mxu1 %v8275_v18  ;;  %v11662_v18 = vld [vmem:[#allocation72_spill] sm:$0xff] }
 0x1af   :  { %1584 = vmatprep.subr.mxu0 %v11622_v33  ;;  %1655 = vmatprep.subr.mxu1 %v11623_v34  ;;  %v11682_v33 = vld [vmem:[#allocation92_spill] sm:$0xff]  ;;  %v11683_v34 = vld [vmem:[#allocation93_spill] sm:$0xff] }
 0x1b0   :  { %1585 = vmatpush1.msra.mxu0 %v11624_v35  ;;  %1656 = vmatpush1.msra.mxu1 %v11625_v36  ;;  %v11684_v35 = vld [vmem:[#allocation94_spill] sm:$0xff]  ;;  %v11685_v36 = vld [vmem:[#allocation95_spill] sm:$0xff] }
 0x1b1   :  { %1586 = vmatprep.subr.mxu0 %v11626_v37  ;;  %1657 = vmatprep.subr.mxu1 %v11627_v38  ;;  %v11686_v37 = vld [vmem:[#allocation96_spill] sm:$0xff]  ;;  %v11687_v38 = vld [vmem:[#allocation97_spill] sm:$0xff] }
 0x1b2   :  { %1587 = vmatpush1.msra.mxu0 %v11628_v39  ;;  %1658 = vmatpush1.msra.mxu1 %v11629_v40  ;;  %v853_v39 = vpop.f32.mrf.mxu0  ;;  %v326_v40 = vld [vmem:[%s10897_s6] sm:$0xf] }
 0x1b3   :  { %1588 = vmatprep.subr.mxu0 %v11630_v41  ;;  %1659 = vmatprep.subr.mxu1 %v11631_v42  ;;  %v924_v41 = vpop.f32.mrf.mxu1 }
 0x1b4   :  { %1589 = vmatpush1.msra.mxu0 %v11632_v43  ;;  %1660 = vmatpush1.msra.mxu1 %v11633_v44  ;;  %v855_v42 = vpop.f32.mrf.mxu0  ;;  %v11688_v43 = vld [vmem:[#allocation160_spill] sm:$0xff] }
 0x1b5   :  { %1590 = vmatprep.subr.mxu0 %v11634_v45  ;;  %1661 = vmatprep.subr.mxu1 %v11635_v46  ;;  %v11689_v44 = vsub.s32 0, %v11688_v43 }
 0x1b6   :  { %1591 = vmatpush1.msra.mxu0 %v11636_v47  ;;  %1662 = vmatpush1.msra.mxu1 %v11637_v48  ;;  %v11690_v47 = vsub.s32 1, %v11688_v43 }
 0x1b7   :  { %1592 = vmatprep.subr.mxu0 %v11638_v49  ;;  %1663 = vmatprep.subr.mxu1 %v11639_v50  ;;  %v8412_v45 = vrot.slane %v326_v40, %v11689_v44  ;;  %v926_v49 = vpop.f32.mrf.mxu1 }
 0x1b8   :  { %1593 = vmatpush1.msra.mxu0 %v11640_v51  ;;  %1664 = vmatpush1.msra.mxu1 %v11641_v52  ;;  %v8416_v48 = vrot.slane %v326_v40, %v11690_v47 }
 0x1b9   :  { %1594 = vmatprep.subr.mxu0 %v11642_v53  ;;  %1665 = vmatprep.subr.mxu1 %v11643_v54 }
 0x1ba   :  { %1595 = vmatpush1.msra.mxu0 %v11644_v55  ;;  %1666 = vmatpush1.msra.mxu1 %v11645_v56 }
 0x1bb   :  { %1596 = vmatprep.subr.mxu0 %v11646_v57  ;;  %1667 = vmatprep.subr.mxu1 %v11647_v58 }
 0x1bc   :  { %1597 = vmatpush1.msra.mxu0 %v11648_v59  ;;  %1668 = vmatpush1.msra.mxu1 %v11649_v61  ;;  %v11691_v59 = vsub.s32 3, %v11688_v43 }
 0x1bd   :  { %1598 = vmatprep.subr.mxu0 %v11650_v63  ;;  %1669 = vmatprep.subr.mxu1 %v11651_v4 }
 0x1be   :  { %1599 = vmatpush1.msra.mxu0 %v11652_v11  ;;  %1670 = vmatpush1.msra.mxu1 %v11653_v3  ;;  %v8422_v61 = vrot.slane %v326_v40, %v11691_v59  ;;  %v11692_v11 = vsub.s32 2, %v11688_v43  ;;  %v11696_v59 = vld [vmem:[#allocation101_spill] sm:$0xff] }
 0x1bf   :  { %1600 = vmatprep.subr.mxu0 %v11654_v16  ;;  %1671 = vmatprep.subr.mxu1 %v11655_v0 }
 0x1c0   :  { %1601 = vmatpush1.msra.mxu0 %v11656_v14  ;;  %1672 = vmatpush1.msra.mxu1 %v11657_v1  ;;  %v8427_v3 = vrot.slane %v326_v40, %v11692_v11  ;;  %v11697_v11 = vld [vmem:[#allocation102_spill] sm:$0xff] }
 0x1c1   :  { %1602 = vmatprep.subr.mxu0 %v11658_v15  ;;  %1673 = vmatprep.subr.mxu1 %v11659_v60 }
 0x1c2   :  { %1603 = vmatpush1.msra.mxu0 %v11660_v6  ;;  %1674 = vmatpush1.msra.mxu1 %v11661_v7 }
 0x1c3   :  { %1604 = vmatprep.subr.mxu0 %v11662_v18  ;;  %1675 = vmatprep.subr.mxu1 %v11663_v2 }
 0x1c4   :  { %1605 = vmatpush1.msra.mxu0 %v11664_v13  ;;  %1676 = vmatpush1.msra.mxu1 %v11665_v12 }
 0x1c5   :  { %1606 = vmatprep.subr.mxu0 %v11666_v5  ;;  %1677 = vmatprep.subr.mxu1 %v11667_v62 }
 0x1c6   :  { %1607 = vmatpush1.msra.mxu0 %v11668_v9  ;;  %1678 = vmatpush1.msra.mxu1 %v11669_v19 }
 0x1c7   :  { %1608 = vmatprep.subr.mxu0 %v11670_v20  ;;  %1679 = vmatprep.subr.mxu1 %v11671_v21 }
 0x1c8   :  { %1609 = vmatpush1.msra.mxu0 %v11672_v22  ;;  %1680 = vmatpush1.msra.mxu1 %v11673_v23 }
 0x1c9   :  { %1610 = vmatprep.subr.mxu0 %v11674_v24  ;;  %1681 = vmatprep.subr.mxu1 %v11675_v25 }
 0x1ca   :  { %1611 = vmatpush1.msra.mxu0 %v11676_v26  ;;  %1682 = vmatpush1.msra.mxu1 %v11677_v27 }
 0x1cb   :  { %1612 = vmatprep.subr.mxu0 %v11678_v28  ;;  %1683 = vmatprep.subr.mxu1 %v11679_v29 }
 0x1cc   :  { %1613 = vmatpush1.msra.mxu0 %v11680_v30  ;;  %1684 = vmatpush1.msra.mxu1 %v11681_v32  ;;  %v1145_v32 = vld [vmem:[#allocation2 + $0x1] ss:$8 sm:$0xf] }
 0x1cd   :  { %1614 = vmatprep.subr.mxu0 %v11682_v33  ;;  %1685 = vmatprep.subr.mxu1 %v11683_v34  ;;  %v1147_v33 = vld [vmem:[#allocation2 + $0x21] ss:$8 sm:$0xf] }
 0x1ce   :  { %1615 = vmatpush1.msra.mxu0 %v11684_v35  ;;  %1648 = vmatprep.mubr.f32.mxu0 %v11620_v31 }
 0x1cf   :  { %1686 = vmatpush1.msra.mxu1 %v11685_v36  ;;  %1719 = vmatprep.mubr.f32.mxu1 %v11620_v31 }
 0x1d0   :  { %1744 = vmatprep.subr.mxu0 %v11686_v37  ;;  %1815 = vmatprep.subr.mxu1 %v11687_v38 }
 0x24d   :  { %v1013_v46 = vpop.f32.mrf.mxu0  ;;  %v1084_v53 = vpop.f32.mrf.mxu1 }
 0x24e   :  { %v1014_v50 = vadd.f32 %v1013_v46, %v853_v39  ;;  %v1085_v16 = vadd.f32 %v1084_v53, %v924_v41 }
 0x24f   :  { %v1015_v51 = vpop.f32.mrf.mxu0  ;;  %v1086_v58 = vpop.f32.mrf.mxu1 }
 0x250   :  { %v1089_v52 = vadd.f32 %v1014_v50, %v8412_v45  ;;  %v1016_v54 = vadd.f32 %v1015_v51, %v855_v42  ;;  %v1087_v63 = vadd.f32 %v1086_v58, %v926_v49  ;;  %v1091_v1 = vadd.f32 %v1085_v16, %v8427_v3  ;;  %v11695_v58 = vld [vmem:[#allocation100_spill] sm:$0xff]  ;;  %v11698_v16 = vld [vmem:[#allocation103_spill] sm:$0xff] }
 0x252   :  { %v6843_v55 = vmul.f32 -1.442695, %v1089_v52  ;;  %v1090_v56 = vadd.f32 %v1016_v54, %v8416_v48  ;;  %v1092_v4 = vadd.f32 %v1087_v63, %v8422_v61  ;;  %v11693_v54 = vld [vmem:[#allocation98_spill] sm:$0xff] }
 0x254   :  { %7024 = vpow2.f32 %v6843_v55  ;;  %v6844_v57 = vmul.f32 -1.442695, %v1090_v56  ;;  %v6845_v0 = vmul.f32 -1.442695, %v1092_v4  ;;  %v11694_v55 = vld [vmem:[#allocation99_spill] sm:$0xff] }
 0x256   :  { %7026 = vpow2.f32 %v6844_v57 }
 0x257   :  { %7028 = vpow2.f32 %v6845_v0 }
 0x261   :  { %v7025_v14 = vpop.eup %7024 }
 0x262   :  { %v1096_v15 = vadd.f32 1.0, %v7025_v14 }
 0x263   :  { %v7027_v60 = vpop.eup %7026 }
 0x264   :  { %7030 = vrcp.f32 %v1096_v15  ;;  %v1102_v6 = vadd.f32 1.0, %v7027_v60  ;;  %v7029_v2 = vpop.eup %7028  ;;  %v11700_v15 = vld [vmem:[#allocation105_spill] sm:$0xff] }
 0x265   :  { %7032 = vtanh.f32 %v1091_v1  ;;  %v1109_v21 = vadd.f32 1.0, %v7029_v2  ;;  %v11699_v1 = vld [vmem:[#allocation104_spill] sm:$0xff] }
 0x266   :  { %7034 = vrcp.f32 %v1102_v6 }
 0x267   :  { %7036 = vrcp.f32 %v1109_v21  ;;  %v11710_v21 = vld [vmem:[#allocation115_spill] sm:$0xff] }
 0x26e   :  { %v1278_v7 = vpop.f32.mrf.mxu0  ;;  %v1349_v18 = vpop.f32.mrf.mxu1 }
 0x270   :  { %v1280_v13 = vpop.f32.mrf.mxu0  ;;  %v1351_v12 = vpop.f32.mrf.mxu1 }
 0x271   :  { %v7031_v5 = vpop.eup %7030  ;;  %v1358_v62 = vcombine.low %v1278_v7, %v1280_v13  ;;  %v1359_v9 = vcombine.low %v1349_v18, %v1351_v12  ;;  %v11701_v7 = vld [vmem:[#allocation106_spill] sm:$0xff]  ;;  %v11702_v18 = vld [vmem:[#allocation107_spill] sm:$0xff]  ;;  %v11703_v13 = vld [vmem:[#allocation108_spill] sm:$0xff] }
 0x272   :  { %v7033_v19 = vpop.eup %7032  ;;  %v11704_v12 = vld [vmem:[#allocation109_spill] sm:$0xff] }
 0x273   :  { %v7035_v20 = vpop.eup %7034  ;;  %v1366_v22 = vrot.slane %v1358_v62, %v8261_v17  ;;  %v1373_v23 = vrot.slane %v1359_v9, %v8261_v17  ;;  %v1113_v25 = vmul.f32 %v7033_v19, %v7031_v5  ;;  %v11705_v5 = vld [vmem:[#allocation110_spill] sm:$0xff]  ;;  %v11706_v62 = vld [vmem:[#allocation111_spill] sm:$0xff]  ;;  %v11707_v9 = vld [vmem:[#allocation112_spill] sm:$0xff] }
 0x274   :  { %v1112_v24 = vmul.f32 0.0, %v7035_v20  ;;  %v7037_v43 = vpop.eup %7036  ;;  %v11708_v19 = vld [vmem:[#allocation113_spill] sm:$0xff]  ;;  %v11709_v20 = vld [vmem:[#allocation114_spill] sm:$0xff] }
 0x275   :  { %v1374_v26 = vcombine.low %v1366_v22, %v1373_v23  ;;  %v1375_v27 = vcombine.high %v1366_v22, %v1373_v23  ;;  %v11711_v22 = vld [vmem:[#allocation116_spill] sm:$0xff]  ;;  %v11712_v23 = vld [vmem:[#allocation117_spill] sm:$0xff] }
 0x276   :  { %v8432_v28 = vadd.f32 %v1113_v25, %v1112_v24  ;;  %v11713_v24 = vld [vmem:[#allocation118_spill] sm:$0xff]  ;;  %v11714_v25 = vld [vmem:[#allocation119_spill] sm:$0xff] }
 0x277   :  { %v1382_v29 = vrot.slane %v1374_v26, %v8261_v17  ;;  %v1389_v30 = vrot.slane %v1375_v27, %v8261_v17  ;;  %v11715_v26 = vld [vmem:[#allocation120_spill] sm:$0xff]  ;;  %v11716_v27 = vld [vmem:[#allocation121_spill] sm:$0xff] }
 0x278   :  { %7038 = vtanh.f32 %v8432_v28 }
 0x279   :  { %v1392_v34 = vadd.f32 %v1382_v29, %v1145_v32  ;;  %v1393_v35 = vadd.f32 %v1389_v30, %v1147_v33  ;;  %v11717_v29 = vld [vmem:[#allocation122_spill] sm:$0xff]  ;;  %v11718_v30 = vld [vmem:[#allocation123_spill] sm:$0xff]  ;;  %v11719_v33 = vld [vmem:[#allocation124_spill] sm:$0xff] }
 0x27b   :  { %v6848_v36 = vmul.f32 -1.442695, %v1392_v34  ;;  %v6849_v37 = vmul.f32 -1.442695, %v1393_v35  ;;  %v1408_v38 = vrot.slane %v1392_v34, 1  ;;  %v1409_v39 = vrot.slane %v1393_v35, 1 }
 0x27c   :  { %v1430_v42 = vrot.slane %v1392_v34, 3  ;;  %v1431_v44 = vrot.slane %v1393_v35, 3  ;;  %v1424_v47 = vrot.slane %v1392_v34, 2  ;;  %v1425_v49 = vrot.slane %v1393_v35, 2  ;;  %v11720_v34 = vld [vmem:[#allocation125_spill] sm:$0xff] }
 0x27d   :  { %7040 = vpow2.f32 %v6848_v36  ;;  %v6850_v40 = vmul.f32 -1.442695, %v1408_v38  ;;  %v6851_v41 = vmul.f32 -1.442695, %v1409_v39  ;;  %v11721_v36 = vld [vmem:[#allocation126_spill] sm:$0xff]  ;;  %v11723_v39 = vld [vmem:[#allocation128_spill] sm:$0xff] }
 0x27e   :  { %7042 = vpow2.f32 %v6849_v37  ;;  %v6852_v51 = vmul.f32 -1.442695, %v1430_v42  ;;  %v6853_v52 = vmul.f32 -1.442695, %v1431_v44  ;;  %v11722_v37 = vld [vmem:[#allocation127_spill] sm:$0xff]  ;;  %v11725_v42 = vld [vmem:[#allocation130_spill] sm:$0xff] }
 0x27f   :  { %7044 = vpow2.f32 %v6850_v40  ;;  %v11724_v40 = vld [vmem:[#allocation129_spill] sm:$0xff] }
 0x280   :  { %7046 = vpow2.f32 %v6851_v41 }
 0x281   :  { %7048 = vtanh.f32 %v1424_v47  ;;  %v11728_v47 = vld [vmem:[#allocation133_spill] sm:$0xff] }
 0x282   :  { %7050 = vtanh.f32 %v1425_v49 }
 0x283   :  { %7052 = vpow2.f32 %v6852_v51  ;;  %v11729_v51 = vld [vmem:[#allocation134_spill] sm:$0xff] }
 0x284   :  { %7054 = vpow2.f32 %v6853_v52  ;;  %v11730_v52 = vld [vmem:[#allocation135_spill] sm:$0xff] }
 0x285   :  { %v7039_v46 = vpop.eup %7038 }
 0x286   :  { %v1116_v50 = vmul.f32 %v7039_v46, %v7037_v43  ;;  %v11726_v43 = vld [vmem:[#allocation131_spill] sm:$0xff]  ;;  %v11727_v46 = vld [vmem:[#allocation132_spill] sm:$0xff] }
 0x288   :  { %v1124_v53 = vrot.slane %v1116_v50, %v8261_v17  ;;  %1649 = vmatmul.mubr.f32.vlgmr.msra.gmra.mxu0 %v1116_v50  ;;  %1720 = vmatmul.mubr.f32.vlgmr.msra.gmra.mxu1 %v1116_v50 }
 0x289   :  { %1745 = vmatpush1.msra.mxu0 %v11693_v54  ;;  %1816 = vmatpush1.msra.mxu1 %v11694_v55  ;;  %v11731_v55 = vld [vmem:[#allocation136_spill] sm:$0xff] }
 0x28a   :  { %v7041_v56 = vpop.eup %7040  ;;  %v1125_v57 = vcombine.high %v1124_v53, %v1124_v53  ;;  %6846 = vst.sshfl [vmem:[#allocation3] sm:$0x1 pattern:$0x73625140] %v1124_v53  ;;  %1746 = vmatprep.subr.mxu0 %v11695_v58  ;;  %1817 = vmatprep.subr.mxu1 %v11696_v59  ;;  %v11733_v59 = vld [vmem:[#allocation138_spill] sm:$0xff] }
 0x28b   :  { %v7043_v63 = vpop.eup %7042  ;;  %v1400_v4 = vadd.f32 1.0, %v7041_v56  ;;  %1747 = vmatpush1.msra.mxu0 %v11697_v11  ;;  %1818 = vmatpush1.msra.mxu1 %v11698_v16  ;;  %v11732_v56 = vld [vmem:[#allocation137_spill] sm:$0xff]  ;;  %v11735_v16 = vld [vmem:[#allocation140_spill] sm:$0xff] }
 0x28c   :  { %v7045_v0 = vpop.eup %7044  ;;  %v1401_v14 = vadd.f32 1.0, %v7043_v63  ;;  %6847 = vst.sshfl [vmem:[#allocation3 + $0x8] sm:$0x1 pattern:$0x73625140] %v1125_v57  ;;  %1748 = vmatprep.subr.mxu0 %v11699_v1  ;;  %1819 = vmatprep.subr.mxu1 %v11700_v15  ;;  %v11734_v63 = vld [vmem:[#allocation139_spill] sm:$0xff] }
 0x28d   :  { %v7047_v60 = vpop.eup %7046  ;;  %7056 = vrcp.f32 %v1400_v4  ;;  %v1418_v6 = vadd.f32 1.0, %v7045_v0  ;;  %1749 = vmatpush1.msra.mxu0 %v11701_v7  ;;  %1820 = vmatpush1.msra.mxu1 %v11702_v18  ;;  %v11736_v0 = vld [vmem:[#allocation141_spill] sm:$0xff]  ;;  %v11737_v1 = vld [vmem:[#allocation142_spill] sm:$0xff]  ;;  %v11738_v15 = vld [vmem:[#allocation143_spill] sm:$0xff] }
 0x28e   :  { %7058 = vrcp.f32 %v1401_v14  ;;  %v1419_v2 = vadd.f32 1.0, %v7047_v60  ;;  %1750 = vmatprep.subr.mxu0 %v11703_v13  ;;  %1821 = vmatprep.subr.mxu1 %v11704_v12  ;;  %v7049_v32 = vpop.eup %7048  ;;  %v11740_v7 = vld [vmem:[#allocation145_spill] sm:$0xff]  ;;  %v11741_v18 = vld [vmem:[#allocation146_spill] sm:$0xff] }
 0x28f   :  { %7060 = vrcp.f32 %v1418_v6  ;;  %1751 = vmatpush1.msra.mxu0 %v11705_v5  ;;  %1822 = vmatpush1.msra.mxu1 %v11706_v62  ;;  %v7051_v35 = vpop.eup %7050  ;;  %v11739_v6 = vld [vmem:[#allocation144_spill] sm:$0xff]  ;;  %v11744_v13 = vld [vmem:[#allocation149_spill] sm:$0xff]  ;;  %v11745_v12 = vld [vmem:[#allocation150_spill] sm:$0xff] }
 0x290   :  { %7062 = vrcp.f32 %v1419_v2  ;;  %1752 = vmatprep.subr.mxu0 %v11707_v9  ;;  %1823 = vmatprep.subr.mxu1 %v11708_v19  ;;  %v7053_v38 = vpop.eup %7052  ;;  %v11742_v2 = vld [vmem:[#allocation147_spill] sm:$0xff]  ;;  %v11747_v62 = vld [vmem:[#allocation152_spill] sm:$0xff]  ;;  %v11748_v9 = vld [vmem:[#allocation153_spill] sm:$0xff] }
 0x291   :  { %1753 = vmatpush1.msra.mxu0 %v11709_v20  ;;  %1824 = vmatpush1.msra.mxu1 %v11710_v21  ;;  %v7055_v41 = vpop.eup %7054  ;;  %v1440_v50 = vadd.f32 1.0, %v7053_v38  ;;  %v11746_v5 = vld [vmem:[#allocation151_spill] sm:$0xff]  ;;  %v11749_v19 = vld [vmem:[#allocation154_spill] sm:$0xff]  ;;  %v11751_v21 = vld [vmem:[#allocation156_spill] sm:$0xff] }
 0x292   :  { %1754 = vmatprep.subr.mxu0 %v11711_v22  ;;  %1825 = vmatprep.subr.mxu1 %v11712_v23  ;;  %v1441_v54 = vadd.f32 1.0, %v7055_v41  ;;  %v11750_v20 = vld [vmem:[#allocation155_spill] sm:$0xff]  ;;  %v11752_v22 = vld [vmem:[#allocation157_spill] sm:$0xff] }
 0x293   :  { %1755 = vmatpush1.msra.mxu0 %v11713_v24  ;;  %1826 = vmatpush1.msra.mxu1 %v11714_v25  ;;  %7064 = vrcp.f32 %v1440_v50  ;;  %v2006_v23 = vld [vmem:[#allocation8 + $0x1e8] sm:$0xff]  ;;  %v2008_v24 = vld [vmem:[#allocation8 + $0x1f8] sm:$0xff]  ;;  %v2005_v38 = vld [vmem:[#allocation8 + $0x1e0] sm:$0xff] }
 0x294   :  { %1756 = vmatprep.subr.mxu0 %v11715_v26  ;;  %1827 = vmatprep.subr.mxu1 %v11716_v27  ;;  %7066 = vrcp.f32 %v1441_v54  ;;  %v11753_v25 = vld [vmem:[#allocation158_spill] sm:$0xff]  ;;  %v11754_v26 = vld [vmem:[#allocation159_spill] sm:$0xff] }
 0x295   :  { %1757 = vmatpush1.msra.mxu0 %v11717_v29  ;;  %1828 = vmatpush1.msra.mxu1 %v11718_v30  ;;  %v2004_v41 = vld [vmem:[#allocation8 + $0x1d8] sm:$0xff]  ;;  %v8516_v50 = vld [vmem:[#allocation8 + $0x188] sm:$0xff] }
 0x296   :  { %1758 = vmatprep.subr.mxu0 %v11719_v33  ;;  %1829 = vmatprep.subr.mxu1 %v11720_v34  ;;  %v8524_v54 = vld [vmem:[#allocation8 + $0x168] sm:$0xff] }
 0x297   :  { %1759 = vmatpush1.msra.mxu0 %v11721_v36  ;;  %1830 = vmatpush1.msra.mxu1 %v11722_v37 }
 0x298   :  { %1760 = vmatprep.subr.mxu0 %v11723_v39  ;;  %1831 = vmatprep.subr.mxu1 %v11724_v40  ;;  %v2007_v39 = vld [vmem:[#allocation8 + $0x1f0] sm:$0xff]  ;;  %v2002_v40 = vld [vmem:[#allocation8 + $0x1c8] sm:$0xff] }
 0x299   :  { %1761 = vmatpush1.msra.mxu0 %v11725_v42  ;;  %1832 = vmatpush1.msra.mxu1 %v11726_v43  ;;  %v2001_v42 = vld [vmem:[#allocation8 + $0x1c0] sm:$0xff]  ;;  %v2003_v43 = vld [vmem:[#allocation8 + $0x1d0] sm:$0xff] }
 0x29a   :  { %v7057_v44 = vpop.eup %7056  ;;  %1762 = vmatprep.subr.mxu0 %v11727_v46  ;;  %1833 = vmatprep.subr.mxu1 %v11728_v47  ;;  %v2000_v46 = vld [vmem:[#allocation8 + $0x1b8] sm:$0xff]  ;;  %v1997_v47 = vld [vmem:[#allocation8 + $0x1a0] sm:$0xff] }
 0x29b   :  { %v7059_v49 = vpop.eup %7058  ;;  %1763 = vmatpush1.msra.mxu0 %v11729_v51  ;;  %1834 = vmatpush1.msra.mxu1 %v11730_v52  ;;  %v1448_v58 = vmul.f32 %v7057_v44, %v7049_v32  ;;  %v1998_v44 = vld [vmem:[#allocation8 + $0x1a8] sm:$0xff]  ;;  %v8518_v51 = vld [vmem:[#allocation8 + $0x198] sm:$0xff]  ;;  %v8520_v52 = vld [vmem:[#allocation8 + $0x180] sm:$0xff] }
 0x29c   :  { %v7061_v53 = vpop.eup %7060  ;;  %1764 = vmatprep.subr.mxu0 %v11731_v55  ;;  %1835 = vmatprep.subr.mxu1 %v11732_v56  ;;  %v1449_v11 = vmul.f32 %v7059_v49, %v7051_v35  ;;  %v1999_v49 = vld [vmem:[#allocation8 + $0x1b0] sm:$0xff]  ;;  %v8526_v55 = vld [vmem:[#allocation8 + $0x178] sm:$0xff]  ;;  %v8530_v56 = vld [vmem:[#allocation8 + $0x160] sm:$0xff] }
 0x29d   :  { %v7063_v57 = vpop.eup %7062  ;;  %1765 = vmatpush1.msra.mxu0 %v11733_v59  ;;  %1836 = vmatpush1.msra.mxu1 %v11734_v63  ;;  %v1446_v4 = vmul.f32 %v7061_v53, %v8267_v10  ;;  %v8522_v53 = vld [vmem:[#allocation8 + $0x190] sm:$0xff]  ;;  %v8538_v59 = vld [vmem:[#allocation8 + $0x158] sm:$0xff]  ;;  %v8542_v63 = vld [vmem:[#allocation8 + $0x140] sm:$0xff] }
 0x29e   :  { %1766 = vmatprep.subr.mxu0 %v11735_v16  ;;  %1837 = vmatprep.subr.mxu1 %v11736_v0  ;;  %v1447_v14 = vmul.f32 %v7063_v57, %v8269_v8  ;;  %v11743_v8 = vld [vmem:[#allocation148_spill] sm:$0xff]  ;;  %v8550_v16 = vld [vmem:[#allocation8 + $0x138] sm:$0xff]  ;;  %v8554_v0 = vld [vmem:[#allocation8 + $0x120] sm:$0xff] }
 0x29f   :  { %1767 = vmatpush1.msra.mxu0 %v11737_v1  ;;  %1838 = vmatpush1.msra.mxu1 %v11738_v15  ;;  %v8486_v60 = vadd.f32 %v1448_v58, %v1446_v4  ;;  %v8532_v57 = vld [vmem:[#allocation8 + $0x170] sm:$0xff]  ;;  %v8536_v58 = vld [vmem:[#allocation8 + $0x148] sm:$0xff]  ;;  %v8562_v15 = vld [vmem:[#allocation8 + $0x118] sm:$0xff] }
 0x2a0   :  { %1768 = vmatprep.subr.mxu0 %v11739_v6  ;;  %1839 = vmatprep.subr.mxu1 %v11740_v7  ;;  %v8490_v10 = vadd.f32 %v1449_v11, %v1447_v14  ;;  %v7065_v27 = vpop.eup %7064  ;;  %v8544_v4 = vld [vmem:[#allocation8 + $0x150] sm:$0xff]  ;;  %v8548_v11 = vld [vmem:[#allocation8 + $0x128] sm:$0xff]  ;;  %v8566_v6 = vld [vmem:[#allocation8 + $0x100] sm:$0xff] }
 0x2a1   :  { %1769 = vmatpush1.msra.mxu0 %v11741_v18  ;;  %1840 = vmatpush1.msra.mxu1 %v11742_v2  ;;  %7068 = vtanh.f32 %v8486_v60  ;;  %v7067_v29 = vpop.eup %7066  ;;  %v8556_v14 = vld [vmem:[#allocation8 + $0x130] sm:$0xff]  ;;  %v8560_v1 = vld [vmem:[#allocation8 + $0x108] sm:$0xff]  ;;  %v8574_v2 = vld [vmem:[#allocation8 + $0xf8] sm:$0xff] }
 0x2a2   :  { %1770 = vmatprep.subr.mxu0 %v11743_v8  ;;  %1841 = vmatprep.subr.mxu1 %v11744_v13  ;;  %7070 = vtanh.f32 %v8490_v10  ;;  %v8568_v7 = vld [vmem:[#allocation8 + $0x110] sm:$0xff]  ;;  %v8572_v18 = vld [vmem:[#allocation8 + $0xe8] sm:$0xff]  ;;  %v8578_v8 = vld [vmem:[#allocation8 + $0xe0] sm:$0xff] }
 0x2a3   :  { %1771 = vmatpush1.msra.mxu0 %v11745_v12  ;;  %1842 = vmatpush1.msra.mxu1 %v11746_v5  ;;  %v8580_v13 = vld [vmem:[#allocation8 + $0xf0] sm:$0xff]  ;;  %v8584_v12 = vld [vmem:[#allocation8 + $0xc8] sm:$0xff]  ;;  %v8586_v5 = vld [vmem:[#allocation8 + $0xd8] sm:$0xff] }
 0x2a4   :  { %1772 = vmatprep.subr.mxu0 %v11747_v62  ;;  %1843 = vmatprep.subr.mxu1 %v11748_v9  ;;  %v8590_v62 = vld [vmem:[#allocation8 + $0xc0] sm:$0xff]  ;;  %v8592_v9 = vld [vmem:[#allocation8 + $0xd0] sm:$0xff] }
 0x2a5   :  { %1773 = vmatpush1.msra.mxu0 %v11749_v19  ;;  %1844 = vmatpush1.msra.mxu1 %v11750_v20  ;;  %v8596_v19 = vld [vmem:[#allocation8 + $0xa8] sm:$0xff]  ;;  %v8598_v20 = vld [vmem:[#allocation8 + $0xb8] sm:$0xff] }
 0x2a6   :  { %1774 = vmatprep.subr.mxu0 %v11751_v21  ;;  %1845 = vmatprep.subr.mxu1 %v11752_v22  ;;  %v8602_v21 = vld [vmem:[#allocation8 + $0xa0] sm:$0xff]  ;;  %v8604_v22 = vld [vmem:[#allocation8 + $0xb0] sm:$0xff] }
 0x2a7   :  { %1775 = vmatpush1.msra.mxu0 %v11753_v25  ;;  %1846 = vmatpush1.msra.mxu1 %v11754_v26  ;;  %v8614_v25 = vld [vmem:[#allocation8 + $0x80] sm:$0xff]  ;;  %v8616_v26 = vld [vmem:[#allocation8 + $0x90] sm:$0xff] }
 0x2a8   :  { %1808 = vmatprep.mubr.f32.mxu0 %v11620_v31  ;;  %1879 = vmatprep.mubr.f32.mxu1 %v11620_v31  ;;  %11755 = vst [vmem:[#allocation22_spill] sm:$0xff] %v8616_v26 }
 0x2a9   :  { %2009 = vmatprep.subr.mxu0 %v2006_v23  ;;  %2080 = vmatprep.subr.mxu1 %v2008_v24  ;;  %v8608_v23 = vld [vmem:[#allocation8 + $0x88] sm:$0xff]  ;;  %v8610_v24 = vld [vmem:[#allocation8 + $0x98] sm:$0xff] }
 0x2ae   :  { %v7069_v30 = vpop.eup %7068 }
 0x2af   :  { %v7071_v32 = vpop.eup %7070  ;;  %v1454_v33 = vmul.f32 %v7069_v30, %v7065_v27  ;;  %v8620_v27 = vld [vmem:[#allocation8 + $0x68] sm:$0xff]  ;;  %v8626_v30 = vld [vmem:[#allocation8 + $0x60] sm:$0xff] }
 0x2b0   :  { %v1455_v34 = vmul.f32 %v7071_v32, %v7067_v29  ;;  %11756 = vst [vmem:[#allocation19_spill] sm:$0xff] %v8620_v27  ;;  %v8622_v29 = vld [vmem:[#allocation8 + $0x78] sm:$0xff]  ;;  %11758 = vst [vmem:[#allocation20_spill] sm:$0xff] %v8626_v30  ;;  %v8628_v32 = vld [vmem:[#allocation8 + $0x70] sm:$0xff] }
 0x2b1   :  { %11757 = vst [vmem:[#allocation24_spill] sm:$0xff] %v8622_v29  ;;  %11759 = vst [vmem:[#allocation26_spill] sm:$0xff] %v8628_v32 }
 0x2b2   :  { %v1728_v35 = vcombine.low %v1454_v33, %v1455_v34  ;;  %v8632_v33 = vld [vmem:[#allocation8 + $0x48] sm:$0xff]  ;;  %v8634_v34 = vld [vmem:[#allocation8 + $0x58] sm:$0xff] }
 0x2b3   :  { %11760 = vst [vmem:[#allocation21_spill] sm:$0xff] %v8632_v33  ;;  %11761 = vst [vmem:[#allocation28_spill] sm:$0xff] %v8634_v34 }
 0x2b4   :  { %v1735_v36 = vrot.slane %v1728_v35, %v8261_v17  ;;  %v8638_v35 = vld [vmem:[#allocation8 + $0x40] sm:$0xff] }
 0x2b5   :  { %11762 = vst [vmem:[#allocation23_spill] sm:$0xff] %v8638_v35 }
 0x2b6   :  { %v8512_v37 = vrot.slane %v1735_v36, %v8261_v17  ;;  %v8640_v36 = vld [vmem:[#allocation8 + $0x50] sm:$0xff] }
 0x2b7   :  { %11763 = vst [vmem:[#allocation29_spill] sm:$0xff] %v8640_v36 }
 0x2b8   :  { %1809 = vmatmul.mubr.f32.vlgmr.msra.gmra.mxu0 %v8512_v37  ;;  %1880 = vmatmul.mubr.f32.vlgmr.msra.gmra.mxu1 %v8512_v37 }
 0x2b9   :  { %2010 = vmatpush1.msra.mxu0 %v2005_v38  ;;  %2081 = vmatpush1.msra.mxu1 %v2007_v39  ;;  %v8644_v38 = vld [vmem:[#allocation8 + $0x28] sm:$0xff]  ;;  %v8646_v39 = vld [vmem:[#allocation8 + $0x38] sm:$0xff] }
 0x2ba   :  { %2011 = vmatprep.subr.mxu0 %v2002_v40  ;;  %2082 = vmatprep.subr.mxu1 %v2004_v41  ;;  %11764 = vst [vmem:[#allocation25_spill] sm:$0xff] %v8644_v38  ;;  %11765 = vst [vmem:[#allocation30_spill] sm:$0xff] %v8646_v39  ;;  %v8650_v40 = vld [vmem:[#allocation8 + $0x20] sm:$0xff]  ;;  %v8652_v41 = vld [vmem:[#allocation8 + $0x30] sm:$0xff] }
 0x2bb   :  { %2012 = vmatpush1.msra.mxu0 %v2001_v42  ;;  %2083 = vmatpush1.msra.mxu1 %v2003_v43  ;;  %11766 = vst [vmem:[#allocation27_spill] sm:$0xff] %v8650_v40  ;;  %11767 = vst [vmem:[#allocation31_spill] sm:$0xff] %v8652_v41  ;;  %v8656_v42 = vld [vmem:[#allocation8 + $0x8] sm:$0xff]  ;;  %v8658_v43 = vld [vmem:[#allocation8 + $0x18] sm:$0xff] }
 0x2bc   :  { %2013 = vmatprep.subr.mxu0 %v1998_v44  ;;  %2084 = vmatprep.subr.mxu1 %v2000_v46  ;;  %11768 = vst [vmem:[#allocation32_spill] sm:$0xff] %v8656_v42  ;;  %11769 = vst [vmem:[#allocation33_spill] sm:$0xff] %v8658_v43  ;;  %v8662_v44 = vld [vmem:[#allocation8] sm:$0xff]  ;;  %v8666_v46 = vld [vmem:[#allocation8 + $0x10] sm:$0xff] }
 0x2bd   :  { %2014 = vmatpush1.msra.mxu0 %v1997_v47  ;;  %2085 = vmatpush1.msra.mxu1 %v1999_v49  ;;  %11770 = vst [vmem:[#allocation34_spill] sm:$0xff] %v8662_v44  ;;  %11771 = vst [vmem:[#allocation35_spill] sm:$0xff] %v8666_v46  ;;  %v8678_v47 = vld [vmem:[#allocation12 + $0x1e8] sm:$0xff]  ;;  %v8680_v49 = vld [vmem:[#allocation12 + $0x1f8] sm:$0xff] }
 0x2be   :  { %2015 = vmatprep.subr.mxu0 %v8516_v50  ;;  %2086 = vmatprep.subr.mxu1 %v8518_v51  ;;  %11772 = vst [vmem:[#allocation36_spill] sm:$0xff] %v8678_v47  ;;  %11773 = vst [vmem:[#allocation37_spill] sm:$0xff] %v8680_v49 }
 0x2bf   :  { %2016 = vmatpush1.msra.mxu0 %v8520_v52  ;;  %2087 = vmatpush1.msra.mxu1 %v8522_v53 }
 0x2c0   :  { %2017 = vmatprep.subr.mxu0 %v8524_v54  ;;  %2088 = vmatprep.subr.mxu1 %v8526_v55 }
 0x2c1   :  { %2018 = vmatpush1.msra.mxu0 %v8530_v56  ;;  %2089 = vmatpush1.msra.mxu1 %v8532_v57 }
 0x2c2   :  { %2019 = vmatprep.subr.mxu0 %v8536_v58  ;;  %2090 = vmatprep.subr.mxu1 %v8538_v59 }
 0x2c3   :  { %2020 = vmatpush1.msra.mxu0 %v8542_v63  ;;  %2091 = vmatpush1.msra.mxu1 %v8544_v4 }
 0x2c4   :  { %2021 = vmatprep.subr.mxu0 %v8548_v11  ;;  %2092 = vmatprep.subr.mxu1 %v8550_v16 }
 0x2c5   :  { %2022 = vmatpush1.msra.mxu0 %v8554_v0  ;;  %2093 = vmatpush1.msra.mxu1 %v8556_v14 }
 0x2c6   :  { %2023 = vmatprep.subr.mxu0 %v8560_v1  ;;  %2094 = vmatprep.subr.mxu1 %v8562_v15 }
 0x2c7   :  { %2024 = vmatpush1.msra.mxu0 %v8566_v6  ;;  %2095 = vmatpush1.msra.mxu1 %v8568_v7 }
 0x2c8   :  { %2025 = vmatprep.subr.mxu0 %v8572_v18  ;;  %2096 = vmatprep.subr.mxu1 %v8574_v2 }
 0x2c9   :  { %2026 = vmatpush1.msra.mxu0 %v8578_v8  ;;  %2097 = vmatpush1.msra.mxu1 %v8580_v13 }
 0x2ca   :  { %2027 = vmatprep.subr.mxu0 %v8584_v12  ;;  %2098 = vmatprep.subr.mxu1 %v8586_v5 }
 0x2cb   :  { %2028 = vmatpush1.msra.mxu0 %v8590_v62  ;;  %2099 = vmatpush1.msra.mxu1 %v8592_v9 }
 0x2cc   :  { %2029 = vmatprep.subr.mxu0 %v8596_v19  ;;  %2100 = vmatprep.subr.mxu1 %v8598_v20 }
 0x2cd   :  { %2030 = vmatpush1.msra.mxu0 %v8602_v21  ;;  %2101 = vmatpush1.msra.mxu1 %v8604_v22 }
 0x2ce   :  { %2031 = vmatprep.subr.mxu0 %v8608_v23  ;;  %2102 = vmatprep.subr.mxu1 %v8610_v24 }
 0x2cf   :  { %2032 = vmatpush1.msra.mxu0 %v8614_v25  ;;  %2103 = vmatpush1.msra.mxu1 %v8616_v26 }
 0x2d0   :  { %2033 = vmatprep.subr.mxu0 %v8620_v27  ;;  %2104 = vmatprep.subr.mxu1 %v8622_v29 }
 0x2d1   :  { %2034 = vmatpush1.msra.mxu0 %v8626_v30  ;;  %2105 = vmatpush1.msra.mxu1 %v8628_v32 }
 0x2d2   :  { %2035 = vmatprep.subr.mxu0 %v8632_v33  ;;  %2106 = vmatprep.subr.mxu1 %v8634_v34 }
 0x2d3   :  { %2036 = vmatpush1.msra.mxu0 %v8638_v35  ;;  %2107 = vmatpush1.msra.mxu1 %v8640_v36 }
 0x2d4   :  { %2037 = vmatprep.subr.mxu0 %v8644_v38  ;;  %2108 = vmatprep.subr.mxu1 %v8646_v39 }
 0x2d5   :  { %2038 = vmatpush1.msra.mxu0 %v8650_v40  ;;  %2109 = vmatpush1.msra.mxu1 %v8652_v41 }
 0x2d6   :  { %2039 = vmatprep.subr.mxu0 %v8656_v42  ;;  %2110 = vmatprep.subr.mxu1 %v8658_v43  ;;  %v8692_v43 = vld [vmem:[#allocation12 + $0x1d8] sm:$0xff]  ;;  %v8696_v42 = vld [vmem:[#allocation12 + $0x1c0] sm:$0xff] }
 0x2d7   :  { %2040 = vmatpush1.msra.mxu0 %v8662_v44  ;;  %2073 = vmatprep.mubr.f32.mxu0 %v11620_v31  ;;  %v8684_v44 = vld [vmem:[#allocation12 + $0x1e0] sm:$0xff]  ;;  %11777 = vst [vmem:[#allocation41_spill] sm:$0xff] %v8692_v43  ;;  %11778 = vst [vmem:[#allocation42_spill] sm:$0xff] %v8696_v42 }
 0x2d8   :  { %2111 = vmatpush1.msra.mxu1 %v8666_v46  ;;  %2144 = vmatprep.mubr.f32.mxu1 %v11620_v31  ;;  %11774 = vst [vmem:[#allocation38_spill] sm:$0xff] %v8684_v44  ;;  %v8686_v46 = vld [vmem:[#allocation12 + $0x1f0] sm:$0xff] }
 0x2d9   :  { %2074 = vmatmul.mubr.f32.vlgmr.msra.gmra.mxu0 %v8512_v37  ;;  %2145 = vmatmul.mubr.f32.vlgmr.msra.gmra.mxu1 %v8512_v37  ;;  %11775 = vst [vmem:[#allocation39_spill] sm:$0xff] %v8686_v46  ;;  %v8690_v37 = vld [vmem:[#allocation12 + $0x1c8] sm:$0xff] }
 0x2da   :  { %2445 = vmatprep.mubr.f32.mxu0 %v11620_v31  ;;  %2516 = vmatprep.mubr.f32.mxu1 %v11620_v31  ;;  %11776 = vst [vmem:[#allocation40_spill] sm:$0xff] %v8690_v37 }
 0x2db   :  { %2381 = vmatprep.subr.mxu0 %v8678_v47  ;;  %2452 = vmatprep.subr.mxu1 %v8680_v49  ;;  %v8698_v47 = vld [vmem:[#allocation12 + $0x1d0] sm:$0xff]  ;;  %v8702_v49 = vld [vmem:[#allocation12 + $0x1a8] sm:$0xff] }
 0x2dc   :  { %2382 = vmatpush1.msra.mxu0 %v8684_v44  ;;  %2453 = vmatpush1.msra.mxu1 %v8686_v46  ;;  %11779 = vst [vmem:[#allocation43_spill] sm:$0xff] %v8698_v47  ;;  %11780 = vst [vmem:[#allocation44_spill] sm:$0xff] %v8702_v49  ;;  %v8704_v44 = vld [vmem:[#allocation12 + $0x1b8] sm:$0xff]  ;;  %v8708_v46 = vld [vmem:[#allocation12 + $0x1a0] sm:$0xff] }
 0x2dd   :  { %2383 = vmatprep.subr.mxu0 %v8690_v37  ;;  %2454 = vmatprep.subr.mxu1 %v8692_v43  ;;  %11781 = vst [vmem:[#allocation45_spill] sm:$0xff] %v8704_v44  ;;  %11782 = vst [vmem:[#allocation46_spill] sm:$0xff] %v8708_v46  ;;  %v8710_v37 = vld [vmem:[#allocation12 + $0x1b0] sm:$0xff]  ;;  %v8714_v43 = vld [vmem:[#allocation12 + $0x188] sm:$0xff] }
 0x2de   :  { %2384 = vmatpush1.msra.mxu0 %v8696_v42  ;;  %2455 = vmatpush1.msra.mxu1 %v8698_v47  ;;  %11783 = vst [vmem:[#allocation47_spill] sm:$0xff] %v8710_v37  ;;  %11784 = vst [vmem:[#allocation48_spill] sm:$0xff] %v8714_v43  ;;  %v8716_v42 = vld [vmem:[#allocation12 + $0x198] sm:$0xff]  ;;  %v8720_v47 = vld [vmem:[#allocation12 + $0x180] sm:$0xff] }
 0x2df   :  { %2385 = vmatprep.subr.mxu0 %v8702_v49  ;;  %2456 = vmatprep.subr.mxu1 %v8704_v44  ;;  %11785 = vst [vmem:[#allocation49_spill] sm:$0xff] %v8716_v42  ;;  %11786 = vst [vmem:[#allocation50_spill] sm:$0xff] %v8720_v47  ;;  %v8722_v49 = vld [vmem:[#allocation12 + $0x190] sm:$0xff]  ;;  %v8726_v44 = vld [vmem:[#allocation12 + $0x168] sm:$0xff] }
 0x2e0   :  { %2386 = vmatpush1.msra.mxu0 %v8708_v46  ;;  %2457 = vmatpush1.msra.mxu1 %v8710_v37  ;;  %11787 = vst [vmem:[#allocation51_spill] sm:$0xff] %v8722_v49  ;;  %11788 = vst [vmem:[#allocation52_spill] sm:$0xff] %v8726_v44  ;;  %v8728_v46 = vld [vmem:[#allocation12 + $0x178] sm:$0xff]  ;;  %v8732_v37 = vld [vmem:[#allocation12 + $0x160] sm:$0xff] }
 0x2e1   :  { %2387 = vmatprep.subr.mxu0 %v8714_v43  ;;  %2458 = vmatprep.subr.mxu1 %v8716_v42  ;;  %11789 = vst [vmem:[#allocation53_spill] sm:$0xff] %v8728_v46  ;;  %11790 = vst [vmem:[#allocation54_spill] sm:$0xff] %v8732_v37  ;;  %v8734_v43 = vld [vmem:[#allocation12 + $0x170] sm:$0xff]  ;;  %v8738_v42 = vld [vmem:[#allocation12 + $0x148] sm:$0xff] }
 0x2e2   :  { %2388 = vmatpush1.msra.mxu0 %v8720_v47  ;;  %2459 = vmatpush1.msra.mxu1 %v8722_v49  ;;  %11791 = vst [vmem:[#allocation55_spill] sm:$0xff] %v8734_v43  ;;  %11792 = vst [vmem:[#allocation56_spill] sm:$0xff] %v8738_v42  ;;  %v8740_v47 = vld [vmem:[#allocation12 + $0x158] sm:$0xff]  ;;  %v8744_v49 = vld [vmem:[#allocation12 + $0x140] sm:$0xff] }
 0x2e3   :  { %2389 = vmatprep.subr.mxu0 %v8726_v44  ;;  %2460 = vmatprep.subr.mxu1 %v8728_v46  ;;  %11793 = vst [vmem:[#allocation57_spill] sm:$0xff] %v8740_v47  ;;  %11794 = vst [vmem:[#allocation58_spill] sm:$0xff] %v8744_v49  ;;  %v8746_v44 = vld [vmem:[#allocation12 + $0x150] sm:$0xff]  ;;  %v8750_v46 = vld [vmem:[#allocation12 + $0x128] sm:$0xff] }
 0x2e4   :  { %2390 = vmatpush1.msra.mxu0 %v8732_v37  ;;  %2461 = vmatpush1.msra.mxu1 %v8734_v43  ;;  %11795 = vst [vmem:[#allocation59_spill] sm:$0xff] %v8746_v44  ;;  %11796 = vst [vmem:[#allocation60_spill] sm:$0xff] %v8750_v46  ;;  %v8752_v37 = vld [vmem:[#allocation12 + $0x138] sm:$0xff]  ;;  %v8756_v43 = vld [vmem:[#allocation12 + $0x120] sm:$0xff] }
 0x2e5   :  { %2391 = vmatprep.subr.mxu0 %v8738_v42  ;;  %2462 = vmatprep.subr.mxu1 %v8740_v47  ;;  %11797 = vst [vmem:[#allocation61_spill] sm:$0xff] %v8752_v37  ;;  %11798 = vst [vmem:[#allocation62_spill] sm:$0xff] %v8756_v43  ;;  %v8758_v42 = vld [vmem:[#allocation12 + $0x130] sm:$0xff]  ;;  %v8762_v47 = vld [vmem:[#allocation12 + $0x108] sm:$0xff] }
 0x2e6   :  { %2392 = vmatpush1.msra.mxu0 %v8744_v49  ;;  %2463 = vmatpush1.msra.mxu1 %v8746_v44  ;;  %11799 = vst [vmem:[#allocation63_spill] sm:$0xff] %v8758_v42  ;;  %11800 = vst [vmem:[#allocation64_spill] sm:$0xff] %v8762_v47  ;;  %v8764_v49 = vld [vmem:[#allocation12 + $0x118] sm:$0xff]  ;;  %v8768_v44 = vld [vmem:[#allocation12 + $0x100] sm:$0xff] }
 0x2e7   :  { %2393 = vmatprep.subr.mxu0 %v8750_v46  ;;  %2464 = vmatprep.subr.mxu1 %v8752_v37  ;;  %11801 = vst [vmem:[#allocation65_spill] sm:$0xff] %v8764_v49  ;;  %11802 = vst [vmem:[#allocation66_spill] sm:$0xff] %v8768_v44  ;;  %v8770_v46 = vld [vmem:[#allocation12 + $0x110] sm:$0xff]  ;;  %v8774_v37 = vld [vmem:[#allocation12 + $0xe8] sm:$0xff] }
 0x2e8   :  { %2394 = vmatpush1.msra.mxu0 %v8756_v43  ;;  %2465 = vmatpush1.msra.mxu1 %v8758_v42  ;;  %11803 = vst [vmem:[#allocation67_spill] sm:$0xff] %v8770_v46  ;;  %11804 = vst [vmem:[#allocation68_spill] sm:$0xff] %v8774_v37  ;;  %v8776_v43 = vld [vmem:[#allocation12 + $0xf8] sm:$0xff]  ;;  %v8780_v42 = vld [vmem:[#allocation12 + $0xe0] sm:$0xff] }
 0x2e9   :  { %2395 = vmatprep.subr.mxu0 %v8762_v47  ;;  %2466 = vmatprep.subr.mxu1 %v8764_v49  ;;  %11805 = vst [vmem:[#allocation69_spill] sm:$0xff] %v8776_v43  ;;  %11806 = vst [vmem:[#allocation70_spill] sm:$0xff] %v8780_v42  ;;  %v8782_v47 = vld [vmem:[#allocation12 + $0xf0] sm:$0xff]  ;;  %v8786_v49 = vld [vmem:[#allocation12 + $0xc8] sm:$0xff] }
 0x2ea   :  { %2396 = vmatpush1.msra.mxu0 %v8768_v44  ;;  %2467 = vmatpush1.msra.mxu1 %v8770_v46  ;;  %11807 = vst [vmem:[#allocation71_spill] sm:$0xff] %v8782_v47  ;;  %11808 = vst [vmem:[#allocation72_spill] sm:$0xff] %v8786_v49  ;;  %v8788_v44 = vld [vmem:[#allocation12 + $0xd8] sm:$0xff]  ;;  %v8792_v46 = vld [vmem:[#allocation12 + $0xc0] sm:$0xff] }
 0x2eb   :  { %2397 = vmatprep.subr.mxu0 %v8774_v37  ;;  %2468 = vmatprep.subr.mxu1 %v8776_v43  ;;  %11809 = vst [vmem:[#allocation73_spill] sm:$0xff] %v8788_v44  ;;  %11810 = vst [vmem:[#allocation74_spill] sm:$0xff] %v8792_v46  ;;  %v8794_v37 = vld [vmem:[#allocation12 + $0xd0] sm:$0xff]  ;;  %v8798_v43 = vld [vmem:[#allocation12 + $0xa8] sm:$0xff] }
 0x2ec   :  { %2398 = vmatpush1.msra.mxu0 %v8780_v42  ;;  %2469 = vmatpush1.msra.mxu1 %v8782_v47  ;;  %11811 = vst [vmem:[#allocation75_spill] sm:$0xff] %v8794_v37  ;;  %11812 = vst [vmem:[#allocation76_spill] sm:$0xff] %v8798_v43  ;;  %v8800_v42 = vld [vmem:[#allocation12 + $0xb8] sm:$0xff]  ;;  %v8804_v47 = vld [vmem:[#allocation12 + $0xa0] sm:$0xff] }
 0x2ed   :  { %2399 = vmatprep.subr.mxu0 %v8786_v49  ;;  %2470 = vmatprep.subr.mxu1 %v8788_v44  ;;  %11813 = vst [vmem:[#allocation77_spill] sm:$0xff] %v8800_v42  ;;  %11814 = vst [vmem:[#allocation78_spill] sm:$0xff] %v8804_v47  ;;  %v8806_v49 = vld [vmem:[#allocation12 + $0xb0] sm:$0xff]  ;;  %v8810_v44 = vld [vmem:[#allocation12 + $0x88] sm:$0xff] }
 0x2ee   :  { %2400 = vmatpush1.msra.mxu0 %v8792_v46  ;;  %2471 = vmatpush1.msra.mxu1 %v8794_v37  ;;  %11815 = vst [vmem:[#allocation79_spill] sm:$0xff] %v8806_v49  ;;  %11816 = vst [vmem:[#allocation80_spill] sm:$0xff] %v8810_v44  ;;  %v8812_v46 = vld [vmem:[#allocation12 + $0x98] sm:$0xff]  ;;  %v8816_v37 = vld [vmem:[#allocation12 + $0x80] sm:$0xff] }
 0x2ef   :  { %2401 = vmatprep.subr.mxu0 %v8798_v43  ;;  %2472 = vmatprep.subr.mxu1 %v8800_v42  ;;  %11817 = vst [vmem:[#allocation81_spill] sm:$0xff] %v8812_v46  ;;  %11818 = vst [vmem:[#allocation82_spill] sm:$0xff] %v8816_v37  ;;  %v8818_v43 = vld [vmem:[#allocation12 + $0x90] sm:$0xff]  ;;  %v8822_v42 = vld [vmem:[#allocation12 + $0x68] sm:$0xff] }
 0x2f0   :  { %2402 = vmatpush1.msra.mxu0 %v8804_v47  ;;  %2473 = vmatpush1.msra.mxu1 %v8806_v49  ;;  %11819 = vst [vmem:[#allocation83_spill] sm:$0xff] %v8818_v43  ;;  %11820 = vst [vmem:[#allocation84_spill] sm:$0xff] %v8822_v42  ;;  %v8824_v47 = vld [vmem:[#allocation12 + $0x78] sm:$0xff]  ;;  %v8828_v49 = vld [vmem:[#allocation12 + $0x60] sm:$0xff] }
 0x2f1   :  { %2403 = vmatprep.subr.mxu0 %v8810_v44  ;;  %2474 = vmatprep.subr.mxu1 %v8812_v46  ;;  %11821 = vst [vmem:[#allocation85_spill] sm:$0xff] %v8824_v47  ;;  %11822 = vst [vmem:[#allocation86_spill] sm:$0xff] %v8828_v49  ;;  %v8830_v44 = vld [vmem:[#allocation12 + $0x70] sm:$0xff]  ;;  %v8834_v46 = vld [vmem:[#allocation12 + $0x48] sm:$0xff] }
 0x2f2   :  { %2404 = vmatpush1.msra.mxu0 %v8816_v37  ;;  %2475 = vmatpush1.msra.mxu1 %v8818_v43  ;;  %11823 = vst [vmem:[#allocation87_spill] sm:$0xff] %v8830_v44  ;;  %11824 = vst [vmem:[#allocation88_spill] sm:$0xff] %v8834_v46  ;;  %v8836_v37 = vld [vmem:[#allocation12 + $0x58] sm:$0xff]  ;;  %v8840_v43 = vld [vmem:[#allocation12 + $0x40] sm:$0xff] }
 0x2f3   :  { %2405 = vmatprep.subr.mxu0 %v8822_v42  ;;  %2476 = vmatprep.subr.mxu1 %v8824_v47  ;;  %11825 = vst [vmem:[#allocation89_spill] sm:$0xff] %v8836_v37  ;;  %11826 = vst [vmem:[#allocation90_spill] sm:$0xff] %v8840_v43  ;;  %v8842_v42 = vld [vmem:[#allocation12 + $0x50] sm:$0xff]  ;;  %v8846_v47 = vld [vmem:[#allocation12 + $0x28] sm:$0xff] }
 0x2f4   :  { %2406 = vmatpush1.msra.mxu0 %v8828_v49  ;;  %2477 = vmatpush1.msra.mxu1 %v8830_v44  ;;  %11827 = vst [vmem:[#allocation91_spill] sm:$0xff] %v8842_v42  ;;  %11828 = vst [vmem:[#allocation92_spill] sm:$0xff] %v8846_v47  ;;  %v8848_v49 = vld [vmem:[#allocation12 + $0x38] sm:$0xff]  ;;  %v8852_v44 = vld [vmem:[#allocation12 + $0x20] sm:$0xff] }
 0x2f5   :  { %2407 = vmatprep.subr.mxu0 %v8834_v46  ;;  %2478 = vmatprep.subr.mxu1 %v8836_v37  ;;  %11829 = vst [vmem:[#allocation93_spill] sm:$0xff] %v8848_v49  ;;  %11830 = vst [vmem:[#allocation94_spill] sm:$0xff] %v8852_v44  ;;  %v8854_v46 = vld [vmem:[#allocation12 + $0x30] sm:$0xff]  ;;  %v8858_v37 = vld [vmem:[#allocation12 + $0x8] sm:$0xff] }
 0x2f6   :  { %2408 = vmatpush1.msra.mxu0 %v8840_v43  ;;  %2479 = vmatpush1.msra.mxu1 %v8842_v42  ;;  %11831 = vst [vmem:[#allocation95_spill] sm:$0xff] %v8854_v46  ;;  %11832 = vst [vmem:[#allocation96_spill] sm:$0xff] %v8858_v37  ;;  %v8860_v43 = vld [vmem:[#allocation12 + $0x18] sm:$0xff]  ;;  %v8864_v42 = vld [vmem:[#allocation12] sm:$0xff] }
 0x2f7   :  { %2409 = vmatprep.subr.mxu0 %v8846_v47  ;;  %2480 = vmatprep.subr.mxu1 %v8848_v49  ;;  %11833 = vst [vmem:[#allocation97_spill] sm:$0xff] %v8860_v43  ;;  %11834 = vst [vmem:[#allocation160_spill] sm:$0xff] %v8864_v42  ;;  %v8866_v47 = vld [vmem:[#allocation12 + $0x10] sm:$0xff]  ;;  %v8870_v49 = vld [vmem:[#allocation11 + $0x1e8] sm:$0xff] }
 0x2f8   :  { %2410 = vmatpush1.msra.mxu0 %v8852_v44  ;;  %2481 = vmatpush1.msra.mxu1 %v8854_v46  ;;  %11835 = vst [vmem:[#allocation98_spill] sm:$0xff] %v8866_v47  ;;  %11836 = vst [vmem:[#allocation99_spill] sm:$0xff] %v8870_v49  ;;  %v8872_v44 = vld [vmem:[#allocation11 + $0x1f8] sm:$0xff] }
 0x2f9   :  { %2411 = vmatprep.subr.mxu0 %v8858_v37  ;;  %2482 = vmatprep.subr.mxu1 %v8860_v43  ;;  %11837 = vst [vmem:[#allocation100_spill] sm:$0xff] %v8872_v44 }
 0x2fa   :  { %2412 = vmatpush1.msra.mxu0 %v8864_v42  ;;  %2483 = vmatpush1.msra.mxu1 %v8866_v47 }
 0x2fb   :  { %2541 = vmatprep.subr.mxu0 %v8870_v49  ;;  %2612 = vmatprep.subr.mxu1 %v8872_v44 }
 0x348   :  { %v1650_v46 = vpop.f32.mrf.mxu0  ;;  %v1721_v37 = vpop.f32.mrf.mxu1 }
 0x34a   :  { %v1652_v41 = vpop.f32.mrf.mxu0  ;;  %v1723_v40 = vpop.f32.mrf.mxu1 }
 0x378   :  { %v1810_v43 = vpop.f32.mrf.mxu0  ;;  %v1881_v42 = vpop.f32.mrf.mxu1 }
 0x379   :  { %v1811_v39 = vadd.f32 %v1810_v43, %v1650_v46  ;;  %v1882_v30 = vadd.f32 %v1881_v42, %v1721_v37 }
 0x37a   :  { %v1812_v38 = vpop.f32.mrf.mxu0  ;;  %v1883_v32 = vpop.f32.mrf.mxu1 }
 0x37b   :  { %v1886_v36 = vadd.f32 %v1811_v39, %v8412_v45  ;;  %v1813_v35 = vadd.f32 %v1812_v38, %v1652_v41  ;;  %v1884_v49 = vadd.f32 %v1883_v32, %v1723_v40  ;;  %v1888_v43 = vadd.f32 %v1882_v30, %v8427_v3 }
 0x37d   :  { %v6854_v47 = vmul.f32 -1.442695, %v1886_v36  ;;  %v1887_v34 = vadd.f32 %v1813_v35, %v8416_v48  ;;  %v1889_v44 = vadd.f32 %v1884_v49, %v8422_v61 }
 0x37f   :  { %7072 = vpow2.f32 %v6854_v47  ;;  %v6855_v33 = vmul.f32 -1.442695, %v1887_v34  ;;  %v6856_v29 = vmul.f32 -1.442695, %v1889_v44 }
 0x381   :  { %7074 = vpow2.f32 %v6855_v33 }
 0x382   :  { %7076 = vpow2.f32 %v6856_v29 }
 0x38c   :  { %v7073_v27 = vpop.eup %7072 }
 0x38d   :  { %v1893_v46 = vadd.f32 1.0, %v7073_v27 }
 0x38e   :  { %v7075_v26 = vpop.eup %7074 }
 0x38f   :  { %7078 = vrcp.f32 %v1893_v46  ;;  %v1899_v38 = vadd.f32 1.0, %v7075_v26  ;;  %v7077_v34 = vpop.eup %7076 }
 0x390   :  { %7080 = vtanh.f32 %v1888_v43  ;;  %v1906_v47 = vadd.f32 1.0, %v7077_v34 }
 0x391   :  { %7082 = vrcp.f32 %v1899_v38 }
 0x392   :  { %7084 = vrcp.f32 %v1906_v47 }
 0x399   :  { %v2075_v35 = vpop.f32.mrf.mxu0  ;;  %v2146_v36 = vpop.f32.mrf.mxu1 }
 0x39b   :  { %v2077_v39 = vpop.f32.mrf.mxu0  ;;  %v2148_v33 = vpop.f32.mrf.mxu1 }
 0x39c   :  { %v7079_v32 = vpop.eup %7078  ;;  %v2155_v40 = vcombine.low %v2075_v35, %v2077_v39  ;;  %v2156_v41 = vcombine.low %v2146_v36, %v2148_v33  ;;  %v1942_v35 = vld [vmem:[#allocation2 + $0x2] ss:$8 sm:$0xf] }
 0x39d   :  { %v7081_v42 = vpop.eup %7080  ;;  %v1944_v36 = vld [vmem:[#allocation2 + $0x22] ss:$8 sm:$0xf] }
 0x39e   :  { %v7083_v44 = vpop.eup %7082  ;;  %v2163_v30 = vrot.slane %v2155_v40, %v8261_v17  ;;  %v2170_v27 = vrot.slane %v2156_v41, %v8261_v17  ;;  %v1910_v29 = vmul.f32 %v7081_v42, %v7079_v32 }
 0x39f   :  { %v1909_v26 = vmul.f32 %v7083_v44, %v8432_v28  ;;  %v7085_v47 = vpop.eup %7084 }
 0x3a0   :  { %v2171_v49 = vcombine.low %v2163_v30, %v2170_v27  ;;  %v2172_v37 = vcombine.high %v2163_v30, %v2170_v27 }
 0x3a1   :  { %v8883_v43 = vadd.f32 %v1910_v29, %v1909_v26 }
 0x3a2   :  { %v2179_v46 = vrot.slane %v2171_v49, %v8261_v17  ;;  %v2186_v38 = vrot.slane %v2172_v37, %v8261_v17  ;;  %v8888_v37 = vld [vmem:[#allocation11 + $0x1e0] sm:$0xff] }
 0x3a3   :  { %11838 = vst [vmem:[#allocation101_spill] sm:$0xff] %v8883_v43  ;;  %7086 = vtanh.f32 %v8883_v43  ;;  %11839 = vst [vmem:[#allocation102_spill] sm:$0xff] %v8888_v37 }
 0x3a4   :  { %v2189_v34 = vadd.f32 %v2179_v46, %v1942_v35  ;;  %v2190_v39 = vadd.f32 %v2186_v38, %v1944_v36  ;;  %v8890_v46 = vld [vmem:[#allocation11 + $0x1f0] sm:$0xff]  ;;  %v8892_v35 = vld [vmem:[#allocation11 + $0x1c8] sm:$0xff]  ;;  %v8894_v36 = vld [vmem:[#allocation11 + $0x1d8] sm:$0xff] }
 0x3a5   :  { %11840 = vst [vmem:[#allocation103_spill] sm:$0xff] %v8890_v46  ;;  %11841 = vst [vmem:[#allocation104_spill] sm:$0xff] %v8892_v35 }
 0x3a6   :  { %v6859_v33 = vmul.f32 -1.442695, %v2189_v34  ;;  %v6860_v40 = vmul.f32 -1.442695, %v2190_v39  ;;  %v2205_v32 = vrot.slane %v2189_v34, 1  ;;  %v2206_v41 = vrot.slane %v2190_v39, 1 }
 0x3a7   :  { %v2227_v44 = vrot.slane %v2189_v34, 3  ;;  %v2228_v30 = vrot.slane %v2190_v39, 3  ;;  %v2221_v29 = vrot.slane %v2189_v34, 2  ;;  %v2222_v26 = vrot.slane %v2190_v39, 2  ;;  %11842 = vst [vmem:[#allocation105_spill] sm:$0xff] %v8894_v36  ;;  %v8903_v34 = vld [vmem:[#allocation11 + $0x1a8] sm:$0xff] }
 0x3a8   :  { %7088 = vpow2.f32 %v6859_v33  ;;  %v6861_v28 = vmul.f32 -1.442695, %v2205_v32  ;;  %v6862_v42 = vmul.f32 -1.442695, %v2206_v41  ;;  %v8897_v32 = vld [vmem:[#allocation11 + $0x1c0] sm:$0xff]  ;;  %v8899_v41 = vld [vmem:[#allocation11 + $0x1d0] sm:$0xff] }
 0x3a9   :  { %7090 = vpow2.f32 %v6860_v40  ;;  %v6863_v38 = vmul.f32 -1.442695, %v2227_v44  ;;  %v6864_v33 = vmul.f32 -1.442695, %v2228_v30  ;;  %11843 = vst [vmem:[#allocation106_spill] sm:$0xff] %v8897_v32  ;;  %11844 = vst [vmem:[#allocation107_spill] sm:$0xff] %v8899_v41 }
 0x3aa   :  { %7092 = vpow2.f32 %v6861_v28  ;;  %11845 = vst [vmem:[#allocation108_spill] sm:$0xff] %v8903_v34  ;;  %v8905_v39 = vld [vmem:[#allocation11 + $0x1b8] sm:$0xff]  ;;  %v8909_v44 = vld [vmem:[#allocation11 + $0x1a0] sm:$0xff] }
 0x3ab   :  { %7094 = vpow2.f32 %v6862_v42  ;;  %11846 = vst [vmem:[#allocation109_spill] sm:$0xff] %v8905_v39  ;;  %11847 = vst [vmem:[#allocation110_spill] sm:$0xff] %v8909_v44 }
 0x3ac   :  { %7096 = vtanh.f32 %v2221_v29  ;;  %v8915_v29 = vld [vmem:[#allocation11 + $0x188] sm:$0xff] }
 0x3ad   :  { %7098 = vtanh.f32 %v2222_v26  ;;  %11849 = vst [vmem:[#allocation112_spill] sm:$0xff] %v8915_v29  ;;  %v8917_v26 = vld [vmem:[#allocation11 + $0x198] sm:$0xff] }
 0x3ae   :  { %7100 = vpow2.f32 %v6863_v38  ;;  %11850 = vst [vmem:[#allocation113_spill] sm:$0xff] %v8917_v26 }
 0x3af   :  { %7102 = vpow2.f32 %v6864_v33 }
 0x3b0   :  { %v7087_v27 = vpop.eup %7086 }
 0x3b1   :  { %v1913_v49 = vmul.f32 %v7087_v27, %v7085_v47  ;;  %v8911_v47 = vld [vmem:[#allocation11 + $0x1b0] sm:$0xff] }
 0x3b2   :  { %11848 = vst [vmem:[#allocation111_spill] sm:$0xff] %v8911_v47 }
 0x3b3   :  { %v1921_v40 = vrot.slane %v1913_v49, %v8261_v17  ;;  %2446 = vmatmul.mubr.f32.vlgmr.msra.gmra.mxu0 %v1913_v49  ;;  %2517 = vmatmul.mubr.f32.vlgmr.msra.gmra.mxu1 %v1913_v49 }
 0x3b4   :  { %2542 = vmatpush1.msra.mxu0 %v8888_v37  ;;  %2613 = vmatpush1.msra.mxu1 %v8890_v46 }
 0x3b5   :  { %v7089_v28 = vpop.eup %7088  ;;  %v1922_v42 = vcombine.high %v1921_v40, %v1921_v40  ;;  %6857 = vst.sshfl [vmem:[#allocation3 + $0x1] sm:$0x1 pattern:$0x73625140] %v1921_v40  ;;  %2543 = vmatprep.subr.mxu0 %v8892_v35  ;;  %2614 = vmatprep.subr.mxu1 %v8894_v36  ;;  %v8921_v36 = vld [vmem:[#allocation11 + $0x180] sm:$0xff] }
 0x3b6   :  { %v7091_v30 = vpop.eup %7090  ;;  %v2197_v27 = vadd.f32 1.0, %v7089_v28  ;;  %2544 = vmatpush1.msra.mxu0 %v8897_v32  ;;  %2615 = vmatpush1.msra.mxu1 %v8899_v41  ;;  %11851 = vst [vmem:[#allocation114_spill] sm:$0xff] %v8921_v36  ;;  %v8923_v28 = vld [vmem:[#allocation11 + $0x190] sm:$0xff]  ;;  %v8927_v41 = vld [vmem:[#allocation11 + $0x168] sm:$0xff] }
 0x3b7   :  { %v7093_v49 = vpop.eup %7092  ;;  %v2198_v40 = vadd.f32 1.0, %v7091_v30  ;;  %6858 = vst.sshfl [vmem:[#allocation3 + $0x9] sm:$0x1 pattern:$0x73625140] %v1922_v42  ;;  %2545 = vmatprep.subr.mxu0 %v8903_v34  ;;  %2616 = vmatprep.subr.mxu1 %v8905_v39  ;;  %11852 = vst [vmem:[#allocation115_spill] sm:$0xff] %v8923_v28 }
 0x3b8   :  { %v7095_v38 = vpop.eup %7094  ;;  %7104 = vrcp.f32 %v2197_v27  ;;  %v2215_v32 = vadd.f32 1.0, %v7093_v49  ;;  %2546 = vmatpush1.msra.mxu0 %v8909_v44  ;;  %2617 = vmatpush1.msra.mxu1 %v8911_v47  ;;  %11853 = vst [vmem:[#allocation116_spill] sm:$0xff] %v8927_v41  ;;  %v8929_v30 = vld [vmem:[#allocation11 + $0x178] sm:$0xff]  ;;  %v8933_v42 = vld [vmem:[#allocation11 + $0x160] sm:$0xff]  ;;  %v8935_v39 = vld [vmem:[#allocation11 + $0x170] sm:$0xff] }
 0x3b9   :  { %11854 = vst [vmem:[#allocation117_spill] sm:$0xff] %v8929_v30  ;;  %7106 = vrcp.f32 %v2198_v40  ;;  %v2216_v33 = vadd.f32 1.0, %v7095_v38  ;;  %2547 = vmatprep.subr.mxu0 %v8915_v29  ;;  %2618 = vmatprep.subr.mxu1 %v8917_v26  ;;  %11855 = vst [vmem:[#allocation118_spill] sm:$0xff] %v8933_v42  ;;  %v8939_v27 = vld [vmem:[#allocation11 + $0x148] sm:$0xff]  ;;  %v8941_v49 = vld [vmem:[#allocation11 + $0x158] sm:$0xff] }
 0x3ba   :  { %11856 = vst [vmem:[#allocation119_spill] sm:$0xff] %v8935_v39  ;;  %7108 = vrcp.f32 %v2215_v32  ;;  %2548 = vmatpush1.msra.mxu0 %v8921_v36  ;;  %2619 = vmatpush1.msra.mxu1 %v8923_v28  ;;  %11857 = vst [vmem:[#allocation120_spill] sm:$0xff] %v8939_v27  ;;  %v8945_v40 = vld [vmem:[#allocation11 + $0x140] sm:$0xff]  ;;  %v8947_v38 = vld [vmem:[#allocation11 + $0x150] sm:$0xff] }
 0x3bb   :  { %11858 = vst [vmem:[#allocation121_spill] sm:$0xff] %v8941_v49  ;;  %7110 = vrcp.f32 %v2216_v33  ;;  %2549 = vmatprep.subr.mxu0 %v8927_v41  ;;  %2620 = vmatprep.subr.mxu1 %v8929_v30  ;;  %11859 = vst [vmem:[#allocation122_spill] sm:$0xff] %v8945_v40  ;;  %v8951_v32 = vld [vmem:[#allocation11 + $0x128] sm:$0xff]  ;;  %v8953_v28 = vld [vmem:[#allocation11 + $0x138] sm:$0xff] }
 0x3bc   :  { %11860 = vst [vmem:[#allocation123_spill] sm:$0xff] %v8947_v38  ;;  %2550 = vmatpush1.msra.mxu0 %v8933_v42  ;;  %2621 = vmatpush1.msra.mxu1 %v8935_v39  ;;  %11861 = vst [vmem:[#allocation124_spill] sm:$0xff] %v8951_v32  ;;  %v8957_v33 = vld [vmem:[#allocation11 + $0x120] sm:$0xff]  ;;  %v8959_v41 = vld [vmem:[#allocation11 + $0x130] sm:$0xff] }
 0x3bd   :  { %11862 = vst [vmem:[#allocation125_spill] sm:$0xff] %v8953_v28  ;;  %2551 = vmatprep.subr.mxu0 %v8939_v27  ;;  %2622 = vmatprep.subr.mxu1 %v8941_v49  ;;  %11863 = vst [vmem:[#allocation126_spill] sm:$0xff] %v8957_v33  ;;  %v8963_v30 = vld [vmem:[#allocation11 + $0x108] sm:$0xff]  ;;  %v8965_v42 = vld [vmem:[#allocation11 + $0x118] sm:$0xff] }
 0x3be   :  { %11864 = vst [vmem:[#allocation127_spill] sm:$0xff] %v8959_v41  ;;  %2552 = vmatpush1.msra.mxu0 %v8945_v40  ;;  %2623 = vmatpush1.msra.mxu1 %v8947_v38  ;;  %11865 = vst [vmem:[#allocation128_spill] sm:$0xff] %v8963_v30  ;;  %v8969_v39 = vld [vmem:[#allocation11 + $0x100] sm:$0xff]  ;;  %v8971_v27 = vld [vmem:[#allocation11 + $0x110] sm:$0xff]  ;;  %v7097_v38 = vpop.eup %7096 }
 0x3bf   :  { %11866 = vst [vmem:[#allocation129_spill] sm:$0xff] %v8965_v42  ;;  %2553 = vmatprep.subr.mxu0 %v8951_v32  ;;  %2624 = vmatprep.subr.mxu1 %v8953_v28  ;;  %11867 = vst [vmem:[#allocation130_spill] sm:$0xff] %v8969_v39  ;;  %v8975_v49 = vld [vmem:[#allocation11 + $0xe8] sm:$0xff]  ;;  %v8977_v40 = vld [vmem:[#allocation11 + $0xf8] sm:$0xff]  ;;  %v7099_v36 = vpop.eup %7098 }
 0x3c0   :  { %11868 = vst [vmem:[#allocation131_spill] sm:$0xff] %v8971_v27  ;;  %2554 = vmatpush1.msra.mxu0 %v8957_v33  ;;  %2625 = vmatpush1.msra.mxu1 %v8959_v41  ;;  %11869 = vst [vmem:[#allocation132_spill] sm:$0xff] %v8975_v49  ;;  %v8981_v32 = vld [vmem:[#allocation11 + $0xe0] sm:$0xff]  ;;  %v8983_v28 = vld [vmem:[#allocation11 + $0xf0] sm:$0xff]  ;;  %v7101_v26 = vpop.eup %7100 }
 0x3c1   :  { %11870 = vst [vmem:[#allocation133_spill] sm:$0xff] %v8977_v40  ;;  %2555 = vmatprep.subr.mxu0 %v8963_v30  ;;  %2626 = vmatprep.subr.mxu1 %v8965_v42  ;;  %11871 = vst [vmem:[#allocation134_spill] sm:$0xff] %v8981_v32  ;;  %v8987_v33 = vld [vmem:[#allocation11 + $0xc8] sm:$0xff]  ;;  %v8989_v41 = vld [vmem:[#allocation11 + $0xd8] sm:$0xff]  ;;  %v7103_v29 = vpop.eup %7102  ;;  %v2237_v34 = vadd.f32 1.0, %v7101_v26 }
 0x3c2   :  { %11872 = vst [vmem:[#allocation135_spill] sm:$0xff] %v8983_v28  ;;  %2556 = vmatpush1.msra.mxu0 %v8969_v39  ;;  %2627 = vmatpush1.msra.mxu1 %v8971_v27  ;;  %11873 = vst [vmem:[#allocation136_spill] sm:$0xff] %v8987_v33  ;;  %v8993_v30 = vld [vmem:[#allocation11 + $0xc0] sm:$0xff]  ;;  %v8995_v42 = vld [vmem:[#allocation11 + $0xd0] sm:$0xff]  ;;  %v2238_v46 = vadd.f32 1.0, %v7103_v29 }
 0x3c3   :  { %11874 = vst [vmem:[#allocation137_spill] sm:$0xff] %v8989_v41  ;;  %2557 = vmatprep.subr.mxu0 %v8975_v49  ;;  %2628 = vmatprep.subr.mxu1 %v8977_v40  ;;  %11875 = vst [vmem:[#allocation138_spill] sm:$0xff] %v8993_v30  ;;  %v8999_v39 = vld [vmem:[#allocation11 + $0xa8] sm:$0xff]  ;;  %v9001_v27 = vld [vmem:[#allocation11 + $0xb8] sm:$0xff]  ;;  %7112 = vrcp.f32 %v2237_v34 }
 0x3c4   :  { %11876 = vst [vmem:[#allocation139_spill] sm:$0xff] %v8995_v42  ;;  %2558 = vmatpush1.msra.mxu0 %v8981_v32  ;;  %2629 = vmatpush1.msra.mxu1 %v8983_v28  ;;  %11877 = vst [vmem:[#allocation140_spill] sm:$0xff] %v8999_v39  ;;  %v9005_v49 = vld [vmem:[#allocation11 + $0xa0] sm:$0xff]  ;;  %v9007_v40 = vld [vmem:[#allocation11 + $0xb0] sm:$0xff]  ;;  %7114 = vrcp.f32 %v2238_v46 }
 0x3c5   :  { %11878 = vst [vmem:[#allocation141_spill] sm:$0xff] %v9001_v27  ;;  %v7105_v47 = vpop.eup %7104  ;;  %2559 = vmatprep.subr.mxu0 %v8987_v33  ;;  %2630 = vmatprep.subr.mxu1 %v8989_v41  ;;  %11879 = vst [vmem:[#allocation142_spill] sm:$0xff] %v9007_v40  ;;  %v9011_v28 = vld [vmem:[#allocation11 + $0x88] sm:$0xff]  ;;  %v9013_v32 = vld [vmem:[#allocation11 + $0x98] sm:$0xff] }
 0x3c6   :  { %v7107_v44 = vpop.eup %7106  ;;  %2560 = vmatpush1.msra.mxu0 %v8993_v30  ;;  %2631 = vmatpush1.msra.mxu1 %v8995_v42  ;;  %v9017_v41 = vld [vmem:[#allocation11 + $0x80] sm:$0xff]  ;;  %v9019_v33 = vld [vmem:[#allocation11 + $0x90] sm:$0xff]  ;;  %v2245_v26 = vmul.f32 %v7105_v47, %v7097_v38  ;;  %v9023_v42 = vld [vmem:[#allocation11 + $0x68] sm:$0xff] }
 0x3c7   :  { %v7109_v35 = vpop.eup %7108  ;;  %2561 = vmatprep.subr.mxu0 %v8999_v39  ;;  %2632 = vmatprep.subr.mxu1 %v9001_v27  ;;  %v9025_v30 = vld [vmem:[#allocation11 + $0x78] sm:$0xff]  ;;  %v2246_v43 = vmul.f32 %v7107_v44, %v7099_v36  ;;  %v9030_v27 = vld [vmem:[#allocation11 + $0x60] sm:$0xff]  ;;  %v9032_v39 = vld [vmem:[#allocation11 + $0x70] sm:$0xff] }
 0x3c8   :  { %v7111_v37 = vpop.eup %7110  ;;  %2562 = vmatpush1.msra.mxu0 %v9005_v49  ;;  %2633 = vmatpush1.msra.mxu1 %v9007_v40  ;;  %v2243_v29 = vmul.f32 %v7109_v35, %v8486_v60  ;;  %11880 = vst [vmem:[#allocation143_spill] sm:$0xff] %v9032_v39  ;;  %v9037_v38 = vld [vmem:[#allocation11 + $0x48] sm:$0xff]  ;;  %v9039_v40 = vld [vmem:[#allocation11 + $0x58] sm:$0xff]  ;;  %v9045_v35 = vld [vmem:[#allocation11 + $0x40] sm:$0xff] }
 0x3c9   :  { %2563 = vmatprep.subr.mxu0 %v9011_v28  ;;  %2634 = vmatprep.subr.mxu1 %v9013_v32  ;;  %v2244_v47 = vmul.f32 %v7111_v37, %v8490_v10  ;;  %11881 = vst [vmem:[#allocation144_spill] sm:$0xff] %v9037_v38  ;;  %11882 = vst [vmem:[#allocation145_spill] sm:$0xff] %v9039_v40  ;;  %v9047_v36 = vld [vmem:[#allocation11 + $0x50] sm:$0xff]  ;;  %v9053_v37 = vld [vmem:[#allocation11 + $0x28] sm:$0xff] }
 0x3ca   :  { %2564 = vmatpush1.msra.mxu0 %v9017_v41  ;;  %2635 = vmatpush1.msra.mxu1 %v9019_v33  ;;  %v9041_v60 = vadd.f32 %v2245_v26, %v2243_v29  ;;  %11883 = vst [vmem:[#allocation146_spill] sm:$0xff] %v9045_v35  ;;  %11884 = vst [vmem:[#allocation147_spill] sm:$0xff] %v9047_v36  ;;  %v9055_v34 = vld [vmem:[#allocation11 + $0x38] sm:$0xff]  ;;  %v9060_v46 = vld [vmem:[#allocation11 + $0x20] sm:$0xff] }
 0x3cb   :  { %2565 = vmatprep.subr.mxu0 %v9023_v42  ;;  %2636 = vmatprep.subr.mxu1 %v9025_v30  ;;  %v9049_v10 = vadd.f32 %v2246_v43, %v2244_v47  ;;  %11885 = vst [vmem:[#allocation148_spill] sm:$0xff] %v9053_v37  ;;  %11886 = vst [vmem:[#allocation149_spill] sm:$0xff] %v9055_v34  ;;  %v9062_v44 = vld [vmem:[#allocation11 + $0x30] sm:$0xff]  ;;  %v9067_v43 = vld [vmem:[#allocation11 + $0x8] sm:$0xff] }
 0x3cc   :  { %2566 = vmatpush1.msra.mxu0 %v9030_v27  ;;  %2637 = vmatpush1.msra.mxu1 %v9032_v39  ;;  %7116 = vtanh.f32 %v9041_v60  ;;  %11887 = vst [vmem:[#allocation150_spill] sm:$0xff] %v9060_v46  ;;  %11888 = vst [vmem:[#allocation151_spill] sm:$0xff] %v9062_v44  ;;  %v9069_v26 = vld [vmem:[#allocation11 + $0x18] sm:$0xff]  ;;  %v9073_v29 = vld [vmem:[#allocation11] sm:$0xff] }
 0x3cd   :  { %2567 = vmatprep.subr.mxu0 %v9037_v38  ;;  %2638 = vmatprep.subr.mxu1 %v9039_v40  ;;  %7118 = vtanh.f32 %v9049_v10  ;;  %11889 = vst [vmem:[#allocation152_spill] sm:$0xff] %v9067_v43  ;;  %11890 = vst [vmem:[#allocation153_spill] sm:$0xff] %v9069_v26  ;;  %v9075_v47 = vld [vmem:[#allocation11 + $0x10] sm:$0xff] }
 0x3ce   :  { %2568 = vmatpush1.msra.mxu0 %v9045_v35  ;;  %2639 = vmatpush1.msra.mxu1 %v9047_v36  ;;  %11891 = vst [vmem:[#allocation154_spill] sm:$0xff] %v9073_v29  ;;  %11892 = vst [vmem:[#allocation155_spill] sm:$0xff] %v9075_v47  ;;  %v7387_v39 = vld [vmem:[#allocation8 + $0x1d8] sm:$0xff] }
 0x3cf   :  { %2569 = vmatprep.subr.mxu0 %v9053_v37  ;;  %2640 = vmatprep.subr.mxu1 %v9055_v34  ;;  %v7382_v34 = vld [vmem:[#allocation8 + $0x1e8] sm:$0xff]  ;;  %v7383_v37 = vld [vmem:[#allocation8 + $0x1f8] sm:$0xff] }
 0x3d0   :  { %2570 = vmatpush1.msra.mxu0 %v9060_v46  ;;  %2641 = vmatpush1.msra.mxu1 %v9062_v44  ;;  %v7113_v36 = vpop.eup %7112 }
 0x3d1   :  { %2571 = vmatprep.subr.mxu0 %v9067_v43  ;;  %2642 = vmatprep.subr.mxu1 %v9069_v26  ;;  %v7115_v46 = vpop.eup %7114 }
 0x3d2   :  { %2572 = vmatpush1.msra.mxu0 %v9073_v29  ;;  %2643 = vmatpush1.msra.mxu1 %v9075_v47  ;;  %v7384_v47 = vld [vmem:[#allocation8 + $0x1e0] sm:$0xff] }
 0x3d3   :  { %2605 = vmatprep.mubr.f32.mxu0 %v11620_v31  ;;  %2676 = vmatprep.mubr.f32.mxu1 %v11620_v31 }
 0x3d4   :  { %2806 = vmatprep.subr.mxu0 %v7382_v34  ;;  %2877 = vmatprep.subr.mxu1 %v7383_v37  ;;  %v7385_v34 = vld [vmem:[#allocation8 + $0x1f0] sm:$0xff]  ;;  %v7386_v37 = vld [vmem:[#allocation8 + $0x1c8] sm:$0xff] }
 0x3d9   :  { %v7117_v35 = vpop.eup %7116 }
 0x3da   :  { %v7119_v44 = vpop.eup %7118  ;;  %v2251_v40 = vmul.f32 %v7117_v35, %v7113_v36  ;;  %v7388_v35 = vld [vmem:[#allocation8 + $0x1c0] sm:$0xff]  ;;  %v7391_v36 = vld [vmem:[#allocation8 + $0x1b8] sm:$0xff] }
 0x3db   :  { %v2252_v43 = vmul.f32 %v7119_v44, %v7115_v46  ;;  %v7392_v46 = vld [vmem:[#allocation8 + $0x1a0] sm:$0xff]  ;;  %v7393_v44 = vld [vmem:[#allocation8 + $0x1b0] sm:$0xff] }
 0x3dd   :  { %v2525_v38 = vcombine.low %v2251_v40, %v2252_v43  ;;  %v7389_v40 = vld [vmem:[#allocation8 + $0x1d0] sm:$0xff]  ;;  %v11929_v43 = vld [vmem:[#allocation55_spill] sm:$0xff] }
 0x3df   :  { %v2532_v26 = vrot.slane %v2525_v38, %v8261_v17  ;;  %v7390_v38 = vld [vmem:[#allocation8 + $0x1a8] sm:$0xff] }
 0x3e1   :  { %v9087_v29 = vrot.slane %v2532_v26, %v8261_v17  ;;  %v11930_v26 = vld [vmem:[#allocation56_spill] sm:$0xff] }
 0x3e3   :  { %2606 = vmatmul.mubr.f32.vlgmr.msra.gmra.mxu0 %v9087_v29  ;;  %2677 = vmatmul.mubr.f32.vlgmr.msra.gmra.mxu1 %v9087_v29 }
 0x3e4   :  { %2807 = vmatpush1.msra.mxu0 %v7384_v47  ;;  %2878 = vmatpush1.msra.mxu1 %v7385_v34  ;;  %v11932_v47 = vld [vmem:[#allocation58_spill] sm:$0xff]  ;;  %v11933_v34 = vld [vmem:[#allocation59_spill] sm:$0xff] }
 0x3e5   :  { %2808 = vmatprep.subr.mxu0 %v7386_v37  ;;  %2879 = vmatprep.subr.mxu1 %v7387_v39  ;;  %v11928_v39 = vld [vmem:[#allocation54_spill] sm:$0xff]  ;;  %v11934_v37 = vld [vmem:[#allocation60_spill] sm:$0xff] }
 0x3e6   :  { %2809 = vmatpush1.msra.mxu0 %v7388_v35  ;;  %2880 = vmatpush1.msra.mxu1 %v7389_v40  ;;  %v11935_v35 = vld [vmem:[#allocation61_spill] sm:$0xff]  ;;  %v11936_v40 = vld [vmem:[#allocation62_spill] sm:$0xff] }
 0x3e7   :  { %2810 = vmatprep.subr.mxu0 %v7390_v38  ;;  %2881 = vmatprep.subr.mxu1 %v7391_v36  ;;  %v11937_v38 = vld [vmem:[#allocation63_spill] sm:$0xff]  ;;  %v11938_v36 = vld [vmem:[#allocation64_spill] sm:$0xff] }
 0x3e8   :  { %2811 = vmatpush1.msra.mxu0 %v7392_v46  ;;  %2882 = vmatpush1.msra.mxu1 %v7393_v44  ;;  %v11939_v46 = vld [vmem:[#allocation65_spill] sm:$0xff]  ;;  %v11940_v44 = vld [vmem:[#allocation66_spill] sm:$0xff] }
 0x3e9   :  { %2812 = vmatprep.subr.mxu0 %v8516_v50  ;;  %2883 = vmatprep.subr.mxu1 %v8518_v51  ;;  %v11893_v50 = vld [vmem:[#allocation22_spill] sm:$0xff]  ;;  %v11894_v51 = vld [vmem:[#allocation19_spill] sm:$0xff] }
 0x3ea   :  { %2813 = vmatpush1.msra.mxu0 %v8520_v52  ;;  %2884 = vmatpush1.msra.mxu1 %v8522_v53  ;;  %v11895_v52 = vld [vmem:[#allocation24_spill] sm:$0xff] }
 0x3eb   :  { %2814 = vmatprep.subr.mxu0 %v8524_v54  ;;  %2885 = vmatprep.subr.mxu1 %v8526_v55  ;;  %v11896_v53 = vld [vmem:[#allocation20_spill] sm:$0xff]  ;;  %v11897_v54 = vld [vmem:[#allocation26_spill] sm:$0xff]  ;;  %v11898_v55 = vld [vmem:[#allocation21_spill] sm:$0xff] }
 0x3ec   :  { %2815 = vmatpush1.msra.mxu0 %v8530_v56  ;;  %2886 = vmatpush1.msra.mxu1 %v8532_v57  ;;  %v11899_v56 = vld [vmem:[#allocation28_spill] sm:$0xff]  ;;  %v11900_v57 = vld [vmem:[#allocation23_spill] sm:$0xff] }
 0x3ed   :  { %2816 = vmatprep.subr.mxu0 %v8536_v58  ;;  %2887 = vmatprep.subr.mxu1 %v8538_v59  ;;  %v11901_v58 = vld [vmem:[#allocation29_spill] sm:$0xff] }
 0x3ee   :  { %2817 = vmatpush1.msra.mxu0 %v8542_v63  ;;  %2888 = vmatpush1.msra.mxu1 %v8544_v4  ;;  %v11902_v59 = vld [vmem:[#allocation25_spill] sm:$0xff]  ;;  %v11903_v63 = vld [vmem:[#allocation30_spill] sm:$0xff]  ;;  %v11904_v4 = vld [vmem:[#allocation27_spill] sm:$0xff] }
 0x3ef   :  { %2818 = vmatprep.subr.mxu0 %v8548_v11  ;;  %2889 = vmatprep.subr.mxu1 %v8550_v16  ;;  %v11905_v11 = vld [vmem:[#allocation31_spill] sm:$0xff]  ;;  %v11906_v16 = vld [vmem:[#allocation32_spill] sm:$0xff] }
 0x3f0   :  { %2819 = vmatpush1.msra.mxu0 %v8554_v0  ;;  %2890 = vmatpush1.msra.mxu1 %v8556_v14  ;;  %v11907_v0 = vld [vmem:[#allocation33_spill] sm:$0xff]  ;;  %v11908_v14 = vld [vmem:[#allocation34_spill] sm:$0xff] }
 0x3f1   :  { %2820 = vmatprep.subr.mxu0 %v8560_v1  ;;  %2891 = vmatprep.subr.mxu1 %v8562_v15  ;;  %v11909_v1 = vld [vmem:[#allocation35_spill] sm:$0xff]  ;;  %v11910_v15 = vld [vmem:[#allocation36_spill] sm:$0xff] }
 0x3f2   :  { %2821 = vmatpush1.msra.mxu0 %v8566_v6  ;;  %2892 = vmatpush1.msra.mxu1 %v8568_v7  ;;  %v11911_v6 = vld [vmem:[#allocation37_spill] sm:$0xff]  ;;  %v11912_v7 = vld [vmem:[#allocation38_spill] sm:$0xff] }
 0x3f3   :  { %2822 = vmatprep.subr.mxu0 %v8572_v18  ;;  %2893 = vmatprep.subr.mxu1 %v8574_v2  ;;  %v11913_v18 = vld [vmem:[#allocation39_spill] sm:$0xff]  ;;  %v11914_v2 = vld [vmem:[#allocation40_spill] sm:$0xff] }
 0x3f4   :  { %2823 = vmatpush1.msra.mxu0 %v8578_v8  ;;  %2894 = vmatpush1.msra.mxu1 %v8580_v13  ;;  %v11915_v8 = vld [vmem:[#allocation41_spill] sm:$0xff]  ;;  %v11916_v13 = vld [vmem:[#allocation42_spill] sm:$0xff] }
 0x3f5   :  { %2824 = vmatprep.subr.mxu0 %v8584_v12  ;;  %2895 = vmatprep.subr.mxu1 %v8586_v5  ;;  %v11917_v12 = vld [vmem:[#allocation43_spill] sm:$0xff]  ;;  %v11918_v5 = vld [vmem:[#allocation44_spill] sm:$0xff] }
 0x3f6   :  { %2825 = vmatpush1.msra.mxu0 %v8590_v62  ;;  %2896 = vmatpush1.msra.mxu1 %v8592_v9  ;;  %v11919_v62 = vld [vmem:[#allocation45_spill] sm:$0xff]  ;;  %v11920_v9 = vld [vmem:[#allocation46_spill] sm:$0xff] }
 0x3f7   :  { %2826 = vmatprep.subr.mxu0 %v8596_v19  ;;  %2897 = vmatprep.subr.mxu1 %v8598_v20  ;;  %v11921_v19 = vld [vmem:[#allocation47_spill] sm:$0xff]  ;;  %v11922_v20 = vld [vmem:[#allocation48_spill] sm:$0xff] }
 0x3f8   :  { %2827 = vmatpush1.msra.mxu0 %v8602_v21  ;;  %2898 = vmatpush1.msra.mxu1 %v8604_v22  ;;  %v11923_v21 = vld [vmem:[#allocation49_spill] sm:$0xff]  ;;  %v11924_v22 = vld [vmem:[#allocation50_spill] sm:$0xff] }
 0x3f9   :  { %2828 = vmatprep.subr.mxu0 %v8608_v23  ;;  %2899 = vmatprep.subr.mxu1 %v8610_v24  ;;  %v11925_v23 = vld [vmem:[#allocation51_spill] sm:$0xff]  ;;  %v11926_v24 = vld [vmem:[#allocation52_spill] sm:$0xff] }
 0x3fa   :  { %2829 = vmatpush1.msra.mxu0 %v8614_v25  ;;  %2900 = vmatpush1.msra.mxu1 %v11893_v50  ;;  %v11927_v25 = vld [vmem:[#allocation53_spill] sm:$0xff]  ;;  %v11941_v50 = vld [vmem:[#allocation67_spill] sm:$0xff] }
 0x3fb   :  { %2830 = vmatprep.subr.mxu0 %v11894_v51  ;;  %2901 = vmatprep.subr.mxu1 %v11895_v52  ;;  %v11942_v51 = vld [vmem:[#allocation68_spill] sm:$0xff]  ;;  %v11943_v52 = vld [vmem:[#allocation69_spill] sm:$0xff] }
 0x3fc   :  { %2831 = vmatpush1.msra.mxu0 %v11896_v53  ;;  %2902 = vmatpush1.msra.mxu1 %v11897_v54  ;;  %v11944_v53 = vld [vmem:[#allocation70_spill] sm:$0xff]  ;;  %v11945_v54 = vld [vmem:[#allocation71_spill] sm:$0xff] }
 0x3fd   :  { %2832 = vmatprep.subr.mxu0 %v11898_v55  ;;  %2903 = vmatprep.subr.mxu1 %v11899_v56  ;;  %v11946_v55 = vld [vmem:[#allocation72_spill] sm:$0xff]  ;;  %v11947_v56 = vld [vmem:[#allocation73_spill] sm:$0xff] }
 0x3fe   :  { %2833 = vmatpush1.msra.mxu0 %v11900_v57  ;;  %2904 = vmatpush1.msra.mxu1 %v11901_v58  ;;  %v11948_v57 = vld [vmem:[#allocation74_spill] sm:$0xff]  ;;  %v11949_v58 = vld [vmem:[#allocation75_spill] sm:$0xff] }
 0x3ff   :  { %2834 = vmatprep.subr.mxu0 %v11902_v59  ;;  %2905 = vmatprep.subr.mxu1 %v11903_v63  ;;  %v11950_v59 = vld [vmem:[#allocation76_spill] sm:$0xff]  ;;  %v11951_v63 = vld [vmem:[#allocation77_spill] sm:$0xff] }
 0x400   :  { %2835 = vmatpush1.msra.mxu0 %v11904_v4  ;;  %2906 = vmatpush1.msra.mxu1 %v11905_v11  ;;  %v11952_v4 = vld [vmem:[#allocation78_spill] sm:$0xff]  ;;  %v11953_v11 = vld [vmem:[#allocation79_spill] sm:$0xff] }
 0x401   :  { %2836 = vmatprep.subr.mxu0 %v11906_v16  ;;  %2907 = vmatprep.subr.mxu1 %v11907_v0  ;;  %v11954_v16 = vld [vmem:[#allocation80_spill] sm:$0xff]  ;;  %v11955_v0 = vld [vmem:[#allocation81_spill] sm:$0xff] }
 0x402   :  { %2837 = vmatpush1.msra.mxu0 %v11908_v14  ;;  %2870 = vmatprep.mubr.f32.mxu0 %v11620_v31  ;;  %v11956_v14 = vld [vmem:[#allocation82_spill] sm:$0xff] }
 0x403   :  { %2908 = vmatpush1.msra.mxu1 %v11909_v1  ;;  %2941 = vmatprep.mubr.f32.mxu1 %v11620_v31  ;;  %v11957_v1 = vld [vmem:[#allocation83_spill] sm:$0xff] }
 0x404   :  { %2871 = vmatmul.mubr.f32.vlgmr.msra.gmra.mxu0 %v9087_v29  ;;  %2942 = vmatmul.mubr.f32.vlgmr.msra.gmra.mxu1 %v9087_v29  ;;  %v11931_v29 = vld [vmem:[#allocation57_spill] sm:$0xff] }
 0x405   :  { %3178 = vmatprep.subr.mxu0 %v11910_v15  ;;  %3249 = vmatprep.subr.mxu1 %v11911_v6  ;;  %v11958_v15 = vld [vmem:[#allocation84_spill] sm:$0xff]  ;;  %v11959_v6 = vld [vmem:[#allocation85_spill] sm:$0xff] }
 0x406   :  { %3179 = vmatpush1.msra.mxu0 %v11912_v7  ;;  %3250 = vmatpush1.msra.mxu1 %v11913_v18  ;;  %v11960_v7 = vld [vmem:[#allocation86_spill] sm:$0xff]  ;;  %v11961_v18 = vld [vmem:[#allocation87_spill] sm:$0xff] }
 0x407   :  { %3180 = vmatprep.subr.mxu0 %v11914_v2  ;;  %3251 = vmatprep.subr.mxu1 %v11915_v8  ;;  %v11962_v2 = vld [vmem:[#allocation88_spill] sm:$0xff]  ;;  %v11963_v8 = vld [vmem:[#allocation89_spill] sm:$0xff] }
 0x408   :  { %3181 = vmatpush1.msra.mxu0 %v11916_v13  ;;  %3252 = vmatpush1.msra.mxu1 %v11917_v12  ;;  %v11964_v13 = vld [vmem:[#allocation90_spill] sm:$0xff]  ;;  %v11965_v12 = vld [vmem:[#allocation91_spill] sm:$0xff] }
 0x409   :  { %3182 = vmatprep.subr.mxu0 %v11918_v5  ;;  %3253 = vmatprep.subr.mxu1 %v11919_v62  ;;  %v11966_v5 = vld [vmem:[#allocation92_spill] sm:$0xff]  ;;  %v11967_v62 = vld [vmem:[#allocation93_spill] sm:$0xff] }
 0x40a   :  { %3183 = vmatpush1.msra.mxu0 %v11920_v9  ;;  %3254 = vmatpush1.msra.mxu1 %v11921_v19  ;;  %v11968_v9 = vld [vmem:[#allocation94_spill] sm:$0xff]  ;;  %v11969_v19 = vld [vmem:[#allocation95_spill] sm:$0xff] }
 0x40b   :  { %3184 = vmatprep.subr.mxu0 %v11922_v20  ;;  %3255 = vmatprep.subr.mxu1 %v11923_v21  ;;  %v11970_v20 = vld [vmem:[#allocation96_spill] sm:$0xff]  ;;  %v11971_v21 = vld [vmem:[#allocation97_spill] sm:$0xff] }
 0x40c   :  { %3185 = vmatpush1.msra.mxu0 %v11924_v22  ;;  %3256 = vmatpush1.msra.mxu1 %v11925_v23  ;;  %v11972_v22 = vld [vmem:[#allocation160_spill] sm:$0xff]  ;;  %v11973_v23 = vld [vmem:[#allocation98_spill] sm:$0xff] }
 0x40d   :  { %3186 = vmatprep.subr.mxu0 %v11926_v24  ;;  %3257 = vmatprep.subr.mxu1 %v11927_v25  ;;  %v11974_v24 = vld [vmem:[#allocation99_spill] sm:$0xff]  ;;  %v11975_v25 = vld [vmem:[#allocation100_spill] sm:$0xff] }
 0x40e   :  { %3187 = vmatpush1.msra.mxu0 %v11928_v39  ;;  %3258 = vmatpush1.msra.mxu1 %v11929_v43 }
 0x40f   :  { %3188 = vmatprep.subr.mxu0 %v11930_v26  ;;  %3259 = vmatprep.subr.mxu1 %v11931_v29 }
 0x410   :  { %3189 = vmatpush1.msra.mxu0 %v11932_v47  ;;  %3260 = vmatpush1.msra.mxu1 %v11933_v34 }
 0x411   :  { %3190 = vmatprep.subr.mxu0 %v11934_v37  ;;  %3261 = vmatprep.subr.mxu1 %v11935_v35 }
 0x412   :  { %3191 = vmatpush1.msra.mxu0 %v11936_v40  ;;  %3262 = vmatpush1.msra.mxu1 %v11937_v38 }
 0x413   :  { %3192 = vmatprep.subr.mxu0 %v11938_v36  ;;  %3263 = vmatprep.subr.mxu1 %v11939_v46 }
 0x414   :  { %3193 = vmatpush1.msra.mxu0 %v11940_v44  ;;  %3264 = vmatpush1.msra.mxu1 %v11941_v50 }
 0x415   :  { %3194 = vmatprep.subr.mxu0 %v11942_v51  ;;  %3265 = vmatprep.subr.mxu1 %v11943_v52 }
 0x416   :  { %3195 = vmatpush1.msra.mxu0 %v11944_v53  ;;  %3266 = vmatpush1.msra.mxu1 %v11945_v54 }
 0x417   :  { %3196 = vmatprep.subr.mxu0 %v11946_v55  ;;  %3267 = vmatprep.subr.mxu1 %v11947_v56 }
 0x418   :  { %3197 = vmatpush1.msra.mxu0 %v11948_v57  ;;  %3268 = vmatpush1.msra.mxu1 %v11949_v58 }
 0x419   :  { %3198 = vmatprep.subr.mxu0 %v11950_v59  ;;  %3269 = vmatprep.subr.mxu1 %v11951_v63 }
 0x41a   :  { %3199 = vmatpush1.msra.mxu0 %v11952_v4  ;;  %3270 = vmatpush1.msra.mxu1 %v11953_v11 }
 0x41b   :  { %3200 = vmatprep.subr.mxu0 %v11954_v16  ;;  %3271 = vmatprep.subr.mxu1 %v11955_v0 }
 0x41c   :  { %3201 = vmatpush1.msra.mxu0 %v11956_v14  ;;  %3272 = vmatpush1.msra.mxu1 %v11957_v1 }
 0x41d   :  { %3202 = vmatprep.subr.mxu0 %v11958_v15  ;;  %3273 = vmatprep.subr.mxu1 %v11959_v6 }
 0x41e   :  { %3203 = vmatpush1.msra.mxu0 %v11960_v7  ;;  %3274 = vmatpush1.msra.mxu1 %v11961_v18 }
 0x41f   :  { %3204 = vmatprep.subr.mxu0 %v11962_v2  ;;  %3275 = vmatprep.subr.mxu1 %v11963_v8 }
 0x420   :  { %3205 = vmatpush1.msra.mxu0 %v11964_v13  ;;  %3276 = vmatpush1.msra.mxu1 %v11965_v12  ;;  %v11976_v12 = vld [vmem:[#allocation101_spill] sm:$0xff] }
 0x421   :  { %3206 = vmatprep.subr.mxu0 %v11966_v5  ;;  %3277 = vmatprep.subr.mxu1 %v11967_v62 }
 0x422   :  { %3207 = vmatpush1.msra.mxu0 %v11968_v9  ;;  %3278 = vmatpush1.msra.mxu1 %v11969_v19 }
 0x423   :  { %3208 = vmatprep.subr.mxu0 %v11970_v20  ;;  %3279 = vmatprep.subr.mxu1 %v11971_v21 }
 0x424   :  { %3209 = vmatpush1.msra.mxu0 %v11972_v22  ;;  %3242 = vmatprep.mubr.f32.mxu0 %v11620_v31  ;;  %v2739_v22 = vld [vmem:[#allocation2 + $0x3] ss:$8 sm:$0xf] }
 0x425   :  { %3280 = vmatpush1.msra.mxu1 %v11973_v23  ;;  %3313 = vmatprep.mubr.f32.mxu1 %v11620_v31  ;;  %v2741_v23 = vld [vmem:[#allocation2 + $0x23] ss:$8 sm:$0xf] }
 0x426   :  { %3338 = vmatprep.subr.mxu0 %v11974_v24  ;;  %3409 = vmatprep.subr.mxu1 %v11975_v25 }
 0x473   :  { %v2447_v39 = vpop.f32.mrf.mxu0  ;;  %v2518_v43 = vpop.f32.mrf.mxu1 }
 0x475   :  { %v2449_v26 = vpop.f32.mrf.mxu0  ;;  %v2520_v47 = vpop.f32.mrf.mxu1 }
 0x4a3   :  { %v2607_v29 = vpop.f32.mrf.mxu0  ;;  %v2678_v40 = vpop.f32.mrf.mxu1 }
 0x4a4   :  { %v2608_v34 = vadd.f32 %v2607_v29, %v2447_v39  ;;  %v2679_v53 = vadd.f32 %v2678_v40, %v2518_v43 }
 0x4a5   :  { %v2609_v37 = vpop.f32.mrf.mxu0  ;;  %v2680_v50 = vpop.f32.mrf.mxu1 }
 0x4a6   :  { %v2683_v35 = vadd.f32 %v2608_v34, %v8412_v45  ;;  %v2610_v38 = vadd.f32 %v2609_v37, %v2449_v26  ;;  %v2681_v51 = vadd.f32 %v2680_v50, %v2520_v47  ;;  %v2685_v56 = vadd.f32 %v2679_v53, %v8427_v3  ;;  %v11977_v53 = vld [vmem:[#allocation102_spill] sm:$0xff] }
 0x4a8   :  { %v6865_v36 = vmul.f32 -1.442695, %v2683_v35  ;;  %v2684_v46 = vadd.f32 %v2610_v38, %v8416_v48  ;;  %v2686_v52 = vadd.f32 %v2681_v51, %v8422_v61 }
 0x4aa   :  { %7120 = vpow2.f32 %v6865_v36  ;;  %v6866_v44 = vmul.f32 -1.442695, %v2684_v46  ;;  %v6867_v54 = vmul.f32 -1.442695, %v2686_v52 }
 0x4ac   :  { %7122 = vpow2.f32 %v6866_v44 }
 0x4ad   :  { %7124 = vpow2.f32 %v6867_v54  ;;  %v11978_v54 = vld [vmem:[#allocation103_spill] sm:$0xff] }
 0x4b7   :  { %v7121_v55 = vpop.eup %7120 }
 0x4b8   :  { %v2690_v57 = vadd.f32 1.0, %v7121_v55 }
 0x4b9   :  { %v7123_v58 = vpop.eup %7122 }
 0x4ba   :  { %7126 = vrcp.f32 %v2690_v57  ;;  %v2696_v59 = vadd.f32 1.0, %v7123_v58  ;;  %v7125_v11 = vpop.eup %7124  ;;  %v11979_v57 = vld [vmem:[#allocation104_spill] sm:$0xff]  ;;  %v11980_v58 = vld [vmem:[#allocation105_spill] sm:$0xff] }
 0x4bb   :  { %7128 = vtanh.f32 %v2685_v56  ;;  %v2703_v18 = vadd.f32 1.0, %v7125_v11  ;;  %v11982_v11 = vld [vmem:[#allocation107_spill] sm:$0xff] }
 0x4bc   :  { %7130 = vrcp.f32 %v2696_v59 }
 0x4bd   :  { %7132 = vrcp.f32 %v2703_v18  ;;  %v11986_v18 = vld [vmem:[#allocation111_spill] sm:$0xff] }
 0x4c4   :  { %v2872_v63 = vpop.f32.mrf.mxu0  ;;  %v2943_v4 = vpop.f32.mrf.mxu1 }
 0x4c6   :  { %v2874_v16 = vpop.f32.mrf.mxu0  ;;  %v2945_v0 = vpop.f32.mrf.mxu1 }
 0x4c7   :  { %v7127_v14 = vpop.eup %7126  ;;  %v2952_v1 = vcombine.low %v2872_v63, %v2874_v16  ;;  %v2953_v15 = vcombine.low %v2943_v4, %v2945_v0  ;;  %v11981_v4 = vld [vmem:[#allocation106_spill] sm:$0xff] }
 0x4c8   :  { %v7129_v6 = vpop.eup %7128 }
 0x4c9   :  { %v7131_v7 = vpop.eup %7130  ;;  %v2960_v2 = vrot.slane %v2952_v1, %v8261_v17  ;;  %v2967_v8 = vrot.slane %v2953_v15, %v8261_v17  ;;  %v2707_v13 = vmul.f32 %v7129_v6, %v7127_v14  ;;  %v11983_v14 = vld [vmem:[#allocation108_spill] sm:$0xff]  ;;  %v11984_v1 = vld [vmem:[#allocation109_spill] sm:$0xff] }
 0x4ca   :  { %v2706_v5 = vmul.f32 %v7131_v7, %v11976_v12  ;;  %v7133_v35 = vpop.eup %7132  ;;  %v11985_v7 = vld [vmem:[#allocation110_spill] sm:$0xff] }
 0x4cb   :  { %v2968_v62 = vcombine.low %v2960_v2, %v2967_v8  ;;  %v2969_v9 = vcombine.high %v2960_v2, %v2967_v8  ;;  %v11987_v8 = vld [vmem:[#allocation112_spill] sm:$0xff]  ;;  %v11989_v12 = vld [vmem:[#allocation114_spill] sm:$0xff] }
 0x4cc   :  { %v9222_v19 = vadd.f32 %v2707_v13, %v2706_v5  ;;  %v11988_v13 = vld [vmem:[#allocation113_spill] sm:$0xff]  ;;  %v11990_v5 = vld [vmem:[#allocation115_spill] sm:$0xff] }
 0x4cd   :  { %v2976_v20 = vrot.slane %v2968_v62, %v8261_v17  ;;  %v2983_v21 = vrot.slane %v2969_v9, %v8261_v17  ;;  %v11991_v62 = vld [vmem:[#allocation116_spill] sm:$0xff]  ;;  %v11992_v9 = vld [vmem:[#allocation117_spill] sm:$0xff] }
 0x4ce   :  { %7134 = vtanh.f32 %v9222_v19 }
 0x4cf   :  { %v2986_v24 = vadd.f32 %v2976_v20, %v2739_v22  ;;  %v2987_v25 = vadd.f32 %v2983_v21, %v2741_v23  ;;  %v11993_v20 = vld [vmem:[#allocation118_spill] sm:$0xff]  ;;  %v11994_v21 = vld [vmem:[#allocation119_spill] sm:$0xff]  ;;  %v11995_v22 = vld [vmem:[#allocation120_spill] sm:$0xff] }
 0x4d0   :  { %v11996_v23 = vld [vmem:[#allocation121_spill] sm:$0xff] }
 0x4d1   :  { %v6870_v39 = vmul.f32 -1.442695, %v2986_v24  ;;  %v6871_v43 = vmul.f32 -1.442695, %v2987_v25  ;;  %v3002_v26 = vrot.slane %v2986_v24, 1  ;;  %v3003_v29 = vrot.slane %v2987_v25, 1 }
 0x4d2   :  { %v3024_v37 = vrot.slane %v2986_v24, 3  ;;  %v3025_v40 = vrot.slane %v2987_v25, 3  ;;  %v3018_v36 = vrot.slane %v2986_v24, 2  ;;  %v3019_v46 = vrot.slane %v2987_v25, 2  ;;  %v11997_v24 = vld [vmem:[#allocation122_spill] sm:$0xff]  ;;  %v11998_v25 = vld [vmem:[#allocation123_spill] sm:$0xff] }
 0x4d3   :  { %7136 = vpow2.f32 %v6870_v39  ;;  %v6872_v47 = vmul.f32 -1.442695, %v3002_v26  ;;  %v6873_v34 = vmul.f32 -1.442695, %v3003_v29  ;;  %v11999_v39 = vld [vmem:[#allocation124_spill] sm:$0xff]  ;;  %v12001_v26 = vld [vmem:[#allocation126_spill] sm:$0xff] }
 0x4d4   :  { %7138 = vpow2.f32 %v6871_v43  ;;  %v6874_v50 = vmul.f32 -1.442695, %v3024_v37  ;;  %v6875_v51 = vmul.f32 -1.442695, %v3025_v40  ;;  %v12000_v43 = vld [vmem:[#allocation125_spill] sm:$0xff]  ;;  %v12002_v29 = vld [vmem:[#allocation127_spill] sm:$0xff] }
 0x4d5   :  { %7140 = vpow2.f32 %v6872_v47  ;;  %v12004_v37 = vld [vmem:[#allocation129_spill] sm:$0xff]  ;;  %v12005_v40 = vld [vmem:[#allocation130_spill] sm:$0xff] }
 0x4d6   :  { %7142 = vpow2.f32 %v6873_v34  ;;  %v12003_v34 = vld [vmem:[#allocation128_spill] sm:$0xff] }
 0x4d7   :  { %7144 = vtanh.f32 %v3018_v36 }
 0x4d8   :  { %7146 = vtanh.f32 %v3019_v46  ;;  %v12007_v46 = vld [vmem:[#allocation132_spill] sm:$0xff] }
 0x4d9   :  { %7148 = vpow2.f32 %v6874_v50 }
 0x4da   :  { %7150 = vpow2.f32 %v6875_v51  ;;  %v12009_v51 = vld [vmem:[#allocation134_spill] sm:$0xff] }
 0x4db   :  { %v7135_v38 = vpop.eup %7134 }
 0x4dc   :  { %v2710_v44 = vmul.f32 %v7135_v38, %v7133_v35  ;;  %v12006_v38 = vld [vmem:[#allocation131_spill] sm:$0xff] }
 0x4de   :  { %v2718_v52 = vrot.slane %v2710_v44, %v8261_v17  ;;  %3243 = vmatmul.mubr.f32.vlgmr.msra.gmra.mxu0 %v2710_v44  ;;  %3314 = vmatmul.mubr.f32.vlgmr.msra.gmra.mxu1 %v2710_v44  ;;  %v12008_v44 = vld [vmem:[#allocation133_spill] sm:$0xff] }
 0x4df   :  { %3339 = vmatpush1.msra.mxu0 %v11977_v53  ;;  %3410 = vmatpush1.msra.mxu1 %v11978_v54  ;;  %v12011_v54 = vld [vmem:[#allocation136_spill] sm:$0xff] }
 0x4e0   :  { %v7137_v55 = vpop.eup %7136  ;;  %v2719_v56 = vcombine.high %v2718_v52, %v2718_v52  ;;  %6868 = vst.sshfl [vmem:[#allocation3 + $0x2] sm:$0x1 pattern:$0x73625140] %v2718_v52  ;;  %3340 = vmatprep.subr.mxu0 %v11979_v57  ;;  %3411 = vmatprep.subr.mxu1 %v11980_v58  ;;  %v12010_v52 = vld [vmem:[#allocation135_spill] sm:$0xff]  ;;  %v12013_v58 = vld [vmem:[#allocation138_spill] sm:$0xff] }
 0x4e1   :  { %v7139_v59 = vpop.eup %7138  ;;  %v2994_v63 = vadd.f32 1.0, %v7137_v55  ;;  %3341 = vmatpush1.msra.mxu0 %v11981_v4  ;;  %3412 = vmatpush1.msra.mxu1 %v11982_v11  ;;  %v12012_v55 = vld [vmem:[#allocation137_spill] sm:$0xff]  ;;  %v12015_v11 = vld [vmem:[#allocation140_spill] sm:$0xff] }
 0x4e2   :  { %v7141_v16 = vpop.eup %7140  ;;  %v2995_v0 = vadd.f32 1.0, %v7139_v59  ;;  %6869 = vst.sshfl [vmem:[#allocation3 + $0xa] sm:$0x1 pattern:$0x73625140] %v2719_v56  ;;  %3342 = vmatprep.subr.mxu0 %v11983_v14  ;;  %3413 = vmatprep.subr.mxu1 %v11984_v1  ;;  %v12014_v59 = vld [vmem:[#allocation139_spill] sm:$0xff] }
 0x4e3   :  { %v7143_v15 = vpop.eup %7142  ;;  %7152 = vrcp.f32 %v2994_v63  ;;  %v3012_v6 = vadd.f32 1.0, %v7141_v16  ;;  %3343 = vmatpush1.msra.mxu0 %v11985_v7  ;;  %3414 = vmatpush1.msra.mxu1 %v11986_v18  ;;  %v12016_v16 = vld [vmem:[#allocation141_spill] sm:$0xff]  ;;  %v12017_v1 = vld [vmem:[#allocation142_spill] sm:$0xff] }
 0x4e4   :  { %7154 = vrcp.f32 %v2995_v0  ;;  %v3013_v2 = vadd.f32 1.0, %v7143_v15  ;;  %3344 = vmatprep.subr.mxu0 %v11987_v8  ;;  %3415 = vmatprep.subr.mxu1 %v11988_v13  ;;  %v7145_v47 = vpop.eup %7144  ;;  %v12028_v8 = vld [vmem:[#allocation153_spill] sm:$0xff]  ;;  %v3600_v13 = vld [vmem:[#allocation8 + $0x1e8] sm:$0xff] }
 0x4e5   :  { %7156 = vrcp.f32 %v3012_v6  ;;  %3345 = vmatpush1.msra.mxu0 %v11989_v12  ;;  %3416 = vmatpush1.msra.mxu1 %v11990_v5  ;;  %v7147_v35 = vpop.eup %7146  ;;  %v3602_v12 = vld [vmem:[#allocation8 + $0x1f8] sm:$0xff] }
 0x4e6   :  { %7158 = vrcp.f32 %v3013_v2  ;;  %3346 = vmatprep.subr.mxu0 %v11991_v62  ;;  %3417 = vmatprep.subr.mxu1 %v11992_v9  ;;  %v7149_v36 = vpop.eup %7148  ;;  %v12027_v2 = vld [vmem:[#allocation152_spill] sm:$0xff]  ;;  %v12029_v5 = vld [vmem:[#allocation154_spill] sm:$0xff]  ;;  %v12030_v62 = vld [vmem:[#allocation155_spill] sm:$0xff] }
 0x4e7   :  { %3347 = vmatpush1.msra.mxu0 %v11993_v20  ;;  %3418 = vmatpush1.msra.mxu1 %v11994_v21  ;;  %v7151_v50 = vpop.eup %7150  ;;  %v3034_v57 = vadd.f32 1.0, %v7149_v36  ;;  %v3591_v36 = vld [vmem:[#allocation8 + $0x1a0] sm:$0xff] }
 0x4e8   :  { %3348 = vmatprep.subr.mxu0 %v11995_v22  ;;  %3419 = vmatprep.subr.mxu1 %v11996_v23  ;;  %v3035_v4 = vadd.f32 1.0, %v7151_v50  ;;  %v9308_v50 = vld [vmem:[#allocation8 + $0x198] sm:$0xff] }
 0x4e9   :  { %3349 = vmatpush1.msra.mxu0 %v11997_v24  ;;  %3420 = vmatpush1.msra.mxu1 %v11998_v25  ;;  %7160 = vrcp.f32 %v3034_v57  ;;  %v9326_v57 = vld [vmem:[#allocation8 + $0x148] sm:$0xff] }
 0x4ea   :  { %3350 = vmatprep.subr.mxu0 %v11999_v39  ;;  %3421 = vmatprep.subr.mxu1 %v12000_v43  ;;  %7162 = vrcp.f32 %v3035_v4  ;;  %v9338_v4 = vld [vmem:[#allocation8 + $0x128] sm:$0xff] }
 0x4eb   :  { %3351 = vmatpush1.msra.mxu0 %v12001_v26  ;;  %3422 = vmatpush1.msra.mxu1 %v12002_v29  ;;  %v3599_v26 = vld [vmem:[#allocation8 + $0x1e0] sm:$0xff]  ;;  %v3601_v29 = vld [vmem:[#allocation8 + $0x1f0] sm:$0xff] }
 0x4ec   :  { %3352 = vmatprep.subr.mxu0 %v12003_v34  ;;  %3423 = vmatprep.subr.mxu1 %v12004_v37  ;;  %v3598_v34 = vld [vmem:[#allocation8 + $0x1d8] sm:$0xff]  ;;  %v3595_v37 = vld [vmem:[#allocation8 + $0x1c0] sm:$0xff] }
 0x4ed   :  { %3353 = vmatpush1.msra.mxu0 %v12005_v40  ;;  %3424 = vmatpush1.msra.mxu1 %v12006_v38  ;;  %v3592_v40 = vld [vmem:[#allocation8 + $0x1a8] sm:$0xff]  ;;  %v3594_v38 = vld [vmem:[#allocation8 + $0x1b8] sm:$0xff] }
 0x4ee   :  { %3354 = vmatprep.subr.mxu0 %v12007_v46  ;;  %3425 = vmatprep.subr.mxu1 %v12008_v44  ;;  %v3593_v46 = vld [vmem:[#allocation8 + $0x1b0] sm:$0xff]  ;;  %v9306_v44 = vld [vmem:[#allocation8 + $0x188] sm:$0xff] }
 0x4ef   :  { %3355 = vmatpush1.msra.mxu0 %v12009_v51  ;;  %3426 = vmatpush1.msra.mxu1 %v12010_v52  ;;  %v9310_v51 = vld [vmem:[#allocation8 + $0x180] sm:$0xff]  ;;  %v9312_v52 = vld [vmem:[#allocation8 + $0x190] sm:$0xff] }
 0x4f0   :  { %v7153_v53 = vpop.eup %7152  ;;  %3356 = vmatprep.subr.mxu0 %v12011_v54  ;;  %3427 = vmatprep.subr.mxu1 %v12012_v55  ;;  %v9316_v54 = vld [vmem:[#allocation8 + $0x178] sm:$0xff]  ;;  %v9320_v55 = vld [vmem:[#allocation8 + $0x160] sm:$0xff] }
 0x4f1   :  { %v7155_v56 = vpop.eup %7154  ;;  %3357 = vmatpush1.msra.mxu0 %v12013_v58  ;;  %3428 = vmatpush1.msra.mxu1 %v12014_v59  ;;  %v3042_v14 = vmul.f32 %v7153_v53, %v7145_v47  ;;  %v3596_v47 = vld [vmem:[#allocation8 + $0x1c8] sm:$0xff]  ;;  %v9328_v58 = vld [vmem:[#allocation8 + $0x158] sm:$0xff]  ;;  %v9332_v59 = vld [vmem:[#allocation8 + $0x140] sm:$0xff] }
 0x4f2   :  { %v7157_v63 = vpop.eup %7156  ;;  %3358 = vmatprep.subr.mxu0 %v12015_v11  ;;  %3429 = vmatprep.subr.mxu1 %v12016_v16  ;;  %v3043_v6 = vmul.f32 %v7155_v56, %v7147_v35  ;;  %v3597_v35 = vld [vmem:[#allocation8 + $0x1d0] sm:$0xff]  ;;  %v9314_v53 = vld [vmem:[#allocation8 + $0x168] sm:$0xff]  ;;  %v9340_v11 = vld [vmem:[#allocation8 + $0x138] sm:$0xff] }
 0x4f3   :  { %v7159_v0 = vpop.eup %7158  ;;  %3359 = vmatpush1.msra.mxu0 %v9005_v49  ;;  %3430 = vmatpush1.msra.mxu1 %v12017_v1  ;;  %v3040_v15 = vmul.f32 %v7157_v63, %v9041_v60  ;;  %v12022_v60 = vld [vmem:[#allocation147_spill] sm:$0xff]  ;;  %v9322_v56 = vld [vmem:[#allocation8 + $0x170] sm:$0xff]  ;;  %v9352_v1 = vld [vmem:[#allocation8 + $0x118] sm:$0xff] }
 0x4f4   :  { %3360 = vmatprep.subr.mxu0 %v9011_v28  ;;  %3431 = vmatprep.subr.mxu1 %v9013_v32  ;;  %v3041_v7 = vmul.f32 %v7159_v0, %v9049_v10  ;;  %v12018_v28 = vld [vmem:[#allocation143_spill] sm:$0xff]  ;;  %v12019_v32 = vld [vmem:[#allocation144_spill] sm:$0xff]  ;;  %v12025_v10 = vld [vmem:[#allocation150_spill] sm:$0xff] }
 0x4f5   :  { %3361 = vmatpush1.msra.mxu0 %v9017_v41  ;;  %3432 = vmatpush1.msra.mxu1 %v9019_v33  ;;  %v9276_v18 = vadd.f32 %v3042_v14, %v3040_v15  ;;  %v12020_v41 = vld [vmem:[#allocation145_spill] sm:$0xff]  ;;  %v12021_v33 = vld [vmem:[#allocation146_spill] sm:$0xff]  ;;  %v9350_v14 = vld [vmem:[#allocation8 + $0x108] sm:$0xff] }
 0x4f6   :  { %3362 = vmatprep.subr.mxu0 %v9023_v42  ;;  %3433 = vmatprep.subr.mxu1 %v9025_v30  ;;  %v9280_v49 = vadd.f32 %v3043_v6, %v3041_v7  ;;  %v12023_v42 = vld [vmem:[#allocation148_spill] sm:$0xff]  ;;  %v12024_v30 = vld [vmem:[#allocation149_spill] sm:$0xff]  ;;  %v7161_v9 = vpop.eup %7160  ;;  %v9344_v16 = vld [vmem:[#allocation8 + $0x120] sm:$0xff] }
 0x4f7   :  { %3363 = vmatpush1.msra.mxu0 %v9030_v27  ;;  %3434 = vmatpush1.msra.mxu1 %v12018_v28  ;;  %7164 = vtanh.f32 %v9276_v18  ;;  %v12026_v27 = vld [vmem:[#allocation151_spill] sm:$0xff]  ;;  %v7163_v20 = vpop.eup %7162  ;;  %v9334_v63 = vld [vmem:[#allocation8 + $0x150] sm:$0xff]  ;;  %v9364_v28 = vld [vmem:[#allocation8 + $0xf8] sm:$0xff] }
 0x4f8   :  { %3364 = vmatprep.subr.mxu0 %v12019_v32  ;;  %3435 = vmatprep.subr.mxu1 %v12020_v41  ;;  %7166 = vtanh.f32 %v9280_v49  ;;  %v9346_v0 = vld [vmem:[#allocation8 + $0x130] sm:$0xff]  ;;  %v9356_v15 = vld [vmem:[#allocation8 + $0x100] sm:$0xff]  ;;  %v9362_v7 = vld [vmem:[#allocation8 + $0xe8] sm:$0xff] }
 0x4f9   :  { %3365 = vmatpush1.msra.mxu0 %v12021_v33  ;;  %3436 = vmatpush1.msra.mxu1 %v12022_v60  ;;  %v9358_v6 = vld [vmem:[#allocation8 + $0x110] sm:$0xff]  ;;  %v9368_v32 = vld [vmem:[#allocation8 + $0xe0] sm:$0xff]  ;;  %v9374_v33 = vld [vmem:[#allocation8 + $0xc8] sm:$0xff] }
 0x4fa   :  { %3366 = vmatprep.subr.mxu0 %v12023_v42  ;;  %3437 = vmatprep.subr.mxu1 %v12024_v30  ;;  %v9370_v41 = vld [vmem:[#allocation8 + $0xf0] sm:$0xff]  ;;  %v9376_v60 = vld [vmem:[#allocation8 + $0xd8] sm:$0xff]  ;;  %v9380_v42 = vld [vmem:[#allocation8 + $0xc0] sm:$0xff] }
 0x4fb   :  { %3367 = vmatpush1.msra.mxu0 %v12025_v10  ;;  %3438 = vmatpush1.msra.mxu1 %v12026_v27  ;;  %v9382_v30 = vld [vmem:[#allocation8 + $0xd0] sm:$0xff]  ;;  %v9386_v10 = vld [vmem:[#allocation8 + $0xa8] sm:$0xff]  ;;  %v9388_v27 = vld [vmem:[#allocation8 + $0xb8] sm:$0xff] }
 0x4fc   :  { %3368 = vmatprep.subr.mxu0 %v12027_v2  ;;  %3439 = vmatprep.subr.mxu1 %v12028_v8  ;;  %v9392_v2 = vld [vmem:[#allocation8 + $0xa0] sm:$0xff]  ;;  %v9394_v8 = vld [vmem:[#allocation8 + $0xb0] sm:$0xff] }
 0x4fd   :  { %3369 = vmatpush1.msra.mxu0 %v12029_v5  ;;  %3440 = vmatpush1.msra.mxu1 %v12030_v62  ;;  %v9404_v5 = vld [vmem:[#allocation8 + $0x80] sm:$0xff]  ;;  %v9406_v62 = vld [vmem:[#allocation8 + $0x90] sm:$0xff] }
 0x4fe   :  { %3402 = vmatprep.mubr.f32.mxu0 %v11620_v31  ;;  %3473 = vmatprep.mubr.f32.mxu1 %v11620_v31  ;;  %12031 = vst [vmem:[#allocation156_spill] sm:$0xff] %v9406_v62 }
 0x4ff   :  { %3603 = vmatprep.subr.mxu0 %v3600_v13  ;;  %3674 = vmatprep.subr.mxu1 %v3602_v12  ;;  %v9398_v13 = vld [vmem:[#allocation8 + $0x88] sm:$0xff]  ;;  %v9400_v12 = vld [vmem:[#allocation8 + $0x98] sm:$0xff] }
 0x504   :  { %v7165_v21 = vpop.eup %7164 }
 0x505   :  { %v7167_v22 = vpop.eup %7166  ;;  %v3048_v23 = vmul.f32 %v7165_v21, %v7161_v9  ;;  %v9410_v9 = vld [vmem:[#allocation8 + $0x68] sm:$0xff]  ;;  %v9416_v21 = vld [vmem:[#allocation8 + $0x60] sm:$0xff] }
 0x506   :  { %v3049_v24 = vmul.f32 %v7167_v22, %v7163_v20  ;;  %12032 = vst [vmem:[#allocation157_spill] sm:$0xff] %v9410_v9  ;;  %v9412_v20 = vld [vmem:[#allocation8 + $0x78] sm:$0xff]  ;;  %12034 = vst [vmem:[#allocation159_spill] sm:$0xff] %v9416_v21  ;;  %v9418_v22 = vld [vmem:[#allocation8 + $0x70] sm:$0xff] }
 0x507   :  { %12033 = vst [vmem:[#allocation158_spill] sm:$0xff] %v9412_v20  ;;  %12035 = vst [vmem:[#allocation22_spill] sm:$0xff] %v9418_v22 }
 0x508   :  { %v3322_v25 = vcombine.low %v3048_v23, %v3049_v24  ;;  %v9422_v23 = vld [vmem:[#allocation8 + $0x48] sm:$0xff]  ;;  %v9424_v24 = vld [vmem:[#allocation8 + $0x58] sm:$0xff] }
 0x509   :  { %12036 = vst [vmem:[#allocation19_spill] sm:$0xff] %v9422_v23  ;;  %12037 = vst [vmem:[#allocation24_spill] sm:$0xff] %v9424_v24 }
 0x50a   :  { %v3329_v39 = vrot.slane %v3322_v25, %v8261_v17  ;;  %v9428_v25 = vld [vmem:[#allocation8 + $0x40] sm:$0xff] }
 0x50b   :  { %12038 = vst [vmem:[#allocation20_spill] sm:$0xff] %v9428_v25 }
 0x50c   :  { %v9302_v43 = vrot.slane %v3329_v39, %v8261_v17  ;;  %v9430_v39 = vld [vmem:[#allocation8 + $0x50] sm:$0xff] }
 0x50d   :  { %12039 = vst [vmem:[#allocation26_spill] sm:$0xff] %v9430_v39 }
 0x50e   :  { %3403 = vmatmul.mubr.f32.vlgmr.msra.gmra.mxu0 %v9302_v43  ;;  %3474 = vmatmul.mubr.f32.vlgmr.msra.gmra.mxu1 %v9302_v43 }
 0x50f   :  { %3604 = vmatpush1.msra.mxu0 %v3599_v26  ;;  %3675 = vmatpush1.msra.mxu1 %v3601_v29  ;;  %v9434_v26 = vld [vmem:[#allocation8 + $0x28] sm:$0xff]  ;;  %v9436_v29 = vld [vmem:[#allocation8 + $0x38] sm:$0xff] }
 0x510   :  { %3605 = vmatprep.subr.mxu0 %v3596_v47  ;;  %3676 = vmatprep.subr.mxu1 %v3598_v34  ;;  %12040 = vst [vmem:[#allocation21_spill] sm:$0xff] %v9434_v26  ;;  %12041 = vst [vmem:[#allocation28_spill] sm:$0xff] %v9436_v29  ;;  %v9440_v47 = vld [vmem:[#allocation8 + $0x20] sm:$0xff]  ;;  %v9442_v34 = vld [vmem:[#allocation8 + $0x30] sm:$0xff] }
 0x511   :  { %3606 = vmatpush1.msra.mxu0 %v3595_v37  ;;  %3677 = vmatpush1.msra.mxu1 %v3597_v35  ;;  %12042 = vst [vmem:[#allocation23_spill] sm:$0xff] %v9440_v47  ;;  %12043 = vst [vmem:[#allocation29_spill] sm:$0xff] %v9442_v34  ;;  %v9446_v37 = vld [vmem:[#allocation8 + $0x8] sm:$0xff]  ;;  %v9448_v35 = vld [vmem:[#allocation8 + $0x18] sm:$0xff] }
 0x512   :  { %3607 = vmatprep.subr.mxu0 %v3592_v40  ;;  %3678 = vmatprep.subr.mxu1 %v3594_v38  ;;  %12044 = vst [vmem:[#allocation25_spill] sm:$0xff] %v9446_v37  ;;  %12045 = vst [vmem:[#allocation30_spill] sm:$0xff] %v9448_v35  ;;  %v9452_v40 = vld [vmem:[#allocation8] sm:$0xff]  ;;  %v9456_v38 = vld [vmem:[#allocation8 + $0x10] sm:$0xff] }
 0x513   :  { %3608 = vmatpush1.msra.mxu0 %v3591_v36  ;;  %3679 = vmatpush1.msra.mxu1 %v3593_v46  ;;  %12046 = vst [vmem:[#allocation27_spill] sm:$0xff] %v9452_v40  ;;  %12047 = vst [vmem:[#allocation31_spill] sm:$0xff] %v9456_v38  ;;  %v9468_v36 = vld [vmem:[#allocation12 + $0x1e8] sm:$0xff]  ;;  %v9470_v46 = vld [vmem:[#allocation12 + $0x1f8] sm:$0xff] }
 0x514   :  { %3609 = vmatprep.subr.mxu0 %v9306_v44  ;;  %3680 = vmatprep.subr.mxu1 %v9308_v50  ;;  %12048 = vst [vmem:[#allocation32_spill] sm:$0xff] %v9468_v36  ;;  %12049 = vst [vmem:[#allocation33_spill] sm:$0xff] %v9470_v46 }
 0x515   :  { %3610 = vmatpush1.msra.mxu0 %v9310_v51  ;;  %3681 = vmatpush1.msra.mxu1 %v9312_v52 }
 0x516   :  { %3611 = vmatprep.subr.mxu0 %v9314_v53  ;;  %3682 = vmatprep.subr.mxu1 %v9316_v54 }
 0x517   :  { %3612 = vmatpush1.msra.mxu0 %v9320_v55  ;;  %3683 = vmatpush1.msra.mxu1 %v9322_v56 }
 0x518   :  { %3613 = vmatprep.subr.mxu0 %v9326_v57  ;;  %3684 = vmatprep.subr.mxu1 %v9328_v58 }
 0x519   :  { %3614 = vmatpush1.msra.mxu0 %v9332_v59  ;;  %3685 = vmatpush1.msra.mxu1 %v9334_v63 }
 0x51a   :  { %3615 = vmatprep.subr.mxu0 %v9338_v4  ;;  %3686 = vmatprep.subr.mxu1 %v9340_v11 }
 0x51b   :  { %3616 = vmatpush1.msra.mxu0 %v9344_v16  ;;  %3687 = vmatpush1.msra.mxu1 %v9346_v0 }
 0x51c   :  { %3617 = vmatprep.subr.mxu0 %v9350_v14  ;;  %3688 = vmatprep.subr.mxu1 %v9352_v1 }
 0x51d   :  { %3618 = vmatpush1.msra.mxu0 %v9356_v15  ;;  %3689 = vmatpush1.msra.mxu1 %v9358_v6 }
 0x51e   :  { %3619 = vmatprep.subr.mxu0 %v9362_v7  ;;  %3690 = vmatprep.subr.mxu1 %v9364_v28 }
 0x51f   :  { %3620 = vmatpush1.msra.mxu0 %v9368_v32  ;;  %3691 = vmatpush1.msra.mxu1 %v9370_v41 }
 0x520   :  { %3621 = vmatprep.subr.mxu0 %v9374_v33  ;;  %3692 = vmatprep.subr.mxu1 %v9376_v60 }
 0x521   :  { %3622 = vmatpush1.msra.mxu0 %v9380_v42  ;;  %3693 = vmatpush1.msra.mxu1 %v9382_v30 }
 0x522   :  { %3623 = vmatprep.subr.mxu0 %v9386_v10  ;;  %3694 = vmatprep.subr.mxu1 %v9388_v27 }
 0x523   :  { %3624 = vmatpush1.msra.mxu0 %v9392_v2  ;;  %3695 = vmatpush1.msra.mxu1 %v9394_v8 }
 0x524   :  { %3625 = vmatprep.subr.mxu0 %v9398_v13  ;;  %3696 = vmatprep.subr.mxu1 %v9400_v12 }
 0x525   :  { %3626 = vmatpush1.msra.mxu0 %v9404_v5  ;;  %3697 = vmatpush1.msra.mxu1 %v9406_v62 }
 0x526   :  { %3627 = vmatprep.subr.mxu0 %v9410_v9  ;;  %3698 = vmatprep.subr.mxu1 %v9412_v20 }
 0x527   :  { %3628 = vmatpush1.msra.mxu0 %v9416_v21  ;;  %3699 = vmatpush1.msra.mxu1 %v9418_v22 }
 0x528   :  { %3629 = vmatprep.subr.mxu0 %v9422_v23  ;;  %3700 = vmatprep.subr.mxu1 %v9424_v24 }
 0x529   :  { %3630 = vmatpush1.msra.mxu0 %v9428_v25  ;;  %3701 = vmatpush1.msra.mxu1 %v9430_v39 }
 0x52a   :  { %3631 = vmatprep.subr.mxu0 %v9434_v26  ;;  %3702 = vmatprep.subr.mxu1 %v9436_v29 }
 0x52b   :  { %3632 = vmatpush1.msra.mxu0 %v9440_v47  ;;  %3703 = vmatpush1.msra.mxu1 %v9442_v34 }
 0x52c   :  { %3633 = vmatprep.subr.mxu0 %v9446_v37  ;;  %3704 = vmatprep.subr.mxu1 %v9448_v35  ;;  %v9482_v35 = vld [vmem:[#allocation12 + $0x1d8] sm:$0xff]  ;;  %v9486_v37 = vld [vmem:[#allocation12 + $0x1c0] sm:$0xff] }
 0x52d   :  { %3634 = vmatpush1.msra.mxu0 %v9452_v40  ;;  %3667 = vmatprep.mubr.f32.mxu0 %v11620_v31  ;;  %v9474_v40 = vld [vmem:[#allocation12 + $0x1e0] sm:$0xff]  ;;  %12053 = vst [vmem:[#allocation37_spill] sm:$0xff] %v9482_v35  ;;  %12054 = vst [vmem:[#allocation38_spill] sm:$0xff] %v9486_v37 }
 0x52e   :  { %3705 = vmatpush1.msra.mxu1 %v9456_v38  ;;  %3738 = vmatprep.mubr.f32.mxu1 %v11620_v31  ;;  %12050 = vst [vmem:[#allocation34_spill] sm:$0xff] %v9474_v40  ;;  %v9476_v38 = vld [vmem:[#allocation12 + $0x1f0] sm:$0xff] }
 0x52f   :  { %3668 = vmatmul.mubr.f32.vlgmr.msra.gmra.mxu0 %v9302_v43  ;;  %3739 = vmatmul.mubr.f32.vlgmr.msra.gmra.mxu1 %v9302_v43  ;;  %12051 = vst [vmem:[#allocation35_spill] sm:$0xff] %v9476_v38  ;;  %v9480_v43 = vld [vmem:[#allocation12 + $0x1c8] sm:$0xff] }
 0x530   :  { %4039 = vmatprep.mubr.f32.mxu0 %v11620_v31  ;;  %4110 = vmatprep.mubr.f32.mxu1 %v11620_v31  ;;  %12052 = vst [vmem:[#allocation36_spill] sm:$0xff] %v9480_v43 }
 0x531   :  { %3975 = vmatprep.subr.mxu0 %v9468_v36  ;;  %4046 = vmatprep.subr.mxu1 %v9470_v46  ;;  %v9488_v36 = vld [vmem:[#allocation12 + $0x1d0] sm:$0xff]  ;;  %v9492_v46 = vld [vmem:[#allocation12 + $0x1a8] sm:$0xff] }
 0x532   :  { %3976 = vmatpush1.msra.mxu0 %v9474_v40  ;;  %4047 = vmatpush1.msra.mxu1 %v9476_v38  ;;  %12055 = vst [vmem:[#allocation39_spill] sm:$0xff] %v9488_v36  ;;  %12056 = vst [vmem:[#allocation40_spill] sm:$0xff] %v9492_v46  ;;  %v9494_v40 = vld [vmem:[#allocation12 + $0x1b8] sm:$0xff]  ;;  %v9498_v38 = vld [vmem:[#allocation12 + $0x1a0] sm:$0xff] }
 0x533   :  { %3977 = vmatprep.subr.mxu0 %v9480_v43  ;;  %4048 = vmatprep.subr.mxu1 %v9482_v35  ;;  %12057 = vst [vmem:[#allocation41_spill] sm:$0xff] %v9494_v40  ;;  %12058 = vst [vmem:[#allocation42_spill] sm:$0xff] %v9498_v38  ;;  %v9500_v43 = vld [vmem:[#allocation12 + $0x1b0] sm:$0xff]  ;;  %v9504_v35 = vld [vmem:[#allocation12 + $0x188] sm:$0xff] }
 0x534   :  { %3978 = vmatpush1.msra.mxu0 %v9486_v37  ;;  %4049 = vmatpush1.msra.mxu1 %v9488_v36  ;;  %12059 = vst [vmem:[#allocation43_spill] sm:$0xff] %v9500_v43  ;;  %12060 = vst [vmem:[#allocation44_spill] sm:$0xff] %v9504_v35  ;;  %v9506_v37 = vld [vmem:[#allocation12 + $0x198] sm:$0xff]  ;;  %v9510_v36 = vld [vmem:[#allocation12 + $0x180] sm:$0xff] }
 0x535   :  { %3979 = vmatprep.subr.mxu0 %v9492_v46  ;;  %4050 = vmatprep.subr.mxu1 %v9494_v40  ;;  %12061 = vst [vmem:[#allocation45_spill] sm:$0xff] %v9506_v37  ;;  %12062 = vst [vmem:[#allocation46_spill] sm:$0xff] %v9510_v36  ;;  %v9512_v46 = vld [vmem:[#allocation12 + $0x190] sm:$0xff]  ;;  %v9516_v40 = vld [vmem:[#allocation12 + $0x168] sm:$0xff] }
 0x536   :  { %3980 = vmatpush1.msra.mxu0 %v9498_v38  ;;  %4051 = vmatpush1.msra.mxu1 %v9500_v43  ;;  %12063 = vst [vmem:[#allocation47_spill] sm:$0xff] %v9512_v46  ;;  %12064 = vst [vmem:[#allocation48_spill] sm:$0xff] %v9516_v40  ;;  %v9518_v38 = vld [vmem:[#allocation12 + $0x178] sm:$0xff]  ;;  %v9522_v43 = vld [vmem:[#allocation12 + $0x160] sm:$0xff] }
 0x537   :  { %3981 = vmatprep.subr.mxu0 %v9504_v35  ;;  %4052 = vmatprep.subr.mxu1 %v9506_v37  ;;  %12065 = vst [vmem:[#allocation49_spill] sm:$0xff] %v9518_v38  ;;  %12066 = vst [vmem:[#allocation50_spill] sm:$0xff] %v9522_v43  ;;  %v9524_v35 = vld [vmem:[#allocation12 + $0x170] sm:$0xff]  ;;  %v9528_v37 = vld [vmem:[#allocation12 + $0x148] sm:$0xff] }
 0x538   :  { %3982 = vmatpush1.msra.mxu0 %v9510_v36  ;;  %4053 = vmatpush1.msra.mxu1 %v9512_v46  ;;  %12067 = vst [vmem:[#allocation51_spill] sm:$0xff] %v9524_v35  ;;  %12068 = vst [vmem:[#allocation52_spill] sm:$0xff] %v9528_v37  ;;  %v9530_v36 = vld [vmem:[#allocation12 + $0x158] sm:$0xff]  ;;  %v9534_v46 = vld [vmem:[#allocation12 + $0x140] sm:$0xff] }
 0x539   :  { %3983 = vmatprep.subr.mxu0 %v9516_v40  ;;  %4054 = vmatprep.subr.mxu1 %v9518_v38  ;;  %12069 = vst [vmem:[#allocation53_spill] sm:$0xff] %v9530_v36  ;;  %12070 = vst [vmem:[#allocation54_spill] sm:$0xff] %v9534_v46  ;;  %v9536_v40 = vld [vmem:[#allocation12 + $0x150] sm:$0xff]  ;;  %v9540_v38 = vld [vmem:[#allocation12 + $0x128] sm:$0xff] }
 0x53a   :  { %3984 = vmatpush1.msra.mxu0 %v9522_v43  ;;  %4055 = vmatpush1.msra.mxu1 %v9524_v35  ;;  %12071 = vst [vmem:[#allocation55_spill] sm:$0xff] %v9536_v40  ;;  %12072 = vst [vmem:[#allocation56_spill] sm:$0xff] %v9540_v38  ;;  %v9542_v43 = vld [vmem:[#allocation12 + $0x138] sm:$0xff]  ;;  %v9546_v35 = vld [vmem:[#allocation12 + $0x120] sm:$0xff] }
 0x53b   :  { %3985 = vmatprep.subr.mxu0 %v9528_v37  ;;  %4056 = vmatprep.subr.mxu1 %v9530_v36  ;;  %12073 = vst [vmem:[#allocation57_spill] sm:$0xff] %v9542_v43  ;;  %12074 = vst [vmem:[#allocation58_spill] sm:$0xff] %v9546_v35  ;;  %v9548_v37 = vld [vmem:[#allocation12 + $0x130] sm:$0xff]  ;;  %v9552_v36 = vld [vmem:[#allocation12 + $0x108] sm:$0xff] }
 0x53c   :  { %3986 = vmatpush1.msra.mxu0 %v9534_v46  ;;  %4057 = vmatpush1.msra.mxu1 %v9536_v40  ;;  %12075 = vst [vmem:[#allocation59_spill] sm:$0xff] %v9548_v37  ;;  %12076 = vst [vmem:[#allocation60_spill] sm:$0xff] %v9552_v36  ;;  %v9554_v46 = vld [vmem:[#allocation12 + $0x118] sm:$0xff]  ;;  %v9558_v40 = vld [vmem:[#allocation12 + $0x100] sm:$0xff] }
 0x53d   :  { %3987 = vmatprep.subr.mxu0 %v9540_v38  ;;  %4058 = vmatprep.subr.mxu1 %v9542_v43  ;;  %12077 = vst [vmem:[#allocation61_spill] sm:$0xff] %v9554_v46  ;;  %12078 = vst [vmem:[#allocation62_spill] sm:$0xff] %v9558_v40  ;;  %v9560_v38 = vld [vmem:[#allocation12 + $0x110] sm:$0xff]  ;;  %v9564_v43 = vld [vmem:[#allocation12 + $0xe8] sm:$0xff] }
 0x53e   :  { %3988 = vmatpush1.msra.mxu0 %v9546_v35  ;;  %4059 = vmatpush1.msra.mxu1 %v9548_v37  ;;  %12079 = vst [vmem:[#allocation63_spill] sm:$0xff] %v9560_v38  ;;  %12080 = vst [vmem:[#allocation64_spill] sm:$0xff] %v9564_v43  ;;  %v9566_v35 = vld [vmem:[#allocation12 + $0xf8] sm:$0xff]  ;;  %v9570_v37 = vld [vmem:[#allocation12 + $0xe0] sm:$0xff] }
 0x53f   :  { %3989 = vmatprep.subr.mxu0 %v9552_v36  ;;  %4060 = vmatprep.subr.mxu1 %v9554_v46  ;;  %12081 = vst [vmem:[#allocation65_spill] sm:$0xff] %v9566_v35  ;;  %12082 = vst [vmem:[#allocation66_spill] sm:$0xff] %v9570_v37  ;;  %v9572_v36 = vld [vmem:[#allocation12 + $0xf0] sm:$0xff]  ;;  %v9576_v46 = vld [vmem:[#allocation12 + $0xc8] sm:$0xff] }
 0x540   :  { %3990 = vmatpush1.msra.mxu0 %v9558_v40  ;;  %4061 = vmatpush1.msra.mxu1 %v9560_v38  ;;  %12083 = vst [vmem:[#allocation67_spill] sm:$0xff] %v9572_v36  ;;  %12084 = vst [vmem:[#allocation68_spill] sm:$0xff] %v9576_v46  ;;  %v9578_v40 = vld [vmem:[#allocation12 + $0xd8] sm:$0xff]  ;;  %v9582_v38 = vld [vmem:[#allocation12 + $0xc0] sm:$0xff] }
 0x541   :  { %3991 = vmatprep.subr.mxu0 %v9564_v43  ;;  %4062 = vmatprep.subr.mxu1 %v9566_v35  ;;  %12085 = vst [vmem:[#allocation69_spill] sm:$0xff] %v9578_v40  ;;  %12086 = vst [vmem:[#allocation70_spill] sm:$0xff] %v9582_v38  ;;  %v9584_v43 = vld [vmem:[#allocation12 + $0xd0] sm:$0xff]  ;;  %v9588_v35 = vld [vmem:[#allocation12 + $0xa8] sm:$0xff] }
 0x542   :  { %3992 = vmatpush1.msra.mxu0 %v9570_v37  ;;  %4063 = vmatpush1.msra.mxu1 %v9572_v36  ;;  %12087 = vst [vmem:[#allocation71_spill] sm:$0xff] %v9584_v43  ;;  %12088 = vst [vmem:[#allocation72_spill] sm:$0xff] %v9588_v35  ;;  %v9590_v37 = vld [vmem:[#allocation12 + $0xb8] sm:$0xff]  ;;  %v9594_v36 = vld [vmem:[#allocation12 + $0xa0] sm:$0xff] }
 0x543   :  { %3993 = vmatprep.subr.mxu0 %v9576_v46  ;;  %4064 = vmatprep.subr.mxu1 %v9578_v40  ;;  %12089 = vst [vmem:[#allocation73_spill] sm:$0xff] %v9590_v37  ;;  %12090 = vst [vmem:[#allocation74_spill] sm:$0xff] %v9594_v36  ;;  %v9596_v46 = vld [vmem:[#allocation12 + $0xb0] sm:$0xff]  ;;  %v9600_v40 = vld [vmem:[#allocation12 + $0x88] sm:$0xff] }
 0x544   :  { %3994 = vmatpush1.msra.mxu0 %v9582_v38  ;;  %4065 = vmatpush1.msra.mxu1 %v9584_v43  ;;  %12091 = vst [vmem:[#allocation75_spill] sm:$0xff] %v9596_v46  ;;  %12092 = vst [vmem:[#allocation76_spill] sm:$0xff] %v9600_v40  ;;  %v9602_v38 = vld [vmem:[#allocation12 + $0x98] sm:$0xff]  ;;  %v9606_v43 = vld [vmem:[#allocation12 + $0x80] sm:$0xff] }
 0x545   :  { %3995 = vmatprep.subr.mxu0 %v9588_v35  ;;  %4066 = vmatprep.subr.mxu1 %v9590_v37  ;;  %12093 = vst [vmem:[#allocation77_spill] sm:$0xff] %v9602_v38  ;;  %12094 = vst [vmem:[#allocation78_spill] sm:$0xff] %v9606_v43  ;;  %v9608_v35 = vld [vmem:[#allocation12 + $0x90] sm:$0xff]  ;;  %v9612_v37 = vld [vmem:[#allocation12 + $0x68] sm:$0xff] }
 0x546   :  { %3996 = vmatpush1.msra.mxu0 %v9594_v36  ;;  %4067 = vmatpush1.msra.mxu1 %v9596_v46  ;;  %12095 = vst [vmem:[#allocation79_spill] sm:$0xff] %v9608_v35  ;;  %12096 = vst [vmem:[#allocation80_spill] sm:$0xff] %v9612_v37  ;;  %v9614_v36 = vld [vmem:[#allocation12 + $0x78] sm:$0xff]  ;;  %v9618_v46 = vld [vmem:[#allocation12 + $0x60] sm:$0xff] }
 0x547   :  { %3997 = vmatprep.subr.mxu0 %v9600_v40  ;;  %4068 = vmatprep.subr.mxu1 %v9602_v38  ;;  %12097 = vst [vmem:[#allocation81_spill] sm:$0xff] %v9614_v36  ;;  %12098 = vst [vmem:[#allocation82_spill] sm:$0xff] %v9618_v46  ;;  %v9620_v40 = vld [vmem:[#allocation12 + $0x70] sm:$0xff]  ;;  %v9624_v38 = vld [vmem:[#allocation12 + $0x48] sm:$0xff] }
 0x548   :  { %3998 = vmatpush1.msra.mxu0 %v9606_v43  ;;  %4069 = vmatpush1.msra.mxu1 %v9608_v35  ;;  %12099 = vst [vmem:[#allocation83_spill] sm:$0xff] %v9620_v40  ;;  %12100 = vst [vmem:[#allocation84_spill] sm:$0xff] %v9624_v38  ;;  %v9626_v43 = vld [vmem:[#allocation12 + $0x58] sm:$0xff]  ;;  %v9630_v35 = vld [vmem:[#allocation12 + $0x40] sm:$0xff] }
 0x549   :  { %3999 = vmatprep.subr.mxu0 %v9612_v37  ;;  %4070 = vmatprep.subr.mxu1 %v9614_v36  ;;  %12101 = vst [vmem:[#allocation85_spill] sm:$0xff] %v9626_v43  ;;  %12102 = vst [vmem:[#allocation86_spill] sm:$0xff] %v9630_v35  ;;  %v9632_v37 = vld [vmem:[#allocation12 + $0x50] sm:$0xff]  ;;  %v9636_v36 = vld [vmem:[#allocation12 + $0x28] sm:$0xff] }
 0x54a   :  { %4000 = vmatpush1.msra.mxu0 %v9618_v46  ;;  %4071 = vmatpush1.msra.mxu1 %v9620_v40  ;;  %12103 = vst [vmem:[#allocation87_spill] sm:$0xff] %v9632_v37  ;;  %12104 = vst [vmem:[#allocation88_spill] sm:$0xff] %v9636_v36  ;;  %v9638_v46 = vld [vmem:[#allocation12 + $0x38] sm:$0xff]  ;;  %v9642_v40 = vld [vmem:[#allocation12 + $0x20] sm:$0xff] }
 0x54b   :  { %4001 = vmatprep.subr.mxu0 %v9624_v38  ;;  %4072 = vmatprep.subr.mxu1 %v9626_v43  ;;  %12105 = vst [vmem:[#allocation89_spill] sm:$0xff] %v9638_v46  ;;  %12106 = vst [vmem:[#allocation90_spill] sm:$0xff] %v9642_v40  ;;  %v9644_v38 = vld [vmem:[#allocation12 + $0x30] sm:$0xff]  ;;  %v9648_v43 = vld [vmem:[#allocation12 + $0x8] sm:$0xff] }
 0x54c   :  { %4002 = vmatpush1.msra.mxu0 %v9630_v35  ;;  %4073 = vmatpush1.msra.mxu1 %v9632_v37  ;;  %12107 = vst [vmem:[#allocation91_spill] sm:$0xff] %v9644_v38  ;;  %12108 = vst [vmem:[#allocation92_spill] sm:$0xff] %v9648_v43  ;;  %v9650_v35 = vld [vmem:[#allocation12 + $0x18] sm:$0xff]  ;;  %v9654_v37 = vld [vmem:[#allocation12] sm:$0xff] }
 0x54d   :  { %4003 = vmatprep.subr.mxu0 %v9636_v36  ;;  %4074 = vmatprep.subr.mxu1 %v9638_v46  ;;  %12109 = vst [vmem:[#allocation93_spill] sm:$0xff] %v9650_v35  ;;  %12110 = vst [vmem:[#allocation94_spill] sm:$0xff] %v9654_v37  ;;  %v9656_v36 = vld [vmem:[#allocation12 + $0x10] sm:$0xff]  ;;  %v9660_v46 = vld [vmem:[#allocation11 + $0x1e8] sm:$0xff] }
 0x54e   :  { %4004 = vmatpush1.msra.mxu0 %v9642_v40  ;;  %4075 = vmatpush1.msra.mxu1 %v9644_v38  ;;  %12111 = vst [vmem:[#allocation95_spill] sm:$0xff] %v9656_v36  ;;  %12112 = vst [vmem:[#allocation96_spill] sm:$0xff] %v9660_v46  ;;  %v9662_v40 = vld [vmem:[#allocation11 + $0x1f8] sm:$0xff] }
 0x54f   :  { %4005 = vmatprep.subr.mxu0 %v9648_v43  ;;  %4076 = vmatprep.subr.mxu1 %v9650_v35  ;;  %12113 = vst [vmem:[#allocation97_spill] sm:$0xff] %v9662_v40 }
 0x550   :  { %4006 = vmatpush1.msra.mxu0 %v9654_v37  ;;  %4077 = vmatpush1.msra.mxu1 %v9656_v36 }
 0x551   :  { %4135 = vmatprep.subr.mxu0 %v9660_v46  ;;  %4206 = vmatprep.subr.mxu1 %v9662_v40 }
 0x59e   :  { %v3244_v38 = vpop.f32.mrf.mxu0  ;;  %v3315_v43 = vpop.f32.mrf.mxu1 }
 0x5a0   :  { %v3246_v34 = vpop.f32.mrf.mxu0  ;;  %v3317_v47 = vpop.f32.mrf.mxu1 }
 0x5ce   :  { %v3404_v35 = vpop.f32.mrf.mxu0  ;;  %v3475_v37 = vpop.f32.mrf.mxu1 }
 0x5cf   :  { %v3405_v29 = vadd.f32 %v3404_v35, %v3244_v38  ;;  %v3476_v21 = vadd.f32 %v3475_v37, %v3315_v43 }
 0x5d0   :  { %v3406_v26 = vpop.f32.mrf.mxu0  ;;  %v3477_v22 = vpop.f32.mrf.mxu1 }
 0x5d1   :  { %v3480_v39 = vadd.f32 %v3405_v29, %v8412_v45  ;;  %v3407_v25 = vadd.f32 %v3406_v26, %v3246_v34  ;;  %v3478_v46 = vadd.f32 %v3477_v22, %v3317_v47  ;;  %v3482_v35 = vadd.f32 %v3476_v21, %v8427_v3 }
 0x5d3   :  { %v6876_v36 = vmul.f32 -1.442695, %v3480_v39  ;;  %v3481_v24 = vadd.f32 %v3407_v25, %v8416_v48  ;;  %v3483_v40 = vadd.f32 %v3478_v46, %v8422_v61 }
 0x5d5   :  { %7168 = vpow2.f32 %v6876_v36  ;;  %v6877_v23 = vmul.f32 -1.442695, %v3481_v24  ;;  %v6878_v20 = vmul.f32 -1.442695, %v3483_v40 }
 0x5d7   :  { %7170 = vpow2.f32 %v6877_v23 }
 0x5d8   :  { %7172 = vpow2.f32 %v6878_v20 }
 0x5e2   :  { %v7169_v9 = vpop.eup %7168 }
 0x5e3   :  { %v3487_v38 = vadd.f32 1.0, %v7169_v9 }
 0x5e4   :  { %v7171_v62 = vpop.eup %7170 }
 0x5e5   :  { %7174 = vrcp.f32 %v3487_v38  ;;  %v3493_v26 = vadd.f32 1.0, %v7171_v62  ;;  %v7173_v24 = vpop.eup %7172 }
 0x5e6   :  { %7176 = vtanh.f32 %v3482_v35  ;;  %v3500_v36 = vadd.f32 1.0, %v7173_v24 }
 0x5e7   :  { %7178 = vrcp.f32 %v3493_v26 }
 0x5e8   :  { %7180 = vrcp.f32 %v3500_v36 }
 0x5ef   :  { %v3669_v25 = vpop.f32.mrf.mxu0  ;;  %v3740_v39 = vpop.f32.mrf.mxu1 }
 0x5f1   :  { %v3671_v29 = vpop.f32.mrf.mxu0  ;;  %v3742_v23 = vpop.f32.mrf.mxu1 }
 0x5f2   :  { %v7175_v22 = vpop.eup %7174  ;;  %v3749_v47 = vcombine.low %v3669_v25, %v3671_v29  ;;  %v3750_v34 = vcombine.low %v3740_v39, %v3742_v23  ;;  %v3536_v25 = vld [vmem:[#allocation2 + $0x4] ss:$8 sm:$0xf] }
 0x5f3   :  { %v7177_v37 = vpop.eup %7176  ;;  %v3538_v39 = vld [vmem:[#allocation2 + $0x24] ss:$8 sm:$0xf] }
 0x5f4   :  { %v7179_v40 = vpop.eup %7178  ;;  %v3757_v21 = vrot.slane %v3749_v47, %v8261_v17  ;;  %v3764_v9 = vrot.slane %v3750_v34, %v8261_v17  ;;  %v3504_v20 = vmul.f32 %v7177_v37, %v7175_v22 }
 0x5f5   :  { %v3503_v62 = vmul.f32 %v7179_v40, %v9222_v19  ;;  %v7181_v36 = vpop.eup %7180 }
 0x5f6   :  { %v3765_v46 = vcombine.low %v3757_v21, %v3764_v9  ;;  %v3766_v43 = vcombine.high %v3757_v21, %v3764_v9 }
 0x5f7   :  { %v9673_v35 = vadd.f32 %v3504_v20, %v3503_v62 }
 0x5f8   :  { %v3773_v38 = vrot.slane %v3765_v46, %v8261_v17  ;;  %v3780_v26 = vrot.slane %v3766_v43, %v8261_v17  ;;  %v9678_v43 = vld [vmem:[#allocation11 + $0x1e0] sm:$0xff] }
 0x5f9   :  { %12114 = vst [vmem:[#allocation160_spill] sm:$0xff] %v9673_v35  ;;  %7182 = vtanh.f32 %v9673_v35  ;;  %12115 = vst [vmem:[#allocation98_spill] sm:$0xff] %v9678_v43 }
 0x5fa   :  { %v3783_v24 = vadd.f32 %v3773_v38, %v3536_v25  ;;  %v3784_v29 = vadd.f32 %v3780_v26, %v3538_v39  ;;  %v9680_v38 = vld [vmem:[#allocation11 + $0x1f0] sm:$0xff]  ;;  %v9682_v25 = vld [vmem:[#allocation11 + $0x1c8] sm:$0xff]  ;;  %v9684_v39 = vld [vmem:[#allocation11 + $0x1d8] sm:$0xff] }
 0x5fb   :  { %12116 = vst [vmem:[#allocation99_spill] sm:$0xff] %v9680_v38  ;;  %12117 = vst [vmem:[#allocation100_spill] sm:$0xff] %v9682_v25 }
 0x5fc   :  { %v6881_v23 = vmul.f32 -1.442695, %v3783_v24  ;;  %v6882_v47 = vmul.f32 -1.442695, %v3784_v29  ;;  %v3799_v22 = vrot.slane %v3783_v24, 1  ;;  %v3800_v34 = vrot.slane %v3784_v29, 1 }
 0x5fd   :  { %v3821_v40 = vrot.slane %v3783_v24, 3  ;;  %v3822_v21 = vrot.slane %v3784_v29, 3  ;;  %v3815_v20 = vrot.slane %v3783_v24, 2  ;;  %v3816_v62 = vrot.slane %v3784_v29, 2  ;;  %12118 = vst [vmem:[#allocation101_spill] sm:$0xff] %v9684_v39  ;;  %v9693_v24 = vld [vmem:[#allocation11 + $0x1a8] sm:$0xff] }
 0x5fe   :  { %7184 = vpow2.f32 %v6881_v23  ;;  %v6883_v19 = vmul.f32 -1.442695, %v3799_v22  ;;  %v6884_v37 = vmul.f32 -1.442695, %v3800_v34  ;;  %v9687_v22 = vld [vmem:[#allocation11 + $0x1c0] sm:$0xff]  ;;  %v9689_v34 = vld [vmem:[#allocation11 + $0x1d0] sm:$0xff] }
 0x5ff   :  { %7186 = vpow2.f32 %v6882_v47  ;;  %v6885_v26 = vmul.f32 -1.442695, %v3821_v40  ;;  %v6886_v23 = vmul.f32 -1.442695, %v3822_v21  ;;  %12119 = vst [vmem:[#allocation102_spill] sm:$0xff] %v9687_v22  ;;  %12120 = vst [vmem:[#allocation103_spill] sm:$0xff] %v9689_v34 }
 0x600   :  { %7188 = vpow2.f32 %v6883_v19  ;;  %12121 = vst [vmem:[#allocation104_spill] sm:$0xff] %v9693_v24  ;;  %v9695_v29 = vld [vmem:[#allocation11 + $0x1b8] sm:$0xff]  ;;  %v9699_v40 = vld [vmem:[#allocation11 + $0x1a0] sm:$0xff] }
 0x601   :  { %7190 = vpow2.f32 %v6884_v37  ;;  %12122 = vst [vmem:[#allocation105_spill] sm:$0xff] %v9695_v29  ;;  %12123 = vst [vmem:[#allocation106_spill] sm:$0xff] %v9699_v40 }
 0x602   :  { %7192 = vtanh.f32 %v3815_v20  ;;  %v9705_v20 = vld [vmem:[#allocation11 + $0x188] sm:$0xff] }
 0x603   :  { %7194 = vtanh.f32 %v3816_v62  ;;  %12125 = vst [vmem:[#allocation108_spill] sm:$0xff] %v9705_v20  ;;  %v9707_v62 = vld [vmem:[#allocation11 + $0x198] sm:$0xff] }
 0x604   :  { %7196 = vpow2.f32 %v6885_v26  ;;  %12126 = vst [vmem:[#allocation109_spill] sm:$0xff] %v9707_v62 }
 0x605   :  { %7198 = vpow2.f32 %v6886_v23 }
 0x606   :  { %v7183_v9 = vpop.eup %7182 }
 0x607   :  { %v3507_v46 = vmul.f32 %v7183_v9, %v7181_v36  ;;  %v9701_v36 = vld [vmem:[#allocation11 + $0x1b0] sm:$0xff] }
 0x608   :  { %12124 = vst [vmem:[#allocation107_spill] sm:$0xff] %v9701_v36 }
 0x609   :  { %v3515_v47 = vrot.slane %v3507_v46, %v8261_v17  ;;  %4040 = vmatmul.mubr.f32.vlgmr.msra.gmra.mxu0 %v3507_v46  ;;  %4111 = vmatmul.mubr.f32.vlgmr.msra.gmra.mxu1 %v3507_v46 }
 0x60a   :  { %4136 = vmatpush1.msra.mxu0 %v9678_v43  ;;  %4207 = vmatpush1.msra.mxu1 %v9680_v38 }
 0x60b   :  { %v7185_v19 = vpop.eup %7184  ;;  %v3516_v37 = vcombine.high %v3515_v47, %v3515_v47  ;;  %6879 = vst.sshfl [vmem:[#allocation3 + $0x3] sm:$0x1 pattern:$0x73625140] %v3515_v47  ;;  %4137 = vmatprep.subr.mxu0 %v9682_v25  ;;  %4208 = vmatprep.subr.mxu1 %v9684_v39  ;;  %v9711_v39 = vld [vmem:[#allocation11 + $0x180] sm:$0xff] }
 0x60c   :  { %v7187_v21 = vpop.eup %7186  ;;  %v3791_v9 = vadd.f32 1.0, %v7185_v19  ;;  %4138 = vmatpush1.msra.mxu0 %v9687_v22  ;;  %4209 = vmatpush1.msra.mxu1 %v9689_v34  ;;  %12127 = vst [vmem:[#allocation110_spill] sm:$0xff] %v9711_v39  ;;  %v9713_v19 = vld [vmem:[#allocation11 + $0x190] sm:$0xff]  ;;  %v9717_v34 = vld [vmem:[#allocation11 + $0x168] sm:$0xff] }
 0x60d   :  { %v7189_v46 = vpop.eup %7188  ;;  %v3792_v47 = vadd.f32 1.0, %v7187_v21  ;;  %6880 = vst.sshfl [vmem:[#allocation3 + $0xb] sm:$0x1 pattern:$0x73625140] %v3516_v37  ;;  %4139 = vmatprep.subr.mxu0 %v9693_v24  ;;  %4210 = vmatprep.subr.mxu1 %v9695_v29  ;;  %12128 = vst [vmem:[#allocation111_spill] sm:$0xff] %v9713_v19 }
 0x60e   :  { %v7191_v26 = vpop.eup %7190  ;;  %7200 = vrcp.f32 %v3791_v9  ;;  %v3809_v22 = vadd.f32 1.0, %v7189_v46  ;;  %4140 = vmatpush1.msra.mxu0 %v9699_v40  ;;  %4211 = vmatpush1.msra.mxu1 %v9701_v36  ;;  %12129 = vst [vmem:[#allocation112_spill] sm:$0xff] %v9717_v34  ;;  %v9719_v21 = vld [vmem:[#allocation11 + $0x178] sm:$0xff]  ;;  %v9723_v37 = vld [vmem:[#allocation11 + $0x160] sm:$0xff]  ;;  %v9725_v29 = vld [vmem:[#allocation11 + $0x170] sm:$0xff] }
 0x60f   :  { %12130 = vst [vmem:[#allocation113_spill] sm:$0xff] %v9719_v21  ;;  %7202 = vrcp.f32 %v3792_v47  ;;  %v3810_v23 = vadd.f32 1.0, %v7191_v26  ;;  %4141 = vmatprep.subr.mxu0 %v9705_v20  ;;  %4212 = vmatprep.subr.mxu1 %v9707_v62  ;;  %12131 = vst [vmem:[#allocation114_spill] sm:$0xff] %v9723_v37  ;;  %v9729_v9 = vld [vmem:[#allocation11 + $0x148] sm:$0xff]  ;;  %v9731_v46 = vld [vmem:[#allocation11 + $0x158] sm:$0xff] }
 0x610   :  { %12132 = vst [vmem:[#allocation115_spill] sm:$0xff] %v9725_v29  ;;  %7204 = vrcp.f32 %v3809_v22  ;;  %4142 = vmatpush1.msra.mxu0 %v9711_v39  ;;  %4213 = vmatpush1.msra.mxu1 %v9713_v19  ;;  %12133 = vst [vmem:[#allocation116_spill] sm:$0xff] %v9729_v9  ;;  %v9735_v47 = vld [vmem:[#allocation11 + $0x140] sm:$0xff]  ;;  %v9737_v26 = vld [vmem:[#allocation11 + $0x150] sm:$0xff] }
 0x611   :  { %12134 = vst [vmem:[#allocation117_spill] sm:$0xff] %v9731_v46  ;;  %7206 = vrcp.f32 %v3810_v23  ;;  %4143 = vmatprep.subr.mxu0 %v9717_v34  ;;  %4214 = vmatprep.subr.mxu1 %v9719_v21  ;;  %12135 = vst [vmem:[#allocation118_spill] sm:$0xff] %v9735_v47  ;;  %v9741_v22 = vld [vmem:[#allocation11 + $0x128] sm:$0xff]  ;;  %v9743_v19 = vld [vmem:[#allocation11 + $0x138] sm:$0xff] }
 0x612   :  { %12136 = vst [vmem:[#allocation119_spill] sm:$0xff] %v9737_v26  ;;  %4144 = vmatpush1.msra.mxu0 %v9723_v37  ;;  %4215 = vmatpush1.msra.mxu1 %v9725_v29  ;;  %12137 = vst [vmem:[#allocation120_spill] sm:$0xff] %v9741_v22  ;;  %v9747_v23 = vld [vmem:[#allocation11 + $0x120] sm:$0xff]  ;;  %v9749_v34 = vld [vmem:[#allocation11 + $0x130] sm:$0xff] }
 0x613   :  { %12138 = vst [vmem:[#allocation121_spill] sm:$0xff] %v9743_v19  ;;  %4145 = vmatprep.subr.mxu0 %v9729_v9  ;;  %4216 = vmatprep.subr.mxu1 %v9731_v46  ;;  %12139 = vst [vmem:[#allocation122_spill] sm:$0xff] %v9747_v23  ;;  %v9753_v21 = vld [vmem:[#allocation11 + $0x108] sm:$0xff]  ;;  %v9755_v37 = vld [vmem:[#allocation11 + $0x118] sm:$0xff] }
 0x614   :  { %12140 = vst [vmem:[#allocation123_spill] sm:$0xff] %v9749_v34  ;;  %4146 = vmatpush1.msra.mxu0 %v9735_v47  ;;  %4217 = vmatpush1.msra.mxu1 %v9737_v26  ;;  %12141 = vst [vmem:[#allocation124_spill] sm:$0xff] %v9753_v21  ;;  %v9759_v29 = vld [vmem:[#allocation11 + $0x100] sm:$0xff]  ;;  %v9761_v9 = vld [vmem:[#allocation11 + $0x110] sm:$0xff]  ;;  %v7193_v26 = vpop.eup %7192 }
 0x615   :  { %12142 = vst [vmem:[#allocation125_spill] sm:$0xff] %v9755_v37  ;;  %4147 = vmatprep.subr.mxu0 %v9741_v22  ;;  %4218 = vmatprep.subr.mxu1 %v9743_v19  ;;  %12143 = vst [vmem:[#allocation126_spill] sm:$0xff] %v9759_v29  ;;  %v9765_v46 = vld [vmem:[#allocation11 + $0xe8] sm:$0xff]  ;;  %v9767_v47 = vld [vmem:[#allocation11 + $0xf8] sm:$0xff]  ;;  %v7195_v39 = vpop.eup %7194 }
 0x616   :  { %12144 = vst [vmem:[#allocation127_spill] sm:$0xff] %v9761_v9  ;;  %4148 = vmatpush1.msra.mxu0 %v9747_v23  ;;  %4219 = vmatpush1.msra.mxu1 %v9749_v34  ;;  %12145 = vst [vmem:[#allocation128_spill] sm:$0xff] %v9765_v46  ;;  %v9771_v22 = vld [vmem:[#allocation11 + $0xe0] sm:$0xff]  ;;  %v9773_v19 = vld [vmem:[#allocation11 + $0xf0] sm:$0xff]  ;;  %v7197_v62 = vpop.eup %7196 }
 0x617   :  { %12146 = vst [vmem:[#allocation129_spill] sm:$0xff] %v9767_v47  ;;  %4149 = vmatprep.subr.mxu0 %v9753_v21  ;;  %4220 = vmatprep.subr.mxu1 %v9755_v37  ;;  %12147 = vst [vmem:[#allocation130_spill] sm:$0xff] %v9771_v22  ;;  %v9777_v23 = vld [vmem:[#allocation11 + $0xc8] sm:$0xff]  ;;  %v9779_v34 = vld [vmem:[#allocation11 + $0xd8] sm:$0xff]  ;;  %v7199_v20 = vpop.eup %7198  ;;  %v3831_v24 = vadd.f32 1.0, %v7197_v62 }
 0x618   :  { %12148 = vst [vmem:[#allocation131_spill] sm:$0xff] %v9773_v19  ;;  %4150 = vmatpush1.msra.mxu0 %v9759_v29  ;;  %4221 = vmatpush1.msra.mxu1 %v9761_v9  ;;  %12149 = vst [vmem:[#allocation132_spill] sm:$0xff] %v9777_v23  ;;  %v9783_v21 = vld [vmem:[#allocation11 + $0xc0] sm:$0xff]  ;;  %v9785_v37 = vld [vmem:[#allocation11 + $0xd0] sm:$0xff]  ;;  %v3832_v38 = vadd.f32 1.0, %v7199_v20 }
 0x619   :  { %12150 = vst [vmem:[#allocation133_spill] sm:$0xff] %v9779_v34  ;;  %4151 = vmatprep.subr.mxu0 %v9765_v46  ;;  %4222 = vmatprep.subr.mxu1 %v9767_v47  ;;  %12151 = vst [vmem:[#allocation134_spill] sm:$0xff] %v9783_v21  ;;  %v9789_v29 = vld [vmem:[#allocation11 + $0xa8] sm:$0xff]  ;;  %v9791_v9 = vld [vmem:[#allocation11 + $0xb8] sm:$0xff]  ;;  %7208 = vrcp.f32 %v3831_v24 }
 0x61a   :  { %12152 = vst [vmem:[#allocation135_spill] sm:$0xff] %v9785_v37  ;;  %4152 = vmatpush1.msra.mxu0 %v9771_v22  ;;  %4223 = vmatpush1.msra.mxu1 %v9773_v19  ;;  %12153 = vst [vmem:[#allocation136_spill] sm:$0xff] %v9789_v29  ;;  %v9795_v46 = vld [vmem:[#allocation11 + $0xa0] sm:$0xff]  ;;  %v9797_v47 = vld [vmem:[#allocation11 + $0xb0] sm:$0xff]  ;;  %7210 = vrcp.f32 %v3832_v38 }
 0x61b   :  { %12154 = vst [vmem:[#allocation137_spill] sm:$0xff] %v9791_v9  ;;  %v7201_v36 = vpop.eup %7200  ;;  %4153 = vmatprep.subr.mxu0 %v9777_v23  ;;  %4224 = vmatprep.subr.mxu1 %v9779_v34  ;;  %12155 = vst [vmem:[#allocation138_spill] sm:$0xff] %v9797_v47  ;;  %v9801_v19 = vld [vmem:[#allocation11 + $0x88] sm:$0xff]  ;;  %v9803_v22 = vld [vmem:[#allocation11 + $0x98] sm:$0xff] }
 0x61c   :  { %v7203_v40 = vpop.eup %7202  ;;  %4154 = vmatpush1.msra.mxu0 %v9783_v21  ;;  %4225 = vmatpush1.msra.mxu1 %v9785_v37  ;;  %v9807_v34 = vld [vmem:[#allocation11 + $0x80] sm:$0xff]  ;;  %v9809_v23 = vld [vmem:[#allocation11 + $0x90] sm:$0xff]  ;;  %v3839_v62 = vmul.f32 %v7201_v36, %v7193_v26  ;;  %v9813_v37 = vld [vmem:[#allocation11 + $0x68] sm:$0xff] }
 0x61d   :  { %v7205_v25 = vpop.eup %7204  ;;  %4155 = vmatprep.subr.mxu0 %v9789_v29  ;;  %4226 = vmatprep.subr.mxu1 %v9791_v9  ;;  %v9815_v21 = vld [vmem:[#allocation11 + $0x78] sm:$0xff]  ;;  %v3840_v35 = vmul.f32 %v7203_v40, %v7195_v39  ;;  %v9820_v9 = vld [vmem:[#allocation11 + $0x60] sm:$0xff]  ;;  %v9822_v29 = vld [vmem:[#allocation11 + $0x70] sm:$0xff] }
 0x61e   :  { %v7207_v43 = vpop.eup %7206  ;;  %4156 = vmatpush1.msra.mxu0 %v9795_v46  ;;  %4227 = vmatpush1.msra.mxu1 %v9797_v47  ;;  %v3837_v20 = vmul.f32 %v7205_v25, %v9276_v18  ;;  %12156 = vst [vmem:[#allocation139_spill] sm:$0xff] %v9822_v29  ;;  %v9827_v26 = vld [vmem:[#allocation11 + $0x48] sm:$0xff]  ;;  %v9829_v47 = vld [vmem:[#allocation11 + $0x58] sm:$0xff]  ;;  %v9835_v25 = vld [vmem:[#allocation11 + $0x40] sm:$0xff] }
 0x61f   :  { %4157 = vmatprep.subr.mxu0 %v9801_v19  ;;  %4228 = vmatprep.subr.mxu1 %v9803_v22  ;;  %v3838_v36 = vmul.f32 %v7207_v43, %v9280_v49  ;;  %12157 = vst [vmem:[#allocation140_spill] sm:$0xff] %v9827_v26  ;;  %12158 = vst [vmem:[#allocation141_spill] sm:$0xff] %v9829_v47  ;;  %v9837_v39 = vld [vmem:[#allocation11 + $0x50] sm:$0xff]  ;;  %v9843_v43 = vld [vmem:[#allocation11 + $0x28] sm:$0xff] }
 0x620   :  { %4158 = vmatpush1.msra.mxu0 %v9807_v34  ;;  %4229 = vmatpush1.msra.mxu1 %v9809_v23  ;;  %v9831_v18 = vadd.f32 %v3839_v62, %v3837_v20  ;;  %12159 = vst [vmem:[#allocation142_spill] sm:$0xff] %v9835_v25  ;;  %12160 = vst [vmem:[#allocation143_spill] sm:$0xff] %v9837_v39  ;;  %v9845_v24 = vld [vmem:[#allocation11 + $0x38] sm:$0xff]  ;;  %v9850_v38 = vld [vmem:[#allocation11 + $0x20] sm:$0xff] }
 0x621   :  { %4159 = vmatprep.subr.mxu0 %v9813_v37  ;;  %4230 = vmatprep.subr.mxu1 %v9815_v21  ;;  %v9839_v49 = vadd.f32 %v3840_v35, %v3838_v36  ;;  %12161 = vst [vmem:[#allocation144_spill] sm:$0xff] %v9843_v43  ;;  %12162 = vst [vmem:[#allocation145_spill] sm:$0xff] %v9845_v24  ;;  %v9852_v40 = vld [vmem:[#allocation11 + $0x30] sm:$0xff]  ;;  %v9857_v35 = vld [vmem:[#allocation11 + $0x8] sm:$0xff] }
 0x622   :  { %4160 = vmatpush1.msra.mxu0 %v9820_v9  ;;  %4231 = vmatpush1.msra.mxu1 %v9822_v29  ;;  %7212 = vtanh.f32 %v9831_v18  ;;  %12163 = vst [vmem:[#allocation146_spill] sm:$0xff] %v9850_v38  ;;  %12164 = vst [vmem:[#allocation147_spill] sm:$0xff] %v9852_v40  ;;  %v9859_v62 = vld [vmem:[#allocation11 + $0x18] sm:$0xff]  ;;  %v9863_v20 = vld [vmem:[#allocation11] sm:$0xff] }
 0x623   :  { %4161 = vmatprep.subr.mxu0 %v9827_v26  ;;  %4232 = vmatprep.subr.mxu1 %v9829_v47  ;;  %7214 = vtanh.f32 %v9839_v49  ;;  %12165 = vst [vmem:[#allocation148_spill] sm:$0xff] %v9857_v35  ;;  %12166 = vst [vmem:[#allocation149_spill] sm:$0xff] %v9859_v62  ;;  %v9865_v36 = vld [vmem:[#allocation11 + $0x10] sm:$0xff] }
 0x624   :  { %4162 = vmatpush1.msra.mxu0 %v9835_v25  ;;  %4233 = vmatpush1.msra.mxu1 %v9837_v39  ;;  %12167 = vst [vmem:[#allocation150_spill] sm:$0xff] %v9863_v20  ;;  %12168 = vst [vmem:[#allocation151_spill] sm:$0xff] %v9865_v36  ;;  %v7399_v29 = vld [vmem:[#allocation8 + $0x1d8] sm:$0xff] }
 0x625   :  { %4163 = vmatprep.subr.mxu0 %v9843_v43  ;;  %4234 = vmatprep.subr.mxu1 %v9845_v24  ;;  %v7394_v24 = vld [vmem:[#allocation8 + $0x1e8] sm:$0xff]  ;;  %v7395_v43 = vld [vmem:[#allocation8 + $0x1f8] sm:$0xff] }
 0x626   :  { %4164 = vmatpush1.msra.mxu0 %v9850_v38  ;;  %4235 = vmatpush1.msra.mxu1 %v9852_v40  ;;  %v7209_v39 = vpop.eup %7208 }
 0x627   :  { %4165 = vmatprep.subr.mxu0 %v9857_v35  ;;  %4236 = vmatprep.subr.mxu1 %v9859_v62  ;;  %v7211_v38 = vpop.eup %7210 }
 0x628   :  { %4166 = vmatpush1.msra.mxu0 %v9863_v20  ;;  %4237 = vmatpush1.msra.mxu1 %v9865_v36  ;;  %v7396_v36 = vld [vmem:[#allocation8 + $0x1e0] sm:$0xff] }
 0x629   :  { %4199 = vmatprep.mubr.f32.mxu0 %v11620_v31  ;;  %4270 = vmatprep.mubr.f32.mxu1 %v11620_v31 }
 0x62a   :  { %4400 = vmatprep.subr.mxu0 %v7394_v24  ;;  %4471 = vmatprep.subr.mxu1 %v7395_v43  ;;  %v7397_v24 = vld [vmem:[#allocation8 + $0x1f0] sm:$0xff]  ;;  %v7398_v43 = vld [vmem:[#allocation8 + $0x1c8] sm:$0xff] }
 0x62f   :  { %v7213_v25 = vpop.eup %7212 }
 0x630   :  { %v7215_v40 = vpop.eup %7214  ;;  %v3845_v47 = vmul.f32 %v7213_v25, %v7209_v39  ;;  %v7400_v25 = vld [vmem:[#allocation8 + $0x1c0] sm:$0xff]  ;;  %v7403_v39 = vld [vmem:[#allocation8 + $0x1b8] sm:$0xff] }
 0x631   :  { %v3846_v35 = vmul.f32 %v7215_v40, %v7211_v38  ;;  %v7404_v38 = vld [vmem:[#allocation8 + $0x1a0] sm:$0xff]  ;;  %v7405_v40 = vld [vmem:[#allocation8 + $0x1b0] sm:$0xff] }
 0x633   :  { %v4119_v26 = vcombine.low %v3845_v47, %v3846_v35  ;;  %v7401_v47 = vld [vmem:[#allocation8 + $0x1d0] sm:$0xff]  ;;  %v12205_v35 = vld [vmem:[#allocation51_spill] sm:$0xff] }
 0x635   :  { %v4126_v62 = vrot.slane %v4119_v26, %v8261_v17  ;;  %v7402_v26 = vld [vmem:[#allocation8 + $0x1a8] sm:$0xff] }
 0x637   :  { %v9877_v20 = vrot.slane %v4126_v62, %v8261_v17  ;;  %v12206_v62 = vld [vmem:[#allocation52_spill] sm:$0xff] }
 0x639   :  { %4200 = vmatmul.mubr.f32.vlgmr.msra.gmra.mxu0 %v9877_v20  ;;  %4271 = vmatmul.mubr.f32.vlgmr.msra.gmra.mxu1 %v9877_v20 }
 0x63a   :  { %4401 = vmatpush1.msra.mxu0 %v7396_v36  ;;  %4472 = vmatpush1.msra.mxu1 %v7397_v24  ;;  %v12208_v36 = vld [vmem:[#allocation54_spill] sm:$0xff]  ;;  %v12209_v24 = vld [vmem:[#allocation55_spill] sm:$0xff] }
 0x63b   :  { %4402 = vmatprep.subr.mxu0 %v7398_v43  ;;  %4473 = vmatprep.subr.mxu1 %v7399_v29  ;;  %v12204_v29 = vld [vmem:[#allocation50_spill] sm:$0xff]  ;;  %v12210_v43 = vld [vmem:[#allocation56_spill] sm:$0xff] }
 0x63c   :  { %4403 = vmatpush1.msra.mxu0 %v7400_v25  ;;  %4474 = vmatpush1.msra.mxu1 %v7401_v47  ;;  %v12211_v25 = vld [vmem:[#allocation57_spill] sm:$0xff]  ;;  %v12212_v47 = vld [vmem:[#allocation58_spill] sm:$0xff] }
 0x63d   :  { %4404 = vmatprep.subr.mxu0 %v7402_v26  ;;  %4475 = vmatprep.subr.mxu1 %v7403_v39  ;;  %v12213_v26 = vld [vmem:[#allocation59_spill] sm:$0xff]  ;;  %v12214_v39 = vld [vmem:[#allocation60_spill] sm:$0xff] }
 0x63e   :  { %4405 = vmatpush1.msra.mxu0 %v7404_v38  ;;  %4476 = vmatpush1.msra.mxu1 %v7405_v40  ;;  %v12215_v38 = vld [vmem:[#allocation61_spill] sm:$0xff]  ;;  %v12216_v40 = vld [vmem:[#allocation62_spill] sm:$0xff] }
 0x63f   :  { %4406 = vmatprep.subr.mxu0 %v9306_v44  ;;  %4477 = vmatprep.subr.mxu1 %v9308_v50  ;;  %v12169_v44 = vld [vmem:[#allocation156_spill] sm:$0xff]  ;;  %v12170_v50 = vld [vmem:[#allocation157_spill] sm:$0xff] }
 0x640   :  { %4407 = vmatpush1.msra.mxu0 %v9310_v51  ;;  %4478 = vmatpush1.msra.mxu1 %v9312_v52  ;;  %v12171_v51 = vld [vmem:[#allocation158_spill] sm:$0xff]  ;;  %v12172_v52 = vld [vmem:[#allocation159_spill] sm:$0xff] }
 0x641   :  { %4408 = vmatprep.subr.mxu0 %v9314_v53  ;;  %4479 = vmatprep.subr.mxu1 %v9316_v54  ;;  %v12173_v53 = vld [vmem:[#allocation22_spill] sm:$0xff]  ;;  %v12174_v54 = vld [vmem:[#allocation19_spill] sm:$0xff] }
 0x642   :  { %4409 = vmatpush1.msra.mxu0 %v9320_v55  ;;  %4480 = vmatpush1.msra.mxu1 %v9322_v56  ;;  %v12175_v55 = vld [vmem:[#allocation24_spill] sm:$0xff] }
 0x643   :  { %4410 = vmatprep.subr.mxu0 %v9326_v57  ;;  %4481 = vmatprep.subr.mxu1 %v9328_v58  ;;  %v12176_v56 = vld [vmem:[#allocation20_spill] sm:$0xff]  ;;  %v12177_v57 = vld [vmem:[#allocation26_spill] sm:$0xff]  ;;  %v12178_v58 = vld [vmem:[#allocation21_spill] sm:$0xff] }
 0x644   :  { %4411 = vmatpush1.msra.mxu0 %v9332_v59  ;;  %4482 = vmatpush1.msra.mxu1 %v9334_v63  ;;  %v12179_v59 = vld [vmem:[#allocation28_spill] sm:$0xff]  ;;  %v12180_v63 = vld [vmem:[#allocation23_spill] sm:$0xff] }
 0x645   :  { %4412 = vmatprep.subr.mxu0 %v9338_v4  ;;  %4483 = vmatprep.subr.mxu1 %v9340_v11  ;;  %v12181_v4 = vld [vmem:[#allocation29_spill] sm:$0xff] }
 0x646   :  { %4413 = vmatpush1.msra.mxu0 %v9344_v16  ;;  %4484 = vmatpush1.msra.mxu1 %v9346_v0  ;;  %v12182_v11 = vld [vmem:[#allocation25_spill] sm:$0xff]  ;;  %v12183_v16 = vld [vmem:[#allocation30_spill] sm:$0xff]  ;;  %v12184_v0 = vld [vmem:[#allocation27_spill] sm:$0xff] }
 0x647   :  { %4414 = vmatprep.subr.mxu0 %v9350_v14  ;;  %4485 = vmatprep.subr.mxu1 %v9352_v1  ;;  %v12185_v14 = vld [vmem:[#allocation31_spill] sm:$0xff]  ;;  %v12186_v1 = vld [vmem:[#allocation32_spill] sm:$0xff] }
 0x648   :  { %4415 = vmatpush1.msra.mxu0 %v9356_v15  ;;  %4486 = vmatpush1.msra.mxu1 %v9358_v6  ;;  %v12187_v15 = vld [vmem:[#allocation33_spill] sm:$0xff]  ;;  %v12188_v6 = vld [vmem:[#allocation34_spill] sm:$0xff] }
 0x649   :  { %4416 = vmatprep.subr.mxu0 %v9362_v7  ;;  %4487 = vmatprep.subr.mxu1 %v9364_v28  ;;  %v12189_v7 = vld [vmem:[#allocation35_spill] sm:$0xff]  ;;  %v12190_v28 = vld [vmem:[#allocation36_spill] sm:$0xff] }
 0x64a   :  { %4417 = vmatpush1.msra.mxu0 %v9368_v32  ;;  %4488 = vmatpush1.msra.mxu1 %v9370_v41  ;;  %v12191_v32 = vld [vmem:[#allocation37_spill] sm:$0xff]  ;;  %v12192_v41 = vld [vmem:[#allocation38_spill] sm:$0xff] }
 0x64b   :  { %4418 = vmatprep.subr.mxu0 %v9374_v33  ;;  %4489 = vmatprep.subr.mxu1 %v9376_v60  ;;  %v12193_v33 = vld [vmem:[#allocation39_spill] sm:$0xff]  ;;  %v12194_v60 = vld [vmem:[#allocation40_spill] sm:$0xff] }
 0x64c   :  { %4419 = vmatpush1.msra.mxu0 %v9380_v42  ;;  %4490 = vmatpush1.msra.mxu1 %v9382_v30  ;;  %v12195_v42 = vld [vmem:[#allocation41_spill] sm:$0xff]  ;;  %v12196_v30 = vld [vmem:[#allocation42_spill] sm:$0xff] }
 0x64d   :  { %4420 = vmatprep.subr.mxu0 %v9386_v10  ;;  %4491 = vmatprep.subr.mxu1 %v9388_v27  ;;  %v12197_v10 = vld [vmem:[#allocation43_spill] sm:$0xff]  ;;  %v12198_v27 = vld [vmem:[#allocation44_spill] sm:$0xff] }
 0x64e   :  { %4421 = vmatpush1.msra.mxu0 %v9392_v2  ;;  %4492 = vmatpush1.msra.mxu1 %v9394_v8  ;;  %v12199_v2 = vld [vmem:[#allocation45_spill] sm:$0xff]  ;;  %v12200_v8 = vld [vmem:[#allocation46_spill] sm:$0xff] }
 0x64f   :  { %4422 = vmatprep.subr.mxu0 %v9398_v13  ;;  %4493 = vmatprep.subr.mxu1 %v9400_v12  ;;  %v12201_v13 = vld [vmem:[#allocation47_spill] sm:$0xff]  ;;  %v12202_v12 = vld [vmem:[#allocation48_spill] sm:$0xff] }
 0x650   :  { %4423 = vmatpush1.msra.mxu0 %v9404_v5  ;;  %4494 = vmatpush1.msra.mxu1 %v12169_v44  ;;  %v12203_v5 = vld [vmem:[#allocation49_spill] sm:$0xff]  ;;  %v12217_v44 = vld [vmem:[#allocation63_spill] sm:$0xff] }
 0x651   :  { %4424 = vmatprep.subr.mxu0 %v12170_v50  ;;  %4495 = vmatprep.subr.mxu1 %v12171_v51  ;;  %v12218_v50 = vld [vmem:[#allocation64_spill] sm:$0xff]  ;;  %v12219_v51 = vld [vmem:[#allocation65_spill] sm:$0xff] }
 0x652   :  { %4425 = vmatpush1.msra.mxu0 %v12172_v52  ;;  %4496 = vmatpush1.msra.mxu1 %v12173_v53  ;;  %v12220_v52 = vld [vmem:[#allocation66_spill] sm:$0xff]  ;;  %v12221_v53 = vld [vmem:[#allocation67_spill] sm:$0xff] }
 0x653   :  { %4426 = vmatprep.subr.mxu0 %v12174_v54  ;;  %4497 = vmatprep.subr.mxu1 %v12175_v55  ;;  %v12222_v54 = vld [vmem:[#allocation68_spill] sm:$0xff]  ;;  %v12223_v55 = vld [vmem:[#allocation69_spill] sm:$0xff] }
 0x654   :  { %4427 = vmatpush1.msra.mxu0 %v12176_v56  ;;  %4498 = vmatpush1.msra.mxu1 %v12177_v57  ;;  %v12224_v56 = vld [vmem:[#allocation70_spill] sm:$0xff]  ;;  %v12225_v57 = vld [vmem:[#allocation71_spill] sm:$0xff] }
 0x655   :  { %4428 = vmatprep.subr.mxu0 %v12178_v58  ;;  %4499 = vmatprep.subr.mxu1 %v12179_v59  ;;  %v12226_v58 = vld [vmem:[#allocation72_spill] sm:$0xff]  ;;  %v12227_v59 = vld [vmem:[#allocation73_spill] sm:$0xff] }
 0x656   :  { %4429 = vmatpush1.msra.mxu0 %v12180_v63  ;;  %4500 = vmatpush1.msra.mxu1 %v12181_v4  ;;  %v12228_v63 = vld [vmem:[#allocation74_spill] sm:$0xff]  ;;  %v12229_v4 = vld [vmem:[#allocation75_spill] sm:$0xff] }
 0x657   :  { %4430 = vmatprep.subr.mxu0 %v12182_v11  ;;  %4501 = vmatprep.subr.mxu1 %v12183_v16  ;;  %v12230_v11 = vld [vmem:[#allocation76_spill] sm:$0xff]  ;;  %v12231_v16 = vld [vmem:[#allocation77_spill] sm:$0xff] }
 0x658   :  { %4431 = vmatpush1.msra.mxu0 %v12184_v0  ;;  %4464 = vmatprep.mubr.f32.mxu0 %v11620_v31  ;;  %v12232_v0 = vld [vmem:[#allocation78_spill] sm:$0xff] }
 0x659   :  { %4502 = vmatpush1.msra.mxu1 %v12185_v14  ;;  %4535 = vmatprep.mubr.f32.mxu1 %v11620_v31  ;;  %v12233_v14 = vld [vmem:[#allocation79_spill] sm:$0xff] }
 0x65a   :  { %4465 = vmatmul.mubr.f32.vlgmr.msra.gmra.mxu0 %v9877_v20  ;;  %4536 = vmatmul.mubr.f32.vlgmr.msra.gmra.mxu1 %v9877_v20  ;;  %v12207_v20 = vld [vmem:[#allocation53_spill] sm:$0xff] }
 0x65b   :  { %4772 = vmatprep.subr.mxu0 %v12186_v1  ;;  %4843 = vmatprep.subr.mxu1 %v12187_v15  ;;  %v12234_v1 = vld [vmem:[#allocation80_spill] sm:$0xff]  ;;  %v12235_v15 = vld [vmem:[#allocation81_spill] sm:$0xff] }
 0x65c   :  { %4773 = vmatpush1.msra.mxu0 %v12188_v6  ;;  %4844 = vmatpush1.msra.mxu1 %v12189_v7  ;;  %v12236_v6 = vld [vmem:[#allocation82_spill] sm:$0xff]  ;;  %v12237_v7 = vld [vmem:[#allocation83_spill] sm:$0xff] }
 0x65d   :  { %4774 = vmatprep.subr.mxu0 %v12190_v28  ;;  %4845 = vmatprep.subr.mxu1 %v12191_v32  ;;  %v12238_v28 = vld [vmem:[#allocation84_spill] sm:$0xff]  ;;  %v12239_v32 = vld [vmem:[#allocation85_spill] sm:$0xff] }
 0x65e   :  { %4775 = vmatpush1.msra.mxu0 %v12192_v41  ;;  %4846 = vmatpush1.msra.mxu1 %v12193_v33  ;;  %v12240_v41 = vld [vmem:[#allocation86_spill] sm:$0xff]  ;;  %v12241_v33 = vld [vmem:[#allocation87_spill] sm:$0xff] }
 0x65f   :  { %4776 = vmatprep.subr.mxu0 %v12194_v60  ;;  %4847 = vmatprep.subr.mxu1 %v12195_v42  ;;  %v12242_v60 = vld [vmem:[#allocation88_spill] sm:$0xff]  ;;  %v12243_v42 = vld [vmem:[#allocation89_spill] sm:$0xff] }
 0x660   :  { %4777 = vmatpush1.msra.mxu0 %v12196_v30  ;;  %4848 = vmatpush1.msra.mxu1 %v12197_v10  ;;  %v12244_v30 = vld [vmem:[#allocation90_spill] sm:$0xff]  ;;  %v12245_v10 = vld [vmem:[#allocation91_spill] sm:$0xff] }
 0x661   :  { %4778 = vmatprep.subr.mxu0 %v12198_v27  ;;  %4849 = vmatprep.subr.mxu1 %v12199_v2  ;;  %v12246_v27 = vld [vmem:[#allocation92_spill] sm:$0xff]  ;;  %v12247_v2 = vld [vmem:[#allocation93_spill] sm:$0xff] }
 0x662   :  { %4779 = vmatpush1.msra.mxu0 %v12200_v8  ;;  %4850 = vmatpush1.msra.mxu1 %v12201_v13  ;;  %v12248_v8 = vld [vmem:[#allocation94_spill] sm:$0xff]  ;;  %v12249_v13 = vld [vmem:[#allocation95_spill] sm:$0xff] }
 0x663   :  { %4780 = vmatprep.subr.mxu0 %v12202_v12  ;;  %4851 = vmatprep.subr.mxu1 %v12203_v5  ;;  %v12250_v12 = vld [vmem:[#allocation96_spill] sm:$0xff]  ;;  %v12251_v5 = vld [vmem:[#allocation97_spill] sm:$0xff] }
 0x664   :  { %4781 = vmatpush1.msra.mxu0 %v12204_v29  ;;  %4852 = vmatpush1.msra.mxu1 %v12205_v35 }
 0x665   :  { %4782 = vmatprep.subr.mxu0 %v12206_v62  ;;  %4853 = vmatprep.subr.mxu1 %v12207_v20 }
 0x666   :  { %4783 = vmatpush1.msra.mxu0 %v12208_v36  ;;  %4854 = vmatpush1.msra.mxu1 %v12209_v24 }
 0x667   :  { %4784 = vmatprep.subr.mxu0 %v12210_v43  ;;  %4855 = vmatprep.subr.mxu1 %v12211_v25 }
 0x668   :  { %4785 = vmatpush1.msra.mxu0 %v12212_v47  ;;  %4856 = vmatpush1.msra.mxu1 %v12213_v26 }
 0x669   :  { %4786 = vmatprep.subr.mxu0 %v12214_v39  ;;  %4857 = vmatprep.subr.mxu1 %v12215_v38 }
 0x66a   :  { %4787 = vmatpush1.msra.mxu0 %v12216_v40  ;;  %4858 = vmatpush1.msra.mxu1 %v12217_v44 }
 0x66b   :  { %4788 = vmatprep.subr.mxu0 %v12218_v50  ;;  %4859 = vmatprep.subr.mxu1 %v12219_v51 }
 0x66c   :  { %4789 = vmatpush1.msra.mxu0 %v12220_v52  ;;  %4860 = vmatpush1.msra.mxu1 %v12221_v53 }
 0x66d   :  { %4790 = vmatprep.subr.mxu0 %v12222_v54  ;;  %4861 = vmatprep.subr.mxu1 %v12223_v55 }
 0x66e   :  { %4791 = vmatpush1.msra.mxu0 %v12224_v56  ;;  %4862 = vmatpush1.msra.mxu1 %v12225_v57 }
 0x66f   :  { %4792 = vmatprep.subr.mxu0 %v12226_v58  ;;  %4863 = vmatprep.subr.mxu1 %v12227_v59 }
 0x670   :  { %4793 = vmatpush1.msra.mxu0 %v12228_v63  ;;  %4864 = vmatpush1.msra.mxu1 %v12229_v4 }
 0x671   :  { %4794 = vmatprep.subr.mxu0 %v12230_v11  ;;  %4865 = vmatprep.subr.mxu1 %v12231_v16 }
 0x672   :  { %4795 = vmatpush1.msra.mxu0 %v12232_v0  ;;  %4866 = vmatpush1.msra.mxu1 %v12233_v14 }
 0x673   :  { %4796 = vmatprep.subr.mxu0 %v12234_v1  ;;  %4867 = vmatprep.subr.mxu1 %v12235_v15 }
 0x674   :  { %4797 = vmatpush1.msra.mxu0 %v12236_v6  ;;  %4868 = vmatpush1.msra.mxu1 %v12237_v7 }
 0x675   :  { %4798 = vmatprep.subr.mxu0 %v12238_v28  ;;  %4869 = vmatprep.subr.mxu1 %v12239_v32 }
 0x676   :  { %4799 = vmatpush1.msra.mxu0 %v12240_v41  ;;  %4870 = vmatpush1.msra.mxu1 %v12241_v33  ;;  %v12252_v33 = vld [vmem:[#allocation160_spill] sm:$0xff] }
 0x677   :  { %4800 = vmatprep.subr.mxu0 %v12242_v60  ;;  %4871 = vmatprep.subr.mxu1 %v12243_v42 }
 0x678   :  { %4801 = vmatpush1.msra.mxu0 %v12244_v30  ;;  %4872 = vmatpush1.msra.mxu1 %v12245_v10 }
 0x679   :  { %4802 = vmatprep.subr.mxu0 %v12246_v27  ;;  %4873 = vmatprep.subr.mxu1 %v12247_v2 }
 0x67a   :  { %4803 = vmatpush1.msra.mxu0 %v12248_v8  ;;  %4836 = vmatprep.mubr.f32.mxu0 %v11620_v31  ;;  %v4333_v8 = vld [vmem:[#allocation2 + $0x5] ss:$8 sm:$0xf] }
 0x67b   :  { %4874 = vmatpush1.msra.mxu1 %v12249_v13  ;;  %4907 = vmatprep.mubr.f32.mxu1 %v11620_v31  ;;  %v4335_v13 = vld [vmem:[#allocation2 + $0x25] ss:$8 sm:$0xf] }
 0x67c   :  { %4932 = vmatprep.subr.mxu0 %v12250_v12  ;;  %5003 = vmatprep.subr.mxu1 %v12251_v5 }
 0x6c9   :  { %v4041_v29 = vpop.f32.mrf.mxu0  ;;  %v4112_v35 = vpop.f32.mrf.mxu1 }
 0x6cb   :  { %v4043_v62 = vpop.f32.mrf.mxu0  ;;  %v4114_v36 = vpop.f32.mrf.mxu1 }
 0x6f9   :  { %v4201_v20 = vpop.f32.mrf.mxu0  ;;  %v4272_v47 = vpop.f32.mrf.mxu1 }
 0x6fa   :  { %v4202_v24 = vadd.f32 %v4201_v20, %v4041_v29  ;;  %v4273_v52 = vadd.f32 %v4272_v47, %v4112_v35 }
 0x6fb   :  { %v4203_v43 = vpop.f32.mrf.mxu0  ;;  %v4274_v44 = vpop.f32.mrf.mxu1 }
 0x6fc   :  { %v4277_v25 = vadd.f32 %v4202_v24, %v8412_v45  ;;  %v4204_v26 = vadd.f32 %v4203_v43, %v4043_v62  ;;  %v4275_v50 = vadd.f32 %v4274_v44, %v4114_v36  ;;  %v4279_v55 = vadd.f32 %v4273_v52, %v8427_v3  ;;  %v12253_v52 = vld [vmem:[#allocation98_spill] sm:$0xff] }
 0x6fe   :  { %v6887_v39 = vmul.f32 -1.442695, %v4277_v25  ;;  %v4278_v38 = vadd.f32 %v4204_v26, %v8416_v48  ;;  %v4280_v51 = vadd.f32 %v4275_v50, %v8422_v61 }
 0x700   :  { %7216 = vpow2.f32 %v6887_v39  ;;  %v6888_v40 = vmul.f32 -1.442695, %v4278_v38  ;;  %v6889_v53 = vmul.f32 -1.442695, %v4280_v51 }
 0x702   :  { %7218 = vpow2.f32 %v6888_v40 }
 0x703   :  { %7220 = vpow2.f32 %v6889_v53  ;;  %v12254_v53 = vld [vmem:[#allocation99_spill] sm:$0xff] }
 0x70d   :  { %v7217_v54 = vpop.eup %7216 }
 0x70e   :  { %v4284_v56 = vadd.f32 1.0, %v7217_v54 }
 0x70f   :  { %v7219_v57 = vpop.eup %7218 }
 0x710   :  { %7222 = vrcp.f32 %v4284_v56  ;;  %v4290_v58 = vadd.f32 1.0, %v7219_v57  ;;  %v7221_v4 = vpop.eup %7220  ;;  %v12255_v56 = vld [vmem:[#allocation100_spill] sm:$0xff]  ;;  %v12256_v57 = vld [vmem:[#allocation101_spill] sm:$0xff] }
 0x711   :  { %7224 = vtanh.f32 %v4279_v55  ;;  %v4297_v7 = vadd.f32 1.0, %v7221_v4  ;;  %v12258_v4 = vld [vmem:[#allocation103_spill] sm:$0xff] }
 0x712   :  { %7226 = vrcp.f32 %v4290_v58 }
 0x713   :  { %7228 = vrcp.f32 %v4297_v7  ;;  %v12262_v7 = vld [vmem:[#allocation107_spill] sm:$0xff] }
 0x71a   :  { %v4466_v59 = vpop.f32.mrf.mxu0  ;;  %v4537_v63 = vpop.f32.mrf.mxu1 }
 0x71c   :  { %v4468_v11 = vpop.f32.mrf.mxu0  ;;  %v4539_v16 = vpop.f32.mrf.mxu1 }
 0x71d   :  { %v7223_v0 = vpop.eup %7222  ;;  %v4546_v14 = vcombine.low %v4466_v59, %v4468_v11  ;;  %v4547_v1 = vcombine.low %v4537_v63, %v4539_v16  ;;  %v12257_v63 = vld [vmem:[#allocation102_spill] sm:$0xff] }
 0x71e   :  { %v7225_v15 = vpop.eup %7224 }
 0x71f   :  { %v7227_v6 = vpop.eup %7226  ;;  %v4554_v28 = vrot.slane %v4546_v14, %v8261_v17  ;;  %v4561_v32 = vrot.slane %v4547_v1, %v8261_v17  ;;  %v4301_v41 = vmul.f32 %v7225_v15, %v7223_v0  ;;  %v12259_v0 = vld [vmem:[#allocation104_spill] sm:$0xff]  ;;  %v12260_v14 = vld [vmem:[#allocation105_spill] sm:$0xff] }
 0x720   :  { %v4300_v60 = vmul.f32 %v7227_v6, %v12252_v33  ;;  %v7229_v25 = vpop.eup %7228  ;;  %v12261_v6 = vld [vmem:[#allocation106_spill] sm:$0xff] }
 0x721   :  { %v4562_v42 = vcombine.low %v4554_v28, %v4561_v32  ;;  %v4563_v30 = vcombine.high %v4554_v28, %v4561_v32  ;;  %v12263_v32 = vld [vmem:[#allocation108_spill] sm:$0xff]  ;;  %v12265_v33 = vld [vmem:[#allocation110_spill] sm:$0xff] }
 0x722   :  { %v10012_v10 = vadd.f32 %v4301_v41, %v4300_v60  ;;  %v12264_v41 = vld [vmem:[#allocation109_spill] sm:$0xff]  ;;  %v12266_v60 = vld [vmem:[#allocation111_spill] sm:$0xff] }
 0x723   :  { %v4570_v27 = vrot.slane %v4562_v42, %v8261_v17  ;;  %v4577_v2 = vrot.slane %v4563_v30, %v8261_v17  ;;  %v12267_v42 = vld [vmem:[#allocation112_spill] sm:$0xff]  ;;  %v12268_v30 = vld [vmem:[#allocation113_spill] sm:$0xff] }
 0x724   :  { %7230 = vtanh.f32 %v10012_v10 }
 0x725   :  { %v4580_v12 = vadd.f32 %v4570_v27, %v4333_v8  ;;  %v4581_v5 = vadd.f32 %v4577_v2, %v4335_v13  ;;  %v12269_v27 = vld [vmem:[#allocation114_spill] sm:$0xff]  ;;  %v12270_v2 = vld [vmem:[#allocation115_spill] sm:$0xff]  ;;  %v12271_v8 = vld [vmem:[#allocation116_spill] sm:$0xff] }
 0x726   :  { %v12272_v13 = vld [vmem:[#allocation117_spill] sm:$0xff] }
 0x727   :  { %v6892_v29 = vmul.f32 -1.442695, %v4580_v12  ;;  %v6893_v35 = vmul.f32 -1.442695, %v4581_v5  ;;  %v4596_v62 = vrot.slane %v4580_v12, 1  ;;  %v4597_v20 = vrot.slane %v4581_v5, 1 }
 0x728   :  { %v4618_v43 = vrot.slane %v4580_v12, 3  ;;  %v4619_v47 = vrot.slane %v4581_v5, 3  ;;  %v4612_v39 = vrot.slane %v4580_v12, 2  ;;  %v4613_v38 = vrot.slane %v4581_v5, 2  ;;  %v12273_v12 = vld [vmem:[#allocation118_spill] sm:$0xff]  ;;  %v12274_v5 = vld [vmem:[#allocation119_spill] sm:$0xff] }
 0x729   :  { %7232 = vpow2.f32 %v6892_v29  ;;  %v6894_v36 = vmul.f32 -1.442695, %v4596_v62  ;;  %v6895_v24 = vmul.f32 -1.442695, %v4597_v20  ;;  %v12275_v29 = vld [vmem:[#allocation120_spill] sm:$0xff]  ;;  %v12277_v62 = vld [vmem:[#allocation122_spill] sm:$0xff] }
 0x72a   :  { %7234 = vpow2.f32 %v6893_v35  ;;  %v6896_v44 = vmul.f32 -1.442695, %v4618_v43  ;;  %v6897_v50 = vmul.f32 -1.442695, %v4619_v47  ;;  %v12276_v35 = vld [vmem:[#allocation121_spill] sm:$0xff]  ;;  %v12278_v20 = vld [vmem:[#allocation123_spill] sm:$0xff] }
 0x72b   :  { %7236 = vpow2.f32 %v6894_v36  ;;  %v12280_v43 = vld [vmem:[#allocation125_spill] sm:$0xff]  ;;  %v12281_v47 = vld [vmem:[#allocation126_spill] sm:$0xff] }
 0x72c   :  { %7238 = vpow2.f32 %v6895_v24  ;;  %v12279_v24 = vld [vmem:[#allocation124_spill] sm:$0xff] }
 0x72d   :  { %7240 = vtanh.f32 %v4612_v39 }
 0x72e   :  { %7242 = vtanh.f32 %v4613_v38  ;;  %v12283_v38 = vld [vmem:[#allocation128_spill] sm:$0xff] }
 0x72f   :  { %7244 = vpow2.f32 %v6896_v44 }
 0x730   :  { %7246 = vpow2.f32 %v6897_v50  ;;  %v12285_v50 = vld [vmem:[#allocation130_spill] sm:$0xff] }
 0x731   :  { %v7231_v26 = vpop.eup %7230 }
 0x732   :  { %v4304_v40 = vmul.f32 %v7231_v26, %v7229_v25  ;;  %v12282_v26 = vld [vmem:[#allocation127_spill] sm:$0xff] }
 0x734   :  { %v4312_v51 = vrot.slane %v4304_v40, %v8261_v17  ;;  %4837 = vmatmul.mubr.f32.vlgmr.msra.gmra.mxu0 %v4304_v40  ;;  %4908 = vmatmul.mubr.f32.vlgmr.msra.gmra.mxu1 %v4304_v40  ;;  %v12284_v40 = vld [vmem:[#allocation129_spill] sm:$0xff] }
 0x735   :  { %4933 = vmatpush1.msra.mxu0 %v12253_v52  ;;  %5004 = vmatpush1.msra.mxu1 %v12254_v53  ;;  %v12287_v53 = vld [vmem:[#allocation132_spill] sm:$0xff] }
 0x736   :  { %v7233_v54 = vpop.eup %7232  ;;  %v4313_v55 = vcombine.high %v4312_v51, %v4312_v51  ;;  %6890 = vst.sshfl [vmem:[#allocation3 + $0x4] sm:$0x1 pattern:$0x73625140] %v4312_v51  ;;  %4934 = vmatprep.subr.mxu0 %v12255_v56  ;;  %5005 = vmatprep.subr.mxu1 %v12256_v57  ;;  %v12286_v51 = vld [vmem:[#allocation131_spill] sm:$0xff]  ;;  %v12289_v57 = vld [vmem:[#allocation134_spill] sm:$0xff] }
 0x737   :  { %v7235_v58 = vpop.eup %7234  ;;  %v4588_v59 = vadd.f32 1.0, %v7233_v54  ;;  %4935 = vmatpush1.msra.mxu0 %v12257_v63  ;;  %5006 = vmatpush1.msra.mxu1 %v12258_v4  ;;  %v12288_v54 = vld [vmem:[#allocation133_spill] sm:$0xff]  ;;  %v12291_v4 = vld [vmem:[#allocation136_spill] sm:$0xff] }
 0x738   :  { %v7237_v11 = vpop.eup %7236  ;;  %v4589_v16 = vadd.f32 1.0, %v7235_v58  ;;  %6891 = vst.sshfl [vmem:[#allocation3 + $0xc] sm:$0x1 pattern:$0x73625140] %v4313_v55  ;;  %4936 = vmatprep.subr.mxu0 %v12259_v0  ;;  %5007 = vmatprep.subr.mxu1 %v12260_v14  ;;  %v12290_v58 = vld [vmem:[#allocation135_spill] sm:$0xff] }
 0x739   :  { %v7239_v1 = vpop.eup %7238  ;;  %7248 = vrcp.f32 %v4588_v59  ;;  %v4606_v15 = vadd.f32 1.0, %v7237_v11  ;;  %4937 = vmatpush1.msra.mxu0 %v12261_v6  ;;  %5008 = vmatpush1.msra.mxu1 %v12262_v7  ;;  %v12292_v11 = vld [vmem:[#allocation137_spill] sm:$0xff]  ;;  %v12293_v14 = vld [vmem:[#allocation138_spill] sm:$0xff] }
 0x73a   :  { %7250 = vrcp.f32 %v4589_v16  ;;  %v4607_v28 = vadd.f32 1.0, %v7239_v1  ;;  %4938 = vmatprep.subr.mxu0 %v12263_v32  ;;  %5009 = vmatprep.subr.mxu1 %v12264_v41  ;;  %v7241_v36 = vpop.eup %7240  ;;  %v12304_v32 = vld [vmem:[#allocation149_spill] sm:$0xff]  ;;  %v5194_v41 = vld [vmem:[#allocation8 + $0x1e8] sm:$0xff] }
 0x73b   :  { %7252 = vrcp.f32 %v4606_v15  ;;  %4939 = vmatpush1.msra.mxu0 %v12265_v33  ;;  %5010 = vmatpush1.msra.mxu1 %v12266_v60  ;;  %v7243_v25 = vpop.eup %7242  ;;  %v5196_v33 = vld [vmem:[#allocation8 + $0x1f8] sm:$0xff] }
 0x73c   :  { %7254 = vrcp.f32 %v4607_v28  ;;  %4940 = vmatprep.subr.mxu0 %v12267_v42  ;;  %5011 = vmatprep.subr.mxu1 %v12268_v30  ;;  %v7245_v39 = vpop.eup %7244  ;;  %v12303_v28 = vld [vmem:[#allocation148_spill] sm:$0xff]  ;;  %v12305_v60 = vld [vmem:[#allocation150_spill] sm:$0xff]  ;;  %v12306_v42 = vld [vmem:[#allocation151_spill] sm:$0xff] }
 0x73d   :  { %4941 = vmatpush1.msra.mxu0 %v12269_v27  ;;  %5012 = vmatpush1.msra.mxu1 %v12270_v2  ;;  %v7247_v44 = vpop.eup %7246  ;;  %v4628_v56 = vadd.f32 1.0, %v7245_v39  ;;  %v5185_v39 = vld [vmem:[#allocation8 + $0x1a0] sm:$0xff] }
 0x73e   :  { %4942 = vmatprep.subr.mxu0 %v12271_v8  ;;  %5013 = vmatprep.subr.mxu1 %v12272_v13  ;;  %v4629_v63 = vadd.f32 1.0, %v7247_v44  ;;  %v10098_v44 = vld [vmem:[#allocation8 + $0x198] sm:$0xff] }
 0x73f   :  { %4943 = vmatpush1.msra.mxu0 %v12273_v12  ;;  %5014 = vmatpush1.msra.mxu1 %v12274_v5  ;;  %7256 = vrcp.f32 %v4628_v56  ;;  %v10116_v56 = vld [vmem:[#allocation8 + $0x148] sm:$0xff] }
 0x740   :  { %4944 = vmatprep.subr.mxu0 %v12275_v29  ;;  %5015 = vmatprep.subr.mxu1 %v12276_v35  ;;  %7258 = vrcp.f32 %v4629_v63  ;;  %v10128_v63 = vld [vmem:[#allocation8 + $0x128] sm:$0xff] }
 0x741   :  { %4945 = vmatpush1.msra.mxu0 %v12277_v62  ;;  %5016 = vmatpush1.msra.mxu1 %v12278_v20  ;;  %v5193_v62 = vld [vmem:[#allocation8 + $0x1e0] sm:$0xff]  ;;  %v5195_v20 = vld [vmem:[#allocation8 + $0x1f0] sm:$0xff] }
 0x742   :  { %4946 = vmatprep.subr.mxu0 %v12279_v24  ;;  %5017 = vmatprep.subr.mxu1 %v12280_v43  ;;  %v5192_v24 = vld [vmem:[#allocation8 + $0x1d8] sm:$0xff]  ;;  %v5189_v43 = vld [vmem:[#allocation8 + $0x1c0] sm:$0xff] }
 0x743   :  { %4947 = vmatpush1.msra.mxu0 %v12281_v47  ;;  %5018 = vmatpush1.msra.mxu1 %v12282_v26  ;;  %v5186_v47 = vld [vmem:[#allocation8 + $0x1a8] sm:$0xff]  ;;  %v5188_v26 = vld [vmem:[#allocation8 + $0x1b8] sm:$0xff] }
 0x744   :  { %4948 = vmatprep.subr.mxu0 %v12283_v38  ;;  %5019 = vmatprep.subr.mxu1 %v12284_v40  ;;  %v5187_v38 = vld [vmem:[#allocation8 + $0x1b0] sm:$0xff]  ;;  %v10096_v40 = vld [vmem:[#allocation8 + $0x188] sm:$0xff] }
 0x745   :  { %4949 = vmatpush1.msra.mxu0 %v12285_v50  ;;  %5020 = vmatpush1.msra.mxu1 %v12286_v51  ;;  %v10100_v50 = vld [vmem:[#allocation8 + $0x180] sm:$0xff]  ;;  %v10102_v51 = vld [vmem:[#allocation8 + $0x190] sm:$0xff] }
 0x746   :  { %v7249_v52 = vpop.eup %7248  ;;  %4950 = vmatprep.subr.mxu0 %v12287_v53  ;;  %5021 = vmatprep.subr.mxu1 %v12288_v54  ;;  %v10106_v53 = vld [vmem:[#allocation8 + $0x178] sm:$0xff]  ;;  %v10110_v54 = vld [vmem:[#allocation8 + $0x160] sm:$0xff] }
 0x747   :  { %v7251_v55 = vpop.eup %7250  ;;  %4951 = vmatpush1.msra.mxu0 %v12289_v57  ;;  %5022 = vmatpush1.msra.mxu1 %v12290_v58  ;;  %v4636_v0 = vmul.f32 %v7249_v52, %v7241_v36  ;;  %v5190_v36 = vld [vmem:[#allocation8 + $0x1c8] sm:$0xff]  ;;  %v10118_v57 = vld [vmem:[#allocation8 + $0x158] sm:$0xff]  ;;  %v10122_v58 = vld [vmem:[#allocation8 + $0x140] sm:$0xff] }
 0x748   :  { %v7253_v59 = vpop.eup %7252  ;;  %4952 = vmatprep.subr.mxu0 %v12291_v4  ;;  %5023 = vmatprep.subr.mxu1 %v12292_v11  ;;  %v4637_v15 = vmul.f32 %v7251_v55, %v7243_v25  ;;  %v5191_v25 = vld [vmem:[#allocation8 + $0x1d0] sm:$0xff]  ;;  %v10104_v52 = vld [vmem:[#allocation8 + $0x168] sm:$0xff]  ;;  %v10130_v4 = vld [vmem:[#allocation8 + $0x138] sm:$0xff] }
 0x749   :  { %v7255_v16 = vpop.eup %7254  ;;  %4953 = vmatpush1.msra.mxu0 %v9795_v46  ;;  %5024 = vmatpush1.msra.mxu1 %v12293_v14  ;;  %v4634_v1 = vmul.f32 %v7253_v59, %v9831_v18  ;;  %v12298_v18 = vld [vmem:[#allocation143_spill] sm:$0xff]  ;;  %v10112_v55 = vld [vmem:[#allocation8 + $0x170] sm:$0xff]  ;;  %v10142_v14 = vld [vmem:[#allocation8 + $0x118] sm:$0xff] }
 0x74a   :  { %4954 = vmatprep.subr.mxu0 %v9801_v19  ;;  %5025 = vmatprep.subr.mxu1 %v9803_v22  ;;  %v4635_v6 = vmul.f32 %v7255_v16, %v9839_v49  ;;  %v12294_v19 = vld [vmem:[#allocation139_spill] sm:$0xff]  ;;  %v12295_v22 = vld [vmem:[#allocation140_spill] sm:$0xff]  ;;  %v12301_v49 = vld [vmem:[#allocation146_spill] sm:$0xff] }
 0x74b   :  { %4955 = vmatpush1.msra.mxu0 %v9807_v34  ;;  %5026 = vmatpush1.msra.mxu1 %v9809_v23  ;;  %v10066_v7 = vadd.f32 %v4636_v0, %v4634_v1  ;;  %v12296_v34 = vld [vmem:[#allocation141_spill] sm:$0xff]  ;;  %v12297_v23 = vld [vmem:[#allocation142_spill] sm:$0xff]  ;;  %v10140_v0 = vld [vmem:[#allocation8 + $0x108] sm:$0xff] }
 0x74c   :  { %4956 = vmatprep.subr.mxu0 %v9813_v37  ;;  %5027 = vmatprep.subr.mxu1 %v9815_v21  ;;  %v10070_v46 = vadd.f32 %v4637_v15, %v4635_v6  ;;  %v12299_v37 = vld [vmem:[#allocation144_spill] sm:$0xff]  ;;  %v12300_v21 = vld [vmem:[#allocation145_spill] sm:$0xff]  ;;  %v7257_v30 = vpop.eup %7256  ;;  %v10134_v11 = vld [vmem:[#allocation8 + $0x120] sm:$0xff] }
 0x74d   :  { %4957 = vmatpush1.msra.mxu0 %v9820_v9  ;;  %5028 = vmatpush1.msra.mxu1 %v12294_v19  ;;  %7260 = vtanh.f32 %v10066_v7  ;;  %v12302_v9 = vld [vmem:[#allocation147_spill] sm:$0xff]  ;;  %v7259_v27 = vpop.eup %7258  ;;  %v10124_v59 = vld [vmem:[#allocation8 + $0x150] sm:$0xff]  ;;  %v10154_v19 = vld [vmem:[#allocation8 + $0xf8] sm:$0xff] }
 0x74e   :  { %4958 = vmatprep.subr.mxu0 %v12295_v22  ;;  %5029 = vmatprep.subr.mxu1 %v12296_v34  ;;  %7262 = vtanh.f32 %v10070_v46  ;;  %v10136_v16 = vld [vmem:[#allocation8 + $0x130] sm:$0xff]  ;;  %v10146_v1 = vld [vmem:[#allocation8 + $0x100] sm:$0xff]  ;;  %v10152_v6 = vld [vmem:[#allocation8 + $0xe8] sm:$0xff] }
 0x74f   :  { %4959 = vmatpush1.msra.mxu0 %v12297_v23  ;;  %5030 = vmatpush1.msra.mxu1 %v12298_v18  ;;  %v10148_v15 = vld [vmem:[#allocation8 + $0x110] sm:$0xff]  ;;  %v10158_v22 = vld [vmem:[#allocation8 + $0xe0] sm:$0xff]  ;;  %v10164_v23 = vld [vmem:[#allocation8 + $0xc8] sm:$0xff] }
 0x750   :  { %4960 = vmatprep.subr.mxu0 %v12299_v37  ;;  %5031 = vmatprep.subr.mxu1 %v12300_v21  ;;  %v10160_v34 = vld [vmem:[#allocation8 + $0xf0] sm:$0xff]  ;;  %v10166_v18 = vld [vmem:[#allocation8 + $0xd8] sm:$0xff]  ;;  %v10170_v37 = vld [vmem:[#allocation8 + $0xc0] sm:$0xff] }
 0x751   :  { %4961 = vmatpush1.msra.mxu0 %v12301_v49  ;;  %5032 = vmatpush1.msra.mxu1 %v12302_v9  ;;  %v10172_v21 = vld [vmem:[#allocation8 + $0xd0] sm:$0xff]  ;;  %v10176_v49 = vld [vmem:[#allocation8 + $0xa8] sm:$0xff]  ;;  %v10178_v9 = vld [vmem:[#allocation8 + $0xb8] sm:$0xff] }
 0x752   :  { %4962 = vmatprep.subr.mxu0 %v12303_v28  ;;  %5033 = vmatprep.subr.mxu1 %v12304_v32  ;;  %v10182_v28 = vld [vmem:[#allocation8 + $0xa0] sm:$0xff]  ;;  %v10184_v32 = vld [vmem:[#allocation8 + $0xb0] sm:$0xff] }
 0x753   :  { %4963 = vmatpush1.msra.mxu0 %v12305_v60  ;;  %5034 = vmatpush1.msra.mxu1 %v12306_v42  ;;  %v10194_v60 = vld [vmem:[#allocation8 + $0x80] sm:$0xff]  ;;  %v10196_v42 = vld [vmem:[#allocation8 + $0x90] sm:$0xff] }
 0x754   :  { %4996 = vmatprep.mubr.f32.mxu0 %v11620_v31  ;;  %5067 = vmatprep.mubr.f32.mxu1 %v11620_v31  ;;  %12307 = vst [vmem:[#allocation152_spill] sm:$0xff] %v10196_v42 }
 0x755   :  { %5197 = vmatprep.subr.mxu0 %v5194_v41  ;;  %5268 = vmatprep.subr.mxu1 %v5196_v33  ;;  %v10188_v41 = vld [vmem:[#allocation8 + $0x88] sm:$0xff]  ;;  %v10190_v33 = vld [vmem:[#allocation8 + $0x98] sm:$0xff] }
 0x75a   :  { %v7261_v2 = vpop.eup %7260 }
 0x75b   :  { %v7263_v8 = vpop.eup %7262  ;;  %v4642_v13 = vmul.f32 %v7261_v2, %v7257_v30  ;;  %v10200_v30 = vld [vmem:[#allocation8 + $0x68] sm:$0xff]  ;;  %v10206_v2 = vld [vmem:[#allocation8 + $0x60] sm:$0xff] }
 0x75c   :  { %v4643_v12 = vmul.f32 %v7263_v8, %v7259_v27  ;;  %12308 = vst [vmem:[#allocation153_spill] sm:$0xff] %v10200_v30  ;;  %v10202_v27 = vld [vmem:[#allocation8 + $0x78] sm:$0xff]  ;;  %12310 = vst [vmem:[#allocation155_spill] sm:$0xff] %v10206_v2  ;;  %v10208_v8 = vld [vmem:[#allocation8 + $0x70] sm:$0xff] }
 0x75d   :  { %12309 = vst [vmem:[#allocation154_spill] sm:$0xff] %v10202_v27  ;;  %12311 = vst [vmem:[#allocation156_spill] sm:$0xff] %v10208_v8 }
 0x75e   :  { %v4916_v5 = vcombine.low %v4642_v13, %v4643_v12  ;;  %v10212_v13 = vld [vmem:[#allocation8 + $0x48] sm:$0xff]  ;;  %v10214_v12 = vld [vmem:[#allocation8 + $0x58] sm:$0xff] }
 0x75f   :  { %12312 = vst [vmem:[#allocation157_spill] sm:$0xff] %v10212_v13  ;;  %12313 = vst [vmem:[#allocation158_spill] sm:$0xff] %v10214_v12 }
 0x760   :  { %v4923_v29 = vrot.slane %v4916_v5, %v8261_v17  ;;  %v10218_v5 = vld [vmem:[#allocation8 + $0x40] sm:$0xff] }
 0x761   :  { %12314 = vst [vmem:[#allocation159_spill] sm:$0xff] %v10218_v5 }
 0x762   :  { %v10092_v35 = vrot.slane %v4923_v29, %v8261_v17  ;;  %v10220_v29 = vld [vmem:[#allocation8 + $0x50] sm:$0xff] }
 0x763   :  { %12315 = vst [vmem:[#allocation22_spill] sm:$0xff] %v10220_v29 }
 0x764   :  { %4997 = vmatmul.mubr.f32.vlgmr.msra.gmra.mxu0 %v10092_v35  ;;  %5068 = vmatmul.mubr.f32.vlgmr.msra.gmra.mxu1 %v10092_v35 }
 0x765   :  { %5198 = vmatpush1.msra.mxu0 %v5193_v62  ;;  %5269 = vmatpush1.msra.mxu1 %v5195_v20  ;;  %v10224_v62 = vld [vmem:[#allocation8 + $0x28] sm:$0xff]  ;;  %v10226_v20 = vld [vmem:[#allocation8 + $0x38] sm:$0xff] }
 0x766   :  { %5199 = vmatprep.subr.mxu0 %v5190_v36  ;;  %5270 = vmatprep.subr.mxu1 %v5192_v24  ;;  %12316 = vst [vmem:[#allocation19_spill] sm:$0xff] %v10224_v62  ;;  %12317 = vst [vmem:[#allocation24_spill] sm:$0xff] %v10226_v20  ;;  %v10230_v36 = vld [vmem:[#allocation8 + $0x20] sm:$0xff]  ;;  %v10232_v24 = vld [vmem:[#allocation8 + $0x30] sm:$0xff] }
 0x767   :  { %5200 = vmatpush1.msra.mxu0 %v5189_v43  ;;  %5271 = vmatpush1.msra.mxu1 %v5191_v25  ;;  %12318 = vst [vmem:[#allocation20_spill] sm:$0xff] %v10230_v36  ;;  %12319 = vst [vmem:[#allocation26_spill] sm:$0xff] %v10232_v24  ;;  %v10236_v43 = vld [vmem:[#allocation8 + $0x8] sm:$0xff]  ;;  %v10238_v25 = vld [vmem:[#allocation8 + $0x18] sm:$0xff] }
 0x768   :  { %5201 = vmatprep.subr.mxu0 %v5186_v47  ;;  %5272 = vmatprep.subr.mxu1 %v5188_v26  ;;  %12320 = vst [vmem:[#allocation21_spill] sm:$0xff] %v10236_v43  ;;  %12321 = vst [vmem:[#allocation28_spill] sm:$0xff] %v10238_v25  ;;  %v10242_v47 = vld [vmem:[#allocation8] sm:$0xff]  ;;  %v10246_v26 = vld [vmem:[#allocation8 + $0x10] sm:$0xff] }
 0x769   :  { %5202 = vmatpush1.msra.mxu0 %v5185_v39  ;;  %5273 = vmatpush1.msra.mxu1 %v5187_v38  ;;  %12322 = vst [vmem:[#allocation23_spill] sm:$0xff] %v10242_v47  ;;  %12323 = vst [vmem:[#allocation29_spill] sm:$0xff] %v10246_v26  ;;  %v10258_v39 = vld [vmem:[#allocation12 + $0x1e8] sm:$0xff]  ;;  %v10260_v38 = vld [vmem:[#allocation12 + $0x1f8] sm:$0xff] }
 0x76a   :  { %5203 = vmatprep.subr.mxu0 %v10096_v40  ;;  %5274 = vmatprep.subr.mxu1 %v10098_v44  ;;  %12324 = vst [vmem:[#allocation25_spill] sm:$0xff] %v10258_v39  ;;  %12325 = vst [vmem:[#allocation30_spill] sm:$0xff] %v10260_v38 }
 0x76b   :  { %5204 = vmatpush1.msra.mxu0 %v10100_v50  ;;  %5275 = vmatpush1.msra.mxu1 %v10102_v51 }
 0x76c   :  { %5205 = vmatprep.subr.mxu0 %v10104_v52  ;;  %5276 = vmatprep.subr.mxu1 %v10106_v53 }
 0x76d   :  { %5206 = vmatpush1.msra.mxu0 %v10110_v54  ;;  %5277 = vmatpush1.msra.mxu1 %v10112_v55 }
 0x76e   :  { %5207 = vmatprep.subr.mxu0 %v10116_v56  ;;  %5278 = vmatprep.subr.mxu1 %v10118_v57 }
 0x76f   :  { %5208 = vmatpush1.msra.mxu0 %v10122_v58  ;;  %5279 = vmatpush1.msra.mxu1 %v10124_v59 }
 0x770   :  { %5209 = vmatprep.subr.mxu0 %v10128_v63  ;;  %5280 = vmatprep.subr.mxu1 %v10130_v4 }
 0x771   :  { %5210 = vmatpush1.msra.mxu0 %v10134_v11  ;;  %5281 = vmatpush1.msra.mxu1 %v10136_v16 }
 0x772   :  { %5211 = vmatprep.subr.mxu0 %v10140_v0  ;;  %5282 = vmatprep.subr.mxu1 %v10142_v14 }
 0x773   :  { %5212 = vmatpush1.msra.mxu0 %v10146_v1  ;;  %5283 = vmatpush1.msra.mxu1 %v10148_v15 }
 0x774   :  { %5213 = vmatprep.subr.mxu0 %v10152_v6  ;;  %5284 = vmatprep.subr.mxu1 %v10154_v19 }
 0x775   :  { %5214 = vmatpush1.msra.mxu0 %v10158_v22  ;;  %5285 = vmatpush1.msra.mxu1 %v10160_v34 }
 0x776   :  { %5215 = vmatprep.subr.mxu0 %v10164_v23  ;;  %5286 = vmatprep.subr.mxu1 %v10166_v18 }
 0x777   :  { %5216 = vmatpush1.msra.mxu0 %v10170_v37  ;;  %5287 = vmatpush1.msra.mxu1 %v10172_v21 }
 0x778   :  { %5217 = vmatprep.subr.mxu0 %v10176_v49  ;;  %5288 = vmatprep.subr.mxu1 %v10178_v9 }
 0x779   :  { %5218 = vmatpush1.msra.mxu0 %v10182_v28  ;;  %5289 = vmatpush1.msra.mxu1 %v10184_v32 }
 0x77a   :  { %5219 = vmatprep.subr.mxu0 %v10188_v41  ;;  %5290 = vmatprep.subr.mxu1 %v10190_v33 }
 0x77b   :  { %5220 = vmatpush1.msra.mxu0 %v10194_v60  ;;  %5291 = vmatpush1.msra.mxu1 %v10196_v42 }
 0x77c   :  { %5221 = vmatprep.subr.mxu0 %v10200_v30  ;;  %5292 = vmatprep.subr.mxu1 %v10202_v27 }
 0x77d   :  { %5222 = vmatpush1.msra.mxu0 %v10206_v2  ;;  %5293 = vmatpush1.msra.mxu1 %v10208_v8 }
 0x77e   :  { %5223 = vmatprep.subr.mxu0 %v10212_v13  ;;  %5294 = vmatprep.subr.mxu1 %v10214_v12 }
 0x77f   :  { %5224 = vmatpush1.msra.mxu0 %v10218_v5  ;;  %5295 = vmatpush1.msra.mxu1 %v10220_v29 }
 0x780   :  { %5225 = vmatprep.subr.mxu0 %v10224_v62  ;;  %5296 = vmatprep.subr.mxu1 %v10226_v20 }
 0x781   :  { %5226 = vmatpush1.msra.mxu0 %v10230_v36  ;;  %5297 = vmatpush1.msra.mxu1 %v10232_v24 }
 0x782   :  { %5227 = vmatprep.subr.mxu0 %v10236_v43  ;;  %5298 = vmatprep.subr.mxu1 %v10238_v25  ;;  %v10272_v25 = vld [vmem:[#allocation12 + $0x1d8] sm:$0xff]  ;;  %v10276_v43 = vld [vmem:[#allocation12 + $0x1c0] sm:$0xff] }
 0x783   :  { %5228 = vmatpush1.msra.mxu0 %v10242_v47  ;;  %5261 = vmatprep.mubr.f32.mxu0 %v11620_v31  ;;  %v10264_v47 = vld [vmem:[#allocation12 + $0x1e0] sm:$0xff]  ;;  %12329 = vst [vmem:[#allocation33_spill] sm:$0xff] %v10272_v25  ;;  %12330 = vst [vmem:[#allocation34_spill] sm:$0xff] %v10276_v43 }
 0x784   :  { %5299 = vmatpush1.msra.mxu1 %v10246_v26  ;;  %5332 = vmatprep.mubr.f32.mxu1 %v11620_v31  ;;  %12326 = vst [vmem:[#allocation27_spill] sm:$0xff] %v10264_v47  ;;  %v10266_v26 = vld [vmem:[#allocation12 + $0x1f0] sm:$0xff] }
 0x785   :  { %5262 = vmatmul.mubr.f32.vlgmr.msra.gmra.mxu0 %v10092_v35  ;;  %5333 = vmatmul.mubr.f32.vlgmr.msra.gmra.mxu1 %v10092_v35  ;;  %12327 = vst [vmem:[#allocation31_spill] sm:$0xff] %v10266_v26  ;;  %v10270_v35 = vld [vmem:[#allocation12 + $0x1c8] sm:$0xff] }
 0x786   :  { %5633 = vmatprep.mubr.f32.mxu0 %v11620_v31  ;;  %5704 = vmatprep.mubr.f32.mxu1 %v11620_v31  ;;  %12328 = vst [vmem:[#allocation32_spill] sm:$0xff] %v10270_v35 }
 0x787   :  { %5569 = vmatprep.subr.mxu0 %v10258_v39  ;;  %5640 = vmatprep.subr.mxu1 %v10260_v38  ;;  %v10278_v39 = vld [vmem:[#allocation12 + $0x1d0] sm:$0xff]  ;;  %v10282_v38 = vld [vmem:[#allocation12 + $0x1a8] sm:$0xff] }
 0x788   :  { %5570 = vmatpush1.msra.mxu0 %v10264_v47  ;;  %5641 = vmatpush1.msra.mxu1 %v10266_v26  ;;  %12331 = vst [vmem:[#allocation35_spill] sm:$0xff] %v10278_v39  ;;  %12332 = vst [vmem:[#allocation36_spill] sm:$0xff] %v10282_v38  ;;  %v10284_v47 = vld [vmem:[#allocation12 + $0x1b8] sm:$0xff]  ;;  %v10288_v26 = vld [vmem:[#allocation12 + $0x1a0] sm:$0xff] }
 0x789   :  { %5571 = vmatprep.subr.mxu0 %v10270_v35  ;;  %5642 = vmatprep.subr.mxu1 %v10272_v25  ;;  %12333 = vst [vmem:[#allocation37_spill] sm:$0xff] %v10284_v47  ;;  %12334 = vst [vmem:[#allocation38_spill] sm:$0xff] %v10288_v26  ;;  %v10290_v35 = vld [vmem:[#allocation12 + $0x1b0] sm:$0xff]  ;;  %v10294_v25 = vld [vmem:[#allocation12 + $0x188] sm:$0xff] }
 0x78a   :  { %5572 = vmatpush1.msra.mxu0 %v10276_v43  ;;  %5643 = vmatpush1.msra.mxu1 %v10278_v39  ;;  %12335 = vst [vmem:[#allocation39_spill] sm:$0xff] %v10290_v35  ;;  %12336 = vst [vmem:[#allocation40_spill] sm:$0xff] %v10294_v25  ;;  %v10296_v43 = vld [vmem:[#allocation12 + $0x198] sm:$0xff]  ;;  %v10300_v39 = vld [vmem:[#allocation12 + $0x180] sm:$0xff] }
 0x78b   :  { %5573 = vmatprep.subr.mxu0 %v10282_v38  ;;  %5644 = vmatprep.subr.mxu1 %v10284_v47  ;;  %12337 = vst [vmem:[#allocation41_spill] sm:$0xff] %v10296_v43  ;;  %12338 = vst [vmem:[#allocation42_spill] sm:$0xff] %v10300_v39  ;;  %v10302_v38 = vld [vmem:[#allocation12 + $0x190] sm:$0xff]  ;;  %v10306_v47 = vld [vmem:[#allocation12 + $0x168] sm:$0xff] }
 0x78c   :  { %5574 = vmatpush1.msra.mxu0 %v10288_v26  ;;  %5645 = vmatpush1.msra.mxu1 %v10290_v35  ;;  %12339 = vst [vmem:[#allocation43_spill] sm:$0xff] %v10302_v38  ;;  %12340 = vst [vmem:[#allocation44_spill] sm:$0xff] %v10306_v47  ;;  %v10308_v26 = vld [vmem:[#allocation12 + $0x178] sm:$0xff]  ;;  %v10312_v35 = vld [vmem:[#allocation12 + $0x160] sm:$0xff] }
 0x78d   :  { %5575 = vmatprep.subr.mxu0 %v10294_v25  ;;  %5646 = vmatprep.subr.mxu1 %v10296_v43  ;;  %12341 = vst [vmem:[#allocation45_spill] sm:$0xff] %v10308_v26  ;;  %12342 = vst [vmem:[#allocation46_spill] sm:$0xff] %v10312_v35  ;;  %v10314_v25 = vld [vmem:[#allocation12 + $0x170] sm:$0xff]  ;;  %v10318_v43 = vld [vmem:[#allocation12 + $0x148] sm:$0xff] }
 0x78e   :  { %5576 = vmatpush1.msra.mxu0 %v10300_v39  ;;  %5647 = vmatpush1.msra.mxu1 %v10302_v38  ;;  %12343 = vst [vmem:[#allocation47_spill] sm:$0xff] %v10314_v25  ;;  %12344 = vst [vmem:[#allocation48_spill] sm:$0xff] %v10318_v43  ;;  %v10320_v39 = vld [vmem:[#allocation12 + $0x158] sm:$0xff]  ;;  %v10324_v38 = vld [vmem:[#allocation12 + $0x140] sm:$0xff] }
 0x78f   :  { %5577 = vmatprep.subr.mxu0 %v10306_v47  ;;  %5648 = vmatprep.subr.mxu1 %v10308_v26  ;;  %12345 = vst [vmem:[#allocation49_spill] sm:$0xff] %v10320_v39  ;;  %12346 = vst [vmem:[#allocation50_spill] sm:$0xff] %v10324_v38  ;;  %v10326_v47 = vld [vmem:[#allocation12 + $0x150] sm:$0xff]  ;;  %v10330_v26 = vld [vmem:[#allocation12 + $0x128] sm:$0xff] }
 0x790   :  { %5578 = vmatpush1.msra.mxu0 %v10312_v35  ;;  %5649 = vmatpush1.msra.mxu1 %v10314_v25  ;;  %12347 = vst [vmem:[#allocation51_spill] sm:$0xff] %v10326_v47  ;;  %12348 = vst [vmem:[#allocation52_spill] sm:$0xff] %v10330_v26  ;;  %v10332_v35 = vld [vmem:[#allocation12 + $0x138] sm:$0xff]  ;;  %v10336_v25 = vld [vmem:[#allocation12 + $0x120] sm:$0xff] }
 0x791   :  { %5579 = vmatprep.subr.mxu0 %v10318_v43  ;;  %5650 = vmatprep.subr.mxu1 %v10320_v39  ;;  %12349 = vst [vmem:[#allocation53_spill] sm:$0xff] %v10332_v35  ;;  %12350 = vst [vmem:[#allocation54_spill] sm:$0xff] %v10336_v25  ;;  %v10338_v43 = vld [vmem:[#allocation12 + $0x130] sm:$0xff]  ;;  %v10342_v39 = vld [vmem:[#allocation12 + $0x108] sm:$0xff] }
 0x792   :  { %5580 = vmatpush1.msra.mxu0 %v10324_v38  ;;  %5651 = vmatpush1.msra.mxu1 %v10326_v47  ;;  %12351 = vst [vmem:[#allocation55_spill] sm:$0xff] %v10338_v43  ;;  %12352 = vst [vmem:[#allocation56_spill] sm:$0xff] %v10342_v39  ;;  %v10344_v38 = vld [vmem:[#allocation12 + $0x118] sm:$0xff]  ;;  %v10348_v47 = vld [vmem:[#allocation12 + $0x100] sm:$0xff] }
 0x793   :  { %5581 = vmatprep.subr.mxu0 %v10330_v26  ;;  %5652 = vmatprep.subr.mxu1 %v10332_v35  ;;  %12353 = vst [vmem:[#allocation57_spill] sm:$0xff] %v10344_v38  ;;  %12354 = vst [vmem:[#allocation58_spill] sm:$0xff] %v10348_v47  ;;  %v10350_v26 = vld [vmem:[#allocation12 + $0x110] sm:$0xff]  ;;  %v10354_v35 = vld [vmem:[#allocation12 + $0xe8] sm:$0xff] }
 0x794   :  { %5582 = vmatpush1.msra.mxu0 %v10336_v25  ;;  %5653 = vmatpush1.msra.mxu1 %v10338_v43  ;;  %12355 = vst [vmem:[#allocation59_spill] sm:$0xff] %v10350_v26  ;;  %12356 = vst [vmem:[#allocation60_spill] sm:$0xff] %v10354_v35  ;;  %v10356_v25 = vld [vmem:[#allocation12 + $0xf8] sm:$0xff]  ;;  %v10360_v43 = vld [vmem:[#allocation12 + $0xe0] sm:$0xff] }
 0x795   :  { %5583 = vmatprep.subr.mxu0 %v10342_v39  ;;  %5654 = vmatprep.subr.mxu1 %v10344_v38  ;;  %12357 = vst [vmem:[#allocation61_spill] sm:$0xff] %v10356_v25  ;;  %12358 = vst [vmem:[#allocation62_spill] sm:$0xff] %v10360_v43  ;;  %v10362_v39 = vld [vmem:[#allocation12 + $0xf0] sm:$0xff]  ;;  %v10366_v38 = vld [vmem:[#allocation12 + $0xc8] sm:$0xff] }
 0x796   :  { %5584 = vmatpush1.msra.mxu0 %v10348_v47  ;;  %5655 = vmatpush1.msra.mxu1 %v10350_v26  ;;  %12359 = vst [vmem:[#allocation63_spill] sm:$0xff] %v10362_v39  ;;  %12360 = vst [vmem:[#allocation64_spill] sm:$0xff] %v10366_v38  ;;  %v10368_v47 = vld [vmem:[#allocation12 + $0xd8] sm:$0xff]  ;;  %v10372_v26 = vld [vmem:[#allocation12 + $0xc0] sm:$0xff] }
 0x797   :  { %5585 = vmatprep.subr.mxu0 %v10354_v35  ;;  %5656 = vmatprep.subr.mxu1 %v10356_v25  ;;  %12361 = vst [vmem:[#allocation65_spill] sm:$0xff] %v10368_v47  ;;  %12362 = vst [vmem:[#allocation66_spill] sm:$0xff] %v10372_v26  ;;  %v10374_v35 = vld [vmem:[#allocation12 + $0xd0] sm:$0xff]  ;;  %v10378_v25 = vld [vmem:[#allocation12 + $0xa8] sm:$0xff] }
 0x798   :  { %5586 = vmatpush1.msra.mxu0 %v10360_v43  ;;  %5657 = vmatpush1.msra.mxu1 %v10362_v39  ;;  %12363 = vst [vmem:[#allocation67_spill] sm:$0xff] %v10374_v35  ;;  %12364 = vst [vmem:[#allocation68_spill] sm:$0xff] %v10378_v25  ;;  %v10380_v43 = vld [vmem:[#allocation12 + $0xb8] sm:$0xff]  ;;  %v10384_v39 = vld [vmem:[#allocation12 + $0xa0] sm:$0xff] }
 0x799   :  { %5587 = vmatprep.subr.mxu0 %v10366_v38  ;;  %5658 = vmatprep.subr.mxu1 %v10368_v47  ;;  %12365 = vst [vmem:[#allocation69_spill] sm:$0xff] %v10380_v43  ;;  %12366 = vst [vmem:[#allocation70_spill] sm:$0xff] %v10384_v39  ;;  %v10386_v38 = vld [vmem:[#allocation12 + $0xb0] sm:$0xff]  ;;  %v10390_v47 = vld [vmem:[#allocation12 + $0x88] sm:$0xff] }
 0x79a   :  { %5588 = vmatpush1.msra.mxu0 %v10372_v26  ;;  %5659 = vmatpush1.msra.mxu1 %v10374_v35  ;;  %12367 = vst [vmem:[#allocation71_spill] sm:$0xff] %v10386_v38  ;;  %12368 = vst [vmem:[#allocation72_spill] sm:$0xff] %v10390_v47  ;;  %v10392_v26 = vld [vmem:[#allocation12 + $0x98] sm:$0xff]  ;;  %v10396_v35 = vld [vmem:[#allocation12 + $0x80] sm:$0xff] }
 0x79b   :  { %5589 = vmatprep.subr.mxu0 %v10378_v25  ;;  %5660 = vmatprep.subr.mxu1 %v10380_v43  ;;  %12369 = vst [vmem:[#allocation73_spill] sm:$0xff] %v10392_v26  ;;  %12370 = vst [vmem:[#allocation74_spill] sm:$0xff] %v10396_v35  ;;  %v10398_v25 = vld [vmem:[#allocation12 + $0x90] sm:$0xff]  ;;  %v10402_v43 = vld [vmem:[#allocation12 + $0x68] sm:$0xff] }
 0x79c   :  { %5590 = vmatpush1.msra.mxu0 %v10384_v39  ;;  %5661 = vmatpush1.msra.mxu1 %v10386_v38  ;;  %12371 = vst [vmem:[#allocation75_spill] sm:$0xff] %v10398_v25  ;;  %12372 = vst [vmem:[#allocation76_spill] sm:$0xff] %v10402_v43  ;;  %v10404_v39 = vld [vmem:[#allocation12 + $0x78] sm:$0xff]  ;;  %v10408_v38 = vld [vmem:[#allocation12 + $0x60] sm:$0xff] }
 0x79d   :  { %5591 = vmatprep.subr.mxu0 %v10390_v47  ;;  %5662 = vmatprep.subr.mxu1 %v10392_v26  ;;  %12373 = vst [vmem:[#allocation77_spill] sm:$0xff] %v10404_v39  ;;  %12374 = vst [vmem:[#allocation78_spill] sm:$0xff] %v10408_v38  ;;  %v10410_v47 = vld [vmem:[#allocation12 + $0x70] sm:$0xff]  ;;  %v10414_v26 = vld [vmem:[#allocation12 + $0x48] sm:$0xff] }
 0x79e   :  { %5592 = vmatpush1.msra.mxu0 %v10396_v35  ;;  %5663 = vmatpush1.msra.mxu1 %v10398_v25  ;;  %12375 = vst [vmem:[#allocation79_spill] sm:$0xff] %v10410_v47  ;;  %12376 = vst [vmem:[#allocation80_spill] sm:$0xff] %v10414_v26  ;;  %v10416_v35 = vld [vmem:[#allocation12 + $0x58] sm:$0xff]  ;;  %v10420_v25 = vld [vmem:[#allocation12 + $0x40] sm:$0xff] }
 0x79f   :  { %5593 = vmatprep.subr.mxu0 %v10402_v43  ;;  %5664 = vmatprep.subr.mxu1 %v10404_v39  ;;  %12377 = vst [vmem:[#allocation81_spill] sm:$0xff] %v10416_v35  ;;  %12378 = vst [vmem:[#allocation82_spill] sm:$0xff] %v10420_v25  ;;  %v10422_v43 = vld [vmem:[#allocation12 + $0x50] sm:$0xff]  ;;  %v10426_v39 = vld [vmem:[#allocation12 + $0x28] sm:$0xff] }
 0x7a0   :  { %5594 = vmatpush1.msra.mxu0 %v10408_v38  ;;  %5665 = vmatpush1.msra.mxu1 %v10410_v47  ;;  %12379 = vst [vmem:[#allocation83_spill] sm:$0xff] %v10422_v43  ;;  %12380 = vst [vmem:[#allocation84_spill] sm:$0xff] %v10426_v39  ;;  %v10428_v38 = vld [vmem:[#allocation12 + $0x38] sm:$0xff]  ;;  %v10432_v47 = vld [vmem:[#allocation12 + $0x20] sm:$0xff] }
 0x7a1   :  { %5595 = vmatprep.subr.mxu0 %v10414_v26  ;;  %5666 = vmatprep.subr.mxu1 %v10416_v35  ;;  %12381 = vst [vmem:[#allocation85_spill] sm:$0xff] %v10428_v38  ;;  %12382 = vst [vmem:[#allocation86_spill] sm:$0xff] %v10432_v47  ;;  %v10434_v26 = vld [vmem:[#allocation12 + $0x30] sm:$0xff]  ;;  %v10438_v35 = vld [vmem:[#allocation12 + $0x8] sm:$0xff] }
 0x7a2   :  { %5596 = vmatpush1.msra.mxu0 %v10420_v25  ;;  %5667 = vmatpush1.msra.mxu1 %v10422_v43  ;;  %12383 = vst [vmem:[#allocation87_spill] sm:$0xff] %v10434_v26  ;;  %12384 = vst [vmem:[#allocation88_spill] sm:$0xff] %v10438_v35  ;;  %v10440_v25 = vld [vmem:[#allocation12 + $0x18] sm:$0xff]  ;;  %v10444_v43 = vld [vmem:[#allocation12] sm:$0xff] }
 0x7a3   :  { %5597 = vmatprep.subr.mxu0 %v10426_v39  ;;  %5668 = vmatprep.subr.mxu1 %v10428_v38  ;;  %12385 = vst [vmem:[#allocation89_spill] sm:$0xff] %v10440_v25  ;;  %12386 = vst [vmem:[#allocation90_spill] sm:$0xff] %v10444_v43  ;;  %v10446_v39 = vld [vmem:[#allocation12 + $0x10] sm:$0xff]  ;;  %v10450_v38 = vld [vmem:[#allocation11 + $0x1e8] sm:$0xff] }
 0x7a4   :  { %5598 = vmatpush1.msra.mxu0 %v10432_v47  ;;  %5669 = vmatpush1.msra.mxu1 %v10434_v26  ;;  %12387 = vst [vmem:[#allocation91_spill] sm:$0xff] %v10446_v39  ;;  %12388 = vst [vmem:[#allocation92_spill] sm:$0xff] %v10450_v38  ;;  %v10452_v47 = vld [vmem:[#allocation11 + $0x1f8] sm:$0xff] }
 0x7a5   :  { %5599 = vmatprep.subr.mxu0 %v10438_v35  ;;  %5670 = vmatprep.subr.mxu1 %v10440_v25  ;;  %12389 = vst [vmem:[#allocation93_spill] sm:$0xff] %v10452_v47 }
 0x7a6   :  { %5600 = vmatpush1.msra.mxu0 %v10444_v43  ;;  %5671 = vmatpush1.msra.mxu1 %v10446_v39 }
 0x7a7   :  { %5729 = vmatprep.subr.mxu0 %v10450_v38  ;;  %5800 = vmatprep.subr.mxu1 %v10452_v47 }
 0x7f4   :  { %v4838_v26 = vpop.f32.mrf.mxu0  ;;  %v4909_v35 = vpop.f32.mrf.mxu1 }
 0x7f6   :  { %v4840_v24 = vpop.f32.mrf.mxu0  ;;  %v4911_v36 = vpop.f32.mrf.mxu1 }
 0x824   :  { %v4998_v25 = vpop.f32.mrf.mxu0  ;;  %v5069_v43 = vpop.f32.mrf.mxu1 }
 0x825   :  { %v4999_v20 = vadd.f32 %v4998_v25, %v4838_v26  ;;  %v5070_v2 = vadd.f32 %v5069_v43, %v4909_v35 }
 0x826   :  { %v5000_v62 = vpop.f32.mrf.mxu0  ;;  %v5071_v8 = vpop.f32.mrf.mxu1 }
 0x827   :  { %v5074_v29 = vadd.f32 %v4999_v20, %v8412_v45  ;;  %v5001_v5 = vadd.f32 %v5000_v62, %v4840_v24  ;;  %v5072_v38 = vadd.f32 %v5071_v8, %v4911_v36  ;;  %v5076_v25 = vadd.f32 %v5070_v2, %v8427_v3 }
 0x829   :  { %v6898_v39 = vmul.f32 -1.442695, %v5074_v29  ;;  %v5075_v12 = vadd.f32 %v5001_v5, %v8416_v48  ;;  %v5077_v47 = vadd.f32 %v5072_v38, %v8422_v61 }
 0x82b   :  { %7264 = vpow2.f32 %v6898_v39  ;;  %v6899_v13 = vmul.f32 -1.442695, %v5075_v12  ;;  %v6900_v27 = vmul.f32 -1.442695, %v5077_v47 }
 0x82d   :  { %7266 = vpow2.f32 %v6899_v13 }
 0x82e   :  { %7268 = vpow2.f32 %v6900_v27 }
 0x838   :  { %v7265_v30 = vpop.eup %7264 }
 0x839   :  { %v5081_v26 = vadd.f32 1.0, %v7265_v30 }
 0x83a   :  { %v7267_v42 = vpop.eup %7266 }
 0x83b   :  { %7270 = vrcp.f32 %v5081_v26  ;;  %v5087_v62 = vadd.f32 1.0, %v7267_v42  ;;  %v7269_v12 = vpop.eup %7268 }
 0x83c   :  { %7272 = vtanh.f32 %v5076_v25  ;;  %v5094_v39 = vadd.f32 1.0, %v7269_v12 }
 0x83d   :  { %7274 = vrcp.f32 %v5087_v62 }
 0x83e   :  { %7276 = vrcp.f32 %v5094_v39 }
 0x845   :  { %v5263_v5 = vpop.f32.mrf.mxu0  ;;  %v5334_v29 = vpop.f32.mrf.mxu1 }
 0x847   :  { %v5265_v20 = vpop.f32.mrf.mxu0  ;;  %v5336_v13 = vpop.f32.mrf.mxu1 }
 0x848   :  { %v7271_v8 = vpop.eup %7270  ;;  %v5343_v36 = vcombine.low %v5263_v5, %v5265_v20  ;;  %v5344_v24 = vcombine.low %v5334_v29, %v5336_v13  ;;  %v5130_v5 = vld [vmem:[#allocation2 + $0x6] ss:$8 sm:$0xf] }
 0x849   :  { %v7273_v43 = vpop.eup %7272  ;;  %v5132_v29 = vld [vmem:[#allocation2 + $0x26] ss:$8 sm:$0xf] }
 0x84a   :  { %v7275_v47 = vpop.eup %7274  ;;  %v5351_v2 = vrot.slane %v5343_v36, %v8261_v17  ;;  %v5358_v30 = vrot.slane %v5344_v24, %v8261_v17  ;;  %v5098_v27 = vmul.f32 %v7273_v43, %v7271_v8 }
 0x84b   :  { %v5097_v42 = vmul.f32 %v7275_v47, %v10012_v10  ;;  %v7277_v39 = vpop.eup %7276 }
 0x84c   :  { %v5359_v38 = vcombine.low %v5351_v2, %v5358_v30  ;;  %v5360_v35 = vcombine.high %v5351_v2, %v5358_v30 }
 0x84d   :  { %v10463_v25 = vadd.f32 %v5098_v27, %v5097_v42 }
 0x84e   :  { %v5367_v26 = vrot.slane %v5359_v38, %v8261_v17  ;;  %v5374_v62 = vrot.slane %v5360_v35, %v8261_v17  ;;  %v10468_v35 = vld [vmem:[#allocation11 + $0x1e0] sm:$0xff] }
 0x84f   :  { %12390 = vst [vmem:[#allocation94_spill] sm:$0xff] %v10463_v25  ;;  %7278 = vtanh.f32 %v10463_v25  ;;  %12391 = vst [vmem:[#allocation95_spill] sm:$0xff] %v10468_v35 }
 0x850   :  { %v5377_v12 = vadd.f32 %v5367_v26, %v5130_v5  ;;  %v5378_v20 = vadd.f32 %v5374_v62, %v5132_v29  ;;  %v10470_v26 = vld [vmem:[#allocation11 + $0x1f0] sm:$0xff]  ;;  %v10472_v5 = vld [vmem:[#allocation11 + $0x1c8] sm:$0xff]  ;;  %v10474_v29 = vld [vmem:[#allocation11 + $0x1d8] sm:$0xff] }
 0x851   :  { %12392 = vst [vmem:[#allocation96_spill] sm:$0xff] %v10470_v26  ;;  %12393 = vst [vmem:[#allocation97_spill] sm:$0xff] %v10472_v5 }
 0x852   :  { %v6903_v13 = vmul.f32 -1.442695, %v5377_v12  ;;  %v6904_v36 = vmul.f32 -1.442695, %v5378_v20  ;;  %v5393_v8 = vrot.slane %v5377_v12, 1  ;;  %v5394_v24 = vrot.slane %v5378_v20, 1 }
 0x853   :  { %v5415_v47 = vrot.slane %v5377_v12, 3  ;;  %v5416_v2 = vrot.slane %v5378_v20, 3  ;;  %v5409_v27 = vrot.slane %v5377_v12, 2  ;;  %v5410_v42 = vrot.slane %v5378_v20, 2  ;;  %12394 = vst [vmem:[#allocation160_spill] sm:$0xff] %v10474_v29  ;;  %v10483_v12 = vld [vmem:[#allocation11 + $0x1a8] sm:$0xff] }
 0x854   :  { %7280 = vpow2.f32 %v6903_v13  ;;  %v6905_v10 = vmul.f32 -1.442695, %v5393_v8  ;;  %v6906_v43 = vmul.f32 -1.442695, %v5394_v24  ;;  %v10477_v8 = vld [vmem:[#allocation11 + $0x1c0] sm:$0xff]  ;;  %v10479_v24 = vld [vmem:[#allocation11 + $0x1d0] sm:$0xff] }
 0x855   :  { %7282 = vpow2.f32 %v6904_v36  ;;  %v6907_v62 = vmul.f32 -1.442695, %v5415_v47  ;;  %v6908_v13 = vmul.f32 -1.442695, %v5416_v2  ;;  %12395 = vst [vmem:[#allocation98_spill] sm:$0xff] %v10477_v8  ;;  %12396 = vst [vmem:[#allocation99_spill] sm:$0xff] %v10479_v24 }
 0x856   :  { %7284 = vpow2.f32 %v6905_v10  ;;  %12397 = vst [vmem:[#allocation100_spill] sm:$0xff] %v10483_v12  ;;  %v10485_v20 = vld [vmem:[#allocation11 + $0x1b8] sm:$0xff]  ;;  %v10489_v47 = vld [vmem:[#allocation11 + $0x1a0] sm:$0xff] }
 0x857   :  { %7286 = vpow2.f32 %v6906_v43  ;;  %12398 = vst [vmem:[#allocation101_spill] sm:$0xff] %v10485_v20  ;;  %12399 = vst [vmem:[#allocation102_spill] sm:$0xff] %v10489_v47 }
 0x858   :  { %7288 = vtanh.f32 %v5409_v27  ;;  %v10495_v27 = vld [vmem:[#allocation11 + $0x188] sm:$0xff] }
 0x859   :  { %7290 = vtanh.f32 %v5410_v42  ;;  %12401 = vst [vmem:[#allocation104_spill] sm:$0xff] %v10495_v27  ;;  %v10497_v42 = vld [vmem:[#allocation11 + $0x198] sm:$0xff] }
 0x85a   :  { %7292 = vpow2.f32 %v6907_v62  ;;  %12402 = vst [vmem:[#allocation105_spill] sm:$0xff] %v10497_v42 }
 0x85b   :  { %7294 = vpow2.f32 %v6908_v13 }
 0x85c   :  { %v7279_v30 = vpop.eup %7278 }
 0x85d   :  { %v5101_v38 = vmul.f32 %v7279_v30, %v7277_v39  ;;  %v10491_v39 = vld [vmem:[#allocation11 + $0x1b0] sm:$0xff] }
 0x85e   :  { %12400 = vst [vmem:[#allocation103_spill] sm:$0xff] %v10491_v39 }
 0x85f   :  { %v5109_v36 = vrot.slane %v5101_v38, %v8261_v17  ;;  %5634 = vmatmul.mubr.f32.vlgmr.msra.gmra.mxu0 %v5101_v38  ;;  %5705 = vmatmul.mubr.f32.vlgmr.msra.gmra.mxu1 %v5101_v38 }
 0x860   :  { %5730 = vmatpush1.msra.mxu0 %v10468_v35  ;;  %5801 = vmatpush1.msra.mxu1 %v10470_v26 }
 0x861   :  { %v7281_v10 = vpop.eup %7280  ;;  %v5110_v43 = vcombine.high %v5109_v36, %v5109_v36  ;;  %6901 = vst.sshfl [vmem:[#allocation3 + $0x5] sm:$0x1 pattern:$0x73625140] %v5109_v36  ;;  %5731 = vmatprep.subr.mxu0 %v10472_v5  ;;  %5802 = vmatprep.subr.mxu1 %v10474_v29  ;;  %v10501_v29 = vld [vmem:[#allocation11 + $0x180] sm:$0xff] }
 0x862   :  { %v7283_v2 = vpop.eup %7282  ;;  %v5385_v30 = vadd.f32 1.0, %v7281_v10  ;;  %5732 = vmatpush1.msra.mxu0 %v10477_v8  ;;  %5803 = vmatpush1.msra.mxu1 %v10479_v24  ;;  %12403 = vst [vmem:[#allocation106_spill] sm:$0xff] %v10501_v29  ;;  %v10503_v10 = vld [vmem:[#allocation11 + $0x190] sm:$0xff]  ;;  %v10507_v24 = vld [vmem:[#allocation11 + $0x168] sm:$0xff] }
 0x863   :  { %v7285_v38 = vpop.eup %7284  ;;  %v5386_v36 = vadd.f32 1.0, %v7283_v2  ;;  %6902 = vst.sshfl [vmem:[#allocation3 + $0xd] sm:$0x1 pattern:$0x73625140] %v5110_v43  ;;  %5733 = vmatprep.subr.mxu0 %v10483_v12  ;;  %5804 = vmatprep.subr.mxu1 %v10485_v20  ;;  %12404 = vst [vmem:[#allocation107_spill] sm:$0xff] %v10503_v10 }
 0x864   :  { %v7287_v62 = vpop.eup %7286  ;;  %7296 = vrcp.f32 %v5385_v30  ;;  %v5403_v8 = vadd.f32 1.0, %v7285_v38  ;;  %5734 = vmatpush1.msra.mxu0 %v10489_v47  ;;  %5805 = vmatpush1.msra.mxu1 %v10491_v39  ;;  %12405 = vst [vmem:[#allocation108_spill] sm:$0xff] %v10507_v24  ;;  %v10509_v2 = vld [vmem:[#allocation11 + $0x178] sm:$0xff]  ;;  %v10513_v43 = vld [vmem:[#allocation11 + $0x160] sm:$0xff]  ;;  %v10515_v20 = vld [vmem:[#allocation11 + $0x170] sm:$0xff] }
 0x865   :  { %12406 = vst [vmem:[#allocation109_spill] sm:$0xff] %v10509_v2  ;;  %7298 = vrcp.f32 %v5386_v36  ;;  %v5404_v13 = vadd.f32 1.0, %v7287_v62  ;;  %5735 = vmatprep.subr.mxu0 %v10495_v27  ;;  %5806 = vmatprep.subr.mxu1 %v10497_v42  ;;  %12407 = vst [vmem:[#allocation110_spill] sm:$0xff] %v10513_v43  ;;  %v10519_v30 = vld [vmem:[#allocation11 + $0x148] sm:$0xff]  ;;  %v10521_v38 = vld [vmem:[#allocation11 + $0x158] sm:$0xff] }
 0x866   :  { %12408 = vst [vmem:[#allocation111_spill] sm:$0xff] %v10515_v20  ;;  %7300 = vrcp.f32 %v5403_v8  ;;  %5736 = vmatpush1.msra.mxu0 %v10501_v29  ;;  %5807 = vmatpush1.msra.mxu1 %v10503_v10  ;;  %12409 = vst [vmem:[#allocation112_spill] sm:$0xff] %v10519_v30  ;;  %v10525_v36 = vld [vmem:[#allocation11 + $0x140] sm:$0xff]  ;;  %v10527_v62 = vld [vmem:[#allocation11 + $0x150] sm:$0xff] }
 0x867   :  { %12410 = vst [vmem:[#allocation113_spill] sm:$0xff] %v10521_v38  ;;  %7302 = vrcp.f32 %v5404_v13  ;;  %5737 = vmatprep.subr.mxu0 %v10507_v24  ;;  %5808 = vmatprep.subr.mxu1 %v10509_v2  ;;  %12411 = vst [vmem:[#allocation114_spill] sm:$0xff] %v10525_v36  ;;  %v10531_v8 = vld [vmem:[#allocation11 + $0x128] sm:$0xff]  ;;  %v10533_v10 = vld [vmem:[#allocation11 + $0x138] sm:$0xff] }
 0x868   :  { %12412 = vst [vmem:[#allocation115_spill] sm:$0xff] %v10527_v62  ;;  %5738 = vmatpush1.msra.mxu0 %v10513_v43  ;;  %5809 = vmatpush1.msra.mxu1 %v10515_v20  ;;  %12413 = vst [vmem:[#allocation116_spill] sm:$0xff] %v10531_v8  ;;  %v10537_v13 = vld [vmem:[#allocation11 + $0x120] sm:$0xff]  ;;  %v10539_v24 = vld [vmem:[#allocation11 + $0x130] sm:$0xff] }
 0x869   :  { %12414 = vst [vmem:[#allocation117_spill] sm:$0xff] %v10533_v10  ;;  %5739 = vmatprep.subr.mxu0 %v10519_v30  ;;  %5810 = vmatprep.subr.mxu1 %v10521_v38  ;;  %12415 = vst [vmem:[#allocation118_spill] sm:$0xff] %v10537_v13  ;;  %v10543_v2 = vld [vmem:[#allocation11 + $0x108] sm:$0xff]  ;;  %v10545_v43 = vld [vmem:[#allocation11 + $0x118] sm:$0xff] }
 0x86a   :  { %12416 = vst [vmem:[#allocation119_spill] sm:$0xff] %v10539_v24  ;;  %5740 = vmatpush1.msra.mxu0 %v10525_v36  ;;  %5811 = vmatpush1.msra.mxu1 %v10527_v62  ;;  %12417 = vst [vmem:[#allocation120_spill] sm:$0xff] %v10543_v2  ;;  %v10549_v20 = vld [vmem:[#allocation11 + $0x100] sm:$0xff]  ;;  %v10551_v30 = vld [vmem:[#allocation11 + $0x110] sm:$0xff]  ;;  %v7289_v62 = vpop.eup %7288 }
 0x86b   :  { %12418 = vst [vmem:[#allocation121_spill] sm:$0xff] %v10545_v43  ;;  %5741 = vmatprep.subr.mxu0 %v10531_v8  ;;  %5812 = vmatprep.subr.mxu1 %v10533_v10  ;;  %12419 = vst [vmem:[#allocation122_spill] sm:$0xff] %v10549_v20  ;;  %v10555_v38 = vld [vmem:[#allocation11 + $0xe8] sm:$0xff]  ;;  %v10557_v36 = vld [vmem:[#allocation11 + $0xf8] sm:$0xff]  ;;  %v7291_v29 = vpop.eup %7290 }
 0x86c   :  { %12420 = vst [vmem:[#allocation123_spill] sm:$0xff] %v10551_v30  ;;  %5742 = vmatpush1.msra.mxu0 %v10537_v13  ;;  %5813 = vmatpush1.msra.mxu1 %v10539_v24  ;;  %12421 = vst [vmem:[#allocation124_spill] sm:$0xff] %v10555_v38  ;;  %v10561_v8 = vld [vmem:[#allocation11 + $0xe0] sm:$0xff]  ;;  %v10563_v10 = vld [vmem:[#allocation11 + $0xf0] sm:$0xff]  ;;  %v7293_v42 = vpop.eup %7292 }
 0x86d   :  { %12422 = vst [vmem:[#allocation125_spill] sm:$0xff] %v10557_v36  ;;  %5743 = vmatprep.subr.mxu0 %v10543_v2  ;;  %5814 = vmatprep.subr.mxu1 %v10545_v43  ;;  %12423 = vst [vmem:[#allocation126_spill] sm:$0xff] %v10561_v8  ;;  %v10567_v13 = vld [vmem:[#allocation11 + $0xc8] sm:$0xff]  ;;  %v10569_v24 = vld [vmem:[#allocation11 + $0xd8] sm:$0xff]  ;;  %v7295_v27 = vpop.eup %7294  ;;  %v5425_v12 = vadd.f32 1.0, %v7293_v42 }
 0x86e   :  { %12424 = vst [vmem:[#allocation127_spill] sm:$0xff] %v10563_v10  ;;  %5744 = vmatpush1.msra.mxu0 %v10549_v20  ;;  %5815 = vmatpush1.msra.mxu1 %v10551_v30  ;;  %12425 = vst [vmem:[#allocation128_spill] sm:$0xff] %v10567_v13  ;;  %v10573_v2 = vld [vmem:[#allocation11 + $0xc0] sm:$0xff]  ;;  %v10575_v43 = vld [vmem:[#allocation11 + $0xd0] sm:$0xff]  ;;  %v5426_v26 = vadd.f32 1.0, %v7295_v27 }
 0x86f   :  { %12426 = vst [vmem:[#allocation129_spill] sm:$0xff] %v10569_v24  ;;  %5745 = vmatprep.subr.mxu0 %v10555_v38  ;;  %5816 = vmatprep.subr.mxu1 %v10557_v36  ;;  %12427 = vst [vmem:[#allocation130_spill] sm:$0xff] %v10573_v2  ;;  %v10579_v20 = vld [vmem:[#allocation11 + $0xa8] sm:$0xff]  ;;  %v10581_v30 = vld [vmem:[#allocation11 + $0xb8] sm:$0xff]  ;;  %7304 = vrcp.f32 %v5425_v12 }
 0x870   :  { %12428 = vst [vmem:[#allocation131_spill] sm:$0xff] %v10575_v43  ;;  %5746 = vmatpush1.msra.mxu0 %v10561_v8  ;;  %5817 = vmatpush1.msra.mxu1 %v10563_v10  ;;  %12429 = vst [vmem:[#allocation132_spill] sm:$0xff] %v10579_v20  ;;  %v10585_v38 = vld [vmem:[#allocation11 + $0xa0] sm:$0xff]  ;;  %v10587_v36 = vld [vmem:[#allocation11 + $0xb0] sm:$0xff]  ;;  %7306 = vrcp.f32 %v5426_v26 }
 0x871   :  { %12430 = vst [vmem:[#allocation133_spill] sm:$0xff] %v10581_v30  ;;  %v7297_v39 = vpop.eup %7296  ;;  %5747 = vmatprep.subr.mxu0 %v10567_v13  ;;  %5818 = vmatprep.subr.mxu1 %v10569_v24  ;;  %12431 = vst [vmem:[#allocation134_spill] sm:$0xff] %v10587_v36  ;;  %v10591_v10 = vld [vmem:[#allocation11 + $0x88] sm:$0xff]  ;;  %v10593_v8 = vld [vmem:[#allocation11 + $0x98] sm:$0xff] }
 0x872   :  { %v7299_v47 = vpop.eup %7298  ;;  %5748 = vmatpush1.msra.mxu0 %v10573_v2  ;;  %5819 = vmatpush1.msra.mxu1 %v10575_v43  ;;  %v10597_v24 = vld [vmem:[#allocation11 + $0x80] sm:$0xff]  ;;  %v10599_v13 = vld [vmem:[#allocation11 + $0x90] sm:$0xff]  ;;  %v5433_v42 = vmul.f32 %v7297_v39, %v7289_v62  ;;  %v10603_v43 = vld [vmem:[#allocation11 + $0x68] sm:$0xff] }
 0x873   :  { %v7301_v5 = vpop.eup %7300  ;;  %5749 = vmatprep.subr.mxu0 %v10579_v20  ;;  %5820 = vmatprep.subr.mxu1 %v10581_v30  ;;  %v10605_v2 = vld [vmem:[#allocation11 + $0x78] sm:$0xff]  ;;  %v5434_v25 = vmul.f32 %v7299_v47, %v7291_v29  ;;  %v10610_v30 = vld [vmem:[#allocation11 + $0x60] sm:$0xff]  ;;  %v10612_v20 = vld [vmem:[#allocation11 + $0x70] sm:$0xff] }
 0x874   :  { %v7303_v35 = vpop.eup %7302  ;;  %5750 = vmatpush1.msra.mxu0 %v10585_v38  ;;  %5821 = vmatpush1.msra.mxu1 %v10587_v36  ;;  %v5431_v27 = vmul.f32 %v7301_v5, %v10066_v7  ;;  %12432 = vst [vmem:[#allocation135_spill] sm:$0xff] %v10612_v20  ;;  %v10617_v62 = vld [vmem:[#allocation11 + $0x48] sm:$0xff]  ;;  %v10619_v36 = vld [vmem:[#allocation11 + $0x58] sm:$0xff]  ;;  %v10625_v5 = vld [vmem:[#allocation11 + $0x40] sm:$0xff] }
 0x875   :  { %5751 = vmatprep.subr.mxu0 %v10591_v10  ;;  %5822 = vmatprep.subr.mxu1 %v10593_v8  ;;  %v5432_v39 = vmul.f32 %v7303_v35, %v10070_v46  ;;  %12433 = vst [vmem:[#allocation136_spill] sm:$0xff] %v10617_v62  ;;  %12434 = vst [vmem:[#allocation137_spill] sm:$0xff] %v10619_v36  ;;  %v10627_v29 = vld [vmem:[#allocation11 + $0x50] sm:$0xff]  ;;  %v10633_v35 = vld [vmem:[#allocation11 + $0x28] sm:$0xff] }
 0x876   :  { %5752 = vmatpush1.msra.mxu0 %v10597_v24  ;;  %5823 = vmatpush1.msra.mxu1 %v10599_v13  ;;  %v10621_v7 = vadd.f32 %v5433_v42, %v5431_v27  ;;  %12435 = vst [vmem:[#allocation138_spill] sm:$0xff] %v10625_v5  ;;  %12436 = vst [vmem:[#allocation139_spill] sm:$0xff] %v10627_v29  ;;  %v10635_v12 = vld [vmem:[#allocation11 + $0x38] sm:$0xff]  ;;  %v10640_v26 = vld [vmem:[#allocation11 + $0x20] sm:$0xff] }
 0x877   :  { %5753 = vmatprep.subr.mxu0 %v10603_v43  ;;  %5824 = vmatprep.subr.mxu1 %v10605_v2  ;;  %v10629_v46 = vadd.f32 %v5434_v25, %v5432_v39  ;;  %12437 = vst [vmem:[#allocation140_spill] sm:$0xff] %v10633_v35  ;;  %12438 = vst [vmem:[#allocation141_spill] sm:$0xff] %v10635_v12  ;;  %v10642_v47 = vld [vmem:[#allocation11 + $0x30] sm:$0xff]  ;;  %v10647_v25 = vld [vmem:[#allocation11 + $0x8] sm:$0xff] }
 0x878   :  { %5754 = vmatpush1.msra.mxu0 %v10610_v30  ;;  %5825 = vmatpush1.msra.mxu1 %v10612_v20  ;;  %7308 = vtanh.f32 %v10621_v7  ;;  %12439 = vst [vmem:[#allocation142_spill] sm:$0xff] %v10640_v26  ;;  %12440 = vst [vmem:[#allocation143_spill] sm:$0xff] %v10642_v47  ;;  %v10649_v42 = vld [vmem:[#allocation11 + $0x18] sm:$0xff]  ;;  %v10653_v27 = vld [vmem:[#allocation11] sm:$0xff] }
 0x879   :  { %5755 = vmatprep.subr.mxu0 %v10617_v62  ;;  %5826 = vmatprep.subr.mxu1 %v10619_v36  ;;  %7310 = vtanh.f32 %v10629_v46  ;;  %12441 = vst [vmem:[#allocation144_spill] sm:$0xff] %v10647_v25  ;;  %12442 = vst [vmem:[#allocation145_spill] sm:$0xff] %v10649_v42  ;;  %v10655_v39 = vld [vmem:[#allocation11 + $0x10] sm:$0xff] }
 0x87a   :  { %5756 = vmatpush1.msra.mxu0 %v10625_v5  ;;  %5827 = vmatpush1.msra.mxu1 %v10627_v29  ;;  %12443 = vst [vmem:[#allocation146_spill] sm:$0xff] %v10653_v27  ;;  %12444 = vst [vmem:[#allocation147_spill] sm:$0xff] %v10655_v39  ;;  %v7411_v20 = vld [vmem:[#allocation8 + $0x1d8] sm:$0xff] }
 0x87b   :  { %5757 = vmatprep.subr.mxu0 %v10633_v35  ;;  %5828 = vmatprep.subr.mxu1 %v10635_v12  ;;  %v7406_v12 = vld [vmem:[#allocation8 + $0x1e8] sm:$0xff]  ;;  %v7407_v35 = vld [vmem:[#allocation8 + $0x1f8] sm:$0xff] }
 0x87c   :  { %5758 = vmatpush1.msra.mxu0 %v10640_v26  ;;  %5829 = vmatpush1.msra.mxu1 %v10642_v47  ;;  %v7305_v29 = vpop.eup %7304 }
 0x87d   :  { %5759 = vmatprep.subr.mxu0 %v10647_v25  ;;  %5830 = vmatprep.subr.mxu1 %v10649_v42  ;;  %v7307_v26 = vpop.eup %7306 }
 0x87e   :  { %5760 = vmatpush1.msra.mxu0 %v10653_v27  ;;  %5831 = vmatpush1.msra.mxu1 %v10655_v39  ;;  %v7408_v39 = vld [vmem:[#allocation8 + $0x1e0] sm:$0xff] }
 0x87f   :  { %5793 = vmatprep.mubr.f32.mxu0 %v11620_v31  ;;  %5864 = vmatprep.mubr.f32.mxu1 %v11620_v31 }
 0x880   :  { %5994 = vmatprep.subr.mxu0 %v7406_v12  ;;  %6065 = vmatprep.subr.mxu1 %v7407_v35  ;;  %v7409_v12 = vld [vmem:[#allocation8 + $0x1f0] sm:$0xff]  ;;  %v7410_v35 = vld [vmem:[#allocation8 + $0x1c8] sm:$0xff] }
 0x885   :  { %v7309_v5 = vpop.eup %7308 }
 0x886   :  { %v7311_v47 = vpop.eup %7310  ;;  %v5439_v36 = vmul.f32 %v7309_v5, %v7305_v29  ;;  %v7412_v5 = vld [vmem:[#allocation8 + $0x1c0] sm:$0xff]  ;;  %v7415_v29 = vld [vmem:[#allocation8 + $0x1b8] sm:$0xff] }
 0x887   :  { %v5440_v25 = vmul.f32 %v7311_v47, %v7307_v26  ;;  %v7416_v26 = vld [vmem:[#allocation8 + $0x1a0] sm:$0xff]  ;;  %v7417_v47 = vld [vmem:[#allocation8 + $0x1b0] sm:$0xff] }
 0x889   :  { %v5713_v62 = vcombine.low %v5439_v36, %v5440_v25  ;;  %v7413_v36 = vld [vmem:[#allocation8 + $0x1d0] sm:$0xff]  ;;  %v12481_v25 = vld [vmem:[#allocation47_spill] sm:$0xff] }
 0x88b   :  { %v5720_v42 = vrot.slane %v5713_v62, %v8261_v17  ;;  %v7414_v62 = vld [vmem:[#allocation8 + $0x1a8] sm:$0xff] }
 0x88d   :  { %v10667_v27 = vrot.slane %v5720_v42, %v8261_v17  ;;  %v12482_v42 = vld [vmem:[#allocation48_spill] sm:$0xff] }
 0x88f   :  { %5794 = vmatmul.mubr.f32.vlgmr.msra.gmra.mxu0 %v10667_v27  ;;  %5865 = vmatmul.mubr.f32.vlgmr.msra.gmra.mxu1 %v10667_v27 }
 0x890   :  { %5995 = vmatpush1.msra.mxu0 %v7408_v39  ;;  %6066 = vmatpush1.msra.mxu1 %v7409_v12  ;;  %v12484_v39 = vld [vmem:[#allocation50_spill] sm:$0xff]  ;;  %v12485_v12 = vld [vmem:[#allocation51_spill] sm:$0xff] }
 0x891   :  { %5996 = vmatprep.subr.mxu0 %v7410_v35  ;;  %6067 = vmatprep.subr.mxu1 %v7411_v20  ;;  %v12480_v20 = vld [vmem:[#allocation46_spill] sm:$0xff]  ;;  %v12486_v35 = vld [vmem:[#allocation52_spill] sm:$0xff] }
 0x892   :  { %5997 = vmatpush1.msra.mxu0 %v7412_v5  ;;  %6068 = vmatpush1.msra.mxu1 %v7413_v36  ;;  %v12487_v5 = vld [vmem:[#allocation53_spill] sm:$0xff]  ;;  %v12488_v36 = vld [vmem:[#allocation54_spill] sm:$0xff] }
 0x893   :  { %5998 = vmatprep.subr.mxu0 %v7414_v62  ;;  %6069 = vmatprep.subr.mxu1 %v7415_v29  ;;  %v12489_v62 = vld [vmem:[#allocation55_spill] sm:$0xff]  ;;  %v12490_v29 = vld [vmem:[#allocation56_spill] sm:$0xff] }
 0x894   :  { %5999 = vmatpush1.msra.mxu0 %v7416_v26  ;;  %6070 = vmatpush1.msra.mxu1 %v7417_v47  ;;  %v12491_v26 = vld [vmem:[#allocation57_spill] sm:$0xff]  ;;  %v12492_v47 = vld [vmem:[#allocation58_spill] sm:$0xff] }
 0x895   :  { %6000 = vmatprep.subr.mxu0 %v10096_v40  ;;  %6071 = vmatprep.subr.mxu1 %v10098_v44  ;;  %v12445_v40 = vld [vmem:[#allocation152_spill] sm:$0xff]  ;;  %v12446_v44 = vld [vmem:[#allocation153_spill] sm:$0xff] }
 0x896   :  { %6001 = vmatpush1.msra.mxu0 %v10100_v50  ;;  %6072 = vmatpush1.msra.mxu1 %v10102_v51  ;;  %v12447_v50 = vld [vmem:[#allocation154_spill] sm:$0xff]  ;;  %v12448_v51 = vld [vmem:[#allocation155_spill] sm:$0xff] }
 0x897   :  { %6002 = vmatprep.subr.mxu0 %v10104_v52  ;;  %6073 = vmatprep.subr.mxu1 %v10106_v53  ;;  %v12449_v52 = vld [vmem:[#allocation156_spill] sm:$0xff]  ;;  %v12450_v53 = vld [vmem:[#allocation157_spill] sm:$0xff] }
 0x898   :  { %6003 = vmatpush1.msra.mxu0 %v10110_v54  ;;  %6074 = vmatpush1.msra.mxu1 %v10112_v55  ;;  %v12451_v54 = vld [vmem:[#allocation158_spill] sm:$0xff]  ;;  %v12452_v55 = vld [vmem:[#allocation159_spill] sm:$0xff] }
 0x899   :  { %6004 = vmatprep.subr.mxu0 %v10116_v56  ;;  %6075 = vmatprep.subr.mxu1 %v10118_v57  ;;  %v12453_v56 = vld [vmem:[#allocation22_spill] sm:$0xff]  ;;  %v12454_v57 = vld [vmem:[#allocation19_spill] sm:$0xff] }
 0x89a   :  { %6005 = vmatpush1.msra.mxu0 %v10122_v58  ;;  %6076 = vmatpush1.msra.mxu1 %v10124_v59  ;;  %v12455_v58 = vld [vmem:[#allocation24_spill] sm:$0xff] }
 0x89b   :  { %6006 = vmatprep.subr.mxu0 %v10128_v63  ;;  %6077 = vmatprep.subr.mxu1 %v10130_v4  ;;  %v12456_v59 = vld [vmem:[#allocation20_spill] sm:$0xff]  ;;  %v12457_v63 = vld [vmem:[#allocation26_spill] sm:$0xff]  ;;  %v12458_v4 = vld [vmem:[#allocation21_spill] sm:$0xff] }
 0x89c   :  { %6007 = vmatpush1.msra.mxu0 %v10134_v11  ;;  %6078 = vmatpush1.msra.mxu1 %v10136_v16  ;;  %v12459_v11 = vld [vmem:[#allocation28_spill] sm:$0xff]  ;;  %v12460_v16 = vld [vmem:[#allocation23_spill] sm:$0xff] }
 0x89d   :  { %6008 = vmatprep.subr.mxu0 %v10140_v0  ;;  %6079 = vmatprep.subr.mxu1 %v10142_v14  ;;  %v12461_v0 = vld [vmem:[#allocation29_spill] sm:$0xff] }
 0x89e   :  { %6009 = vmatpush1.msra.mxu0 %v10146_v1  ;;  %6080 = vmatpush1.msra.mxu1 %v10148_v15  ;;  %v12462_v14 = vld [vmem:[#allocation25_spill] sm:$0xff]  ;;  %v12463_v1 = vld [vmem:[#allocation30_spill] sm:$0xff]  ;;  %v12464_v15 = vld [vmem:[#allocation27_spill] sm:$0xff] }
 0x89f   :  { %6010 = vmatprep.subr.mxu0 %v10152_v6  ;;  %6081 = vmatprep.subr.mxu1 %v10154_v19  ;;  %v12465_v6 = vld [vmem:[#allocation31_spill] sm:$0xff]  ;;  %v12466_v19 = vld [vmem:[#allocation32_spill] sm:$0xff] }
 0x8a0   :  { %6011 = vmatpush1.msra.mxu0 %v10158_v22  ;;  %6082 = vmatpush1.msra.mxu1 %v10160_v34  ;;  %v12467_v22 = vld [vmem:[#allocation33_spill] sm:$0xff]  ;;  %v12468_v34 = vld [vmem:[#allocation34_spill] sm:$0xff] }
 0x8a1   :  { %6012 = vmatprep.subr.mxu0 %v10164_v23  ;;  %6083 = vmatprep.subr.mxu1 %v10166_v18  ;;  %v12469_v23 = vld [vmem:[#allocation35_spill] sm:$0xff]  ;;  %v12470_v18 = vld [vmem:[#allocation36_spill] sm:$0xff] }
 0x8a2   :  { %6013 = vmatpush1.msra.mxu0 %v10170_v37  ;;  %6084 = vmatpush1.msra.mxu1 %v10172_v21  ;;  %v12471_v37 = vld [vmem:[#allocation37_spill] sm:$0xff]  ;;  %v12472_v21 = vld [vmem:[#allocation38_spill] sm:$0xff] }
 0x8a3   :  { %6014 = vmatprep.subr.mxu0 %v10176_v49  ;;  %6085 = vmatprep.subr.mxu1 %v10178_v9  ;;  %v12473_v49 = vld [vmem:[#allocation39_spill] sm:$0xff]  ;;  %v12474_v9 = vld [vmem:[#allocation40_spill] sm:$0xff] }
 0x8a4   :  { %6015 = vmatpush1.msra.mxu0 %v10182_v28  ;;  %6086 = vmatpush1.msra.mxu1 %v10184_v32  ;;  %v12475_v28 = vld [vmem:[#allocation41_spill] sm:$0xff]  ;;  %v12476_v32 = vld [vmem:[#allocation42_spill] sm:$0xff] }
 0x8a5   :  { %6016 = vmatprep.subr.mxu0 %v10188_v41  ;;  %6087 = vmatprep.subr.mxu1 %v10190_v33  ;;  %v12477_v41 = vld [vmem:[#allocation43_spill] sm:$0xff]  ;;  %v12478_v33 = vld [vmem:[#allocation44_spill] sm:$0xff] }
 0x8a6   :  { %6017 = vmatpush1.msra.mxu0 %v10194_v60  ;;  %6088 = vmatpush1.msra.mxu1 %v12445_v40  ;;  %v12479_v60 = vld [vmem:[#allocation45_spill] sm:$0xff]  ;;  %v12493_v40 = vld [vmem:[#allocation59_spill] sm:$0xff] }
 0x8a7   :  { %6018 = vmatprep.subr.mxu0 %v12446_v44  ;;  %6089 = vmatprep.subr.mxu1 %v12447_v50  ;;  %v12494_v44 = vld [vmem:[#allocation60_spill] sm:$0xff]  ;;  %v12495_v50 = vld [vmem:[#allocation61_spill] sm:$0xff] }
 0x8a8   :  { %6019 = vmatpush1.msra.mxu0 %v12448_v51  ;;  %6090 = vmatpush1.msra.mxu1 %v12449_v52  ;;  %v12496_v51 = vld [vmem:[#allocation62_spill] sm:$0xff]  ;;  %v12497_v52 = vld [vmem:[#allocation63_spill] sm:$0xff] }
 0x8a9   :  { %6020 = vmatprep.subr.mxu0 %v12450_v53  ;;  %6091 = vmatprep.subr.mxu1 %v12451_v54  ;;  %v12498_v53 = vld [vmem:[#allocation64_spill] sm:$0xff]  ;;  %v12499_v54 = vld [vmem:[#allocation65_spill] sm:$0xff] }
 0x8aa   :  { %6021 = vmatpush1.msra.mxu0 %v12452_v55  ;;  %6092 = vmatpush1.msra.mxu1 %v12453_v56  ;;  %v12500_v55 = vld [vmem:[#allocation66_spill] sm:$0xff]  ;;  %v12501_v56 = vld [vmem:[#allocation67_spill] sm:$0xff] }
 0x8ab   :  { %6022 = vmatprep.subr.mxu0 %v12454_v57  ;;  %6093 = vmatprep.subr.mxu1 %v12455_v58  ;;  %v12502_v57 = vld [vmem:[#allocation68_spill] sm:$0xff]  ;;  %v12503_v58 = vld [vmem:[#allocation69_spill] sm:$0xff] }
 0x8ac   :  { %6023 = vmatpush1.msra.mxu0 %v12456_v59  ;;  %6094 = vmatpush1.msra.mxu1 %v12457_v63  ;;  %v12504_v59 = vld [vmem:[#allocation70_spill] sm:$0xff]  ;;  %v12505_v63 = vld [vmem:[#allocation71_spill] sm:$0xff] }
 0x8ad   :  { %6024 = vmatprep.subr.mxu0 %v12458_v4  ;;  %6095 = vmatprep.subr.mxu1 %v12459_v11  ;;  %v12506_v4 = vld [vmem:[#allocation72_spill] sm:$0xff]  ;;  %v12507_v11 = vld [vmem:[#allocation73_spill] sm:$0xff] }
 0x8ae   :  { %6025 = vmatpush1.msra.mxu0 %v12460_v16  ;;  %6058 = vmatprep.mubr.f32.mxu0 %v11620_v31  ;;  %v12508_v16 = vld [vmem:[#allocation74_spill] sm:$0xff] }
 0x8af   :  { %6096 = vmatpush1.msra.mxu1 %v12461_v0  ;;  %6129 = vmatprep.mubr.f32.mxu1 %v11620_v31  ;;  %v12509_v0 = vld [vmem:[#allocation75_spill] sm:$0xff] }
 0x8b0   :  { %6059 = vmatmul.mubr.f32.vlgmr.msra.gmra.mxu0 %v10667_v27  ;;  %6130 = vmatmul.mubr.f32.vlgmr.msra.gmra.mxu1 %v10667_v27  ;;  %v12483_v27 = vld [vmem:[#allocation49_spill] sm:$0xff] }
 0x8b1   :  { %6366 = vmatprep.subr.mxu0 %v12462_v14  ;;  %6437 = vmatprep.subr.mxu1 %v12463_v1  ;;  %v12510_v14 = vld [vmem:[#allocation76_spill] sm:$0xff]  ;;  %v12511_v1 = vld [vmem:[#allocation77_spill] sm:$0xff] }
 0x8b2   :  { %6367 = vmatpush1.msra.mxu0 %v12464_v15  ;;  %6438 = vmatpush1.msra.mxu1 %v12465_v6  ;;  %v12512_v15 = vld [vmem:[#allocation78_spill] sm:$0xff]  ;;  %v12513_v6 = vld [vmem:[#allocation79_spill] sm:$0xff] }
 0x8b3   :  { %6368 = vmatprep.subr.mxu0 %v12466_v19  ;;  %6439 = vmatprep.subr.mxu1 %v12467_v22  ;;  %v12514_v19 = vld [vmem:[#allocation80_spill] sm:$0xff]  ;;  %v12515_v22 = vld [vmem:[#allocation81_spill] sm:$0xff] }
 0x8b4   :  { %6369 = vmatpush1.msra.mxu0 %v12468_v34  ;;  %6440 = vmatpush1.msra.mxu1 %v12469_v23  ;;  %v12516_v34 = vld [vmem:[#allocation82_spill] sm:$0xff]  ;;  %v12517_v23 = vld [vmem:[#allocation83_spill] sm:$0xff] }
 0x8b5   :  { %6370 = vmatprep.subr.mxu0 %v12470_v18  ;;  %6441 = vmatprep.subr.mxu1 %v12471_v37  ;;  %v12518_v18 = vld [vmem:[#allocation84_spill] sm:$0xff]  ;;  %v12519_v37 = vld [vmem:[#allocation85_spill] sm:$0xff] }
 0x8b6   :  { %6371 = vmatpush1.msra.mxu0 %v12472_v21  ;;  %6442 = vmatpush1.msra.mxu1 %v12473_v49  ;;  %v12520_v21 = vld [vmem:[#allocation86_spill] sm:$0xff]  ;;  %v12521_v49 = vld [vmem:[#allocation87_spill] sm:$0xff] }
 0x8b7   :  { %6372 = vmatprep.subr.mxu0 %v12474_v9  ;;  %6443 = vmatprep.subr.mxu1 %v12475_v28  ;;  %v12522_v9 = vld [vmem:[#allocation88_spill] sm:$0xff]  ;;  %v12523_v28 = vld [vmem:[#allocation89_spill] sm:$0xff] }
 0x8b8   :  { %6373 = vmatpush1.msra.mxu0 %v12476_v32  ;;  %6444 = vmatpush1.msra.mxu1 %v12477_v41  ;;  %v12524_v32 = vld [vmem:[#allocation90_spill] sm:$0xff]  ;;  %v12525_v41 = vld [vmem:[#allocation91_spill] sm:$0xff] }
 0x8b9   :  { %6374 = vmatprep.subr.mxu0 %v12478_v33  ;;  %6445 = vmatprep.subr.mxu1 %v12479_v60  ;;  %v12526_v33 = vld [vmem:[#allocation92_spill] sm:$0xff]  ;;  %v12527_v60 = vld [vmem:[#allocation93_spill] sm:$0xff] }
 0x8ba   :  { %6375 = vmatpush1.msra.mxu0 %v12480_v20  ;;  %6446 = vmatpush1.msra.mxu1 %v12481_v25 }
 0x8bb   :  { %6376 = vmatprep.subr.mxu0 %v12482_v42  ;;  %6447 = vmatprep.subr.mxu1 %v12483_v27 }
 0x8bc   :  { %6377 = vmatpush1.msra.mxu0 %v12484_v39  ;;  %6448 = vmatpush1.msra.mxu1 %v12485_v12 }
 0x8bd   :  { %6378 = vmatprep.subr.mxu0 %v12486_v35  ;;  %6449 = vmatprep.subr.mxu1 %v12487_v5 }
 0x8be   :  { %6379 = vmatpush1.msra.mxu0 %v12488_v36  ;;  %6450 = vmatpush1.msra.mxu1 %v12489_v62 }
 0x8bf   :  { %6380 = vmatprep.subr.mxu0 %v12490_v29  ;;  %6451 = vmatprep.subr.mxu1 %v12491_v26 }
 0x8c0   :  { %6381 = vmatpush1.msra.mxu0 %v12492_v47  ;;  %6452 = vmatpush1.msra.mxu1 %v12493_v40 }
 0x8c1   :  { %6382 = vmatprep.subr.mxu0 %v12494_v44  ;;  %6453 = vmatprep.subr.mxu1 %v12495_v50 }
 0x8c2   :  { %6383 = vmatpush1.msra.mxu0 %v12496_v51  ;;  %6454 = vmatpush1.msra.mxu1 %v12497_v52 }
 0x8c3   :  { %6384 = vmatprep.subr.mxu0 %v12498_v53  ;;  %6455 = vmatprep.subr.mxu1 %v12499_v54 }
 0x8c4   :  { %6385 = vmatpush1.msra.mxu0 %v12500_v55  ;;  %6456 = vmatpush1.msra.mxu1 %v12501_v56 }
 0x8c5   :  { %6386 = vmatprep.subr.mxu0 %v12502_v57  ;;  %6457 = vmatprep.subr.mxu1 %v12503_v58 }
 0x8c6   :  { %6387 = vmatpush1.msra.mxu0 %v12504_v59  ;;  %6458 = vmatpush1.msra.mxu1 %v12505_v63 }
 0x8c7   :  { %6388 = vmatprep.subr.mxu0 %v12506_v4  ;;  %6459 = vmatprep.subr.mxu1 %v12507_v11 }
 0x8c8   :  { %6389 = vmatpush1.msra.mxu0 %v12508_v16  ;;  %6460 = vmatpush1.msra.mxu1 %v12509_v0 }
 0x8c9   :  { %6390 = vmatprep.subr.mxu0 %v12510_v14  ;;  %6461 = vmatprep.subr.mxu1 %v12511_v1 }
 0x8ca   :  { %6391 = vmatpush1.msra.mxu0 %v12512_v15  ;;  %6462 = vmatpush1.msra.mxu1 %v12513_v6 }
 0x8cb   :  { %6392 = vmatprep.subr.mxu0 %v12514_v19  ;;  %6463 = vmatprep.subr.mxu1 %v12515_v22 }
 0x8cc   :  { %6393 = vmatpush1.msra.mxu0 %v12516_v34  ;;  %6464 = vmatpush1.msra.mxu1 %v12517_v23  ;;  %v12528_v23 = vld [vmem:[#allocation94_spill] sm:$0xff] }
 0x8cd   :  { %6394 = vmatprep.subr.mxu0 %v12518_v18  ;;  %6465 = vmatprep.subr.mxu1 %v12519_v37 }
 0x8ce   :  { %6395 = vmatpush1.msra.mxu0 %v12520_v21  ;;  %6466 = vmatpush1.msra.mxu1 %v12521_v49 }
 0x8cf   :  { %6396 = vmatprep.subr.mxu0 %v12522_v9  ;;  %6467 = vmatprep.subr.mxu1 %v12523_v28 }
 0x8d0   :  { %6397 = vmatpush1.msra.mxu0 %v12524_v32  ;;  %6430 = vmatprep.mubr.f32.mxu0 %v11620_v31  ;;  %v5927_v32 = vld [vmem:[#allocation2 + $0x7] ss:$8 sm:$0xf] }
 0x8d1   :  { %6468 = vmatpush1.msra.mxu1 %v12525_v41  ;;  %6501 = vmatprep.mubr.f32.mxu1 %v11620_v31  ;;  %v5929_v41 = vld [vmem:[#allocation2 + $0x27] ss:$8 sm:$0xf] }
 0x8d2   :  { %6526 = vmatprep.subr.mxu0 %v12526_v33  ;;  %6597 = vmatprep.subr.mxu1 %v12527_v60 }
 0x91f   :  { %v5635_v20 = vpop.f32.mrf.mxu0  ;;  %v5706_v25 = vpop.f32.mrf.mxu1 }
 0x921   :  { %v5637_v42 = vpop.f32.mrf.mxu0  ;;  %v5708_v39 = vpop.f32.mrf.mxu1 }
 0x94f   :  { %v5795_v27 = vpop.f32.mrf.mxu0  ;;  %v5866_v36 = vpop.f32.mrf.mxu1 }
 0x950   :  { %v5796_v12 = vadd.f32 %v5795_v27, %v5635_v20  ;;  %v5867_v51 = vadd.f32 %v5866_v36, %v5706_v25 }
 0x951   :  { %v5797_v35 = vpop.f32.mrf.mxu0  ;;  %v5868_v40 = vpop.f32.mrf.mxu1 }
 0x952   :  { %v5871_v5 = vadd.f32 %v5796_v12, %v8412_v45  ;;  %v5798_v62 = vadd.f32 %v5797_v35, %v5637_v42  ;;  %v5869_v44 = vadd.f32 %v5868_v40, %v5708_v39  ;;  %v5873_v54 = vadd.f32 %v5867_v51, %v8427_v3  ;;  %v12529_v51 = vld [vmem:[#allocation95_spill] sm:$0xff] }
 0x954   :  { %v6909_v29 = vmul.f32 -1.442695, %v5871_v5  ;;  %v5872_v26 = vadd.f32 %v5798_v62, %v8416_v48  ;;  %v5874_v50 = vadd.f32 %v5869_v44, %v8422_v61 }
 0x956   :  { %7312 = vpow2.f32 %v6909_v29  ;;  %v6910_v47 = vmul.f32 -1.442695, %v5872_v26  ;;  %v6911_v52 = vmul.f32 -1.442695, %v5874_v50 }
 0x958   :  { %7314 = vpow2.f32 %v6910_v47 }
 0x959   :  { %7316 = vpow2.f32 %v6911_v52  ;;  %v12530_v52 = vld [vmem:[#allocation96_spill] sm:$0xff] }
 0x963   :  { %v7313_v53 = vpop.eup %7312 }
 0x964   :  { %v5878_v55 = vadd.f32 1.0, %v7313_v53 }
 0x965   :  { %v7315_v56 = vpop.eup %7314 }
 0x966   :  { %7318 = vrcp.f32 %v5878_v55  ;;  %v5884_v57 = vadd.f32 1.0, %v7315_v56  ;;  %v7317_v63 = vpop.eup %7316  ;;  %v12531_v55 = vld [vmem:[#allocation97_spill] sm:$0xff]  ;;  %v12532_v56 = vld [vmem:[#allocation160_spill] sm:$0xff] }
 0x967   :  { %7320 = vtanh.f32 %v5873_v54  ;;  %v5891_v6 = vadd.f32 1.0, %v7317_v63  ;;  %v12534_v63 = vld [vmem:[#allocation99_spill] sm:$0xff] }
 0x968   :  { %7322 = vrcp.f32 %v5884_v57 }
 0x969   :  { %7324 = vrcp.f32 %v5891_v6  ;;  %v12538_v6 = vld [vmem:[#allocation103_spill] sm:$0xff] }
 0x970   :  { %v6060_v58 = vpop.f32.mrf.mxu0  ;;  %v6131_v59 = vpop.f32.mrf.mxu1 }
 0x972   :  { %v6062_v4 = vpop.f32.mrf.mxu0  ;;  %v6133_v11 = vpop.f32.mrf.mxu1 }
 0x973   :  { %v7319_v16 = vpop.eup %7318  ;;  %v6140_v0 = vcombine.low %v6060_v58, %v6062_v4  ;;  %v6141_v14 = vcombine.low %v6131_v59, %v6133_v11  ;;  %v12533_v59 = vld [vmem:[#allocation98_spill] sm:$0xff] }
 0x974   :  { %v7321_v1 = vpop.eup %7320 }
 0x975   :  { %v7323_v15 = vpop.eup %7322  ;;  %v6148_v19 = vrot.slane %v6140_v0, %v8261_v17  ;;  %v6155_v22 = vrot.slane %v6141_v14, %v8261_v17  ;;  %v5895_v34 = vmul.f32 %v7321_v1, %v7319_v16  ;;  %v12535_v16 = vld [vmem:[#allocation100_spill] sm:$0xff]  ;;  %v12536_v0 = vld [vmem:[#allocation101_spill] sm:$0xff] }
 0x976   :  { %v5894_v18 = vmul.f32 %v7323_v15, %v12528_v23  ;;  %v7325_v5 = vpop.eup %7324  ;;  %v12537_v15 = vld [vmem:[#allocation102_spill] sm:$0xff] }
 0x977   :  { %v6156_v37 = vcombine.low %v6148_v19, %v6155_v22  ;;  %v6157_v21 = vcombine.high %v6148_v19, %v6155_v22  ;;  %v12539_v22 = vld [vmem:[#allocation104_spill] sm:$0xff]  ;;  %v12541_v23 = vld [vmem:[#allocation106_spill] sm:$0xff] }
 0x978   :  { %v10802_v49 = vadd.f32 %v5895_v34, %v5894_v18  ;;  %v12540_v34 = vld [vmem:[#allocation105_spill] sm:$0xff]  ;;  %v12542_v18 = vld [vmem:[#allocation107_spill] sm:$0xff] }
 0x979   :  { %v6164_v9 = vrot.slane %v6156_v37, %v8261_v17  ;;  %v6171_v28 = vrot.slane %v6157_v21, %v8261_v17  ;;  %v12543_v37 = vld [vmem:[#allocation108_spill] sm:$0xff]  ;;  %v12544_v21 = vld [vmem:[#allocation109_spill] sm:$0xff] }
 0x97a   :  { %7326 = vtanh.f32 %v10802_v49 }
 0x97b   :  { %v6174_v33 = vadd.f32 %v6164_v9, %v5927_v32  ;;  %v6175_v60 = vadd.f32 %v6171_v28, %v5929_v41  ;;  %v12545_v9 = vld [vmem:[#allocation110_spill] sm:$0xff]  ;;  %v12546_v28 = vld [vmem:[#allocation111_spill] sm:$0xff]  ;;  %v12547_v32 = vld [vmem:[#allocation112_spill] sm:$0xff] }
 0x97c   :  { %v12548_v41 = vld [vmem:[#allocation113_spill] sm:$0xff] }
 0x97d   :  { %v6914_v20 = vmul.f32 -1.442695, %v6174_v33  ;;  %v6915_v25 = vmul.f32 -1.442695, %v6175_v60  ;;  %v6190_v42 = vrot.slane %v6174_v33, 1  ;;  %v6191_v27 = vrot.slane %v6175_v60, 1 }
 0x97e   :  { %v6212_v35 = vrot.slane %v6174_v33, 3  ;;  %v6213_v36 = vrot.slane %v6175_v60, 3  ;;  %v6206_v29 = vrot.slane %v6174_v33, 2  ;;  %v6207_v26 = vrot.slane %v6175_v60, 2  ;;  %v12549_v33 = vld [vmem:[#allocation114_spill] sm:$0xff]  ;;  %v12550_v60 = vld [vmem:[#allocation115_spill] sm:$0xff] }
 0x97f   :  { %7328 = vpow2.f32 %v6914_v20  ;;  %v6916_v39 = vmul.f32 -1.442695, %v6190_v42  ;;  %v6917_v12 = vmul.f32 -1.442695, %v6191_v27  ;;  %v12551_v20 = vld [vmem:[#allocation116_spill] sm:$0xff]  ;;  %v12553_v42 = vld [vmem:[#allocation118_spill] sm:$0xff] }
 0x980   :  { %7330 = vpow2.f32 %v6915_v25  ;;  %v6918_v40 = vmul.f32 -1.442695, %v6212_v35  ;;  %v6919_v44 = vmul.f32 -1.442695, %v6213_v36  ;;  %v12552_v25 = vld [vmem:[#allocation117_spill] sm:$0xff]  ;;  %v12554_v27 = vld [vmem:[#allocation119_spill] sm:$0xff] }
 0x981   :  { %7332 = vpow2.f32 %v6916_v39  ;;  %v12556_v35 = vld [vmem:[#allocation121_spill] sm:$0xff]  ;;  %v12557_v36 = vld [vmem:[#allocation122_spill] sm:$0xff] }
 0x982   :  { %7334 = vpow2.f32 %v6917_v12  ;;  %v12555_v12 = vld [vmem:[#allocation120_spill] sm:$0xff] }
 0x983   :  { %7336 = vtanh.f32 %v6206_v29 }
 0x984   :  { %7338 = vtanh.f32 %v6207_v26  ;;  %v12559_v26 = vld [vmem:[#allocation124_spill] sm:$0xff] }
 0x985   :  { %7340 = vpow2.f32 %v6918_v40 }
 0x986   :  { %7342 = vpow2.f32 %v6919_v44  ;;  %v12561_v44 = vld [vmem:[#allocation126_spill] sm:$0xff] }
 0x987   :  { %v7327_v62 = vpop.eup %7326 }
 0x988   :  { %v5898_v47 = vmul.f32 %v7327_v62, %v7325_v5  ;;  %v12558_v62 = vld [vmem:[#allocation123_spill] sm:$0xff] }
 0x98a   :  { %v5906_v50 = vrot.slane %v5898_v47, %v8261_v17  ;;  %6431 = vmatmul.mubr.f32.vlgmr.msra.gmra.mxu0 %v5898_v47  ;;  %6502 = vmatmul.mubr.f32.vlgmr.msra.gmra.mxu1 %v5898_v47  ;;  %v12560_v47 = vld [vmem:[#allocation125_spill] sm:$0xff] }
 0x98b   :  { %6527 = vmatpush1.msra.mxu0 %v12529_v51  ;;  %6598 = vmatpush1.msra.mxu1 %v12530_v52  ;;  %v12563_v52 = vld [vmem:[#allocation128_spill] sm:$0xff] }
 0x98c   :  { %v7329_v53 = vpop.eup %7328  ;;  %v5907_v54 = vcombine.high %v5906_v50, %v5906_v50  ;;  %6912 = vst.sshfl [vmem:[#allocation3 + $0x6] sm:$0x1 pattern:$0x73625140] %v5906_v50  ;;  %6528 = vmatprep.subr.mxu0 %v12531_v55  ;;  %6599 = vmatprep.subr.mxu1 %v12532_v56  ;;  %v12562_v50 = vld [vmem:[#allocation127_spill] sm:$0xff]  ;;  %v12565_v56 = vld [vmem:[#allocation130_spill] sm:$0xff] }
 0x98d   :  { %v7331_v57 = vpop.eup %7330  ;;  %v6182_v58 = vadd.f32 1.0, %v7329_v53  ;;  %6529 = vmatpush1.msra.mxu0 %v12533_v59  ;;  %6600 = vmatpush1.msra.mxu1 %v12534_v63  ;;  %v12564_v53 = vld [vmem:[#allocation129_spill] sm:$0xff]  ;;  %v12567_v63 = vld [vmem:[#allocation132_spill] sm:$0xff] }
 0x98e   :  { %v7333_v4 = vpop.eup %7332  ;;  %v6183_v11 = vadd.f32 1.0, %v7331_v57  ;;  %6913 = vst.sshfl [vmem:[#allocation3 + $0xe] sm:$0x1 pattern:$0x73625140] %v5907_v54  ;;  %6530 = vmatprep.subr.mxu0 %v12535_v16  ;;  %6601 = vmatprep.subr.mxu1 %v12536_v0  ;;  %v12566_v57 = vld [vmem:[#allocation131_spill] sm:$0xff] }
 0x98f   :  { %v7335_v14 = vpop.eup %7334  ;;  %7344 = vrcp.f32 %v6182_v58  ;;  %v6200_v1 = vadd.f32 1.0, %v7333_v4  ;;  %6531 = vmatpush1.msra.mxu0 %v12537_v15  ;;  %6602 = vmatpush1.msra.mxu1 %v12538_v6  ;;  %v12568_v4 = vld [vmem:[#allocation133_spill] sm:$0xff]  ;;  %v12569_v16 = vld [vmem:[#allocation134_spill] sm:$0xff] }
 0x990   :  { %7346 = vrcp.f32 %v6183_v11  ;;  %v6201_v19 = vadd.f32 1.0, %v7335_v14  ;;  %6532 = vmatprep.subr.mxu0 %v12539_v22  ;;  %6603 = vmatprep.subr.mxu1 %v12540_v34  ;;  %v7337_v39 = vpop.eup %7336  ;;  %v12580_v22 = vld [vmem:[#allocation145_spill] sm:$0xff]  ;;  %v12581_v34 = vld [vmem:[#allocation146_spill] sm:$0xff] }
 0x991   :  { %7348 = vrcp.f32 %v6200_v1  ;;  %6533 = vmatpush1.msra.mxu0 %v12541_v23  ;;  %6604 = vmatpush1.msra.mxu1 %v12542_v18  ;;  %v7339_v5 = vpop.eup %7338  ;;  %v12582_v23 = vld [vmem:[#allocation147_spill] sm:$0xff] }
 0x992   :  { %7350 = vrcp.f32 %v6201_v19  ;;  %6534 = vmatprep.subr.mxu0 %v12543_v37  ;;  %6605 = vmatprep.subr.mxu1 %v12544_v21  ;;  %v7341_v29 = vpop.eup %7340  ;;  %v12578_v19 = vld [vmem:[#allocation143_spill] sm:$0xff] }
 0x993   :  { %6535 = vmatpush1.msra.mxu0 %v12545_v9  ;;  %6606 = vmatpush1.msra.mxu1 %v12546_v28  ;;  %v7343_v40 = vpop.eup %7342  ;;  %v6222_v55 = vadd.f32 1.0, %v7341_v29  ;;  %v6729_v29 = vld [vmem:[#allocation14 + $0x20] sm:$0xff] }
 0x994   :  { %6536 = vmatprep.subr.mxu0 %v12547_v32  ;;  %6607 = vmatprep.subr.mxu1 %v12548_v41  ;;  %v6223_v59 = vadd.f32 1.0, %v7343_v40  ;;  %v6726_v40 = vld [vmem:[#allocation14 + $0x8] sm:$0xff] }
 0x995   :  { %6537 = vmatpush1.msra.mxu0 %v12549_v33  ;;  %6608 = vmatpush1.msra.mxu1 %v12550_v60  ;;  %7352 = vrcp.f32 %v6222_v55 }
 0x996   :  { %6538 = vmatprep.subr.mxu0 %v12551_v20  ;;  %6609 = vmatprep.subr.mxu1 %v12552_v25  ;;  %7354 = vrcp.f32 %v6223_v59  ;;  %v6740_v20 = vld [vmem:[#allocation14 + $0x78] sm:$0xff]  ;;  %v6739_v25 = vld [vmem:[#allocation14 + $0x70] sm:$0xff] }
 0x997   :  { %6539 = vmatpush1.msra.mxu0 %v12553_v42  ;;  %6610 = vmatpush1.msra.mxu1 %v12554_v27  ;;  %v6737_v42 = vld [vmem:[#allocation14 + $0x60] sm:$0xff]  ;;  %v6736_v27 = vld [vmem:[#allocation14 + $0x58] sm:$0xff] }
 0x998   :  { %6540 = vmatprep.subr.mxu0 %v12555_v12  ;;  %6611 = vmatprep.subr.mxu1 %v12556_v35  ;;  %v6734_v12 = vld [vmem:[#allocation14 + $0x48] sm:$0xff]  ;;  %v6733_v35 = vld [vmem:[#allocation14 + $0x40] sm:$0xff] }
 0x999   :  { %6541 = vmatpush1.msra.mxu0 %v12557_v36  ;;  %6612 = vmatpush1.msra.mxu1 %v12558_v62  ;;  %v6731_v36 = vld [vmem:[#allocation14 + $0x30] sm:$0xff]  ;;  %v6730_v62 = vld [vmem:[#allocation14 + $0x28] sm:$0xff] }
 0x99a   :  { %6542 = vmatprep.subr.mxu0 %v12559_v26  ;;  %6613 = vmatprep.subr.mxu1 %v12560_v47  ;;  %v6728_v26 = vld [vmem:[#allocation14 + $0x18] sm:$0xff]  ;;  %v6727_v47 = vld [vmem:[#allocation14 + $0x10] sm:$0xff] }
 0x99b   :  { %6543 = vmatpush1.msra.mxu0 %v12561_v44  ;;  %6614 = vmatpush1.msra.mxu1 %v12562_v50  ;;  %v6725_v44 = vld [vmem:[#allocation14] sm:$0xff] }
 0x99c   :  { %v7345_v51 = vpop.eup %7344  ;;  %6544 = vmatprep.subr.mxu0 %v12563_v52  ;;  %6615 = vmatprep.subr.mxu1 %v12564_v53 }
 0x99d   :  { %v7347_v54 = vpop.eup %7346  ;;  %6545 = vmatpush1.msra.mxu0 %v12565_v56  ;;  %6616 = vmatpush1.msra.mxu1 %v12566_v57  ;;  %v6230_v14 = vmul.f32 %v7345_v51, %v7337_v39  ;;  %v6735_v39 = vld [vmem:[#allocation14 + $0x50] sm:$0xff] }
 0x99e   :  { %v7349_v58 = vpop.eup %7348  ;;  %6546 = vmatprep.subr.mxu0 %v12567_v63  ;;  %6617 = vmatprep.subr.mxu1 %v12568_v4  ;;  %v6231_v15 = vmul.f32 %v7347_v54, %v7339_v5  ;;  %v6732_v5 = vld [vmem:[#allocation14 + $0x38] sm:$0xff] }
 0x99f   :  { %v7351_v11 = vpop.eup %7350  ;;  %6547 = vmatpush1.msra.mxu0 %v10585_v38  ;;  %6618 = vmatpush1.msra.mxu1 %v12569_v16  ;;  %v6228_v0 = vmul.f32 %v7349_v58, %v10621_v7  ;;  %v12572_v7 = vld [vmem:[#allocation137_spill] sm:$0xff] }
 0x9a0   :  { %6548 = vmatprep.subr.mxu0 %v10591_v10  ;;  %6619 = vmatprep.subr.mxu1 %v10593_v8  ;;  %v6229_v1 = vmul.f32 %v7351_v11, %v10629_v46  ;;  %v12570_v10 = vld [vmem:[#allocation135_spill] sm:$0xff]  ;;  %v12571_v8 = vld [vmem:[#allocation136_spill] sm:$0xff] }
 0x9a1   :  { %6549 = vmatpush1.msra.mxu0 %v10597_v24  ;;  %6620 = vmatpush1.msra.mxu1 %v10599_v13  ;;  %v6232_v6 = vadd.f32 %v6230_v14, %v6228_v0  ;;  %v12573_v24 = vld [vmem:[#allocation138_spill] sm:$0xff]  ;;  %v12574_v13 = vld [vmem:[#allocation139_spill] sm:$0xff]  ;;  %v12575_v46 = vld [vmem:[#allocation140_spill] sm:$0xff] }
 0x9a2   :  { %6550 = vmatprep.subr.mxu0 %v10603_v43  ;;  %6621 = vmatprep.subr.mxu1 %v10605_v2  ;;  %v6233_v38 = vadd.f32 %v6231_v15, %v6229_v1  ;;  %v12576_v43 = vld [vmem:[#allocation141_spill] sm:$0xff]  ;;  %v12577_v2 = vld [vmem:[#allocation142_spill] sm:$0xff]  ;;  %v7353_v18 = vpop.eup %7352 }
 0x9a3   :  { %6551 = vmatpush1.msra.mxu0 %v10610_v30  ;;  %6622 = vmatpush1.msra.mxu1 %v12570_v10  ;;  %7356 = vtanh.f32 %v6232_v6  ;;  %v12579_v30 = vld [vmem:[#allocation144_spill] sm:$0xff]  ;;  %v7355_v37 = vpop.eup %7354 }
 0x9a4   :  { %6552 = vmatprep.subr.mxu0 %v12571_v8  ;;  %6623 = vmatprep.subr.mxu1 %v12572_v7  ;;  %7358 = vtanh.f32 %v6233_v38 }
 0x9a5   :  { %6553 = vmatpush1.msra.mxu0 %v12573_v24  ;;  %6624 = vmatpush1.msra.mxu1 %v12574_v13 }
 0x9a6   :  { %6554 = vmatprep.subr.mxu0 %v12575_v46  ;;  %6625 = vmatprep.subr.mxu1 %v12576_v43 }
 0x9a7   :  { %6555 = vmatpush1.msra.mxu0 %v12577_v2  ;;  %6626 = vmatpush1.msra.mxu1 %v12578_v19 }
 0x9a8   :  { %6556 = vmatprep.subr.mxu0 %v12579_v30  ;;  %6627 = vmatprep.subr.mxu1 %v12580_v22 }
 0x9a9   :  { %6557 = vmatpush1.msra.mxu0 %v12581_v34  ;;  %6590 = vmatprep.mubr.f32.mxu0 %v11620_v31 }
 0x9aa   :  { %6628 = vmatpush1.msra.mxu1 %v12582_v23  ;;  %6661 = vmatprep.mubr.f32.mxu1 %v11620_v31  ;;  %v6738_v31 = vld [vmem:[#allocation14 + $0x68] sm:$0xff] }
 0x9ab   :  { %6944 = vmatprep.subr.mxu0 %v6740_v20 }
 0x9b0   :  { %v7357_v21 = vpop.eup %7356 }
 0x9b1   :  { %v7359_v9 = vpop.eup %7358  ;;  %v6236_v28 = vmul.f32 %v7357_v21, %v7353_v18 }
 0x9b2   :  { %v6237_v32 = vmul.f32 %v7359_v9, %v7355_v37  ;;  %v6925_v37 = vld [vmem:[%s10899_s8] ss:$0 sm:$0xff] }
 0x9b4   :  { %v6510_v41 = vcombine.low %v6236_v28, %v6237_v32 }
 0x9b6   :  { %v6517_v33 = vrot.slane %v6510_v41, %v8261_v17 }
 0x9b8   :  { %v6524_v60 = vrot.slane %v6517_v33, %v8261_v17 }
 0x9ba   :  { %6591 = vmatmul.mubr.f32.vlgmr.msra.gmra.mxu0 %v6524_v60  ;;  %6662 = vmatmul.mubr.f32.vlgmr.msra.gmra.mxu1 %v6524_v60 }
 0x9bb   :  { %6945 = vmatpush3.msra.mxu0 %v6740_v20 }
 0x9bc   :  { %6946 = vmatprep.subr.mxu0 %v6739_v25 }
 0x9bd   :  { %6947 = vmatpush3.msra.mxu0 %v6739_v25 }
 0x9be   :  { %6948 = vmatprep.subr.mxu0 %v6738_v31 }
 0x9bf   :  { %6949 = vmatpush3.msra.mxu0 %v6738_v31 }
 0x9c0   :  { %6950 = vmatprep.subr.mxu0 %v6737_v42 }
 0x9c1   :  { %6951 = vmatpush3.msra.mxu0 %v6737_v42 }
 0x9c2   :  { %6952 = vmatprep.subr.mxu0 %v6736_v27 }
 0x9c3   :  { %6953 = vmatpush3.msra.mxu0 %v6736_v27 }
 0x9c4   :  { %6954 = vmatprep.subr.mxu0 %v6735_v39 }
 0x9c5   :  { %6955 = vmatpush3.msra.mxu0 %v6735_v39 }
 0x9c6   :  { %6956 = vmatprep.subr.mxu0 %v6734_v12 }
 0x9c7   :  { %6957 = vmatpush3.msra.mxu0 %v6734_v12 }
 0x9c8   :  { %6958 = vmatprep.subr.mxu0 %v6733_v35 }
 0x9c9   :  { %6959 = vmatpush3.msra.mxu0 %v6733_v35 }
 0x9ca   :  { %6960 = vmatprep.subr.mxu0 %v6732_v5 }
 0x9cb   :  { %6961 = vmatpush3.msra.mxu0 %v6732_v5 }
 0x9cc   :  { %6962 = vmatprep.subr.mxu0 %v6731_v36 }
 0x9cd   :  { %6963 = vmatpush3.msra.mxu0 %v6731_v36 }
 0x9ce   :  { %6964 = vmatprep.subr.mxu0 %v6730_v62 }
 0x9cf   :  { %6965 = vmatpush3.msra.mxu0 %v6730_v62 }
 0x9d0   :  { %6966 = vmatprep.subr.mxu0 %v6729_v29 }
 0x9d1   :  { %6967 = vmatpush3.msra.mxu0 %v6729_v29 }
 0x9d2   :  { %6968 = vmatprep.subr.mxu0 %v6728_v26 }
 0x9d3   :  { %6969 = vmatpush3.msra.mxu0 %v6728_v26 }
 0x9d4   :  { %6970 = vmatprep.subr.mxu0 %v6727_v47 }
 0x9d5   :  { %6971 = vmatpush3.msra.mxu0 %v6727_v47 }
 0x9d6   :  { %6972 = vmatprep.subr.mxu0 %v6726_v40 }
 0x9d7   :  { %6973 = vmatpush3.msra.mxu0 %v6726_v40 }
 0x9d8   :  { %6974 = vmatprep.subr.mxu0 %v6725_v44 }
 0x9d9   :  { %6975 = vmatpush3.msra.mxu0 %v6725_v44 }
 0xa4a   :  { %v6432_v50 = vpop.f32.mrf.mxu0  ;;  %v6503_v51 = vpop.f32.mrf.mxu1 }
 0xa4c   :  { %v6434_v52 = vpop.f32.mrf.mxu0  ;;  %v6505_v54 = vpop.f32.mrf.mxu1 }
 0xa7a   :  { %v6592_v53 = vpop.f32.mrf.mxu0  ;;  %v6663_v58 = vpop.f32.mrf.mxu1 }
 0xa7b   :  { %v6593_v55 = vadd.f32 %v6592_v53, %v6432_v50  ;;  %v6664_v1 = vadd.f32 %v6663_v58, %v6503_v51 }
 0xa7c   :  { %v6594_v56 = vpop.f32.mrf.mxu0  ;;  %v6665_v16 = vpop.f32.mrf.mxu1 }
 0xa7d   :  { %v6668_v57 = vadd.f32 %v6593_v55, %v8412_v45  ;;  %v6595_v59 = vadd.f32 %v6594_v56, %v6434_v52  ;;  %v6666_v0 = vadd.f32 %v6665_v16, %v6505_v54  ;;  %v6670_v38 = vadd.f32 %v6664_v1, %v8427_v3 }
 0xa7f   :  { %v6920_v63 = vmul.f32 -1.442695, %v6668_v57  ;;  %v6669_v4 = vadd.f32 %v6595_v59, %v8416_v48  ;;  %v6671_v14 = vadd.f32 %v6666_v0, %v8422_v61 }
 0xa81   :  { %7360 = vpow2.f32 %v6920_v63  ;;  %v6921_v11 = vmul.f32 -1.442695, %v6669_v4  ;;  %v6922_v15 = vmul.f32 -1.442695, %v6671_v14 }
 0xa83   :  { %7362 = vpow2.f32 %v6921_v11 }
 0xa84   :  { %7364 = vpow2.f32 %v6922_v15 }
 0xa8e   :  { %v7361_v6 = vpop.eup %7360 }
 0xa8f   :  { %v6675_v10 = vadd.f32 1.0, %v7361_v6 }
 0xa90   :  { %v7363_v8 = vpop.eup %7362 }
 0xa91   :  { %7366 = vrcp.f32 %v6675_v10  ;;  %v6681_v45 = vadd.f32 1.0, %v7363_v8  ;;  %v7365_v48 = vpop.eup %7364 }
 0xa92   :  { %7368 = vtanh.f32 %v6670_v38  ;;  %v6688_v46 = vadd.f32 1.0, %v7365_v48 }
 0xa93   :  { %7370 = vrcp.f32 %v6681_v45 }
 0xa94   :  { %7372 = vrcp.f32 %v6688_v46 }
 0xa9e   :  { %v7367_v7 = vpop.eup %7366 }
 0xa9f   :  { %v7369_v24 = vpop.eup %7368 }
 0xaa0   :  { %v7371_v13 = vpop.eup %7370  ;;  %v6692_v43 = vmul.f32 %v7369_v24, %v7367_v7 }
 0xaa1   :  { %v6691_v61 = vmul.f32 %v7371_v13, %v10802_v49  ;;  %v7373_v19 = vpop.eup %7372 }
 0xaa3   :  { %v6693_v2 = vadd.f32 %v6692_v43, %v6691_v61 }
 0xaa5   :  { %7374 = vtanh.f32 %v6693_v2 }
 0xab2   :  { %v7375_v3 = vpop.eup %7374 }
 0xab3   :  { %v6695_v30 = vmul.f32 %v7375_v3, %v7373_v19 }
 0xab5   :  { %v6703_v22 = vrot.slane %v6695_v30, %v8261_v17 }
 0xab7   :  { %v6704_v34 = vcombine.high %v6703_v22, %v6703_v22  ;;  %6923 = vst.sshfl [vmem:[#allocation3 + $0x7] sm:$0x1 pattern:$0x73625140] %v6703_v22 }
 0xab9   :  { %6924 = vst.sshfl [vmem:[#allocation3 + $0xf] sm:$0x1 pattern:$0x73625140] %v6704_v34 }
 0xabe   :  { %v6723_v23 = vld [vmem:[#allocation3] sm:$0xff] }
 0xabf   :  { %6976 = vmatprep.mubr.f32.mxu0 %v6723_v23 }
 0xac0   :  { %v6724_v18 = vld [vmem:[#allocation3 + $0x8] sm:$0xff] }
 0xac1   :  { %6977 = vmatmul.mubr.f32.vlgmr.msra.gmra.mxu0 %v6724_v18 }
 0xb81   :  { %v6978_v49 = vpop.f32.mrf.mxu0 }
 0xb82   :  { %v6820_v21 = vadd.f32 %v6978_v49, %v6925_v37 }
 0xb83   :  { %v6814_v9 = vpop.f32.mrf.mxu0 }
 0xb84   :  { %6824 = vst [vmem:[%s10900_s9 + $0x8] sm:$0xff] %v6820_v21  ;;  %v6815_v28 = vadd.f32 %v6925_v37, %v6814_v9 }
 0xb86   :  { %6823 = vst [vmem:[%s10900_s9] sm:$0xff] %v6815_v28 }
 0xb87   :  { %6829 = vsyncpa [#allocation5], 1 }
 0xb88   :  { %6830 = vsyncpa [#allocation7], 1 }
 0xb89   :  { %6831 = vsyncpa [#allocation10], 1 }
 0xb8a   :  { %6832 = vsyncpa [#allocation13], 1 }

</bundles_post_ra>
